<compile_context>
chip_gen: v7x
topology: tpu7x:2x2x1
jax: 0.10.0
libtpu: 0.0.40
codegen_flags: <defaults>
</compile_context>

<pallas_src>
import jax
import jax.numpy as jnp
from jax import lax
from jax.experimental import pallas as pl
from jax.experimental.pallas import tpu as pltpu

EPS = 1e-5            # nn.BatchNorm2d default eps
LANE = 128            # TPU lane width; channel padding target
HALO = 8              # leading/trailing zero rows of the G-layout (sublane-aligned)


def _round_up(x, m):
    return (x + m - 1) // m * m


def _vmem_limit_bytes():
    """Generation-aware scoped-VMEM limit (v5e/v6e: ~100 MiB, v7x: ~48 MiB)."""
    fallback = 32 * 1024 * 1024
    try:
        info_fn = getattr(pltpu, "get_tpu_info", None)
        if info_fn is None:
            return fallback
        info = info_fn()
        cap = None
        for name in ("vmem_capacity_bytes", "vmem_size_bytes", "vmem_bytes"):
            v = getattr(info, name, None)
            if isinstance(v, int) and v > 0:
                cap = v
                break
        if cap is None:
            return fallback
        return int(max(min(cap - 16 * 1024 * 1024, 100 * 1024 * 1024), fallback))
    except Exception:
        return fallback


# ---------------------------------------------------------------------------
# Kernel 1: conv1 (3x3) + per-image per-channel sum / sum-of-squares partials
# ---------------------------------------------------------------------------
def _conv_stats_call(x_g, w_taps, gmask, *, m, wp, vmem_limit):
    """x_g: [B, np2, Cp] bf16 G-layout input; w_taps: [9, Cp, Cp] bf16.

    Returns (y [B, m, Cp] bf16 masked conv output (interior rows only),
             s [B, 8, Cp] f32 per-image per-channel sum (row 0 valid),
             q [B, 8, Cp] f32 per-image per-channel sum of squares (row 0 valid)).
    """
    B, np2, cp = x_g.shape

    def kernel(x_ref, w_ref, gm_ref, y_ref, s_ref, q_ref, acc_ref):
        def tap(t):
            kh, kw = divmod(t, 3)
            return jnp.dot(x_ref[0, pl.ds(HALO - 1 + kh * wp + kw, m), :],
                           w_ref[t], preferred_element_type=jnp.float32)

        # First pair assigned directly; remaining taps added pairwise (fewer acc RMWs).
        acc_ref[...] = tap(0) + tap(1)
        acc_ref[...] += tap(2) + tap(3)
        acc_ref[...] += tap(4) + tap(5)
        acc_ref[...] += tap(6) + tap(7)
        acc_ref[...] += tap(8)

        # Zero the width-padding columns (lane-dense mask) so they do not pollute the
        # BN stats or conv2's taps.
        acc = acc_ref[...] * gm_ref[...]

        s_ref[0] = jnp.broadcast_to(jnp.sum(acc, axis=0, keepdims=True), (8, cp))
        q_ref[0] = jnp.broadcast_to(jnp.sum(acc * acc, axis=0, keepdims=True), (8, cp))
        y_ref[0] = acc.astype(jnp.bfloat16)

    return pl.pallas_call(
        kernel,
        grid=(B,),
        in_specs=[
            pl.BlockSpec((1, np2, cp), lambda b: (b, 0, 0)),
            pl.BlockSpec((9, cp, cp), lambda b: (0, 0, 0)),
            pl.BlockSpec((m, cp), lambda b: (0, 0)),
        ],
        out_specs=(
            pl.BlockSpec((1, m, cp), lambda b: (b, 0, 0)),
            pl.BlockSpec((1, 8, cp), lambda b: (b, 0, 0)),
            pl.BlockSpec((1, 8, cp), lambda b: (b, 0, 0)),
        ),
        out_shape=(
            jax.ShapeDtypeStruct((B, m, cp), jnp.bfloat16),
            jax.ShapeDtypeStruct((B, 8, cp), jnp.float32),
            jax.ShapeDtypeStruct((B, 8, cp), jnp.float32),
        ),
        scratch_shapes=[pltpu.VMEM((m, cp), jnp.float32)],
        compiler_params=pltpu.CompilerParams(
            dimension_semantics=("parallel",),   # per-image partial stats -> megacore-safe
            vmem_limit_bytes=vmem_limit),
    )(x_g, w_taps, gmask)


# ---------------------------------------------------------------------------
# Kernel 2: bn1(scale,shift) + ReLU + conv2 (3x3) + per-image sum/sumsq partials
#           (post-activation intermediate never leaves VMEM, held in bf16)
# ---------------------------------------------------------------------------
def _bn_relu_conv_stats_call(y, w_taps, scale, shift, gmask, *, m, wp, np2, vmem_limit):
    B, _, cp = y.shape
    lead = HALO + wp
    trail = np2 - lead - m

    def kernel(y_ref, w_ref, sc_ref, sh_ref, gm_ref, z_ref, s_ref, q_ref,
               h_scr, acc_ref):
        # bn1 epilogue: FMA + ReLU in f32, masked, cast once to bf16 on the store.
        h = (jnp.maximum(y_ref[0].astype(jnp.float32) * sc_ref[...] + sh_ref[...], 0.0)
             * gm_ref[...])
        # Rebuild the G-layout activation in VMEM scratch: zero the small halo every
        # step (safe when the batch axis is sharded across cores), write the interior.
        h_scr[pl.ds(0, lead), :] = jnp.zeros((lead, cp), jnp.bfloat16)
        h_scr[pl.ds(lead + m, trail), :] = jnp.zeros((trail, cp), jnp.bfloat16)
        h_scr[pl.ds(lead, m), :] = h.astype(jnp.bfloat16)

        def tap(t):
            kh, kw = divmod(t, 3)
            return jnp.dot(h_scr[pl.ds(HALO - 1 + kh * wp + kw, m), :],
                           w_ref[t], preferred_element_type=jnp.float32)

        acc_ref[...] = tap(0) + tap(1)
        acc_ref[...] += tap(2) + tap(3)
        acc_ref[...] += tap(4) + tap(5)
        acc_ref[...] += tap(6) + tap(7)
        acc_ref[...] += tap(8)

        acc = acc_ref[...] * gm_ref[...]

        s_ref[0] = jnp.broadcast_to(jnp.sum(acc, axis=0, keepdims=True), (8, cp))
        q_ref[0] = jnp.broadcast_to(jnp.sum(acc * acc, axis=0, keepdims=True), (8, cp))
        z_ref[0] = acc.astype(jnp.bfloat16)

    return pl.pallas_call(
        kernel,
        grid=(B,),
        in_specs=[
            pl.BlockSpec((1, m, cp), lambda b: (b, 0, 0)),
            pl.BlockSpec((9, cp, cp), lambda b: (0, 0, 0)),
            pl.BlockSpec((1, cp), lambda b: (0, 0)),
            pl.BlockSpec((1, cp), lambda b: (0, 0)),
            pl.BlockSpec((m, cp), lambda b: (0, 0)),
        ],
        out_specs=(
            pl.BlockSpec((1, m, cp), lambda b: (b, 0, 0)),
            pl.BlockSpec((1, 8, cp), lambda b: (b, 0, 0)),
            pl.BlockSpec((1, 8, cp), lambda b: (b, 0, 0)),
        ),
        out_shape=(
            jax.ShapeDtypeStruct((B, m, cp), jnp.bfloat16),
            jax.ShapeDtypeStruct((B, 8, cp), jnp.float32),
            jax.ShapeDtypeStruct((B, 8, cp), jnp.float32),
        ),
        scratch_shapes=[pltpu.VMEM((np2, cp), jnp.bfloat16),
                        pltpu.VMEM((m, cp), jnp.float32)],
        compiler_params=pltpu.CompilerParams(
            dimension_semantics=("parallel",),
            vmem_limit_bytes=vmem_limit),
    )(y, w_taps, scale, shift, gmask)


# ---------------------------------------------------------------------------
# Kernel 3: bn2(scale,shift) + residual add + ReLU  (fully parallel epilogue)
#           Residual is read straight out of x_g's interior slab (no x_skip array).
# ---------------------------------------------------------------------------
def _bn_add_relu_call(z, x_g, scale, shift, *, m, wp, vmem_limit):
    B, np2, cp = x_g.shape

    def kernel(z_ref, x_ref, sc_ref, sh_ref, o_ref):
        xs = x_ref[0, pl.ds(HALO + wp, m), :].astype(jnp.float32)
        o_ref[0] = jnp.maximum(
            z_ref[0].astype(jnp.float32) * sc_ref[...] + sh_ref[...] + xs, 0.0)

    return pl.pallas_call(
        kernel,
        grid=(B,),
        in_specs=[
            pl.BlockSpec((1, m, cp), lambda b: (b, 0, 0)),
            pl.BlockSpec((1, np2, cp), lambda b: (b, 0, 0)),
            pl.BlockSpec((1, cp), lambda b: (0, 0)),
            pl.BlockSpec((1, cp), lambda b: (0, 0)),
        ],
        out_specs=pl.BlockSpec((1, m, cp), lambda b: (b, 0, 0)),
        out_shape=jax.ShapeDtypeStruct((B, m, cp), jnp.float32),
        compiler_params=pltpu.CompilerParams(
            dimension_semantics=("parallel",),
            vmem_limit_bytes=vmem_limit),
    )(z, x_g, scale, shift)


# ---------------------------------------------------------------------------
# Plain-JAX glue: layout packing, weight reshaping, BN scale/shift precompute
# ---------------------------------------------------------------------------
def _weights_to_taps(w, cp):
    """[C_out, C_in, 3, 3] -> [9, Cp, Cp] bf16, tap index = kh*3 + kw."""
    co, ci = w.shape[0], w.shape[1]
    taps = jnp.transpose(w, (2, 3, 1, 0)).reshape(9, ci, co)
    taps = jnp.pad(taps, ((0, 0), (0, cp - ci), (0, cp - co)))
    return taps.astype(jnp.bfloat16)


def _bn_scale_shift(s, q, gamma, beta, n, cp):
    """Training-mode BN: scale = g*rsqrt(var+eps), shift = b - mean*scale (f32).

    s, q: [B, 8, Cp] per-image partial sums (row 0 valid), reduced here.
    TODO(synk): use shifted sums / Welford for production-size B*H*W (cancellation).
    """
    gamma_p = jnp.pad(gamma.astype(jnp.float32), (0, cp - gamma.shape[0]),
                      constant_values=1.0)
    beta_p = jnp.pad(beta.astype(jnp.float32), (0, cp - beta.shape[0]))
    s_tot = jnp.sum(s[:, 0, :], axis=0)
    q_tot = jnp.sum(q[:, 0, :], axis=0)
    mean = s_tot / n
    var = jnp.maximum(q_tot / n - mean * mean, 0.0)
    scale = gamma_p * lax.rsqrt(var + EPS)
    shift = beta_p - mean * scale
    return scale.reshape(1, cp), shift.reshape(1, cp)


def resnet_block_forward(x_nchw, w1, w2, g1, b1, g2, b2):
    """Forward of ResNetBlock(c_in, act_fn=ReLU, subsample=False, complex=False)."""
    B, C, H, W = x_nchw.shape
    cp = _round_up(C, LANE)
    wp = _round_up(W + 2, 8)        # sublane-aligned padded row stride
    flat = (H + 2) * wp             # flattened zero-padded image length
    np2 = HALO + flat + HALO        # + sublane-aligned halo rows at each end
    m = H * wp                      # conv-output rows computed per image
    n_real = B * H * W              # BN normalization count
    vmem_limit = _vmem_limit_bytes()

    # G-layout input in bf16 (MXU operand + residual skip): pad H by 1, W to wp,
    # channels to 128 lanes, flatten the spatial dims, add HALO zero rows at each end.
    # TODO(synk): keep consecutive ResNet blocks in this layout to avoid the NCHW
    #             transpose/pad round trips at the block boundary.
    x_nhwc = jnp.transpose(x_nchw, (0, 2, 3, 1))
    x_g = jnp.pad(x_nhwc, ((0, 0), (1, 1), (1, wp - W - 1), (0, cp - C)))
    x_g = x_g.reshape(B, flat, cp)
    x_g = jnp.pad(x_g, ((0, 0), (HALO, HALO), (0, 0))).astype(jnp.bfloat16)

    w1_t = _weights_to_taps(w1, cp)
    w2_t = _weights_to_taps(w2, cp)

    # Lane-dense interior mask over the m interior rows: 1.0 at real image columns.
    col = jnp.arange(m) % wp
    gmask = jnp.broadcast_to(
        ((col >= 1) & (col <= W)).astype(jnp.float32)[:, None], (m, cp))

    # Pass 1a: conv1 + BN1 partial statistics.
    y1, s1, q1 = _conv_stats_call(x_g, w1_t, gmask, m=m, wp=wp, vmem_limit=vmem_limit)
    scale1, shift1 = _bn_scale_shift(s1, q1, g1, b1, n_real, cp)

    # Pass 1b/2a: BN1 apply + ReLU + conv2 + BN2 partials (intermediate stays in VMEM).
    z, s2, q2 = _bn_relu_conv_stats_call(y1, w2_t, scale1, shift1, gmask,
                                         m=m, wp=wp, np2=np2, vmem_limit=vmem_limit)
    scale2, shift2 = _bn_scale_shift(s2, q2, g2, b2, n_real, cp)

    # Pass 2b: BN2 apply + residual add + ReLU (residual sliced out of x_g in-kernel).
    out_c = _bn_add_relu_call(z, x_g, scale2, shift2, m=m, wp=wp, vmem_limit=vmem_limit)

    out = out_c.reshape(B, H, wp, cp)[:, :, 1:W + 1, :C]
    return jnp.transpose(out, (0, 3, 1, 2))          # NHWC -> NCHW


# ---------------------------------------------------------------------------
# Pure-JAX reference (sanity check)
# ---------------------------------------------------------------------------
def _reference_forward(x, w1, w2, g1, b1, g2, b2):
    def bn(y, g, b):
        mu = jnp.mean(y, axis=(0, 2, 3), keepdims=True)
        var = jnp.mean((y - mu) ** 2, axis=(0, 2, 3), keepdims=True)
        return ((y - mu) * lax.rsqrt(var + EPS) * g.reshape(1, -1, 1, 1)
                + b.reshape(1, -1, 1, 1))

    conv = lambda inp, w: lax.conv_general_dilated(
        inp, w, (1, 1), "SAME", dimension_numbers=("NCHW", "OIHW", "NCHW"),
        precision=lax.Precision.HIGHEST)

    y = jax.nn.relu(bn(conv(x, w1), g1, b1))
    z = bn(conv(y, w2), g2, b2)
    return jax.nn.relu(z + x)


# ---------------------------------------------------------------------------
if __name__ == "__main__":
    B, C, H, W = 2, 4, 16, 16
    key = jax.random.PRNGKey(0)
    kx, kw1, kw2 = jax.random.split(key, 3)

    x = jax.random.normal(kx, (B, C, H, W), jnp.float32)
    # Conv weights (bias=False in the module). Deterministic init.
    w1 = jax.random.normal(kw1, (C, C, 3, 3), jnp.float32) * 0.1
    w2 = jax.random.normal(kw2, (C, C, 3, 3), jnp.float32) * 0.1
    # BatchNorm affine params (PyTorch default init: weight=1, bias=0).
    g1 = jnp.ones((C,), jnp.float32)
    b1 = jnp.zeros((C,), jnp.float32)
    g2 = jnp.ones((C,), jnp.float32)
    b2 = jnp.zeros((C,), jnp.float32)

    out = jax.jit(resnet_block_forward)(x, w1, w2, g1, b1, g2, b2)
    out = jax.block_until_ready(out)

    ref = _reference_forward(x, w1, w2, g1, b1, g2, b2)
    assert out.shape == (B, C, H, W)
    max_err = float(jnp.max(jnp.abs(out - ref)))
    # Tolerance accounts for the bf16 activation path (x_g / y / h / z stored in bf16;
    # accumulation and BN statistics in f32).
    assert jnp.allclose(out, ref, atol=3e-2, rtol=3e-2), max_err

    print("KERNEL_OK")
</pallas_src>

<mosaic_0001>
module attributes {stable_mosaic.version = 11 : i64} {
  func.func @kernel(%arg0: i32, %arg1: memref<1x448x128xbf16, #tpu.memory_space<vmem>>, %arg2: memref<9x128x128xbf16, #tpu.memory_space<vmem>>, %arg3: memref<384x128xf32, #tpu.memory_space<vmem>>, %arg4: memref<1x384x128xbf16, #tpu.memory_space<vmem>>, %arg5: memref<1x8x128xf32, #tpu.memory_space<vmem>>, %arg6: memref<1x8x128xf32, #tpu.memory_space<vmem>>, %arg7: memref<384x128xf32, #tpu.memory_space<vmem>>) attributes {dimension_semantics = [#tpu.dimension_semantics<parallel>], iteration_bounds = array<i64: 2>, scalar_prefetch = 0 : i64, scratch_operands = 1 : i64, tpu.core_type = #tpu.core_type<tc>, window_params = [{transform_indices = @transform_0, window_bounds = array<i64: 1, 448, 128>}, {pipeline_mode = #tpu.pipeline_mode<synchronous>, transform_indices = @transform_1, window_bounds = array<i64: 9, 128, 128>}, {pipeline_mode = #tpu.pipeline_mode<synchronous>, transform_indices = @transform_2, window_bounds = array<i64: 384, 128>}, {transform_indices = @transform_3, window_bounds = array<i64: 1, 384, 128>}, {transform_indices = @transform_4, window_bounds = array<i64: 1, 8, 128>}, {transform_indices = @transform_5, window_bounds = array<i64: 1, 8, 128>}]} {
    %c0 = arith.constant 0 : index
    %c7 = arith.constant 7 : index
    %c0_0 = arith.constant 0 : index
    %0 = vector.load %arg1[%c0, %c7, %c0_0] : memref<1x448x128xbf16, #tpu.memory_space<vmem>>, vector<1x384x128xbf16>
    %1 = vector.shape_cast %0 : vector<1x384x128xbf16> to vector<384x128xbf16>
    %c0_1 = arith.constant 0 : index
    %c0_2 = arith.constant 0 : index
    %c0_3 = arith.constant 0 : index
    %2 = vector.load %arg2[%c0_1, %c0_2, %c0_3] : memref<9x128x128xbf16, #tpu.memory_space<vmem>>, vector<1x128x128xbf16>
    %3 = vector.shape_cast %2 : vector<1x128x128xbf16> to vector<128x128xbf16>
    %cst = arith.constant dense<0.000000e+00> : vector<384x128xf32>
    %4 = tpu.matmul %1, %3, %cst {dimension_numbers = #tpu.dot_dimension_numbers<[1], [0], [0], [1], [0, 0, 1, 1], [], []>} : vector<384x128xbf16>, vector<128x128xbf16>, vector<384x128xf32> -> vector<384x128xf32>
    %c0_4 = arith.constant 0 : index
    %c8 = arith.constant 8 : index
    %c0_5 = arith.constant 0 : index
    %5 = vector.load %arg1[%c0_4, %c8, %c0_5] : memref<1x448x128xbf16, #tpu.memory_space<vmem>>, vector<1x384x128xbf16>
    %6 = vector.shape_cast %5 : vector<1x384x128xbf16> to vector<384x128xbf16>
    %c1 = arith.constant 1 : index
    %c0_6 = arith.constant 0 : index
    %c0_7 = arith.constant 0 : index
    %7 = vector.load %arg2[%c1, %c0_6, %c0_7] : memref<9x128x128xbf16, #tpu.memory_space<vmem>>, vector<1x128x128xbf16>
    %8 = vector.shape_cast %7 : vector<1x128x128xbf16> to vector<128x128xbf16>
    %cst_8 = arith.constant dense<0.000000e+00> : vector<384x128xf32>
    %9 = tpu.matmul %6, %8, %cst_8 {dimension_numbers = #tpu.dot_dimension_numbers<[1], [0], [0], [1], [0, 0, 1, 1], [], []>} : vector<384x128xbf16>, vector<128x128xbf16>, vector<384x128xf32> -> vector<384x128xf32>
    %10 = arith.addf %4, %9 : vector<384x128xf32>
    %c0_9 = arith.constant 0 : index
    %c0_10 = arith.constant 0 : index
    %11 = vector.load %arg7[%c0_9, %c0_10] : memref<384x128xf32, #tpu.memory_space<vmem>>, vector<384x128xf32>
    tpu.vector_store %arg7[%c0_9, %c0_10], %10 {strides = array<i32>} : memref<384x128xf32, #tpu.memory_space<vmem>>, vector<384x128xf32>,
    %c0_11 = arith.constant 0 : index
    %c0_12 = arith.constant 0 : index
    %12 = vector.load %arg7[%c0_11, %c0_12] : memref<384x128xf32, #tpu.memory_space<vmem>>, vector<384x128xf32>
    %c0_13 = arith.constant 0 : index
    %c9 = arith.constant 9 : index
    %c0_14 = arith.constant 0 : index
    %13 = vector.load %arg1[%c0_13, %c9, %c0_14] : memref<1x448x128xbf16, #tpu.memory_space<vmem>>, vector<1x384x128xbf16>
    %14 = vector.shape_cast %13 : vector<1x384x128xbf16> to vector<384x128xbf16>
    %c2 = arith.constant 2 : index
    %c0_15 = arith.constant 0 : index
    %c0_16 = arith.constant 0 : index
    %15 = vector.load %arg2[%c2, %c0_15, %c0_16] : memref<9x128x128xbf16, #tpu.memory_space<vmem>>, vector<1x128x128xbf16>
    %16 = vector.shape_cast %15 : vector<1x128x128xbf16> to vector<128x128xbf16>
    %cst_17 = arith.constant dense<0.000000e+00> : vector<384x128xf32>
    %17 = tpu.matmul %14, %16, %cst_17 {dimension_numbers = #tpu.dot_dimension_numbers<[1], [0], [0], [1], [0, 0, 1, 1], [], []>} : vector<384x128xbf16>, vector<128x128xbf16>, vector<384x128xf32> -> vector<384x128xf32>
    %c0_18 = arith.constant 0 : index
    %c31 = arith.constant 31 : index
    %c0_19 = arith.constant 0 : index
    %18 = vector.load %arg1[%c0_18, %c31, %c0_19] : memref<1x448x128xbf16, #tpu.memory_space<vmem>>, vector<1x384x128xbf16>
    %19 = vector.shape_cast %18 : vector<1x384x128xbf16> to vector<384x128xbf16>
    %c3 = arith.constant 3 : index
    %c0_20 = arith.constant 0 : index
    %c0_21 = arith.constant 0 : index
    %20 = vector.load %arg2[%c3, %c0_20, %c0_21] : memref<9x128x128xbf16, #tpu.memory_space<vmem>>, vector<1x128x128xbf16>
    %21 = vector.shape_cast %20 : vector<1x128x128xbf16> to vector<128x128xbf16>
    %cst_22 = arith.constant dense<0.000000e+00> : vector<384x128xf32>
    %22 = tpu.matmul %19, %21, %cst_22 {dimension_numbers = #tpu.dot_dimension_numbers<[1], [0], [0], [1], [0, 0, 1, 1], [], []>} : vector<384x128xbf16>, vector<128x128xbf16>, vector<384x128xf32> -> vector<384x128xf32>
    %23 = arith.addf %17, %22 : vector<384x128xf32>
    %24 = arith.addf %12, %23 : vector<384x128xf32>
    %c0_23 = arith.constant 0 : index
    %c0_24 = arith.constant 0 : index
    %25 = vector.load %arg7[%c0_23, %c0_24] : memref<384x128xf32, #tpu.memory_space<vmem>>, vector<384x128xf32>
    tpu.vector_store %arg7[%c0_23, %c0_24], %24 {strides = array<i32>} : memref<384x128xf32, #tpu.memory_space<vmem>>, vector<384x128xf32>,
    %c0_25 = arith.constant 0 : index
    %c0_26 = arith.constant 0 : index
    %26 = vector.load %arg7[%c0_25, %c0_26] : memref<384x128xf32, #tpu.memory_space<vmem>>, vector<384x128xf32>
    %c0_27 = arith.constant 0 : index
    %c32 = arith.constant 32 : index
    %c0_28 = arith.constant 0 : index
    %27 = vector.load %arg1[%c0_27, %c32, %c0_28] : memref<1x448x128xbf16, #tpu.memory_space<vmem>>, vector<1x384x128xbf16>
    %28 = vector.shape_cast %27 : vector<1x384x128xbf16> to vector<384x128xbf16>
    %c4 = arith.constant 4 : index
    %c0_29 = arith.constant 0 : index
    %c0_30 = arith.constant 0 : index
    %29 = vector.load %arg2[%c4, %c0_29, %c0_30] : memref<9x128x128xbf16, #tpu.memory_space<vmem>>, vector<1x128x128xbf16>
    %30 = vector.shape_cast %29 : vector<1x128x128xbf16> to vector<128x128xbf16>
    %cst_31 = arith.constant dense<0.000000e+00> : vector<384x128xf32>
    %31 = tpu.matmul %28, %30, %cst_31 {dimension_numbers = #tpu.dot_dimension_numbers<[1], [0], [0], [1], [0, 0, 1, 1], [], []>} : vector<384x128xbf16>, vector<128x128xbf16>, vector<384x128xf32> -> vector<384x128xf32>
    %c0_32 = arith.constant 0 : index
    %c33 = arith.constant 33 : index
    %c0_33 = arith.constant 0 : index
    %32 = vector.load %arg1[%c0_32, %c33, %c0_33] : memref<1x448x128xbf16, #tpu.memory_space<vmem>>, vector<1x384x128xbf16>
    %33 = vector.shape_cast %32 : vector<1x384x128xbf16> to vector<384x128xbf16>
    %c5 = arith.constant 5 : index
    %c0_34 = arith.constant 0 : index
    %c0_35 = arith.constant 0 : index
    %34 = vector.load %arg2[%c5, %c0_34, %c0_35] : memref<9x128x128xbf16, #tpu.memory_space<vmem>>, vector<1x128x128xbf16>
    %35 = vector.shape_cast %34 : vector<1x128x128xbf16> to vector<128x128xbf16>
    %cst_36 = arith.constant dense<0.000000e+00> : vector<384x128xf32>
    %36 = tpu.matmul %33, %35, %cst_36 {dimension_numbers = #tpu.dot_dimension_numbers<[1], [0], [0], [1], [0, 0, 1, 1], [], []>} : vector<384x128xbf16>, vector<128x128xbf16>, vector<384x128xf32> -> vector<384x128xf32>
    %37 = arith.addf %31, %36 : vector<384x128xf32>
    %38 = arith.addf %26, %37 : vector<384x128xf32>
    %c0_37 = arith.constant 0 : index
    %c0_38 = arith.constant 0 : index
    %39 = vector.load %arg7[%c0_37, %c0_38] : memref<384x128xf32, #tpu.memory_space<vmem>>, vector<384x128xf32>
    tpu.vector_store %arg7[%c0_37, %c0_38], %38 {strides = array<i32>} : memref<384x128xf32, #tpu.memory_space<vmem>>, vector<384x128xf32>,
    %c0_39 = arith.constant 0 : index
    %c0_40 = arith.constant 0 : index
    %40 = vector.load %arg7[%c0_39, %c0_40] : memref<384x128xf32, #tpu.memory_space<vmem>>, vector<384x128xf32>
    %c0_41 = arith.constant 0 : index
    %c55 = arith.constant 55 : index
    %c0_42 = arith.constant 0 : index
    %41 = vector.load %arg1[%c0_41, %c55, %c0_42] : memref<1x448x128xbf16, #tpu.memory_space<vmem>>, vector<1x384x128xbf16>
    %42 = vector.shape_cast %41 : vector<1x384x128xbf16> to vector<384x128xbf16>
    %c6 = arith.constant 6 : index
    %c0_43 = arith.constant 0 : index
    %c0_44 = arith.constant 0 : index
    %43 = vector.load %arg2[%c6, %c0_43, %c0_44] : memref<9x128x128xbf16, #tpu.memory_space<vmem>>, vector<1x128x128xbf16>
    %44 = vector.shape_cast %43 : vector<1x128x128xbf16> to vector<128x128xbf16>
    %cst_45 = arith.constant dense<0.000000e+00> : vector<384x128xf32>
    %45 = tpu.matmul %42, %44, %cst_45 {dimension_numbers = #tpu.dot_dimension_numbers<[1], [0], [0], [1], [0, 0, 1, 1], [], []>} : vector<384x128xbf16>, vector<128x128xbf16>, vector<384x128xf32> -> vector<384x128xf32>
    %c0_46 = arith.constant 0 : index
    %c56 = arith.constant 56 : index
    %c0_47 = arith.constant 0 : index
    %46 = vector.load %arg1[%c0_46, %c56, %c0_47] : memref<1x448x128xbf16, #tpu.memory_space<vmem>>, vector<1x384x128xbf16>
    %47 = vector.shape_cast %46 : vector<1x384x128xbf16> to vector<384x128xbf16>
    %c7_48 = arith.constant 7 : index
    %c0_49 = arith.constant 0 : index
    %c0_50 = arith.constant 0 : index
    %48 = vector.load %arg2[%c7_48, %c0_49, %c0_50] : memref<9x128x128xbf16, #tpu.memory_space<vmem>>, vector<1x128x128xbf16>
    %49 = vector.shape_cast %48 : vector<1x128x128xbf16> to vector<128x128xbf16>
    %cst_51 = arith.constant dense<0.000000e+00> : vector<384x128xf32>
    %50 = tpu.matmul %47, %49, %cst_51 {dimension_numbers = #tpu.dot_dimension_numbers<[1], [0], [0], [1], [0, 0, 1, 1], [], []>} : vector<384x128xbf16>, vector<128x128xbf16>, vector<384x128xf32> -> vector<384x128xf32>
    %51 = arith.addf %45, %50 : vector<384x128xf32>
    %52 = arith.addf %40, %51 : vector<384x128xf32>
    %c0_52 = arith.constant 0 : index
    %c0_53 = arith.constant 0 : index
    %53 = vector.load %arg7[%c0_52, %c0_53] : memref<384x128xf32, #tpu.memory_space<vmem>>, vector<384x128xf32>
    tpu.vector_store %arg7[%c0_52, %c0_53], %52 {strides = array<i32>} : memref<384x128xf32, #tpu.memory_space<vmem>>, vector<384x128xf32>,
    %c0_54 = arith.constant 0 : index
    %c0_55 = arith.constant 0 : index
    %54 = vector.load %arg7[%c0_54, %c0_55] : memref<384x128xf32, #tpu.memory_space<vmem>>, vector<384x128xf32>
    %c0_56 = arith.constant 0 : index
    %c57 = arith.constant 57 : index
    %c0_57 = arith.constant 0 : index
    %55 = vector.load %arg1[%c0_56, %c57, %c0_57] : memref<1x448x128xbf16, #tpu.memory_space<vmem>>, vector<1x384x128xbf16>
    %56 = vector.shape_cast %55 : vector<1x384x128xbf16> to vector<384x128xbf16>
    %c8_58 = arith.constant 8 : index
    %c0_59 = arith.constant 0 : index
    %c0_60 = arith.constant 0 : index
    %57 = vector.load %arg2[%c8_58, %c0_59, %c0_60] : memref<9x128x128xbf16, #tpu.memory_space<vmem>>, vector<1x128x128xbf16>
    %58 = vector.shape_cast %57 : vector<1x128x128xbf16> to vector<128x128xbf16>
    %cst_61 = arith.constant dense<0.000000e+00> : vector<384x128xf32>
    %59 = tpu.matmul %56, %58, %cst_61 {dimension_numbers = #tpu.dot_dimension_numbers<[1], [0], [0], [1], [0, 0, 1, 1], [], []>} : vector<384x128xbf16>, vector<128x128xbf16>, vector<384x128xf32> -> vector<384x128xf32>
    %60 = arith.addf %54, %59 : vector<384x128xf32>
    %c0_62 = arith.constant 0 : index
    %c0_63 = arith.constant 0 : index
    %61 = vector.load %arg7[%c0_62, %c0_63] : memref<384x128xf32, #tpu.memory_space<vmem>>, vector<384x128xf32>
    tpu.vector_store %arg7[%c0_62, %c0_63], %60 {strides = array<i32>} : memref<384x128xf32, #tpu.memory_space<vmem>>, vector<384x128xf32>,
    %c0_64 = arith.constant 0 : index
    %c0_65 = arith.constant 0 : index
    %62 = vector.load %arg7[%c0_64, %c0_65] : memref<384x128xf32, #tpu.memory_space<vmem>>, vector<384x128xf32>
    %c0_66 = arith.constant 0 : index
    %c0_67 = arith.constant 0 : index
    %63 = vector.load %arg3[%c0_66, %c0_67] : memref<384x128xf32, #tpu.memory_space<vmem>>, vector<384x128xf32>
    %64 = arith.mulf %62, %63 : vector<384x128xf32>
    %cst_68 = arith.constant dense<0.000000e+00> : vector<128xf32>
    %65 = vector.multi_reduction <add>, %64, %cst_68 [0] : vector<384x128xf32> to vector<128xf32>
    %66 = vector.shape_cast %65 : vector<128xf32> to vector<1x128xf32>
    %67 = vector.shape_cast %66 : vector<1x128xf32> to vector<1x128xf32>
    %68 = vector.broadcast %67 : vector<1x128xf32> to vector<8x128xf32>
    %c0_69 = arith.constant 0 : index
    %c0_70 = arith.constant 0 : index
    %c0_71 = arith.constant 0 : index
    %69 = vector.load %arg5[%c0_69, %c0_70, %c0_71] : memref<1x8x128xf32, #tpu.memory_space<vmem>>, vector<1x8x128xf32>
    %70 = vector.shape_cast %69 : vector<1x8x128xf32> to vector<8x128xf32>
    %71 = vector.shape_cast %68 : vector<8x128xf32> to vector<1x8x128xf32>
    tpu.vector_store %arg5[%c0_69, %c0_70, %c0_71], %71 {strides = array<i32>} : memref<1x8x128xf32, #tpu.memory_space<vmem>>, vector<1x8x128xf32>,
    %72 = arith.mulf %64, %64 : vector<384x128xf32>
    %cst_72 = arith.constant dense<0.000000e+00> : vector<128xf32>
    %73 = vector.multi_reduction <add>, %72, %cst_72 [0] : vector<384x128xf32> to vector<128xf32>
    %74 = vector.shape_cast %73 : vector<128xf32> to vector<1x128xf32>
    %75 = vector.shape_cast %74 : vector<1x128xf32> to vector<1x128xf32>
    %76 = vector.broadcast %75 : vector<1x128xf32> to vector<8x128xf32>
    %c0_73 = arith.constant 0 : index
    %c0_74 = arith.constant 0 : index
    %c0_75 = arith.constant 0 : index
    %77 = vector.load %arg6[%c0_73, %c0_74, %c0_75] : memref<1x8x128xf32, #tpu.memory_space<vmem>>, vector<1x8x128xf32>
    %78 = vector.shape_cast %77 : vector<1x8x128xf32> to vector<8x128xf32>
    %79 = vector.shape_cast %76 : vector<8x128xf32> to vector<1x8x128xf32>
    tpu.vector_store %arg6[%c0_73, %c0_74, %c0_75], %79 {strides = array<i32>} : memref<1x8x128xf32, #tpu.memory_space<vmem>>, vector<1x8x128xf32>,
    %80 = arith.truncf %64 : vector<384x128xf32> to vector<384x128xbf16>
    %c0_76 = arith.constant 0 : index
    %c0_77 = arith.constant 0 : index
    %c0_78 = arith.constant 0 : index
    %81 = vector.load %arg4[%c0_76, %c0_77, %c0_78] : memref<1x384x128xbf16, #tpu.memory_space<vmem>>, vector<1x384x128xbf16>
    %82 = vector.shape_cast %81 : vector<1x384x128xbf16> to vector<384x128xbf16>
    %83 = vector.shape_cast %80 : vector<384x128xbf16> to vector<1x384x128xbf16>
    tpu.vector_store %arg4[%c0_76, %c0_77, %c0_78], %83 {strides = array<i32>} : memref<1x384x128xbf16, #tpu.memory_space<vmem>>, vector<1x384x128xbf16>,
    return
  }
  func.func @transform_0(%arg0: i32) -> (i32, i32, i32) {
    %c0_i32 = arith.constant 0 : i32
    %c0_i32_0 = arith.constant 0 : i32
    %c0_i32_1 = arith.constant 0 : i32
    return %arg0, %c0_i32, %c0_i32_0 : i32, i32, i32
  }
  func.func @transform_1(%arg0: i32) -> (i32, i32, i32) {
    %c0_i32 = arith.constant 0 : i32
    %c0_i32_0 = arith.constant 0 : i32
    %c0_i32_1 = arith.constant 0 : i32
    %c0_i32_2 = arith.constant 0 : i32
    return %c0_i32, %c0_i32_0, %c0_i32_1 : i32, i32, i32
  }
  func.func @transform_2(%arg0: i32) -> (i32, i32) {
    %c0_i32 = arith.constant 0 : i32
    %c0_i32_0 = arith.constant 0 : i32
    %c0_i32_1 = arith.constant 0 : i32
    return %c0_i32, %c0_i32_0 : i32, i32
  }
  func.func @transform_3(%arg0: i32) -> (i32, i32, i32) {
    %c0_i32 = arith.constant 0 : i32
    %c0_i32_0 = arith.constant 0 : i32
    %c0_i32_1 = arith.constant 0 : i32
    return %arg0, %c0_i32, %c0_i32_0 : i32, i32, i32
  }
  func.func @transform_4(%arg0: i32) -> (i32, i32, i32) {
    %c0_i32 = arith.constant 0 : i32
    %c0_i32_0 = arith.constant 0 : i32
    %c0_i32_1 = arith.constant 0 : i32
    return %arg0, %c0_i32, %c0_i32_0 : i32, i32, i32
  }
  func.func @transform_5(%arg0: i32) -> (i32, i32, i32) {
    %c0_i32 = arith.constant 0 : i32
    %c0_i32_0 = arith.constant 0 : i32
    %c0_i32_1 = arith.constant 0 : i32
    return %arg0, %c0_i32, %c0_i32_0 : i32, i32, i32
  }
}

module attributes {stable_mosaic.version = 11 : i64} {
  func.func @kernel(%arg0: i32, %arg1: memref<1x384x128xbf16, #tpu.memory_space<vmem>>, %arg2: memref<1x448x128xbf16, #tpu.memory_space<vmem>>, %arg3: memref<1x128xf32, #tpu.memory_space<vmem>>, %arg4: memref<1x128xf32, #tpu.memory_space<vmem>>, %arg5: memref<1x384x128xf32, #tpu.memory_space<vmem>>) attributes {dimension_semantics = [#tpu.dimension_semantics<parallel>], iteration_bounds = array<i64: 2>, scalar_prefetch = 0 : i64, scratch_operands = 0 : i64, tpu.core_type = #tpu.core_type<tc>, window_params = [{transform_indices = @transform_0, window_bounds = array<i64: 1, 384, 128>}, {transform_indices = @transform_1, window_bounds = array<i64: 1, 448, 128>}, {pipeline_mode = #tpu.pipeline_mode<synchronous>, transform_indices = @transform_2, window_bounds = array<i64: 1, 128>}, {pipeline_mode = #tpu.pipeline_mode<synchronous>, transform_indices = @transform_3, window_bounds = array<i64: 1, 128>}, {transform_indices = @transform_4, window_bounds = array<i64: 1, 384, 128>}]} {
    %c0 = arith.constant 0 : index
    %c32 = arith.constant 32 : index
    %c0_0 = arith.constant 0 : index
    %0 = vector.load %arg2[%c0, %c32, %c0_0] : memref<1x448x128xbf16, #tpu.memory_space<vmem>>, vector<1x384x128xbf16>
    %1 = vector.shape_cast %0 : vector<1x384x128xbf16> to vector<384x128xbf16>
    %2 = arith.extf %1 : vector<384x128xbf16> to vector<384x128xf32>
    %c0_1 = arith.constant 0 : index
    %c0_2 = arith.constant 0 : index
    %c0_3 = arith.constant 0 : index
    %3 = vector.load %arg1[%c0_1, %c0_2, %c0_3] : memref<1x384x128xbf16, #tpu.memory_space<vmem>>, vector<1x384x128xbf16>
    %4 = vector.shape_cast %3 : vector<1x384x128xbf16> to vector<384x128xbf16>
    %5 = arith.extf %4 : vector<384x128xbf16> to vector<384x128xf32>
    %c0_4 = arith.constant 0 : index
    %c0_5 = arith.constant 0 : index
    %6 = vector.load %arg3[%c0_4, %c0_5] : memref<1x128xf32, #tpu.memory_space<vmem>>, vector<1x128xf32>
    %7 = vector.broadcast %6 : vector<1x128xf32> to vector<384x128xf32>
    %8 = arith.mulf %5, %7 : vector<384x128xf32>
    %c0_6 = arith.constant 0 : index
    %c0_7 = arith.constant 0 : index
    %9 = vector.load %arg4[%c0_6, %c0_7] : memref<1x128xf32, #tpu.memory_space<vmem>>, vector<1x128xf32>
    %10 = vector.broadcast %9 : vector<1x128xf32> to vector<384x128xf32>
    %11 = arith.addf %8, %10 : vector<384x128xf32>
    %12 = arith.addf %11, %2 : vector<384x128xf32>
    %cst = arith.constant 0.000000e+00 : f32
    %13 = vector.broadcast %cst : f32 to vector<384x128xf32>
    %14 = arith.maximumf %12, %13 : vector<384x128xf32>
    %c0_8 = arith.constant 0 : index
    %c0_9 = arith.constant 0 : index
    %c0_10 = arith.constant 0 : index
    %15 = vector.load %arg5[%c0_8, %c0_9, %c0_10] : memref<1x384x128xf32, #tpu.memory_space<vmem>>, vector<1x384x128xf32>
    %16 = vector.shape_cast %15 : vector<1x384x128xf32> to vector<384x128xf32>
    %17 = vector.shape_cast %14 : vector<384x128xf32> to vector<1x384x128xf32>
    tpu.vector_store %arg5[%c0_8, %c0_9, %c0_10], %17 {strides = array<i32>} : memref<1x384x128xf32, #tpu.memory_space<vmem>>, vector<1x384x128xf32>,
    return
  }
  func.func @transform_0(%arg0: i32) -> (i32, i32, i32) {
    %c0_i32 = arith.constant 0 : i32
    %c0_i32_0 = arith.constant 0 : i32
    %c0_i32_1 = arith.constant 0 : i32
    return %arg0, %c0_i32, %c0_i32_0 : i32, i32, i32
  }
  func.func @transform_1(%arg0: i32) -> (i32, i32, i32) {
    %c0_i32 = arith.constant 0 : i32
    %c0_i32_0 = arith.constant 0 : i32
    %c0_i32_1 = arith.constant 0 : i32
    return %arg0, %c0_i32, %c0_i32_0 : i32, i32, i32
  }
  func.func @transform_2(%arg0: i32) -> (i32, i32) {
    %c0_i32 = arith.constant 0 : i32
    %c0_i32_0 = arith.constant 0 : i32
    %c0_i32_1 = arith.constant 0 : i32
    return %c0_i32, %c0_i32_0 : i32, i32
  }
  func.func @transform_3(%arg0: i32) -> (i32, i32) {
    %c0_i32 = arith.constant 0 : i32
    %c0_i32_0 = arith.constant 0 : i32
    %c0_i32_1 = arith.constant 0 : i32
    return %c0_i32, %c0_i32_0 : i32, i32
  }
  func.func @transform_4(%arg0: i32) -> (i32, i32, i32) {
    %c0_i32 = arith.constant 0 : i32
    %c0_i32_0 = arith.constant 0 : i32
    %c0_i32_1 = arith.constant 0 : i32
    return %arg0, %c0_i32, %c0_i32_0 : i32, i32, i32
  }
}

module attributes {stable_mosaic.version = 11 : i64} {
  func.func @kernel(%arg0: i32, %arg1: memref<1x384x128xbf16, #tpu.memory_space<vmem>>, %arg2: memref<9x128x128xbf16, #tpu.memory_space<vmem>>, %arg3: memref<1x128xf32, #tpu.memory_space<vmem>>, %arg4: memref<1x128xf32, #tpu.memory_space<vmem>>, %arg5: memref<384x128xf32, #tpu.memory_space<vmem>>, %arg6: memref<1x384x128xbf16, #tpu.memory_space<vmem>>, %arg7: memref<1x8x128xf32, #tpu.memory_space<vmem>>, %arg8: memref<1x8x128xf32, #tpu.memory_space<vmem>>, %arg9: memref<448x128xbf16, #tpu.memory_space<vmem>>, %arg10: memref<384x128xf32, #tpu.memory_space<vmem>>) attributes {dimension_semantics = [#tpu.dimension_semantics<parallel>], iteration_bounds = array<i64: 2>, scalar_prefetch = 0 : i64, scratch_operands = 2 : i64, tpu.core_type = #tpu.core_type<tc>, window_params = [{transform_indices = @transform_0, window_bounds = array<i64: 1, 384, 128>}, {pipeline_mode = #tpu.pipeline_mode<synchronous>, transform_indices = @transform_1, window_bounds = array<i64: 9, 128, 128>}, {pipeline_mode = #tpu.pipeline_mode<synchronous>, transform_indices = @transform_2, window_bounds = array<i64: 1, 128>}, {pipeline_mode = #tpu.pipeline_mode<synchronous>, transform_indices = @transform_3, window_bounds = array<i64: 1, 128>}, {pipeline_mode = #tpu.pipeline_mode<synchronous>, transform_indices = @transform_4, window_bounds = array<i64: 384, 128>}, {transform_indices = @transform_5, window_bounds = array<i64: 1, 384, 128>}, {transform_indices = @transform_6, window_bounds = array<i64: 1, 8, 128>}, {transform_indices = @transform_7, window_bounds = array<i64: 1, 8, 128>}]} {
    %c0 = arith.constant 0 : index
    %c0_0 = arith.constant 0 : index
    %c0_1 = arith.constant 0 : index
    %0 = vector.load %arg1[%c0, %c0_0, %c0_1] : memref<1x384x128xbf16, #tpu.memory_space<vmem>>, vector<1x384x128xbf16>
    %1 = vector.shape_cast %0 : vector<1x384x128xbf16> to vector<384x128xbf16>
    %2 = arith.extf %1 : vector<384x128xbf16> to vector<384x128xf32>
    %c0_2 = arith.constant 0 : index
    %c0_3 = arith.constant 0 : index
    %3 = vector.load %arg3[%c0_2, %c0_3] : memref<1x128xf32, #tpu.memory_space<vmem>>, vector<1x128xf32>
    %4 = vector.broadcast %3 : vector<1x128xf32> to vector<384x128xf32>
    %5 = arith.mulf %2, %4 : vector<384x128xf32>
    %c0_4 = arith.constant 0 : index
    %c0_5 = arith.constant 0 : index
    %6 = vector.load %arg4[%c0_4, %c0_5] : memref<1x128xf32, #tpu.memory_space<vmem>>, vector<1x128xf32>
    %7 = vector.broadcast %6 : vector<1x128xf32> to vector<384x128xf32>
    %8 = arith.addf %5, %7 : vector<384x128xf32>
    %cst = arith.constant 0.000000e+00 : f32
    %9 = vector.broadcast %cst : f32 to vector<384x128xf32>
    %10 = arith.maximumf %8, %9 : vector<384x128xf32>
    %c0_6 = arith.constant 0 : index
    %c0_7 = arith.constant 0 : index
    %11 = vector.load %arg5[%c0_6, %c0_7] : memref<384x128xf32, #tpu.memory_space<vmem>>, vector<384x128xf32>
    %12 = arith.mulf %10, %11 : vector<384x128xf32>
    %cst_8 = arith.constant 0.000000e+00 : bf16
    %13 = vector.broadcast %cst_8 : bf16 to vector<32x128xbf16>
    %c0_9 = arith.constant 0 : index
    %c0_10 = arith.constant 0 : index
    %14 = vector.load %arg9[%c0_9, %c0_10] : memref<448x128xbf16, #tpu.memory_space<vmem>>, vector<32x128xbf16>
    tpu.vector_store %arg9[%c0_9, %c0_10], %13 {strides = array<i32>} : memref<448x128xbf16, #tpu.memory_space<vmem>>, vector<32x128xbf16>,
    %cst_11 = arith.constant 0.000000e+00 : bf16
    %15 = vector.broadcast %cst_11 : bf16 to vector<32x128xbf16>
    %c416 = arith.constant 416 : index
    %c0_12 = arith.constant 0 : index
    %16 = vector.load %arg9[%c416, %c0_12] : memref<448x128xbf16, #tpu.memory_space<vmem>>, vector<32x128xbf16>
    tpu.vector_store %arg9[%c416, %c0_12], %15 {strides = array<i32>} : memref<448x128xbf16, #tpu.memory_space<vmem>>, vector<32x128xbf16>,
    %17 = arith.truncf %12 : vector<384x128xf32> to vector<384x128xbf16>
    %c32 = arith.constant 32 : index
    %c0_13 = arith.constant 0 : index
    %18 = vector.load %arg9[%c32, %c0_13] : memref<448x128xbf16, #tpu.memory_space<vmem>>, vector<384x128xbf16>
    tpu.vector_store %arg9[%c32, %c0_13], %17 {strides = array<i32>} : memref<448x128xbf16, #tpu.memory_space<vmem>>, vector<384x128xbf16>,
    %c7 = arith.constant 7 : index
    %c0_14 = arith.constant 0 : index
    %19 = vector.load %arg9[%c7, %c0_14] : memref<448x128xbf16, #tpu.memory_space<vmem>>, vector<384x128xbf16>
    %c0_15 = arith.constant 0 : index
    %c0_16 = arith.constant 0 : index
    %c0_17 = arith.constant 0 : index
    %20 = vector.load %arg2[%c0_15, %c0_16, %c0_17] : memref<9x128x128xbf16, #tpu.memory_space<vmem>>, vector<1x128x128xbf16>
    %21 = vector.shape_cast %20 : vector<1x128x128xbf16> to vector<128x128xbf16>
    %cst_18 = arith.constant dense<0.000000e+00> : vector<384x128xf32>
    %22 = tpu.matmul %19, %21, %cst_18 {dimension_numbers = #tpu.dot_dimension_numbers<[1], [0], [0], [1], [0, 0, 1, 1], [], []>} : vector<384x128xbf16>, vector<128x128xbf16>, vector<384x128xf32> -> vector<384x128xf32>
    %c8 = arith.constant 8 : index
    %c0_19 = arith.constant 0 : index
    %23 = vector.load %arg9[%c8, %c0_19] : memref<448x128xbf16, #tpu.memory_space<vmem>>, vector<384x128xbf16>
    %c1 = arith.constant 1 : index
    %c0_20 = arith.constant 0 : index
    %c0_21 = arith.constant 0 : index
    %24 = vector.load %arg2[%c1, %c0_20, %c0_21] : memref<9x128x128xbf16, #tpu.memory_space<vmem>>, vector<1x128x128xbf16>
    %25 = vector.shape_cast %24 : vector<1x128x128xbf16> to vector<128x128xbf16>
    %cst_22 = arith.constant dense<0.000000e+00> : vector<384x128xf32>
    %26 = tpu.matmul %23, %25, %cst_22 {dimension_numbers = #tpu.dot_dimension_numbers<[1], [0], [0], [1], [0, 0, 1, 1], [], []>} : vector<384x128xbf16>, vector<128x128xbf16>, vector<384x128xf32> -> vector<384x128xf32>
    %27 = arith.addf %22, %26 : vector<384x128xf32>
    %c0_23 = arith.constant 0 : index
    %c0_24 = arith.constant 0 : index
    %28 = vector.load %arg10[%c0_23, %c0_24] : memref<384x128xf32, #tpu.memory_space<vmem>>, vector<384x128xf32>
    tpu.vector_store %arg10[%c0_23, %c0_24], %27 {strides = array<i32>} : memref<384x128xf32, #tpu.memory_space<vmem>>, vector<384x128xf32>,
    %c0_25 = arith.constant 0 : index
    %c0_26 = arith.constant 0 : index
    %29 = vector.load %arg10[%c0_25, %c0_26] : memref<384x128xf32, #tpu.memory_space<vmem>>, vector<384x128xf32>
    %c9 = arith.constant 9 : index
    %c0_27 = arith.constant 0 : index
    %30 = vector.load %arg9[%c9, %c0_27] : memref<448x128xbf16, #tpu.memory_space<vmem>>, vector<384x128xbf16>
    %c2 = arith.constant 2 : index
    %c0_28 = arith.constant 0 : index
    %c0_29 = arith.constant 0 : index
    %31 = vector.load %arg2[%c2, %c0_28, %c0_29] : memref<9x128x128xbf16, #tpu.memory_space<vmem>>, vector<1x128x128xbf16>
    %32 = vector.shape_cast %31 : vector<1x128x128xbf16> to vector<128x128xbf16>
    %cst_30 = arith.constant dense<0.000000e+00> : vector<384x128xf32>
    %33 = tpu.matmul %30, %32, %cst_30 {dimension_numbers = #tpu.dot_dimension_numbers<[1], [0], [0], [1], [0, 0, 1, 1], [], []>} : vector<384x128xbf16>, vector<128x128xbf16>, vector<384x128xf32> -> vector<384x128xf32>
    %c31 = arith.constant 31 : index
    %c0_31 = arith.constant 0 : index
    %34 = vector.load %arg9[%c31, %c0_31] : memref<448x128xbf16, #tpu.memory_space<vmem>>, vector<384x128xbf16>
    %c3 = arith.constant 3 : index
    %c0_32 = arith.constant 0 : index
    %c0_33 = arith.constant 0 : index
    %35 = vector.load %arg2[%c3, %c0_32, %c0_33] : memref<9x128x128xbf16, #tpu.memory_space<vmem>>, vector<1x128x128xbf16>
    %36 = vector.shape_cast %35 : vector<1x128x128xbf16> to vector<128x128xbf16>
    %cst_34 = arith.constant dense<0.000000e+00> : vector<384x128xf32>
    %37 = tpu.matmul %34, %36, %cst_34 {dimension_numbers = #tpu.dot_dimension_numbers<[1], [0], [0], [1], [0, 0, 1, 1], [], []>} : vector<384x128xbf16>, vector<128x128xbf16>, vector<384x128xf32> -> vector<384x128xf32>
    %38 = arith.addf %33, %37 : vector<384x128xf32>
    %39 = arith.addf %29, %38 : vector<384x128xf32>
    %c0_35 = arith.constant 0 : index
    %c0_36 = arith.constant 0 : index
    %40 = vector.load %arg10[%c0_35, %c0_36] : memref<384x128xf32, #tpu.memory_space<vmem>>, vector<384x128xf32>
    tpu.vector_store %arg10[%c0_35, %c0_36], %39 {strides = array<i32>} : memref<384x128xf32, #tpu.memory_space<vmem>>, vector<384x128xf32>,
    %c0_37 = arith.constant 0 : index
    %c0_38 = arith.constant 0 : index
    %41 = vector.load %arg10[%c0_37, %c0_38] : memref<384x128xf32, #tpu.memory_space<vmem>>, vector<384x128xf32>
    %c32_39 = arith.constant 32 : index
    %c0_40 = arith.constant 0 : index
    %42 = vector.load %arg9[%c32_39, %c0_40] : memref<448x128xbf16, #tpu.memory_space<vmem>>, vector<384x128xbf16>
    %c4 = arith.constant 4 : index
    %c0_41 = arith.constant 0 : index
    %c0_42 = arith.constant 0 : index
    %43 = vector.load %arg2[%c4, %c0_41, %c0_42] : memref<9x128x128xbf16, #tpu.memory_space<vmem>>, vector<1x128x128xbf16>
    %44 = vector.shape_cast %43 : vector<1x128x128xbf16> to vector<128x128xbf16>
    %cst_43 = arith.constant dense<0.000000e+00> : vector<384x128xf32>
    %45 = tpu.matmul %42, %44, %cst_43 {dimension_numbers = #tpu.dot_dimension_numbers<[1], [0], [0], [1], [0, 0, 1, 1], [], []>} : vector<384x128xbf16>, vector<128x128xbf16>, vector<384x128xf32> -> vector<384x128xf32>
    %c33 = arith.constant 33 : index
    %c0_44 = arith.constant 0 : index
    %46 = vector.load %arg9[%c33, %c0_44] : memref<448x128xbf16, #tpu.memory_space<vmem>>, vector<384x128xbf16>
    %c5 = arith.constant 5 : index
    %c0_45 = arith.constant 0 : index
    %c0_46 = arith.constant 0 : index
    %47 = vector.load %arg2[%c5, %c0_45, %c0_46] : memref<9x128x128xbf16, #tpu.memory_space<vmem>>, vector<1x128x128xbf16>
    %48 = vector.shape_cast %47 : vector<1x128x128xbf16> to vector<128x128xbf16>
    %cst_47 = arith.constant dense<0.000000e+00> : vector<384x128xf32>
    %49 = tpu.matmul %46, %48, %cst_47 {dimension_numbers = #tpu.dot_dimension_numbers<[1], [0], [0], [1], [0, 0, 1, 1], [], []>} : vector<384x128xbf16>, vector<128x128xbf16>, vector<384x128xf32> -> vector<384x128xf32>
    %50 = arith.addf %45, %49 : vector<384x128xf32>
    %51 = arith.addf %41, %50 : vector<384x128xf32>
    %c0_48 = arith.constant 0 : index
    %c0_49 = arith.constant 0 : index
    %52 = vector.load %arg10[%c0_48, %c0_49] : memref<384x128xf32, #tpu.memory_space<vmem>>, vector<384x128xf32>
    tpu.vector_store %arg10[%c0_48, %c0_49], %51 {strides = array<i32>} : memref<384x128xf32, #tpu.memory_space<vmem>>, vector<384x128xf32>,
    %c0_50 = arith.constant 0 : index
    %c0_51 = arith.constant 0 : index
    %53 = vector.load %arg10[%c0_50, %c0_51] : memref<384x128xf32, #tpu.memory_space<vmem>>, vector<384x128xf32>
    %c55 = arith.constant 55 : index
    %c0_52 = arith.constant 0 : index
    %54 = vector.load %arg9[%c55, %c0_52] : memref<448x128xbf16, #tpu.memory_space<vmem>>, vector<384x128xbf16>
    %c6 = arith.constant 6 : index
    %c0_53 = arith.constant 0 : index
    %c0_54 = arith.constant 0 : index
    %55 = vector.load %arg2[%c6, %c0_53, %c0_54] : memref<9x128x128xbf16, #tpu.memory_space<vmem>>, vector<1x128x128xbf16>
    %56 = vector.shape_cast %55 : vector<1x128x128xbf16> to vector<128x128xbf16>
    %cst_55 = arith.constant dense<0.000000e+00> : vector<384x128xf32>
    %57 = tpu.matmul %54, %56, %cst_55 {dimension_numbers = #tpu.dot_dimension_numbers<[1], [0], [0], [1], [0, 0, 1, 1], [], []>} : vector<384x128xbf16>, vector<128x128xbf16>, vector<384x128xf32> -> vector<384x128xf32>
    %c56 = arith.constant 56 : index
    %c0_56 = arith.constant 0 : index
    %58 = vector.load %arg9[%c56, %c0_56] : memref<448x128xbf16, #tpu.memory_space<vmem>>, vector<384x128xbf16>
    %c7_57 = arith.constant 7 : index
    %c0_58 = arith.constant 0 : index
    %c0_59 = arith.constant 0 : index
    %59 = vector.load %arg2[%c7_57, %c0_58, %c0_59] : memref<9x128x128xbf16, #tpu.memory_space<vmem>>, vector<1x128x128xbf16>
    %60 = vector.shape_cast %59 : vector<1x128x128xbf16> to vector<128x128xbf16>
    %cst_60 = arith.constant dense<0.000000e+00> : vector<384x128xf32>
    %61 = tpu.matmul %58, %60, %cst_60 {dimension_numbers = #tpu.dot_dimension_numbers<[1], [0], [0], [1], [0, 0, 1, 1], [], []>} : vector<384x128xbf16>, vector<128x128xbf16>, vector<384x128xf32> -> vector<384x128xf32>
    %62 = arith.addf %57, %61 : vector<384x128xf32>
    %63 = arith.addf %53, %62 : vector<384x128xf32>
    %c0_61 = arith.constant 0 : index
    %c0_62 = arith.constant 0 : index
    %64 = vector.load %arg10[%c0_61, %c0_62] : memref<384x128xf32, #tpu.memory_space<vmem>>, vector<384x128xf32>
    tpu.vector_store %arg10[%c0_61, %c0_62], %63 {strides = array<i32>} : memref<384x128xf32, #tpu.memory_space<vmem>>, vector<384x128xf32>,
    %c0_63 = arith.constant 0 : index
    %c0_64 = arith.constant 0 : index
    %65 = vector.load %arg10[%c0_63, %c0_64] : memref<384x128xf32, #tpu.memory_space<vmem>>, vector<384x128xf32>
    %c57 = arith.constant 57 : index
    %c0_65 = arith.constant 0 : index
    %66 = vector.load %arg9[%c57, %c0_65] : memref<448x128xbf16, #tpu.memory_space<vmem>>, vector<384x128xbf16>
    %c8_66 = arith.constant 8 : index
    %c0_67 = arith.constant 0 : index
    %c0_68 = arith.constant 0 : index
    %67 = vector.load %arg2[%c8_66, %c0_67, %c0_68] : memref<9x128x128xbf16, #tpu.memory_space<vmem>>, vector<1x128x128xbf16>
    %68 = vector.shape_cast %67 : vector<1x128x128xbf16> to vector<128x128xbf16>
    %cst_69 = arith.constant dense<0.000000e+00> : vector<384x128xf32>
    %69 = tpu.matmul %66, %68, %cst_69 {dimension_numbers = #tpu.dot_dimension_numbers<[1], [0], [0], [1], [0, 0, 1, 1], [], []>} : vector<384x128xbf16>, vector<128x128xbf16>, vector<384x128xf32> -> vector<384x128xf32>
    %70 = arith.addf %65, %69 : vector<384x128xf32>
    %c0_70 = arith.constant 0 : index
    %c0_71 = arith.constant 0 : index
    %71 = vector.load %arg10[%c0_70, %c0_71] : memref<384x128xf32, #tpu.memory_space<vmem>>, vector<384x128xf32>
    tpu.vector_store %arg10[%c0_70, %c0_71], %70 {strides = array<i32>} : memref<384x128xf32, #tpu.memory_space<vmem>>, vector<384x128xf32>,
    %c0_72 = arith.constant 0 : index
    %c0_73 = arith.constant 0 : index
    %72 = vector.load %arg10[%c0_72, %c0_73] : memref<384x128xf32, #tpu.memory_space<vmem>>, vector<384x128xf32>
    %c0_74 = arith.constant 0 : index
    %c0_75 = arith.constant 0 : index
    %73 = vector.load %arg5[%c0_74, %c0_75] : memref<384x128xf32, #tpu.memory_space<vmem>>, vector<384x128xf32>
    %74 = arith.mulf %72, %73 : vector<384x128xf32>
    %cst_76 = arith.constant dense<0.000000e+00> : vector<128xf32>
    %75 = vector.multi_reduction <add>, %74, %cst_76 [0] : vector<384x128xf32> to vector<128xf32>
    %76 = vector.shape_cast %75 : vector<128xf32> to vector<1x128xf32>
    %77 = vector.shape_cast %76 : vector<1x128xf32> to vector<1x128xf32>
    %78 = vector.broadcast %77 : vector<1x128xf32> to vector<8x128xf32>
    %c0_77 = arith.constant 0 : index
    %c0_78 = arith.constant 0 : index
    %c0_79 = arith.constant 0 : index
    %79 = vector.load %arg7[%c0_77, %c0_78, %c0_79] : memref<1x8x128xf32, #tpu.memory_space<vmem>>, vector<1x8x128xf32>
    %80 = vector.shape_cast %79 : vector<1x8x128xf32> to vector<8x128xf32>
    %81 = vector.shape_cast %78 : vector<8x128xf32> to vector<1x8x128xf32>
    tpu.vector_store %arg7[%c0_77, %c0_78, %c0_79], %81 {strides = array<i32>} : memref<1x8x128xf32, #tpu.memory_space<vmem>>, vector<1x8x128xf32>,
    %82 = arith.mulf %74, %74 : vector<384x128xf32>
    %cst_80 = arith.constant dense<0.000000e+00> : vector<128xf32>
    %83 = vector.multi_reduction <add>, %82, %cst_80 [0] : vector<384x128xf32> to vector<128xf32>
    %84 = vector.shape_cast %83 : vector<128xf32> to vector<1x128xf32>
    %85 = vector.shape_cast %84 : vector<1x128xf32> to vector<1x128xf32>
    %86 = vector.broadcast %85 : vector<1x128xf32> to vector<8x128xf32>
    %c0_81 = arith.constant 0 : index
    %c0_82 = arith.constant 0 : index
    %c0_83 = arith.constant 0 : index
    %87 = vector.load %arg8[%c0_81, %c0_82, %c0_83] : memref<1x8x128xf32, #tpu.memory_space<vmem>>, vector<1x8x128xf32>
    %88 = vector.shape_cast %87 : vector<1x8x128xf32> to vector<8x128xf32>
    %89 = vector.shape_cast %86 : vector<8x128xf32> to vector<1x8x128xf32>
    tpu.vector_store %arg8[%c0_81, %c0_82, %c0_83], %89 {strides = array<i32>} : memref<1x8x128xf32, #tpu.memory_space<vmem>>, vector<1x8x128xf32>,
    %90 = arith.truncf %74 : vector<384x128xf32> to vector<384x128xbf16>
    %c0_84 = arith.constant 0 : index
    %c0_85 = arith.constant 0 : index
    %c0_86 = arith.constant 0 : index
    %91 = vector.load %arg6[%c0_84, %c0_85, %c0_86] : memref<1x384x128xbf16, #tpu.memory_space<vmem>>, vector<1x384x128xbf16>
    %92 = vector.shape_cast %91 : vector<1x384x128xbf16> to vector<384x128xbf16>
    %93 = vector.shape_cast %90 : vector<384x128xbf16> to vector<1x384x128xbf16>
    tpu.vector_store %arg6[%c0_84, %c0_85, %c0_86], %93 {strides = array<i32>} : memref<1x384x128xbf16, #tpu.memory_space<vmem>>, vector<1x384x128xbf16>,
    return
  }
  func.func @transform_0(%arg0: i32) -> (i32, i32, i32) {
    %c0_i32 = arith.constant 0 : i32
    %c0_i32_0 = arith.constant 0 : i32
    %c0_i32_1 = arith.constant 0 : i32
    return %arg0, %c0_i32, %c0_i32_0 : i32, i32, i32
  }
  func.func @transform_1(%arg0: i32) -> (i32, i32, i32) {
    %c0_i32 = arith.constant 0 : i32
    %c0_i32_0 = arith.constant 0 : i32
    %c0_i32_1 = arith.constant 0 : i32
    %c0_i32_2 = arith.constant 0 : i32
    return %c0_i32, %c0_i32_0, %c0_i32_1 : i32, i32, i32
  }
  func.func @transform_2(%arg0: i32) -> (i32, i32) {
    %c0_i32 = arith.constant 0 : i32
    %c0_i32_0 = arith.constant 0 : i32
    %c0_i32_1 = arith.constant 0 : i32
    return %c0_i32, %c0_i32_0 : i32, i32
  }
  func.func @transform_3(%arg0: i32) -> (i32, i32) {
    %c0_i32 = arith.constant 0 : i32
    %c0_i32_0 = arith.constant 0 : i32
    %c0_i32_1 = arith.constant 0 : i32
    return %c0_i32, %c0_i32_0 : i32, i32
  }
  func.func @transform_4(%arg0: i32) -> (i32, i32) {
    %c0_i32 = arith.constant 0 : i32
    %c0_i32_0 = arith.constant 0 : i32
    %c0_i32_1 = arith.constant 0 : i32
    return %c0_i32, %c0_i32_0 : i32, i32
  }
  func.func @transform_5(%arg0: i32) -> (i32, i32, i32) {
    %c0_i32 = arith.constant 0 : i32
    %c0_i32_0 = arith.constant 0 : i32
    %c0_i32_1 = arith.constant 0 : i32
    return %arg0, %c0_i32, %c0_i32_0 : i32, i32, i32
  }
  func.func @transform_6(%arg0: i32) -> (i32, i32, i32) {
    %c0_i32 = arith.constant 0 : i32
    %c0_i32_0 = arith.constant 0 : i32
    %c0_i32_1 = arith.constant 0 : i32
    return %arg0, %c0_i32, %c0_i32_0 : i32, i32, i32
  }
  func.func @transform_7(%arg0: i32) -> (i32, i32, i32) {
    %c0_i32 = arith.constant 0 : i32
    %c0_i32_0 = arith.constant 0 : i32
    %c0_i32_1 = arith.constant 0 : i32
    return %arg0, %c0_i32, %c0_i32_0 : i32, i32, i32
  }
}

</mosaic_0001>

<bundles_post_ra>
// kernel: resnet_block_forward.5
= control target key start
LH: loop header
LB: loop body
LE: loop exit
PB: predicated region body
PF: predicated region fallthrough
CT: control target
= control target key end

     0   :  { %s1026_s15 = smov 0   ;;  %s1259_s0 = inlined_call_operand.vmem [shape: bf16[2,384,128], index: 0, kind: input, shape index: {}]   ;;  %s1260_s1 = inlined_call_operand.vmem [shape: bf16[2,448,128], index: 1, kind: input, shape index: {}]   ;;  %s1261_s2 = inlined_call_operand.vmem [shape: f32[1,128], index: 2, kind: input, shape index: {}]   ;;  %s1262_s3 = inlined_call_operand.vmem [shape: f32[1,128], index: 3, kind: input, shape index: {}]   ;;  %s1263_s4 = inlined_call_operand.vmem [shape: f32[2,384,128], index: 4, kind: output, shape index: {}]  }
   0x1 LB: > { %s731_s16 = sadd.s32 4294967295, %s999_s15   ;;  %p735_p0 = scmp.ge.s32.totalorder %s999_s15, 1  ;;  %s999_s15 = sphi %s1026_s15, %s14_s15  }
   0x2   : > { %p172_p1 = scmp.lt.s32.totalorder %s999_s15, 3 }
   0x4   : > { %p173_p2 = pnand %p735_p0, %p172_p1 }
   0x5   : > { %p203_p3 = scmp.lt.s32.totalorder (!%p173_p2), %s731_s16, 1  ;;  %v1046_v0 = vld [vmem:[%s1261_s2] ss:$0 sm:$0xff] (!%p173_p2) }
   0x6   : > { %176 = sbr.rel (%p173_p2) target bundleno = 97 (0x61), region = 36  ;;  %v1062_v12 = vld [vmem:[%s1262_s3] ss:$0 sm:$0xff] (!%p173_p2) }
   0xd   : > { %s1265_s16 = smov (!%p203_p3, %s731_s16), 1 }
   0xe   : > { %s982_s17 = smul.u32 192, %s1265_s16 }
   0xf   : > { %s983_s18 = smul.u32 224, %s1265_s16 }
  0x10   : > { %s1041_s21 = scalar_lea.vmem %s1259_s0, %s982_s17  ;;  %s984_s29 = smul.u32 384, %s1265_s16 }
  0x11   : > { %s1051_s26 = scalar_lea.vmem %s1260_s1, %s983_s18  ;;  %v840_v1 = vld [vmem:[%s1041_s21] sm:$0xff]   ;;  %v959_v2 = vld [vmem:[%s1041_s21 + $0x8] sm:$0xff]   ;;  %v960_v3 = vld [vmem:[%s1041_s21 + $0x10] sm:$0xff]  }
  0x12   : > { %v935_v4 = vld [vmem:[%s1051_s26 + $0x10] sm:$0xff]   ;;  %v841_v5 = vunpack.c.l.bf16 %v840_v1  ;;  %v842_v6 = vunpack.c.h.bf16 %v840_v1  ;;  %v936_v7 = vld [vmem:[%s1051_s26 + $0x18] sm:$0xff]   ;;  %v845_v8 = vunpack.c.l.bf16 %v959_v2  ;;  %v846_v9 = vunpack.c.h.bf16 %v959_v2  ;;  %v937_v10 = vld [vmem:[%s1051_s26 + $0x20] sm:$0xff]   ;;  %s1080_s6 = scalar_lea.vmem %s1263_s4, %s984_s29 }
  0x13   : > { %v745_v11 = vunpack.c.l.bf16 %v935_v4  ;;  %v746_v13 = vunpack.c.h.bf16 %v935_v4  ;;  %v749_v14 = vunpack.c.l.bf16 %v936_v7  ;;  %v750_v15 = vunpack.c.h.bf16 %v936_v7  ;;  %v961_v20 = vld [vmem:[%s1041_s21 + $0x18] sm:$0xff]   ;;  %v938_v28 = vld [vmem:[%s1051_s26 + $0x28] sm:$0xff]   ;;  %v939_v41 = vld [vmem:[%s1051_s26 + $0x30] sm:$0xff]  }
  0x14   : > { %v417_v16 = vmul.f32 %v841_v5, %v1046_v0  ;;  %v418_v17 = vmul.f32 %v842_v6, %v1046_v0  ;;  %v419_v18 = vmul.f32 %v845_v8, %v1046_v0  ;;  %v420_v19 = vmul.f32 %v846_v9, %v1046_v0  ;;  %v962_v42 = vld [vmem:[%s1041_s21 + $0x20] sm:$0xff]   ;;  %v963_v51 = vld [vmem:[%s1041_s21 + $0x28] sm:$0xff]   ;;  %v940_v56 = vld [vmem:[%s1051_s26 + $0x38] sm:$0xff]  }
  0x15   : > { %v753_v21 = vunpack.c.l.bf16 %v937_v10  ;;  %v849_v22 = vunpack.c.l.bf16 %v960_v3  ;;  %v850_v23 = vunpack.c.h.bf16 %v960_v3  ;;  %v754_v30 = vunpack.c.h.bf16 %v937_v10  ;;  %v941_v2 = vld [vmem:[%s1051_s26 + $0x40] sm:$0xff]   ;;  %v964_v3 = vld [vmem:[%s1041_s21 + $0x30] sm:$0xff]  }
  0x16   : > { %v472_v24 = vadd.f32 %v1062_v12, %v417_v16  ;;  %v473_v25 = vadd.f32 %v1062_v12, %v418_v17  ;;  %v474_v26 = vadd.f32 %v1062_v12, %v419_v18  ;;  %v475_v27 = vadd.f32 %v1062_v12, %v420_v19 }
  0x17   : > { %v421_v29 = vmul.f32 %v849_v22, %v1046_v0  ;;  %v422_v31 = vmul.f32 %v850_v23, %v1046_v0  ;;  %v853_v32 = vunpack.c.l.bf16 %v961_v20  ;;  %v757_v39 = vunpack.c.l.bf16 %v938_v28  ;;  %v965_v22 = vld [vmem:[%s1041_s21 + $0x38] sm:$0xff]  }
  0x18   : > { %v520_v33 = vadd.f32 %v745_v11, %v472_v24  ;;  %v521_v34 = vadd.f32 %v746_v13, %v473_v25  ;;  %v522_v35 = vadd.f32 %v749_v14, %v474_v26  ;;  %v523_v36 = vadd.f32 %v750_v15, %v475_v27 }
  0x19   : > { %v476_v37 = vadd.f32 %v1062_v12, %v421_v29  ;;  %v477_v38 = vadd.f32 %v1062_v12, %v422_v31  ;;  %v423_v40 = vmul.f32 %v853_v32, %v1046_v0  ;;  %v854_v50 = vunpack.c.h.bf16 %v961_v20  ;;  %v966_v31 = vld [vmem:[%s1041_s21 + $0x40] sm:$0xff]  }
  0x1a   : > { %v568_v43 = vmax.f32 %v520_v33, 0.0  ;;  %v569_v44 = vmax.f32 %v521_v34, 0.0  ;;  %v570_v45 = vmax.f32 %v522_v35, 0.0  ;;  %v571_v46 = vmax.f32 %v523_v36, 0.0  ;;  %v943_v36 = vld [vmem:[%s1051_s26 + $0x50] sm:$0xff]  }
  0x1b   : > { %v524_v47 = vadd.f32 %v753_v21, %v476_v37  ;;  %v525_v48 = vadd.f32 %v754_v30, %v477_v38  ;;  %v478_v49 = vadd.f32 %v1062_v12, %v423_v40  ;;  %v758_v52 = vunpack.c.h.bf16 %v938_v28  ;;  %v942_v21 = vld [vmem:[%s1051_s26 + $0x48] sm:$0xff]  }
  0x1c   : > { %616 = vst [vmem:[%s1080_s6] sm:$0xff] %v568_v43  ;;  %617 = vst [vmem:[%s1080_s6 + $0x8] sm:$0xff] %v569_v44  ;;  %v761_v53 = vunpack.c.l.bf16 %v939_v41  ;;  %v857_v54 = vunpack.c.l.bf16 %v962_v42  ;;  %v858_v55 = vunpack.c.h.bf16 %v962_v42  ;;  %v424_v60 = vmul.f32 %v854_v50, %v1046_v0  ;;  %v944_v50 = vld [vmem:[%s1051_s26 + $0x58] sm:$0xff]  }
  0x1d   : > { %618 = vst [vmem:[%s1080_s6 + $0x10] sm:$0xff] %v570_v45  ;;  %619 = vst [vmem:[%s1080_s6 + $0x18] sm:$0xff] %v571_v46  ;;  %v572_v57 = vmax.f32 %v524_v47, 0.0  ;;  %v573_v58 = vmax.f32 %v525_v48, 0.0  ;;  %v526_v59 = vadd.f32 %v757_v39, %v478_v49  ;;  %v762_v62 = vunpack.c.h.bf16 %v939_v41  ;;  %v967_v45 = vld [vmem:[%s1041_s21 + $0x48] sm:$0xff]  }
  0x1e   : > { %v425_v61 = vmul.f32 %v857_v54, %v1046_v0  ;;  %v426_v63 = vmul.f32 %v858_v55, %v1046_v0  ;;  %v861_v1 = vunpack.c.l.bf16 %v963_v51  ;;  %v479_v5 = vadd.f32 %v1062_v12, %v424_v60 }
  0x1f   : > { %620 = vst [vmem:[%s1080_s6 + $0x20] sm:$0xff] %v572_v57  ;;  %621 = vst [vmem:[%s1080_s6 + $0x28] sm:$0xff] %v573_v58  ;;  %v574_v4 = vmax.f32 %v526_v59, 0.0  ;;  %v765_v6 = vunpack.c.l.bf16 %v940_v56  ;;  %v862_v7 = vunpack.c.h.bf16 %v963_v51  ;;  %v766_v11 = vunpack.c.h.bf16 %v940_v56  ;;  %v968_v59 = vld [vmem:[%s1041_s21 + $0x50] sm:$0xff]  }
  0x20   : > { %v480_v8 = vadd.f32 %v1062_v12, %v425_v61  ;;  %v481_v9 = vadd.f32 %v1062_v12, %v426_v63  ;;  %v427_v10 = vmul.f32 %v861_v1, %v1046_v0  ;;  %v527_v13 = vadd.f32 %v758_v52, %v479_v5  ;;  %v945_v1 = vld [vmem:[%s1051_s26 + $0x60] sm:$0xff]  }
  0x21   : > { %622 = vst [vmem:[%s1080_s6 + $0x30] sm:$0xff] %v574_v4  ;;  %v428_v14 = vmul.f32 %v862_v7, %v1046_v0  ;;  %v769_v15 = vunpack.c.l.bf16 %v941_v2  ;;  %v865_v16 = vunpack.c.l.bf16 %v964_v3  ;;  %v866_v20 = vunpack.c.h.bf16 %v964_v3 }
  0x22   : > { %v528_v17 = vadd.f32 %v761_v53, %v480_v8  ;;  %v529_v18 = vadd.f32 %v762_v62, %v481_v9  ;;  %v482_v19 = vadd.f32 %v1062_v12, %v427_v10  ;;  %v575_v23 = vmax.f32 %v527_v13, 0.0  ;;  %v969_v10 = vld [vmem:[%s1041_s21 + $0x58] sm:$0xff]  }
  0x23   : > { %v483_v24 = vadd.f32 %v1062_v12, %v428_v14  ;;  %v429_v25 = vmul.f32 %v865_v16, %v1046_v0  ;;  %v770_v26 = vunpack.c.h.bf16 %v941_v2  ;;  %v430_v30 = vmul.f32 %v866_v20, %v1046_v0  ;;  %v946_v16 = vld [vmem:[%s1051_s26 + $0x68] sm:$0xff]  }
  0x24   : > { %v576_v27 = vmax.f32 %v528_v17, 0.0  ;;  %v577_v28 = vmax.f32 %v529_v18, 0.0  ;;  %v530_v29 = vadd.f32 %v765_v6, %v482_v19  ;;  %623 = vst [vmem:[%s1080_s6 + $0x38] sm:$0xff] %v575_v23  ;;  %v773_v34 = vunpack.c.l.bf16 %v942_v21 }
  0x25   : > { %v531_v32 = vadd.f32 %v766_v11, %v483_v24  ;;  %v484_v33 = vadd.f32 %v1062_v12, %v429_v25  ;;  %v869_v35 = vunpack.c.l.bf16 %v965_v22  ;;  %v485_v38 = vadd.f32 %v1062_v12, %v430_v30  ;;  %v970_v25 = vld [vmem:[%s1041_s21 + $0x60] sm:$0xff]   ;;  %v947_v30 = vld [vmem:[%s1051_s26 + $0x70] sm:$0xff]  }
  0x26   : > { %624 = vst [vmem:[%s1080_s6 + $0x40] sm:$0xff] %v576_v27  ;;  %625 = vst [vmem:[%s1080_s6 + $0x48] sm:$0xff] %v577_v28  ;;  %v578_v37 = vmax.f32 %v530_v29, 0.0  ;;  %v774_v39 = vunpack.c.h.bf16 %v942_v21  ;;  %v870_v40 = vunpack.c.h.bf16 %v965_v22  ;;  %v873_v44 = vunpack.c.l.bf16 %v966_v31 }
  0x27   : > { %v579_v41 = vmax.f32 %v531_v32, 0.0  ;;  %v532_v42 = vadd.f32 %v769_v15, %v484_v33  ;;  %v431_v43 = vmul.f32 %v869_v35, %v1046_v0  ;;  %v533_v46 = vadd.f32 %v770_v26, %v485_v38 }
  0x28   : > { %626 = vst [vmem:[%s1080_s6 + $0x50] sm:$0xff] %v578_v37  ;;  %v432_v47 = vmul.f32 %v870_v40, %v1046_v0  ;;  %v777_v48 = vunpack.c.l.bf16 %v943_v36  ;;  %v874_v49 = vunpack.c.h.bf16 %v966_v31  ;;  %v433_v53 = vmul.f32 %v873_v44, %v1046_v0  ;;  %v948_v44 = vld [vmem:[%s1051_s26 + $0x78] sm:$0xff]  }
  0x29   : > { %627 = vst [vmem:[%s1080_s6 + $0x58] sm:$0xff] %v579_v41  ;;  %v580_v51 = vmax.f32 %v532_v42, 0.0  ;;  %v486_v52 = vadd.f32 %v1062_v12, %v431_v43  ;;  %v778_v54 = vunpack.c.h.bf16 %v943_v36  ;;  %v581_v55 = vmax.f32 %v533_v46, 0.0 }
  0x2a   : > { %v487_v56 = vadd.f32 %v1062_v12, %v432_v47  ;;  %v434_v57 = vmul.f32 %v874_v49, %v1046_v0  ;;  %v877_v58 = vunpack.c.l.bf16 %v967_v45  ;;  %v488_v61 = vadd.f32 %v1062_v12, %v433_v53  ;;  %v972_v53 = vld [vmem:[%s1041_s21 + $0x70] sm:$0xff]  }
  0x2b   : > { %628 = vst [vmem:[%s1080_s6 + $0x60] sm:$0xff] %v580_v51  ;;  %v534_v60 = vadd.f32 %v773_v34, %v486_v52  ;;  %v781_v62 = vunpack.c.l.bf16 %v944_v50  ;;  %v878_v63 = vunpack.c.h.bf16 %v967_v45  ;;  %629 = vst [vmem:[%s1080_s6 + $0x68] sm:$0xff] %v581_v55  ;;  %v782_v5 = vunpack.c.h.bf16 %v944_v50 }
  0x2c   : > { %v535_v2 = vadd.f32 %v774_v39, %v487_v56  ;;  %v489_v3 = vadd.f32 %v1062_v12, %v434_v57  ;;  %v435_v4 = vmul.f32 %v877_v58, %v1046_v0  ;;  %v536_v7 = vadd.f32 %v777_v48, %v488_v61  ;;  %v971_v39 = vld [vmem:[%s1041_s21 + $0x68] sm:$0xff]   ;;  %v949_v58 = vld [vmem:[%s1051_s26 + $0x80] sm:$0xff]  }
  0x2d   : > { %v582_v6 = vmax.f32 %v534_v60, 0.0  ;;  %v436_v8 = vmul.f32 %v878_v63, %v1046_v0  ;;  %v881_v9 = vunpack.c.l.bf16 %v968_v59  ;;  %v785_v15 = vunpack.c.l.bf16 %v945_v1 }
  0x2e   : > { %v583_v11 = vmax.f32 %v535_v2, 0.0  ;;  %v537_v13 = vadd.f32 %v778_v54, %v489_v3  ;;  %v490_v14 = vadd.f32 %v1062_v12, %v435_v4  ;;  %v584_v17 = vmax.f32 %v536_v7, 0.0  ;;  %v973_v4 = vld [vmem:[%s1041_s21 + $0x78] sm:$0xff]  }
  0x2f   : > { %630 = vst [vmem:[%s1080_s6 + $0x70] sm:$0xff] %v582_v6  ;;  %v491_v18 = vadd.f32 %v1062_v12, %v436_v8  ;;  %v437_v19 = vmul.f32 %v881_v9, %v1046_v0  ;;  %v882_v20 = vunpack.c.h.bf16 %v968_v59  ;;  %v786_v23 = vunpack.c.h.bf16 %v945_v1  ;;  %v950_v9 = vld [vmem:[%s1051_s26 + $0x88] sm:$0xff]  }
  0x30   : > { %631 = vst [vmem:[%s1080_s6 + $0x78] sm:$0xff] %v583_v11  ;;  %v585_v21 = vmax.f32 %v537_v13, 0.0  ;;  %v538_v22 = vadd.f32 %v781_v62, %v490_v14  ;;  %v885_v24 = vunpack.c.l.bf16 %v969_v10  ;;  %632 = vst [vmem:[%s1080_s6 + $0x80] sm:$0xff] %v584_v17  ;;  %v789_v29 = vunpack.c.l.bf16 %v946_v16 }
  0x31   : > { %v539_v26 = vadd.f32 %v782_v5, %v491_v18  ;;  %v492_v27 = vadd.f32 %v1062_v12, %v437_v19  ;;  %v438_v28 = vmul.f32 %v882_v20, %v1046_v0  ;;  %v790_v33 = vunpack.c.h.bf16 %v946_v16  ;;  %v974_v19 = vld [vmem:[%s1041_s21 + $0x80] sm:$0xff]  }
  0x32   : > { %633 = vst [vmem:[%s1080_s6 + $0x88] sm:$0xff] %v585_v21  ;;  %v586_v31 = vmax.f32 %v538_v22, 0.0  ;;  %v439_v32 = vmul.f32 %v885_v24, %v1046_v0  ;;  %v886_v34 = vunpack.c.h.bf16 %v969_v10  ;;  %v889_v38 = vunpack.c.l.bf16 %v970_v25  ;;  %v951_v24 = vld [vmem:[%s1051_s26 + $0x90] sm:$0xff]  }
  0x33   : > { %v587_v35 = vmax.f32 %v539_v26, 0.0  ;;  %v540_v36 = vadd.f32 %v785_v15, %v492_v27  ;;  %v493_v37 = vadd.f32 %v1062_v12, %v438_v28  ;;  %v793_v42 = vunpack.c.l.bf16 %v947_v30 }
  0x34   : > { %634 = vst [vmem:[%s1080_s6 + $0x90] sm:$0xff] %v586_v31  ;;  %v494_v40 = vadd.f32 %v1062_v12, %v439_v32  ;;  %v440_v41 = vmul.f32 %v886_v34, %v1046_v0  ;;  %v890_v43 = vunpack.c.h.bf16 %v970_v25  ;;  %v441_v47 = vmul.f32 %v889_v38, %v1046_v0  ;;  %v952_v38 = vld [vmem:[%s1051_s26 + $0x98] sm:$0xff]  }
  0x35   : > { %635 = vst [vmem:[%s1080_s6 + $0x98] sm:$0xff] %v587_v35  ;;  %v588_v45 = vmax.f32 %v540_v36, 0.0  ;;  %v541_v46 = vadd.f32 %v786_v23, %v493_v37  ;;  %v794_v48 = vunpack.c.h.bf16 %v947_v30  ;;  %v893_v52 = vunpack.c.l.bf16 %v971_v39 }
  0x36   : > { %v542_v49 = vadd.f32 %v789_v29, %v494_v40  ;;  %v495_v50 = vadd.f32 %v1062_v12, %v440_v41  ;;  %v442_v51 = vmul.f32 %v890_v43, %v1046_v0  ;;  %v496_v55 = vadd.f32 %v1062_v12, %v441_v47  ;;  %v976_v47 = vld [vmem:[%s1041_s21 + $0x90] sm:$0xff]  }
  0x37   : > { %636 = vst [vmem:[%s1080_s6 + $0xa0] sm:$0xff] %v588_v45  ;;  %v589_v54 = vmax.f32 %v541_v46, 0.0  ;;  %v797_v56 = vunpack.c.l.bf16 %v948_v44  ;;  %v894_v57 = vunpack.c.h.bf16 %v971_v39  ;;  %v443_v62 = vmul.f32 %v893_v52, %v1046_v0  ;;  %v953_v52 = vld [vmem:[%s1051_s26 + $0xa0] sm:$0xff]  }
  0x38   : > { %v590_v59 = vmax.f32 %v542_v49, 0.0  ;;  %v543_v60 = vadd.f32 %v790_v33, %v495_v50  ;;  %v497_v61 = vadd.f32 %v1062_v12, %v442_v51  ;;  %v544_v63 = vadd.f32 %v793_v42, %v496_v55  ;;  %v975_v33 = vld [vmem:[%s1041_s21 + $0x88] sm:$0xff]  }
  0x39   : > { %637 = vst [vmem:[%s1080_s6 + $0xa8] sm:$0xff] %v589_v54  ;;  %v798_v1 = vunpack.c.h.bf16 %v948_v44  ;;  %v444_v2 = vmul.f32 %v894_v57, %v1046_v0  ;;  %v897_v3 = vunpack.c.l.bf16 %v972_v53  ;;  %v498_v7 = vadd.f32 %v1062_v12, %v443_v62 }
  0x3a   : > { %638 = vst [vmem:[%s1080_s6 + $0xb0] sm:$0xff] %v590_v59  ;;  %v591_v5 = vmax.f32 %v543_v60, 0.0  ;;  %v545_v6 = vadd.f32 %v794_v48, %v497_v61  ;;  %v801_v8 = vunpack.c.l.bf16 %v949_v58  ;;  %v592_v10 = vmax.f32 %v544_v63, 0.0  ;;  %v977_v61 = vld [vmem:[%s1041_s21 + $0x98] sm:$0xff]  }
  0x3b   : > { %v499_v11 = vadd.f32 %v1062_v12, %v444_v2  ;;  %v445_v13 = vmul.f32 %v897_v3, %v1046_v0  ;;  %v898_v14 = vunpack.c.h.bf16 %v972_v53  ;;  %v546_v16 = vadd.f32 %v797_v56, %v498_v7  ;;  %v954_v3 = vld [vmem:[%s1051_s26 + $0xa8] sm:$0xff]  }
  0x3c   : > { %639 = vst [vmem:[%s1080_s6 + $0xb8] sm:$0xff] %v591_v5  ;;  %v593_v15 = vmax.f32 %v545_v6, 0.0  ;;  %v802_v17 = vunpack.c.h.bf16 %v949_v58  ;;  %v901_v18 = vunpack.c.l.bf16 %v973_v4  ;;  %640 = vst [vmem:[%s1080_s6 + $0xc0] sm:$0xff] %v592_v10  ;;  %v805_v23 = vunpack.c.l.bf16 %v950_v9 }
  0x3d   : > { %v547_v20 = vadd.f32 %v798_v1, %v499_v11  ;;  %v500_v21 = vadd.f32 %v1062_v12, %v445_v13  ;;  %v446_v22 = vmul.f32 %v898_v14, %v1046_v0  ;;  %v594_v25 = vmax.f32 %v546_v16, 0.0  ;;  %v978_v13 = vld [vmem:[%s1041_s21 + $0xa0] sm:$0xff]  }
  0x3e   : > { %641 = vst [vmem:[%s1080_s6 + $0xc8] sm:$0xff] %v593_v15  ;;  %v447_v26 = vmul.f32 %v901_v18, %v1046_v0  ;;  %v806_v27 = vunpack.c.h.bf16 %v950_v9  ;;  %v902_v28 = vunpack.c.h.bf16 %v973_v4  ;;  %v905_v32 = vunpack.c.l.bf16 %v974_v19  ;;  %v955_v18 = vld [vmem:[%s1051_s26 + $0xb0] sm:$0xff]  }
  0x3f   : > { %v595_v29 = vmax.f32 %v547_v20, 0.0  ;;  %v548_v30 = vadd.f32 %v801_v8, %v500_v21  ;;  %v501_v31 = vadd.f32 %v1062_v12, %v446_v22  ;;  %642 = vst [vmem:[%s1080_s6 + $0xd0] sm:$0xff] %v594_v25  ;;  %v809_v36 = vunpack.c.l.bf16 %v951_v24 }
  0x40   : > { %v502_v34 = vadd.f32 %v1062_v12, %v447_v26  ;;  %v448_v35 = vmul.f32 %v902_v28, %v1046_v0  ;;  %v906_v37 = vunpack.c.h.bf16 %v974_v19  ;;  %v449_v41 = vmul.f32 %v905_v32, %v1046_v0  ;;  %v956_v32 = vld [vmem:[%s1051_s26 + $0xb8] sm:$0xff]  }
  0x41   : > { %643 = vst [vmem:[%s1080_s6 + $0xd8] sm:$0xff] %v595_v29  ;;  %v596_v39 = vmax.f32 %v548_v30, 0.0  ;;  %v549_v40 = vadd.f32 %v802_v17, %v501_v31  ;;  %v810_v42 = vunpack.c.h.bf16 %v951_v24  ;;  %v909_v46 = vunpack.c.l.bf16 %v975_v33 }
  0x42   : > { %v550_v43 = vadd.f32 %v805_v23, %v502_v34  ;;  %v503_v44 = vadd.f32 %v1062_v12, %v448_v35  ;;  %v450_v45 = vmul.f32 %v906_v37, %v1046_v0  ;;  %v504_v49 = vadd.f32 %v1062_v12, %v449_v41  ;;  %v980_v41 = vld [vmem:[%s1041_s21 + $0xb0] sm:$0xff]  }
  0x43   : > { %644 = vst [vmem:[%s1080_s6 + $0xe0] sm:$0xff] %v596_v39  ;;  %v597_v48 = vmax.f32 %v549_v40, 0.0  ;;  %v813_v50 = vunpack.c.l.bf16 %v952_v38  ;;  %v910_v51 = vunpack.c.h.bf16 %v975_v33  ;;  %v451_v56 = vmul.f32 %v909_v46, %v1046_v0  ;;  %v957_v46 = vld [vmem:[%s1051_s26 + $0xc0] sm:$0xff]  }
  0x44   : > { %v598_v53 = vmax.f32 %v550_v43, 0.0  ;;  %v551_v54 = vadd.f32 %v806_v27, %v503_v44  ;;  %v505_v55 = vadd.f32 %v1062_v12, %v450_v45  ;;  %v552_v57 = vadd.f32 %v809_v36, %v504_v49  ;;  %v979_v27 = vld [vmem:[%s1041_s21 + $0xa8] sm:$0xff]  }
  0x45   : > { %645 = vst [vmem:[%s1080_s6 + $0xe8] sm:$0xff] %v597_v48  ;;  %v814_v58 = vunpack.c.h.bf16 %v952_v38  ;;  %v452_v59 = vmul.f32 %v910_v51, %v1046_v0  ;;  %v913_v60 = vunpack.c.l.bf16 %v976_v47  ;;  %v506_v1 = vadd.f32 %v1062_v12, %v451_v56 }
  0x46   : > { %646 = vst [vmem:[%s1080_s6 + $0xf0] sm:$0xff] %v598_v53  ;;  %v599_v62 = vmax.f32 %v551_v54, 0.0  ;;  %v553_v63 = vadd.f32 %v810_v42, %v505_v55  ;;  %v817_v2 = vunpack.c.l.bf16 %v953_v52  ;;  %v600_v4 = vmax.f32 %v552_v57, 0.0  ;;  %v981_v55 = vld [vmem:[%s1041_s21 + $0xb8] sm:$0xff]  }
  0x47   : > { %v507_v5 = vadd.f32 %v1062_v12, %v452_v59  ;;  %v453_v6 = vmul.f32 %v913_v60, %v1046_v0  ;;  %v914_v7 = vunpack.c.h.bf16 %v976_v47  ;;  %v554_v9 = vadd.f32 %v813_v50, %v506_v1  ;;  %v958_v1 = vld [vmem:[%s1051_s26 + $0xc8] sm:$0xff]  }
  0x48   : > { %647 = vst [vmem:[%s1080_s6 + $0xf8] sm:$0xff] %v599_v62  ;;  %v601_v8 = vmax.f32 %v553_v63, 0.0  ;;  %v818_v10 = vunpack.c.h.bf16 %v953_v52  ;;  %v917_v11 = vunpack.c.l.bf16 %v977_v61  ;;  %648 = vst [vmem:[%s1080_s6 + $0x100] sm:$0xff] %v600_v4  ;;  %v821_v17 = vunpack.c.l.bf16 %v954_v3 }
  0x49   : > { %v555_v14 = vadd.f32 %v814_v58, %v507_v5  ;;  %v508_v15 = vadd.f32 %v1062_v12, %v453_v6  ;;  %v454_v16 = vmul.f32 %v914_v7, %v1046_v0  ;;  %v602_v19 = vmax.f32 %v554_v9, 0.0 }
  0x4a   : > { %649 = vst [vmem:[%s1080_s6 + $0x108] sm:$0xff] %v601_v8  ;;  %v455_v20 = vmul.f32 %v917_v11, %v1046_v0  ;;  %v822_v21 = vunpack.c.h.bf16 %v954_v3  ;;  %v918_v22 = vunpack.c.h.bf16 %v977_v61  ;;  %v921_v26 = vunpack.c.l.bf16 %v978_v13 }
  0x4b   : > { %v603_v23 = vmax.f32 %v555_v14, 0.0  ;;  %v556_v24 = vadd.f32 %v817_v2, %v508_v15  ;;  %v509_v25 = vadd.f32 %v1062_v12, %v454_v16  ;;  %650 = vst [vmem:[%s1080_s6 + $0x110] sm:$0xff] %v602_v19  ;;  %v825_v30 = vunpack.c.l.bf16 %v955_v18 }
  0x4c   : > { %v510_v28 = vadd.f32 %v1062_v12, %v455_v20  ;;  %v456_v29 = vmul.f32 %v918_v22, %v1046_v0  ;;  %v922_v31 = vunpack.c.h.bf16 %v978_v13  ;;  %v457_v35 = vmul.f32 %v921_v26, %v1046_v0 }
  0x4d   : > { %651 = vst [vmem:[%s1080_s6 + $0x118] sm:$0xff] %v603_v23  ;;  %v604_v33 = vmax.f32 %v556_v24, 0.0  ;;  %v557_v34 = vadd.f32 %v818_v10, %v509_v25  ;;  %v826_v36 = vunpack.c.h.bf16 %v955_v18  ;;  %v925_v40 = vunpack.c.l.bf16 %v979_v27 }
  0x4e   : > { %v558_v37 = vadd.f32 %v821_v17, %v510_v28  ;;  %v511_v38 = vadd.f32 %v1062_v12, %v456_v29  ;;  %v458_v39 = vmul.f32 %v922_v31, %v1046_v0  ;;  %v512_v43 = vadd.f32 %v1062_v12, %v457_v35 }
  0x4f   : > { %652 = vst [vmem:[%s1080_s6 + $0x120] sm:$0xff] %v604_v33  ;;  %v605_v42 = vmax.f32 %v557_v34, 0.0  ;;  %v829_v44 = vunpack.c.l.bf16 %v956_v32  ;;  %v926_v45 = vunpack.c.h.bf16 %v979_v27  ;;  %v459_v50 = vmul.f32 %v925_v40, %v1046_v0 }
  0x50   : > { %v606_v47 = vmax.f32 %v558_v37, 0.0  ;;  %v559_v48 = vadd.f32 %v822_v21, %v511_v38  ;;  %v513_v49 = vadd.f32 %v1062_v12, %v458_v39  ;;  %v560_v51 = vadd.f32 %v825_v30, %v512_v43 }
  0x51   : > { %653 = vst [vmem:[%s1080_s6 + $0x128] sm:$0xff] %v605_v42  ;;  %v830_v52 = vunpack.c.h.bf16 %v956_v32  ;;  %v460_v53 = vmul.f32 %v926_v45, %v1046_v0  ;;  %v929_v54 = vunpack.c.l.bf16 %v980_v41  ;;  %v514_v58 = vadd.f32 %v1062_v12, %v459_v50 }
  0x52   : > { %654 = vst [vmem:[%s1080_s6 + $0x130] sm:$0xff] %v606_v47  ;;  %v607_v56 = vmax.f32 %v559_v48, 0.0  ;;  %v561_v57 = vadd.f32 %v826_v36, %v513_v49  ;;  %v833_v59 = vunpack.c.l.bf16 %v957_v46  ;;  %v608_v60 = vmax.f32 %v560_v51, 0.0 }
  0x53   : > { %v515_v61 = vadd.f32 %v1062_v12, %v460_v53  ;;  %v461_v62 = vmul.f32 %v929_v54, %v1046_v0  ;;  %v930_v63 = vunpack.c.h.bf16 %v980_v41  ;;  %v562_v3 = vadd.f32 %v829_v44, %v514_v58 }
  0x54   : > { %655 = vst [vmem:[%s1080_s6 + $0x138] sm:$0xff] %v607_v56  ;;  %v609_v2 = vmax.f32 %v561_v57, 0.0  ;;  %v933_v4 = vunpack.c.l.bf16 %v981_v55  ;;  %656 = vst [vmem:[%s1080_s6 + $0x140] sm:$0xff] %v608_v60  ;;  %v834_v7 = vunpack.c.h.bf16 %v957_v46  ;;  %v837_v10 = vunpack.c.l.bf16 %v958_v1 }
  0x55   : > { %v563_v5 = vadd.f32 %v830_v52, %v515_v61  ;;  %v516_v6 = vadd.f32 %v1062_v12, %v461_v62  ;;  %v462_v8 = vmul.f32 %v930_v63, %v1046_v0  ;;  %v610_v9 = vmax.f32 %v562_v3, 0.0 }
  0x56   : > { %657 = vst [vmem:[%s1080_s6 + $0x148] sm:$0xff] %v609_v2  ;;  %v463_v11 = vmul.f32 %v933_v4, %v1046_v0  ;;  %v934_v13 = vunpack.c.h.bf16 %v981_v55  ;;  %v838_v18 = vunpack.c.h.bf16 %v958_v1 }
  0x57   : > { %v611_v14 = vmax.f32 %v563_v5, 0.0  ;;  %v564_v15 = vadd.f32 %v833_v59, %v516_v6  ;;  %v517_v16 = vadd.f32 %v1062_v12, %v462_v8  ;;  %658 = vst [vmem:[%s1080_s6 + $0x150] sm:$0xff] %v610_v9 }
  0x58   : > { %v518_v17 = vadd.f32 %v1062_v12, %v463_v11  ;;  %v464_v19 = vmul.f32 %v934_v13, %v1046_v0 }
  0x59   : > { %659 = vst [vmem:[%s1080_s6 + $0x158] sm:$0xff] %v611_v14  ;;  %v612_v20 = vmax.f32 %v564_v15, 0.0  ;;  %v565_v21 = vadd.f32 %v834_v7, %v517_v16 }
  0x5a   : > { %v566_v22 = vadd.f32 %v837_v10, %v518_v17  ;;  %v519_v23 = vadd.f32 %v1062_v12, %v464_v19 }
  0x5b   : > { %660 = vst [vmem:[%s1080_s6 + $0x160] sm:$0xff] %v612_v20  ;;  %v613_v24 = vmax.f32 %v565_v21, 0.0 }
  0x5c   : > { %v614_v25 = vmax.f32 %v566_v22, 0.0  ;;  %v567_v26 = vadd.f32 %v838_v18, %v519_v23 }
  0x5d   : > { %661 = vst [vmem:[%s1080_s6 + $0x168] sm:$0xff] %v613_v24 }
  0x5e   : > { %662 = vst [vmem:[%s1080_s6 + $0x170] sm:$0xff] %v614_v25  ;;  %v615_v27 = vmax.f32 %v567_v26, 0.0 }
  0x60   : > { %663 = vst [vmem:[%s1080_s6 + $0x178] sm:$0xff] %v615_v27 }
  0x61 PF: > { %s14_s15 = sadd.s32 1, %s999_s15  }
  0x62   : > { %p11_p4 = scmp.ge.s32.totalorder %s14_s15, 4  }
  0x64   :  { %13 = sbr.rel (!%p11_p4) target bundleno = 1 (0x1), region = 69 }

// kernel: resnet_block_forward.4
= control target key start
LH: loop header
LB: loop body
LE: loop exit
PB: predicated region body
PF: predicated region fallthrough
CT: control target
= control target key end

     0   :  { %s8234_s24 = smov 0   ;;  %s10099_s0 = inlined_call_operand.vmem [shape: bf16[2,384,128], index: 0, kind: input, shape index: {}]   ;;  %s10100_s1 = inlined_call_operand.vmem [shape: bf16[9,128,128], index: 1, kind: input, shape index: {}]   ;;  %s10101_s2 = inlined_call_operand.vmem [shape: f32[1,128], index: 2, kind: input, shape index: {}]   ;;  %s10102_s3 = inlined_call_operand.vmem [shape: f32[1,128], index: 3, kind: input, shape index: {}]   ;;  %s10103_s4 = inlined_call_operand.vmem [shape: f32[384,128], index: 4, kind: input, shape index: {}]   ;;  %s10104_s5 = inlined_call_operand.vmem [shape: bf16[2,384,128], index: 5, kind: output, shape index: {0}]   ;;  %s10105_s6 = inlined_call_operand.vmem [shape: f32[2,8,128], index: 6, kind: output, shape index: {1}]   ;;  %s10106_s7 = inlined_call_operand.vmem [shape: f32[2,8,128], index: 7, kind: output, shape index: {2}]  }
   0x1 LB: > { %s6246_s25 = sadd.s32 4294967295, %s8191_s24   ;;  %p6250_p0 = scmp.ge.s32.totalorder %s8191_s24, 1  ;;  %s8191_s24 = sphi %s8234_s24, %s18_s24  }
   0x2   : > { %p242_p1 = scmp.lt.s32.totalorder %s8191_s24, 3 }
   0x4   : > { %p243_p2 = pnand %p6250_p0, %p242_p1 }
   0x6   : > { %246 = sbr.rel (%p243_p2) target bundleno = 714 (0x2ca), region = 40 }
   0xd   : > { %v8091_v0 = vld [vmem:[%s10100_s1 + $0x40] sm:$0xff]   ;;  %v8193_v2 = vmov 0   ;;  %v8093_v3 = vld [vmem:[%s10100_s1 + $0x48] sm:$0xff]   ;;  %p282_p3 = scmp.lt.s32.totalorder %s6246_s25, 1  ;;  %v8095_v5 = vld [vmem:[%s10100_s1 + $0x50] sm:$0xff]   ;;  %vm787_vm0 = vcmask 1043456  }
   0xe   : > { %v8092_v1 = vld [vmem:[%s10100_s1 + $0x140] sm:$0xff]   ;;  %651 = vst [vmem:[#allocation2] sm:$0xff] %v8193_v2  ;;  %652 = vst [vmem:[#allocation2 + $0x8] sm:$0xff] %v8193_v2  ;;  %7105 = vmatprep.subr.bf16.mxu1 %v8091_v0  ;;  %v8094_v4 = vld [vmem:[%s10100_s1 + $0x148] sm:$0xff]   ;;  %v8285_v12 = vrot.slane %v8193_v2, 4 }
   0xf   : > { %653 = vst [vmem:[#allocation2 + $0xd0] sm:$0xff] %v8193_v2  ;;  %654 = vst [vmem:[#allocation2 + $0xd8] sm:$0xff] %v8193_v2  ;;  %7361 = vmatprep.subr.bf16.mxu0 %v8092_v1  ;;  %7106 = vmatpush3.bf16.msra.mxu1 %v8091_v0  ;;  %v8096_v6 = vld [vmem:[%s10100_s1 + $0x150] sm:$0xff]   ;;  %s10214_s25 = smov (!%p282_p3, %s6246_s25), 1  ;;  %v8097_v7 = vld [vmem:[%s10100_s1 + $0x58] sm:$0xff]  }
  0x10   : > { %7362 = vmatpush3.bf16.msra.mxu0 %v8092_v1  ;;  %7107 = vmatprep.subr.bf16.mxu1 %v8093_v3  ;;  %v8098_v8 = vld [vmem:[%s10100_s1 + $0x158] sm:$0xff]   ;;  %s8081_s19 = smul.u32 192, %s10214_s25  ;;  %v8099_v9 = vld [vmem:[%s10100_s1 + $0x60] sm:$0xff]   ;;  %v8101_v11 = vld [vmem:[%s10100_s1 + $0x68] sm:$0xff]   ;;  %vm2923_vm1 = vsmask.f32 7424 }
  0x11   : > { %7363 = vmatprep.subr.bf16.mxu0 %v8094_v4  ;;  %v8100_v10 = vld [vmem:[%s10100_s1 + $0x160] sm:$0xff]   ;;  %v8102_v16 = vld [vmem:[%s10100_s1 + $0x168] sm:$0xff]   ;;  %v8103_v25 = vld [vmem:[%s10100_s1 + $0x70] sm:$0xff]   ;;  %vm1134_vm2 = vsmask.f32 4352  ;;  %s6253_s16 = sshll.u32 %s10214_s25, 3 }
  0x12   : > { %s8280_s28 = scalar_lea.vmem %s10099_s0, %s8081_s19  ;;  %v8291_v15 = vld [vmem:[%s10101_s2] ss:$0 sm:$0xff]  ;;  %v8104_v28 = vld [vmem:[%s10100_s1 + $0x170] sm:$0xff]   ;;  %v556_v33 = vld [vmem:[%s10103_s4 + $0x8] sm:$0xff]  ;;  %vm1814_vm3 = vsmask.f32 256  ;;  %s9915_s8 = scalar_lea.vmem %s10104_s5, %s8081_s19 }
  0x13   : > { %7108 = vmatpush3.bf16.msra.mxu1 %v8093_v3  ;;  %v6556_v14 = vld [vmem:[%s8280_s28] sm:$0xff]   ;;  %v6771_v24 = vld [vmem:[%s8280_s28 + $0x8] sm:$0xff]   ;;  %v6772_v32 = vld [vmem:[%s8280_s28 + $0x10] sm:$0xff]   ;;  %vm2308_vm4 = vsmask.f32 3328  ;;  %s295_s20 = scalar_lea.vmem %s10105_s6, %s6253_s16  ;;  %s299_s21 = scalar_lea.vmem %s10106_s7, %s6253_s16 }
  0x14   : > { %7364 = vmatpush3.bf16.msra.mxu0 %v8094_v4  ;;  %7109 = vmatprep.subr.bf16.mxu1 %v8095_v5  ;;  %v6557_v18 = vunpack.c.l.bf16 %v6556_v14  ;;  %v6558_v19 = vunpack.c.h.bf16 %v6556_v14  ;;  %v8299_v20 = vld [vmem:[%s10102_s3] ss:$0 sm:$0xff]  ;;  %v6561_v26 = vunpack.c.l.bf16 %v6771_v24  ;;  %v6562_v27 = vunpack.c.h.bf16 %v6771_v24  ;;  %v8105_v38 = vld [vmem:[%s10100_s1 + $0x78] sm:$0xff]   ;;  %v557_v45 = vld [vmem:[%s10103_s4 + $0x10] sm:$0xff] }
  0x15   : > { %7365 = vmatprep.subr.bf16.mxu0 %v8096_v6  ;;  %v744_v13 = vld [vmem:[#allocation2] sm:$0xf0]  ;;  %v6565_v36 = vunpack.c.l.bf16 %v6772_v32  ;;  %v6566_v37 = vunpack.c.h.bf16 %v6772_v32  ;;  %v6773_v41 = vld [vmem:[%s8280_s28 + $0x18] sm:$0xff]  }
  0x16   : > { %v788_v17 = vrot.slane %v744_v13, 4  ;;  %v404_v22 = vmul.f32 %v6557_v18, %v8291_v15  ;;  %v405_v23 = vmul.f32 %v6558_v19, %v8291_v15  ;;  %v555_v31 = vld [vmem:[%s10103_s4] sm:$0xff]  ;;  %v406_v34 = vmul.f32 %v6561_v26, %v8291_v15  ;;  %v8106_v42 = vld [vmem:[%s10100_s1 + $0x178] sm:$0xff]   ;;  %v6775_v26 = vld [vmem:[%s8280_s28 + $0x28] sm:$0xff]  }
  0x17   : > { %7110 = vmatpush3.bf16.msra.mxu1 %v8095_v5  ;;  %v407_v35 = vmul.f32 %v6562_v27, %v8291_v15  ;;  %v408_v46 = vmul.f32 %v6565_v36, %v8291_v15  ;;  %v6569_v47 = vunpack.c.l.bf16 %v6773_v41  ;;  %v8337_v48 = vld [vmem:[%s8280_s28 + $0x20] sm:$0xff]   ;;  %v558_v51 = vld [vmem:[%s10103_s4 + $0x18] sm:$0xff]  ;;  %v409_v52 = vmul.f32 %v6566_v37, %v8291_v15 }
  0x18   : > { %7366 = vmatpush3.bf16.msra.mxu0 %v8096_v6  ;;  %7111 = vmatprep.subr.bf16.mxu1 %v8097_v7  ;;  %v790_v21 = vsel %vm787_vm0, %v788_v17, %v8285_v12  ;;  %v459_v29 = vadd.f32 %v8299_v20, %v404_v22  ;;  %v460_v30 = vadd.f32 %v8299_v20, %v405_v23  ;;  %v6570_v53 = vunpack.c.h.bf16 %v6773_v41  ;;  %v559_v60 = vld [vmem:[%s10103_s4 + $0x20] sm:$0xff]  ;;  %v8110_v22 = vld [vmem:[%s10100_s1 + $0x8] sm:$0xff]  }
  0x19   : > { %7367 = vmatprep.subr.bf16.mxu0 %v8098_v8  ;;  %7121 = vmatprep.mubr.bf16.mxu1 %v790_v21  ;;  %v461_v43 = vadd.f32 %v8299_v20, %v406_v34  ;;  %v462_v44 = vadd.f32 %v8299_v20, %v407_v35  ;;  %v463_v56 = vadd.f32 %v8299_v20, %v408_v46  ;;  %v6573_v62 = vunpack.c.l.bf16 %v8337_v48  ;;  %v8107_v63 = vld [vmem:[%s10100_s1] sm:$0xff]   ;;  %v562_v21 = vld [vmem:[%s10103_s4 + $0x38] sm:$0xff] }
  0x1a   : > { %v507_v39 = vmax.f32 %v459_v29, 0.0  ;;  %v508_v40 = vmax.f32 %v460_v30, 0.0  ;;  %v410_v57 = vmul.f32 %v6569_v47, %v8291_v15  ;;  %v464_v59 = vadd.f32 %v8299_v20, %v409_v52 }
  0x1b   : > { %7112 = vmatpush3.bf16.msra.mxu1 %v8097_v7  ;;  %v509_v54 = vmax.f32 %v461_v43, 0.0  ;;  %v510_v55 = vmax.f32 %v462_v44, 0.0  ;;  %v411_v61 = vmul.f32 %v6570_v53, %v8291_v15  ;;  %v511_v2 = vmax.f32 %v463_v56, 0.0  ;;  %v8364_v7 = vld [vmem:[%s10100_s1 + $0x100] sm:$0xff]   ;;  %v8113_v43 = vld [vmem:[%s10100_s1 + $0x10] sm:$0xff]  }
  0x1c   : > { %7368 = vmatpush3.bf16.msra.mxu0 %v8098_v8  ;;  %7113 = vmatprep.subr.bf16.mxu1 %v8099_v9  ;;  %v603_v49 = vmul.f32 %v555_v31, %v507_v39  ;;  %v604_v50 = vmul.f32 %v556_v33, %v508_v40  ;;  %v465_v3 = vadd.f32 %v8299_v20, %v410_v57  ;;  %v512_v8 = vmax.f32 %v464_v59, 0.0 }
  0x1d   : > { %7369 = vmatprep.subr.bf16.mxu0 %v8100_v10  ;;  %v605_v0 = vmul.f32 %v557_v45, %v509_v54  ;;  %v606_v1 = vmul.f32 %v558_v51, %v510_v55  ;;  %v466_v13 = vadd.f32 %v8299_v20, %v411_v61  ;;  %v6574_v30 = vunpack.c.h.bf16 %v8337_v48  ;;  %v563_v48 = vld [vmem:[%s10103_s4 + $0x40] sm:$0xff]  ;;  %v564_v51 = vld [vmem:[%s10103_s4 + $0x48] sm:$0xff] }
  0x1e   : > { %v8345_v58 = vpack.c.bf16 %v604_v50, %v603_v49  ;;  %v513_v14 = vmax.f32 %v465_v3, 0.0  ;;  %v412_v34 = vmul.f32 %v6573_v62, %v8291_v15  ;;  %v6577_v37 = vunpack.c.l.bf16 %v6775_v26  ;;  %v8109_v54 = vld [vmem:[%s10100_s1 + $0x108] sm:$0xff]  }
  0x1f   : > { %7114 = vmatpush3.bf16.msra.mxu1 %v8099_v9  ;;  %v560_v9 = vld [vmem:[%s10103_s4 + $0x28] sm:$0xff]  ;;  %v413_v36 = vmul.f32 %v6574_v30, %v8291_v15 }
  0x20   : > { %7370 = vmatpush3.bf16.msra.mxu0 %v8100_v10  ;;  %7115 = vmatprep.subr.bf16.mxu1 %v8101_v11  ;;  %679 = vst [vmem:[#allocation2 + $0x10] sm:$0xff] %v8345_v58  ;;  %v791_v4 = vrot.slane %v8345_v58, 4  ;;  %v1153_v5 = vshrl.u32 %v8345_v58, 16  ;;  %v1156_v6 = vshll.u32 %v8345_v58, 16  ;;  %v8369_v10 = vpack.c.bf16 %v606_v1, %v605_v0 }
  0x21   : > { %7371 = vmatprep.subr.bf16.mxu0 %v8102_v16  ;;  %v467_v46 = vadd.f32 %v8299_v20, %v412_v34  ;;  %v468_v47 = vadd.f32 %v8299_v20, %v413_v36  ;;  %v414_v52 = vmul.f32 %v6577_v37, %v8291_v15 }
  0x22   : > { %v792_v17 = vsel %vm787_vm0, %v8285_v12, %v791_v4  ;;  %v8377_v18 = vrot.slane %v1153_v5, 3  ;;  %v2929_v19 = vrot.slane %v1156_v6, 1  ;;  %680 = vst [vmem:[#allocation2 + $0x18] sm:$0xff] %v8369_v10  ;;  %v2932_v23 = vshll.u32 %v8369_v10, 16 }
  0x23   : > { %7116 = vmatpush3.bf16.msra.mxu1 %v8101_v11  ;;  %v607_v11 = vmul.f32 %v559_v60, %v511_v2  ;;  %v608_v12 = vmul.f32 %v560_v9, %v512_v8  ;;  %v2936_v24 = vshrl.u32 %v8369_v10, 16  ;;  %v515_v56 = vmax.f32 %v467_v46, 0.0  ;;  %v6776_v60 = vld [vmem:[%s8280_s28 + $0x30] sm:$0xff]   ;;  %v6777_v8 = vld [vmem:[%s8280_s28 + $0x38] sm:$0xff]  }
  0x24   : > { %7372 = vmatpush3.bf16.msra.mxu0 %v8102_v16  ;;  %7117 = vmatprep.subr.bf16.mxu1 %v8103_v25  ;;  %v561_v16 = vld [vmem:[%s10103_s4 + $0x30] sm:$0xff]  ;;  %v2930_v27 = vor.u32 %v2929_v19, %v1153_v5  ;;  %v2934_v31 = vrot.slane %v2932_v23, 1  ;;  %v516_v57 = vmax.f32 %v468_v47, 0.0  ;;  %v469_v0 = vadd.f32 %v8299_v20, %v414_v52  ;;  %v8116_v9 = vld [vmem:[%s10100_s1 + $0x18] sm:$0xff]  }
  0x25   : > { %7373 = vmatprep.subr.bf16.mxu0 %v8104_v28  ;;  %v609_v29 = vmul.f32 %v561_v16, %v513_v14  ;;  %v8394_v32 = vpack.c.bf16 %v608_v12, %v607_v11  ;;  %v611_v2 = vmul.f32 %v563_v48, %v515_v56  ;;  %v565_v5 = vld [vmem:[%s10103_s4 + $0x50] sm:$0xff]  ;;  %v566_v14 = vld [vmem:[%s10103_s4 + $0x58] sm:$0xff]  ;;  %v6581_v16 = vunpack.c.l.bf16 %v6776_v60 }
  0x26   : > { %v2935_v39 = vsel %vm2923_vm1, %v2930_v27, %v2934_v31  ;;  %v2938_v40 = vor.u32 %v2936_v24, %v2934_v31  ;;  %v612_v3 = vmul.f32 %v564_v51, %v516_v57  ;;  %v6778_v27 = vld [vmem:[%s8280_s28 + $0x40] sm:$0xff]   ;;  %v6586_v36 = vunpack.c.h.bf16 %v6777_v8 }
  0x27   : > { %7118 = vmatpush3.bf16.msra.mxu1 %v8103_v25  ;;  %v793_v25 = vrot.slane %v8369_v10, 4  ;;  %681 = vst [vmem:[#allocation2 + $0x20] sm:$0xff] %v8394_v32  ;;  %v2940_v41 = vshll.u32 %v8394_v32, 16  ;;  %7377 = vmatprep.mubr.bf16.mxu0 %v2935_v39  ;;  %v2944_v45 = vshrl.u32 %v8394_v32, 16  ;;  %v416_v24 = vmul.f32 %v6581_v16, %v8291_v15 }
  0x28   : > { %7374 = vmatpush3.bf16.msra.mxu0 %v8104_v28  ;;  %7119 = vmatprep.subr.bf16.mxu1 %v8105_v38  ;;  %v514_v28 = vmax.f32 %v466_v13, 0.0  ;;  %v517_v13 = vmax.f32 %v469_v0, 0.0  ;;  %v419_v48 = vmul.f32 %v6586_v36, %v8291_v15  ;;  %v570_v0 = vld [vmem:[%s10103_s4 + $0x78] sm:$0xff] }
  0x29   : > { %7375 = vmatprep.subr.bf16.mxu0 %v8106_v42  ;;  %v794_v33 = vsel %vm787_vm0, %v791_v4, %v793_v25  ;;  %v2942_v49 = vrot.slane %v2940_v41, 1  ;;  %v471_v34 = vadd.f32 %v8299_v20, %v416_v24  ;;  %v567_v41 = vld [vmem:[%s10103_s4 + $0x60] sm:$0xff] }
  0x2a   : > { %v610_v35 = vmul.f32 %v562_v21, %v514_v28  ;;  %v8444_v21 = vpack.c.bf16 %v612_v3, %v611_v2  ;;  %v613_v12 = vmul.f32 %v565_v5, %v517_v13 }
  0x2b   : > { %7120 = vmatpush3.bf16.msra.mxu1 %v8105_v38  ;;  %v6578_v38 = vunpack.c.h.bf16 %v6775_v26  ;;  %v2943_v61 = vsel %vm2923_vm1, %v2938_v40, %v2942_v49  ;;  %v2946_v62 = vor.u32 %v2944_v45, %v2942_v49  ;;  %v6585_v26 = vunpack.c.l.bf16 %v6777_v8  ;;  %v8114_v8 = vld [vmem:[%s10100_s1 + $0x120] sm:$0xff]  }
  0x2c   : > { %7376 = vmatpush3.bf16.msra.mxu0 %v8106_v42  ;;  %7169 = vmatprep.subr.bf16.mxu1 %v8107_v63  ;;  %v795_v42 = vrot.slane %v8394_v32, 4  ;;  %v8406_v44 = vpack.c.bf16 %v610_v35, %v609_v29  ;;  %683 = vst [vmem:[#allocation2 + $0x30] sm:$0xff] %v8444_v21  ;;  %v2956_v28 = vshll.u32 %v8444_v21, 16  ;;  %v799_v29 = vrot.slane %v8444_v21, 4 }
  0x2d   : > { %7425 = vmatprep.subr.bf16.mxu0 %v8364_v7  ;;  %v415_v53 = vmul.f32 %v6578_v38, %v8291_v15  ;;  %v2960_v31 = vshrl.u32 %v8444_v21, 16  ;;  %v418_v37 = vmul.f32 %v6585_v26, %v8291_v15  ;;  %v6589_v45 = vunpack.c.l.bf16 %v6778_v27 }
  0x2e   : > { %7122 = vmatmul.mubr.bf16.vlgmr.msra.gmra.mrb[0].mxu1 %v792_v17  ;;  %v796_v50 = vsel %vm787_vm0, %v793_v25, %v795_v42  ;;  %682 = vst [vmem:[#allocation2 + $0x28] sm:$0xff] %v8406_v44  ;;  %v2948_v55 = vshll.u32 %v8406_v44, 16  ;;  %v2952_v59 = vshrl.u32 %v8406_v44, 16  ;;  %v6582_v17 = vunpack.c.h.bf16 %v6776_v60  ;;  %v569_v60 = vld [vmem:[%s10103_s4 + $0x70] sm:$0xff] }
  0x2f   : > { %7170 = vmatpush3.bf16.msra.mxu1 %v8107_v63  ;;  %7125 = vmatprep.mubr.bf16.mxu1 %v794_v33  ;;  %v797_v63 = vrot.slane %v8406_v44, 4  ;;  %v470_v4 = vadd.f32 %v8299_v20, %v415_v53  ;;  %v8119_v33 = vld [vmem:[%s10100_s1 + $0x20] sm:$0xff]   ;;  %v2958_v38 = vrot.slane %v2956_v28, 1  ;;  %v519_v46 = vmax.f32 %v471_v34, 0.0 }
  0x30   : > { %7171 = vmatprep.subr.bf16.mxu1 %v8110_v22  ;;  %7378 = vmatmul.mubr.bf16.vlgmr.msra.gmra.mrb[0].mxu0 %v2943_v61  ;;  %v2950_v1 = vrot.slane %v2948_v55, 1  ;;  %v417_v25 = vmul.f32 %v6582_v17, %v8291_v15  ;;  %v473_v49 = vadd.f32 %v8299_v20, %v418_v37  ;;  %v8121_v61 = vld [vmem:[%s10100_s1 + $0x28] sm:$0xff]   ;;  %v420_v2 = vmul.f32 %v6589_v45, %v8291_v15  ;;  %v6780_v17 = vld [vmem:[%s8280_s28 + $0x50] sm:$0xff]  }
  0x31   : > { %7426 = vmatpush3.bf16.msra.mxu0 %v8364_v7  ;;  %v798_v11 = vsel %vm787_vm0, %v795_v42, %v797_v63  ;;  %v8111_v7 = vld [vmem:[%s10100_s1 + $0x110] sm:$0xff]   ;;  %v518_v23 = vmax.f32 %v470_v4, 0.0  ;;  %v800_v39 = vsel %vm787_vm0, %v797_v63, %v799_v29  ;;  %v568_v42 = vld [vmem:[%s10103_s4 + $0x68] sm:$0xff]  ;;  %v2962_v51 = vor.u32 %v2960_v31, %v2958_v38  ;;  %v571_v31 = vld [vmem:[%s10103_s4 + $0x80] sm:$0xff] }
  0x32   : > { %7427 = vmatprep.subr.bf16.mxu0 %v8109_v54  ;;  %v2951_v19 = vsel %vm2923_vm1, %v2946_v62, %v2950_v1  ;;  %v472_v35 = vadd.f32 %v8299_v20, %v417_v25  ;;  %v615_v55 = vmul.f32 %v567_v41, %v519_v46  ;;  %v521_v63 = vmax.f32 %v473_v49, 0.0  ;;  %v8115_v37 = vld [vmem:[%s10100_s1 + $0x128] sm:$0xff]   ;;  %v573_v46 = vld [vmem:[%s10103_s4 + $0x90] sm:$0xff] }
  0x33   : > { %7172 = vmatpush3.bf16.msra.mxu1 %v8110_v22  ;;  %v2954_v22 = vor.u32 %v2952_v59, %v2950_v1  ;;  %7381 = vmatprep.mubr.bf16.mxu0 %v2951_v19  ;;  %v614_v30 = vmul.f32 %v566_v14, %v518_v23  ;;  %v474_v59 = vadd.f32 %v8299_v20, %v419_v48  ;;  %v6590_v1 = vunpack.c.h.bf16 %v6778_v27  ;;  %v8123_v27 = vld [vmem:[%s10100_s1 + $0x30] sm:$0xff]  }
  0x34   : > { %7173 = vmatprep.subr.bf16.mxu1 %v8113_v43  ;;  %v520_v47 = vmax.f32 %v472_v35, 0.0  ;;  %v617_v14 = vmul.f32 %v569_v60, %v521_v63  ;;  %v6597_v34 = vunpack.c.l.bf16 %v6780_v17 }
  0x35   : > { %7428 = vmatpush3.bf16.msra.mxu0 %v8109_v54  ;;  %v8463_v40 = vpack.c.bf16 %v614_v30, %v613_v12  ;;  %v6779_v54 = vld [vmem:[%s8280_s28 + $0x48] sm:$0xff]   ;;  %v522_v5 = vmax.f32 %v474_v59, 0.0  ;;  %v421_v16 = vmul.f32 %v6590_v1, %v8291_v15  ;;  %v475_v12 = vadd.f32 %v8299_v20, %v420_v2 }
  0x36   : > { %7126 = vmatmul.mubr.bf16.gmra.mrb[4].mxu1 %v796_v50  ;;  %7429 = vmatprep.subr.bf16.mxu0 %v8111_v7  ;;  %v2959_v50 = vsel %vm2923_vm1, %v2954_v22, %v2958_v38  ;;  %v616_v56 = vmul.f32 %v568_v42, %v520_v47  ;;  %v6594_v25 = vunpack.c.h.bf16 %v6779_v54  ;;  %v6781_v47 = vld [vmem:[%s8280_s28 + $0x58] sm:$0xff]  }
  0x37   : > { %7129 = vmatprep.mubr.bf16.mxu1 %v798_v11  ;;  %7174 = vmatpush3.bf16.msra.mxu1 %v8113_v43  ;;  %v8112_v43 = vld [vmem:[%s10100_s1 + $0x118] sm:$0xff]   ;;  %684 = vst [vmem:[#allocation2 + $0x38] sm:$0xff] %v8463_v40  ;;  %v2964_v52 = vshll.u32 %v8463_v40, 16  ;;  %v2968_v53 = vshrl.u32 %v8463_v40, 16  ;;  %v801_v57 = vrot.slane %v8463_v40, 4  ;;  %v476_v24 = vadd.f32 %v8299_v20, %v421_v16  ;;  %v8564_v16 = vld [vmem:[%s10100_s1 + $0xc0] sm:$0xff]  }
  0x38   : > { %7175 = vmatprep.subr.bf16.mxu1 %v8116_v9  ;;  %7382 = vmatmul.mubr.bf16.gmra.mrb[4].mxu0 %v2959_v50  ;;  %v8493_v3 = vpack.c.bf16 %v616_v56, %v615_v55  ;;  %v523_v35 = vmax.f32 %v475_v12, 0.0  ;;  %v423_v38 = vmul.f32 %v6594_v25, %v8291_v15  ;;  %v574_v55 = vld [vmem:[%s10103_s4 + $0x98] sm:$0xff]  ;;  %v6598_v56 = vunpack.c.h.bf16 %v6780_v17 }
  0x39   : > { %7430 = vmatpush3.bf16.msra.mxu0 %v8111_v7  ;;  %v2966_v62 = vrot.slane %v2964_v52, 1  ;;  %v802_v4 = vsel %vm787_vm0, %v799_v29, %v801_v57  ;;  %v618_v7 = vmul.f32 %v570_v0, %v522_v5  ;;  %v524_v36 = vmax.f32 %v476_v24, 0.0  ;;  %v8125_v52 = vld [vmem:[%s10100_s1 + $0x38] sm:$0xff]   ;;  %v6782_v5 = vld [vmem:[%s8280_s28 + $0x60] sm:$0xff]  }
  0x3a   : > { %7431 = vmatprep.subr.bf16.mxu0 %v8112_v43  ;;  %685 = vst [vmem:[#allocation2 + $0x40] sm:$0xff] %v8493_v3  ;;  %v2972_v19 = vshll.u32 %v8493_v3, 16  ;;  %v803_v22 = vrot.slane %v8493_v3, 4  ;;  %v10107_v23 = vshrl.u32 %v8493_v3, 16  ;;  %v619_v48 = vmul.f32 %v571_v31, %v523_v35  ;;  %v6783_v35 = vld [vmem:[%s8280_s28 + $0x68] sm:$0xff]  }
  0x3b   : > { %7176 = vmatpush3.bf16.msra.mxu1 %v8116_v9  ;;  %v6593_v9 = vunpack.c.l.bf16 %v6779_v54  ;;  %v2967_v11 = vsel %vm2923_vm1, %v2962_v51, %v2966_v62  ;;  %v2970_v13 = vor.u32 %v2968_v53, %v2966_v62  ;;  %v8513_v30 = vpack.c.bf16 %v618_v7, %v617_v14  ;;  %v8117_v62 = vld [vmem:[%s10100_s1 + $0x130] sm:$0xff]   ;;  %v575_v14 = vld [vmem:[%s10103_s4 + $0xa0] sm:$0xff] }
  0x3c   : > { %7177 = vmatprep.subr.bf16.mxu1 %v8119_v33  ;;  %7385 = vmatprep.mubr.bf16.mxu0 %v2967_v11  ;;  %v2974_v28 = vrot.slane %v2972_v19, 1  ;;  %v804_v29 = vsel %vm787_vm0, %v801_v57, %v803_v22  ;;  %v478_v51 = vadd.f32 %v8299_v20, %v423_v38  ;;  %v424_v57 = vmul.f32 %v6597_v34, %v8291_v15  ;;  %v8118_v34 = vld [vmem:[%s10100_s1 + $0x138] sm:$0xff]  }
  0x3d   : > { %7432 = vmatpush3.bf16.msra.mxu0 %v8112_v43  ;;  %v422_v26 = vmul.f32 %v6593_v9, %v8291_v15  ;;  %686 = vst [vmem:[#allocation2 + $0x48] sm:$0xff] %v8513_v30  ;;  %v2980_v43 = vshll.u32 %v8513_v30, 16  ;;  %v2984_v45 = vshrl.u32 %v8513_v30, 16  ;;  %v805_v50 = vrot.slane %v8513_v30, 4 }
  0x3e   : > { %7130 = vmatmul.mubr.bf16.gmra.mrb[8].mxu1 %v800_v39  ;;  %7433 = vmatprep.subr.bf16.mxu0 %v8114_v8  ;;  %v2975_v41 = vsel %vm2923_vm1, %v2970_v13, %v2974_v28  ;;  %v2978_v42 = vor.u32 %v10107_v23, %v2974_v28  ;;  %v6601_v63 = vunpack.c.l.bf16 %v6781_v47  ;;  %v479_v17 = vadd.f32 %v8299_v20, %v424_v57  ;;  %v8168_v23 = vld [vmem:[#allocation2 + $0x28] sm:$0xff] }
  0x3f   : > { %7178 = vmatpush3.bf16.msra.mxu1 %v8119_v33  ;;  %7133 = vmatprep.mubr.bf16.mxu1 %v802_v4  ;;  %v572_v33 = vld [vmem:[%s10103_s4 + $0x88] sm:$0xff]  ;;  %v477_v39 = vadd.f32 %v8299_v20, %v422_v26  ;;  %v2982_v53 = vrot.slane %v2980_v43, 1  ;;  %v806_v60 = vsel %vm787_vm0, %v803_v22, %v805_v50  ;;  %v425_v4 = vmul.f32 %v6598_v56, %v8291_v15 }
  0x40   : > { %7179 = vmatprep.subr.bf16.mxu1 %v8121_v61  ;;  %7386 = vmatmul.mubr.bf16.gmra.mrb[8].mxu0 %v2975_v41  ;;  %v620_v49 = vmul.f32 %v572_v33, %v524_v36  ;;  %v6602_v22 = vunpack.c.h.bf16 %v6781_v47  ;;  %v426_v7 = vmul.f32 %v6601_v63, %v8291_v15  ;;  %v576_v26 = vld [vmem:[%s10103_s4 + $0xa8] sm:$0xff]  ;;  %v527_v28 = vmax.f32 %v479_v17, 0.0  ;;  %v6784_v63 = vld [vmem:[%s8280_s28 + $0x70] sm:$0xff]  }
  0x41   : > { %7434 = vmatpush3.bf16.msra.mxu0 %v8114_v8  ;;  %v525_v54 = vmax.f32 %v477_v39, 0.0  ;;  %v2983_v0 = vsel %vm2923_vm1, %v2978_v42, %v2982_v53  ;;  %v2986_v1 = vor.u32 %v2984_v45, %v2982_v53  ;;  %v480_v19 = vadd.f32 %v8299_v20, %v425_v4 }
  0x42   : > { %v8545_v59 = vpack.c.bf16 %v620_v49, %v619_v48  ;;  %7435 = vmatprep.subr.bf16.mxu0 %v8115_v37  ;;  %7389 = vmatprep.mubr.bf16.mxu0 %v2983_v0  ;;  %v427_v31 = vmul.f32 %v6602_v22, %v8291_v15  ;;  %v481_v33 = vadd.f32 %v8299_v20, %v426_v7  ;;  %v578_v49 = vld [vmem:[%s10103_s4 + $0xb8] sm:$0xff]  ;;  %v6609_v56 = vunpack.c.l.bf16 %v6783_v35  ;;  %v579_v7 = vld [vmem:[%s10103_s4 + $0xc0] sm:$0xff] }
  0x43   : > { %7180 = vmatpush3.bf16.msra.mxu1 %v8121_v61  ;;  %v526_v61 = vmax.f32 %v478_v51, 0.0  ;;  %v621_v2 = vmul.f32 %v573_v46, %v525_v54  ;;  %v623_v41 = vmul.f32 %v575_v14, %v527_v28  ;;  %v577_v46 = vld [vmem:[%s10103_s4 + $0xb0] sm:$0xff] }
  0x44   : > { %7181 = vmatprep.subr.bf16.mxu1 %v8123_v27  ;;  %687 = vst [vmem:[#allocation2 + $0x50] sm:$0xff] %v8545_v59  ;;  %v2988_v8 = vshll.u32 %v8545_v59, 16  ;;  %v807_v9 = vrot.slane %v8545_v59, 4  ;;  %v2992_v13 = vshrl.u32 %v8545_v59, 16  ;;  %v482_v45 = vadd.f32 %v8299_v20, %v427_v31 }
  0x45   : > { %v622_v11 = vmul.f32 %v574_v55, %v526_v61  ;;  %7436 = vmatpush3.bf16.msra.mxu0 %v8115_v37  ;;  %v529_v48 = vmax.f32 %v481_v33, 0.0  ;;  %v8607_v55 = vld [vmem:[%s10100_s1 + $0x1c0] sm:$0xff]   ;;  %v430_v14 = vmul.f32 %v6609_v56, %v8291_v15 }
  0x46   : > { %7134 = vmatmul.mubr.bf16.gmra.mrb[12].mxu1 %v804_v29  ;;  %v2990_v12 = vrot.slane %v2988_v8, 1  ;;  %v808_v24 = vsel %vm787_vm0, %v805_v50, %v807_v9  ;;  %7437 = vmatprep.subr.bf16.mxu0 %v8117_v62  ;;  %v528_v29 = vmax.f32 %v480_v19, 0.0  ;;  %v6606_v50 = vunpack.c.h.bf16 %v6782_v5 }
  0x47   : > { %7182 = vmatpush3.bf16.msra.mxu1 %v8123_v27  ;;  %7137 = vmatprep.mubr.bf16.mxu1 %v806_v60  ;;  %v8572_v25 = vpack.c.bf16 %v622_v11, %v621_v2  ;;  %v6605_v27 = vunpack.c.l.bf16 %v6782_v5  ;;  %v530_v54 = vmax.f32 %v482_v45, 0.0  ;;  %v625_v61 = vmul.f32 %v577_v46, %v529_v48  ;;  %v581_v45 = vld [vmem:[%s10103_s4 + $0xd0] sm:$0xff]  ;;  %v582_v48 = vld [vmem:[%s10103_s4 + $0xd8] sm:$0xff] }
  0x48   : > { %7183 = vmatprep.subr.bf16.mxu1 %v8125_v52  ;;  %v2991_v36 = vsel %vm2923_vm1, %v2986_v1, %v2990_v12  ;;  %v2994_v37 = vor.u32 %v2992_v13, %v2990_v12  ;;  %v624_v42 = vmul.f32 %v576_v26, %v528_v29  ;;  %v6610_v11 = vunpack.c.h.bf16 %v6783_v35  ;;  %v580_v12 = vld [vmem:[%s10103_s4 + $0xc8] sm:$0xff] }
  0x49   : > { %688 = vst [vmem:[#allocation2 + $0x58] sm:$0xff] %v8572_v25  ;;  %v2996_v38 = vshll.u32 %v8572_v25, 16  ;;  %v3000_v39 = vshrl.u32 %v8572_v25, 16  ;;  %7390 = vmatmul.mubr.bf16.gmra.mrb[12].mxu0 %v2991_v36  ;;  %v809_v43 = vrot.slane %v8572_v25, 4  ;;  %v428_v51 = vmul.f32 %v6605_v27, %v8291_v15  ;;  %v6785_v36 = vld [vmem:[%s8280_s28 + $0x78] sm:$0xff]  }
  0x4a   : > { %7438 = vmatpush3.bf16.msra.mxu0 %v8117_v62  ;;  %v429_v62 = vmul.f32 %v6606_v50, %v8291_v15  ;;  %v626_v2 = vmul.f32 %v578_v49, %v530_v54  ;;  %v431_v28 = vmul.f32 %v6610_v11, %v8291_v15  ;;  %v485_v29 = vadd.f32 %v8299_v20, %v430_v14  ;;  %v583_v11 = vld [vmem:[%s10103_s4 + $0xe0] sm:$0xff]  ;;  %v584_v14 = vld [vmem:[%s10103_s4 + $0xe8] sm:$0xff] }
  0x4b   : > { %7184 = vmatpush3.bf16.msra.mxu1 %v8125_v52  ;;  %v2998_v47 = vrot.slane %v2996_v38, 1  ;;  %v8601_v52 = vpack.c.bf16 %v624_v42, %v623_v41  ;;  %v810_v53 = vsel %vm787_vm0, %v807_v9, %v809_v43  ;;  %7439 = vmatprep.subr.bf16.mxu0 %v8118_v34  ;;  %v483_v5 = vadd.f32 %v8299_v20, %v428_v51 }
  0x4c   : > { %7233 = vmatprep.subr.bf16.mxu1 %v8564_v16  ;;  %v484_v9 = vadd.f32 %v8299_v20, %v429_v62  ;;  %v8624_v22 = vpack.c.bf16 %v626_v2, %v625_v61  ;;  %v6614_v49 = vunpack.c.h.bf16 %v6784_v63  ;;  %v6617_v56 = vunpack.c.l.bf16 %v6785_v36 }
  0x4d   : > { %v2999_v57 = vsel %vm2923_vm1, %v2994_v37, %v2998_v47  ;;  %v3002_v60 = vor.u32 %v3000_v39, %v2998_v47  ;;  %689 = vst [vmem:[#allocation2 + $0x60] sm:$0xff] %v8601_v52  ;;  %v3004_v0 = vshll.u32 %v8601_v52, 16  ;;  %v811_v1 = vrot.slane %v8601_v52, 4 }
  0x4e   : > { %7138 = vmatmul.mubr.bf16.gmra.mrb[16].mxu1 %v808_v24  ;;  %7393 = vmatprep.mubr.bf16.mxu0 %v2999_v57  ;;  %v3008_v4 = vshrl.u32 %v8601_v52, 16  ;;  %v6613_v24 = vunpack.c.l.bf16 %v6784_v63  ;;  %v531_v26 = vmax.f32 %v483_v5, 0.0  ;;  %v532_v27 = vmax.f32 %v484_v9, 0.0  ;;  %690 = vst [vmem:[#allocation2 + $0x68] sm:$0xff] %v8624_v22  ;;  %v6786_v57 = vld [vmem:[%s8280_s28 + $0x80] sm:$0xff]  }
  0x4f   : > { %7141 = vmatprep.mubr.bf16.mxu1 %v810_v53  ;;  %7440 = vmatpush3.bf16.msra.mxu0 %v8118_v34  ;;  %v3006_v17 = vrot.slane %v3004_v0, 1  ;;  %v812_v19 = vsel %vm787_vm0, %v809_v43, %v811_v1  ;;  %v10124_v34 = vshll.u32 %v8624_v22, 16  ;;  %v3016_v35 = vshrl.u32 %v8624_v22, 16 }
  0x50   : > { %7489 = vmatprep.subr.bf16.mxu0 %v8607_v55  ;;  %v627_v37 = vmul.f32 %v579_v7, %v531_v26  ;;  %v628_v41 = vmul.f32 %v580_v12, %v532_v27  ;;  %v813_v42 = vrot.slane %v8624_v22, 4  ;;  %v486_v43 = vadd.f32 %v8299_v20, %v431_v28 }
  0x51   : > { %v3007_v31 = vsel %vm2923_vm1, %v3002_v60, %v3006_v17  ;;  %v3010_v33 = vor.u32 %v3008_v4, %v3006_v17  ;;  %v3014_v46 = vrot.slane %v10124_v34, 1  ;;  %v533_v47 = vmax.f32 %v485_v29, 0.0  ;;  %v585_v29 = vld [vmem:[%s10103_s4 + $0xf0] sm:$0xff] }
  0x52   : > { %7394 = vmatmul.mubr.bf16.gmra.mrb[16].mxu0 %v3007_v31  ;;  %v432_v50 = vmul.f32 %v6613_v24, %v8291_v15  ;;  %v8653_v51 = vpack.c.bf16 %v628_v41, %v627_v37  ;;  %v814_v53 = vsel %vm787_vm0, %v811_v1, %v813_v42  ;;  %v534_v54 = vmax.f32 %v486_v43, 0.0  ;;  %v6787_v41 = vld [vmem:[%s8280_s28 + $0x88] sm:$0xff]  }
  0x53   : > { %v3015_v60 = vsel %vm2923_vm1, %v3010_v33, %v3014_v46  ;;  %v3018_v61 = vor.u32 %v3016_v35, %v3014_v46  ;;  %v629_v62 = vmul.f32 %v581_v45, %v533_v47  ;;  %v433_v2 = vmul.f32 %v6614_v49, %v8291_v15  ;;  %v586_v46 = vld [vmem:[%s10103_s4 + $0xf8] sm:$0xff] }
  0x54   : > { %7397 = vmatprep.mubr.bf16.mxu0 %v3015_v60  ;;  %691 = vst [vmem:[#allocation2 + $0x70] sm:$0xff] %v8653_v51  ;;  %v10122_v63 = vshll.u32 %v8653_v51, 16  ;;  %v815_v5 = vrot.slane %v8653_v51, 4  ;;  %v630_v1 = vmul.f32 %v582_v48, %v534_v54  ;;  %v487_v9 = vadd.f32 %v8299_v20, %v432_v50  ;;  %v6788_v54 = vld [vmem:[%s8280_s28 + $0x90] sm:$0xff]   ;;  %v587_v60 = vld [vmem:[%s10103_s4 + $0x100] sm:$0xff] }
  0x55   : > { %v488_v17 = vadd.f32 %v8299_v20, %v433_v2  ;;  %v434_v7 = vmul.f32 %v6617_v56, %v8291_v15  ;;  %v6621_v12 = vunpack.c.l.bf16 %v6786_v57  ;;  %v6622_v37 = vunpack.c.h.bf16 %v6786_v57 }
  0x56   : > { %7142 = vmatmul.mubr.bf16.gmra.mrb[20].mxu1 %v812_v19  ;;  %v6618_v19 = vunpack.c.h.bf16 %v6785_v36  ;;  %v8675_v24 = vrot.slane %v10122_v63, 1  ;;  %v816_v26 = vsel %vm787_vm0, %v813_v42, %v815_v5  ;;  %v8678_v27 = vpack.c.bf16 %v630_v1, %v629_v62 }
  0x57   : > { %7145 = vmatprep.mubr.bf16.mxu1 %v814_v53  ;;  %v535_v28 = vmax.f32 %v487_v9, 0.0  ;;  %v536_v31 = vmax.f32 %v488_v17, 0.0  ;;  %v489_v36 = vadd.f32 %v8299_v20, %v434_v7  ;;  %v436_v47 = vmul.f32 %v6621_v12, %v8291_v15  ;;  %v6789_v12 = vld [vmem:[%s8280_s28 + $0x98] sm:$0xff]  }
  0x58   : > { %10138 = vst [vmem:[#allocation4_spill] sm:$0xff] %v8675_v24  ;;  %v435_v33 = vmul.f32 %v6618_v19, %v8291_v15  ;;  %v3023_v43 = vsel %vm2923_vm1, %v3018_v61, %v8675_v24  ;;  %692 = vst [vmem:[#allocation2 + $0x78] sm:$0xff] %v8678_v27  ;;  %v817_v42 = vrot.slane %v8678_v27, 4  ;;  %v437_v53 = vmul.f32 %v6622_v37, %v8291_v15  ;;  %v8708_v15 = vld [vmem:[%s10102_s3] ss:$0 sm:$0xff] }
  0x59   : > { %v631_v45 = vmul.f32 %v583_v11, %v535_v28  ;;  %v632_v48 = vmul.f32 %v584_v14, %v536_v31  ;;  %v537_v50 = vmax.f32 %v489_v36, 0.0  ;;  %v491_v57 = vadd.f32 %v8299_v20, %v436_v47  ;;  %v8717_v14 = vld [vmem:[%s10101_s2] ss:$0 sm:$0xff]  ;;  %v8122_v28 = vld [vmem:[%s10100_s1 + $0x1c8] sm:$0xff]   ;;  %v590_v36 = vld [vmem:[%s10103_s4 + $0x118] sm:$0xff] }
  0x5a   : > { %7398 = vmatmul.mubr.bf16.gmra.mrb[20].mxu0 %v3023_v43  ;;  %v490_v49 = vadd.f32 %v8299_v20, %v435_v33  ;;  %v818_v56 = vsel %vm787_vm0, %v815_v5, %v817_v42  ;;  %v6625_v61 = vunpack.c.l.bf16 %v6787_v41  ;;  %v6626_v62 = vunpack.c.h.bf16 %v6787_v41  ;;  %v588_v20 = vld [vmem:[%s10103_s4 + $0x108] sm:$0xff]  ;;  %v589_v33 = vld [vmem:[%s10103_s4 + $0x110] sm:$0xff] }
  0x5b   : > { %7441 = vmatprep.mubr.bf16.mxu0 %v8345_v58  ;;  %v8703_v2 = vpack.c.bf16 %v632_v48, %v631_v45  ;;  %v633_v9 = vmul.f32 %v585_v29, %v537_v50  ;;  %v492_v5 = vadd.f32 %v8708_v15, %v437_v53  ;;  %v539_v11 = vmax.f32 %v491_v57, 0.0  ;;  %v591_v53 = vld [vmem:[%s10103_s4 + $0x120] sm:$0xff]  ;;  %v598_v58 = vld [vmem:[%s10103_s4 + $0x158] sm:$0xff] }
  0x5c   : > { %v538_v1 = vmax.f32 %v490_v49, 0.0  ;;  %v438_v17 = vmul.f32 %v8717_v14, %v6625_v61  ;;  %v439_v19 = vmul.f32 %v8717_v14, %v6626_v62  ;;  %v6629_v7 = vunpack.c.l.bf16 %v6788_v54 }
  0x5d   : > { %693 = vst [vmem:[#allocation2 + $0x80] sm:$0xff] %v8703_v2  ;;  %v540_v31 = vmax.f32 %v492_v5, 0.0  ;;  %v6630_v37 = vunpack.c.h.bf16 %v6788_v54  ;;  %v635_v41 = vmul.f32 %v587_v60, %v539_v11  ;;  %v6633_v60 = vunpack.c.l.bf16 %v6789_v12 }
  0x5e   : > { %7146 = vmatmul.mubr.bf16.gmra.mrb[24].mxu1 %v816_v26  ;;  %v819_v26 = vrot.slane %v8703_v2, 4  ;;  %v634_v29 = vmul.f32 %v586_v46, %v538_v1  ;;  %v493_v43 = vadd.f32 %v8708_v15, %v438_v17  ;;  %v494_v45 = vadd.f32 %v8708_v15, %v439_v19  ;;  %v592_v1 = vld [vmem:[%s10103_s4 + $0x128] sm:$0xff] }
  0x5f   : > { %7149 = vmatprep.mubr.bf16.mxu1 %v818_v56  ;;  %v440_v47 = vmul.f32 %v8717_v14, %v6629_v7  ;;  %v636_v49 = vmul.f32 %v588_v20, %v540_v31  ;;  %v441_v50 = vmul.f32 %v8717_v14, %v6630_v37  ;;  %v6634_v5 = vunpack.c.h.bf16 %v6789_v12  ;;  %v6790_v20 = vld [vmem:[%s8280_s28 + $0xa0] sm:$0xff]   ;;  %v6791_v7 = vld [vmem:[%s8280_s28 + $0xa8] sm:$0xff]  }
  0x60   : > { %v820_v48 = vsel %vm787_vm0, %v817_v42, %v819_v26  ;;  %v8737_v46 = vpack.c.bf16 %v634_v29, %v633_v9  ;;  %v541_v54 = vmax.f32 %v493_v43, 0.0  ;;  %v542_v56 = vmax.f32 %v494_v45, 0.0  ;;  %v8124_v9 = vld [vmem:[%s10100_s1 + $0x1d0] sm:$0xff]  }
  0x61   : > { %v495_v57 = vadd.f32 %v8708_v15, %v440_v47  ;;  %v8747_v61 = vpack.c.bf16 %v636_v49, %v635_v41  ;;  %v496_v62 = vadd.f32 %v8708_v15, %v441_v50  ;;  %v442_v19 = vmul.f32 %v8717_v14, %v6633_v60  ;;  %v8126_v49 = vld [vmem:[%s10100_s1 + $0x1d8] sm:$0xff]  }
  0x62   : > { %7442 = vmatmul.mubr.bf16.vlgmr.msra.gmra.mrb[0].mxu0 %v8369_v10  ;;  %694 = vst [vmem:[#allocation2 + $0x88] sm:$0xff] %v8737_v46  ;;  %v821_v42 = vrot.slane %v8737_v46, 4  ;;  %v637_v10 = vmul.f32 %v589_v33, %v541_v54  ;;  %v638_v11 = vmul.f32 %v590_v36, %v542_v56  ;;  %v443_v12 = vmul.f32 %v8717_v14, %v6634_v5 }
  0x63   : > { %7490 = vmatpush3.bf16.msra.mxu0 %v8607_v55  ;;  %7445 = vmatprep.mubr.bf16.mxu0 %v8394_v32  ;;  %v543_v17 = vmax.f32 %v495_v57, 0.0  ;;  %695 = vst [vmem:[#allocation2 + $0x90] sm:$0xff] %v8747_v61  ;;  %v823_v31 = vrot.slane %v8747_v61, 4  ;;  %v544_v37 = vmax.f32 %v496_v62, 0.0  ;;  %v593_v32 = vld [vmem:[%s10103_s4 + $0x130] sm:$0xff]  ;;  %v497_v36 = vadd.f32 %v8708_v15, %v442_v19 }
  0x64   : > { %7491 = vmatprep.subr.bf16.mxu0 %v8122_v28  ;;  %v822_v29 = vsel %vm787_vm0, %v819_v26, %v821_v42  ;;  %v8768_v55 = vpack.c.bf16 %v638_v11, %v637_v10  ;;  %v594_v26 = vld [vmem:[%s10103_s4 + $0x138] sm:$0xff]  ;;  %v6637_v41 = vunpack.c.l.bf16 %v6790_v20  ;;  %v498_v47 = vadd.f32 %v8708_v15, %v443_v12 }
  0x65   : > { %v639_v33 = vmul.f32 %v591_v53, %v543_v17  ;;  %v824_v43 = vsel %vm787_vm0, %v821_v42, %v823_v31  ;;  %v640_v45 = vmul.f32 %v592_v1, %v544_v37  ;;  %v545_v53 = vmax.f32 %v497_v36, 0.0  ;;  %v6792_v1 = vld [vmem:[%s8280_s28 + $0xb0] sm:$0xff]  }
  0x66   : > { %7150 = vmatmul.mubr.bf16.gmra.mrb[28].mxu1 %v820_v48  ;;  %v6638_v48 = vunpack.c.h.bf16 %v6790_v20  ;;  %696 = vst [vmem:[#allocation2 + $0x98] sm:$0xff] %v8768_v55  ;;  %v825_v50 = vrot.slane %v8768_v55, 4  ;;  %v444_v54 = vmul.f32 %v8717_v14, %v6637_v41  ;;  %v6641_v56 = vunpack.c.l.bf16 %v6791_v7 }
  0x67   : > { %7153 = vmatprep.mubr.bf16.mxu1 %v822_v29  ;;  %7492 = vmatpush3.bf16.msra.mxu0 %v8122_v28  ;;  %v8782_v57 = vpack.c.bf16 %v640_v45, %v639_v33  ;;  %v546_v60 = vmax.f32 %v498_v47, 0.0  ;;  %v6642_v62 = vunpack.c.h.bf16 %v6791_v7  ;;  %v641_v28 = vmul.f32 %v593_v32, %v545_v53  ;;  %v595_v7 = vld [vmem:[%s10103_s4 + $0x140] sm:$0xff] }
  0x68   : > { %7493 = vmatprep.subr.bf16.mxu0 %v8124_v9  ;;  %v445_v42 = vmul.f32 %v8717_v14, %v6638_v48  ;;  %v826_v5 = vsel %vm787_vm0, %v823_v31, %v825_v50  ;;  %v499_v20 = vadd.f32 %v8708_v15, %v444_v54  ;;  %v446_v10 = vmul.f32 %v8717_v14, %v6641_v56 }
  0x69   : > { %697 = vst [vmem:[#allocation2 + $0xa0] sm:$0xff] %v8782_v57  ;;  %v827_v11 = vrot.slane %v8782_v57, 4  ;;  %v642_v17 = vmul.f32 %v594_v26, %v546_v60  ;;  %v447_v29 = vmul.f32 %v8717_v14, %v6642_v62  ;;  %v6645_v12 = vunpack.c.l.bf16 %v6792_v1  ;;  %v703_v60 = vld [vmem:[#allocation2] sm:$0xf8]  ;;  %v9309_v24 = vld [vmem:[#allocation2 + $0x88] sm:$0xff] }
  0x6a   : > { %7446 = vmatmul.mubr.bf16.gmra.mrb[4].mxu0 %v8406_v44  ;;  %v500_v19 = vadd.f32 %v8708_v15, %v445_v42  ;;  %v547_v31 = vmax.f32 %v499_v20, 0.0  ;;  %v596_v44 = vld [vmem:[%s10103_s4 + $0x148] sm:$0xff]  ;;  %v501_v37 = vadd.f32 %v8708_v15, %v446_v10  ;;  %v6646_v32 = vunpack.c.h.bf16 %v6792_v1 }
  0x6b   : > { %7449 = vmatprep.mubr.bf16.mxu0 %v8444_v21  ;;  %7494 = vmatpush3.bf16.msra.mxu0 %v8124_v9  ;;  %v1158_v33 = vrot.slane %v1156_v6, 4  ;;  %v8804_v36 = vpack.c.bf16 %v642_v17, %v641_v28  ;;  %v502_v41 = vadd.f32 %v8708_v15, %v447_v29  ;;  %v597_v21 = vld [vmem:[%s10103_s4 + $0x150] sm:$0xff]  ;;  %v8128_v9 = vld [vmem:[%s10100_s1 + $0x1e0] sm:$0xff]   ;;  %v448_v6 = vmul.f32 %v8717_v14, %v6645_v12 }
  0x6c   : > { %v548_v26 = vmax.f32 %v500_v19, 0.0  ;;  %7495 = vmatprep.subr.bf16.mxu0 %v8126_v49  ;;  %v549_v45 = vmax.f32 %v501_v37, 0.0  ;;  %v449_v47 = vmul.f32 %v8717_v14, %v6646_v32  ;;  %v828_v48 = vsel %vm787_vm0, %v825_v50, %v827_v11  ;;  %v599_v17 = vld [vmem:[%s10103_s4 + $0x160] sm:$0xff] }
  0x6d   : > { %698 = vst [vmem:[#allocation2 + $0xa8] sm:$0xff] %v8804_v36  ;;  %v829_v53 = vrot.slane %v8804_v36, 4  ;;  %v550_v56 = vmax.f32 %v502_v41, 0.0  ;;  %v503_v62 = vadd.f32 %v8708_v15, %v448_v6  ;;  %v1139_v32 = vshll.u32 %v703_v60, 16  ;;  %v8132_v6 = vld [vmem:[%s10100_s1 + $0x1f0] sm:$0xff]  }
  0x6e   : > { %7154 = vmatmul.mubr.bf16.gmra.mrb[32].mxu1 %v824_v43  ;;  %v643_v43 = vmul.f32 %v595_v7, %v547_v31  ;;  %v644_v54 = vmul.f32 %v596_v44, %v548_v26  ;;  %v645_v42 = vmul.f32 %v597_v21, %v549_v45  ;;  %v504_v1 = vadd.f32 %v8708_v15, %v449_v47 }
  0x6f   : > { %7157 = vmatprep.mubr.bf16.mxu1 %v826_v5  ;;  %7496 = vmatpush3.bf16.msra.mxu0 %v8126_v49  ;;  %v8165_v5 = vld [vmem:[#allocation2] sm:$0xff]  ;;  %v830_v20 = vsel %vm787_vm0, %v827_v11, %v829_v53  ;;  %v646_v50 = vmul.f32 %v598_v58, %v550_v56  ;;  %v600_v49 = vld [vmem:[%s10103_s4 + $0x168] sm:$0xff]  ;;  %v551_v7 = vmax.f32 %v503_v62, 0.0  ;;  %v1136_v31 = vshrl.u32 %v703_v60, 16  ;;  %v8166_v60 = vld [vmem:[#allocation2 + $0x18] sm:$0xff] }
  0x70   : > { %v1144_v28 = vshrl.u32 %v8165_v5, 16  ;;  %v8824_v10 = vpack.c.bf16 %v644_v54, %v643_v43  ;;  %v1147_v19 = vshll.u32 %v8165_v5, 16  ;;  %7497 = vmatprep.subr.bf16.mxu0 %v8128_v9  ;;  %v552_v29 = vmax.f32 %v504_v1, 0.0  ;;  %v8130_v11 = vld [vmem:[%s10100_s1 + $0x1e8] sm:$0xff]  }
  0x71   : > { %v8833_v44 = vor.u32 %v1158_v33, %v8377_v18  ;;  %v8841_v12 = vpack.c.bf16 %v646_v50, %v645_v42  ;;  %v10118_v26 = vshll.u32 %v8678_v27, 16  ;;  %v647_v18 = vmul.f32 %v599_v17, %v551_v7 }
  0x72   : > { %7450 = vmatmul.mubr.bf16.gmra.mrb[8].mxu0 %v8463_v40  ;;  %699 = vst [vmem:[#allocation2 + $0xb0] sm:$0xff] %v8824_v10  ;;  %v831_v37 = vrot.slane %v8824_v10, 4  ;;  %v648_v33 = vmul.f32 %v600_v49, %v552_v29  ;;  %v10121_v21 = vshrl.u32 %v8678_v27, 16  ;;  %v1146_v45 = vrot.slane %v1144_v28, 3  ;;  %v8167_v29 = vld [vmem:[#allocation2 + $0x20] sm:$0xff] }
  0x73   : > { %7453 = vmatprep.mubr.bf16.mxu0 %v8493_v3  ;;  %700 = vst [vmem:[#allocation2 + $0xb8] sm:$0xff] %v8841_v12  ;;  %v833_v41 = vrot.slane %v8841_v12, 4  ;;  %v8849_v40 = vrot.slane %v10118_v26, 1  ;;  %7498 = vmatpush3.bf16.msra.mxu0 %v8128_v9  ;;  %v1149_v58 = vrot.slane %v1147_v19, 4  ;;  %v1141_v54 = vrot.slane %v1139_v32, 4 }
  0x74   : > { %v8852_v43 = vpack.c.bf16 %v648_v33, %v647_v18  ;;  %7499 = vmatprep.subr.bf16.mxu0 %v8130_v11  ;;  %v832_v47 = vsel %vm787_vm0, %v829_v53, %v831_v37  ;;  %v1162_v42 = vshrl.u32 %v8166_v60, 16  ;;  %v10115_v62 = vshll.u32 %v8703_v2, 16 }
  0x75   : > { %10139 = vst [vmem:[#allocation5_spill] sm:$0xff] %v8849_v40  ;;  %v8861_v56 = vor.u32 %v10121_v21, %v8849_v40  ;;  %v834_v9 = vsel %vm787_vm0, %v831_v37, %v833_v41  ;;  %v1165_v1 = vshll.u32 %v8166_v60, 16  ;;  %v10109_v5 = vshll.u32 %v8737_v46, 16  ;;  %v6793_v21 = vld [vmem:[%s8280_s28 + $0xb8] sm:$0xff]  }
  0x76   : > { %7158 = vmatmul.mubr.bf16.gmra.mrb[36].mxu1 %v828_v48  ;;  %v1138_v48 = vrot.slane %v1136_v31, 3  ;;  %701 = vst [vmem:[#allocation2 + $0xc0] sm:$0xff] %v8852_v43  ;;  %v8869_v53 = vrot.slane %v10115_v62, 1  ;;  %v10117_v28 = vshrl.u32 %v8703_v2, 16  ;;  %v1150_v17 = vor.u32 %v1149_v58, %v1146_v45  ;;  %v8897_v45 = vld [vmem:[%s10100_s1 + $0x180] sm:$0xff]  }
  0x77   : > { %7161 = vmatprep.mubr.bf16.mxu1 %v830_v20  ;;  %7500 = vmatpush3.bf16.msra.mxu0 %v8130_v11  ;;  %v8134_v20 = vld [vmem:[%s10100_s1 + $0x1f8] sm:$0xff]   ;;  %v8878_v49 = vrot.slane %v10109_v5, 1  ;;  %v10113_v19 = vshrl.u32 %v8737_v46, 16  ;;  %v1164_v7 = vrot.slane %v1162_v42, 3  ;;  %v1171_v31 = vshrl.u32 %v8167_v29, 16 }
  0x78   : > { %7501 = vmatprep.subr.bf16.mxu0 %v8132_v6  ;;  %v1142_v50 = vor.u32 %v1141_v54, %v1138_v48  ;;  %v8885_v11 = vor.u32 %v10117_v28, %v8869_v53  ;;  %v1174_v37 = vshll.u32 %v8167_v29, 16  ;;  %v10108_v18 = vshll.u32 %v8747_v61, 16  ;;  %v8170_v28 = vld [vmem:[#allocation2 + $0x38] sm:$0xff] }
  0x79   : > { %v8890_v32 = vor.u32 %v10113_v19, %v8878_v49  ;;  %v10110_v33 = vshll.u32 %v8768_v55, 16  ;;  %v10111_v54 = vshrl.u32 %v8747_v61, 16  ;;  %v10112_v42 = vshrl.u32 %v8768_v55, 16 }
  0x7a   : > { %7454 = vmatmul.mubr.bf16.gmra.mrb[12].mxu0 %v8513_v30  ;;  %v1167_v30 = vrot.slane %v1165_v1, 4  ;;  %v8904_v48 = vrot.slane %v10108_v18, 1  ;;  %v1176_v29 = vrot.slane %v1174_v37, 4  ;;  %v1198_v26 = vshrl.u32 %v8170_v28, 16 }
  0x7b   : > { %7457 = vmatprep.mubr.bf16.mxu0 %v8545_v59  ;;  %7502 = vmatpush3.bf16.msra.mxu0 %v8132_v6  ;;  %v8910_v60 = vrot.slane %v10110_v33, 1  ;;  %v1248_v63 = vrot.slane %v3004_v0, 4  ;;  %v1201_v34 = vshll.u32 %v8170_v28, 16  ;;  %v6649_v28 = vunpack.c.l.bf16 %v6793_v21 }
  0x7c   : > { %7503 = vmatprep.subr.bf16.mxu0 %v8134_v20  ;;  %v8913_v1 = vor.u32 %v1167_v30, %v1164_v7  ;;  %v8918_v18 = vor.u32 %v10111_v54, %v8904_v48  ;;  %v10114_v7 = vshll.u32 %v8782_v57, 16  ;;  %v8169_v30 = vld [vmem:[#allocation2 + $0x30] sm:$0xff] }
  0x7d   : > { %v8899_v58 = vld [vmem:[#allocation2 + $0xc0] sm:$0xf]  ;;  %v8924_v33 = vor.u32 %v10112_v42, %v8910_v60  ;;  %v1189_v37 = vshrl.u32 %v8169_v30, 16  ;;  %v1192_v54 = vshll.u32 %v8169_v30, 16  ;;  %v10119_v30 = vshrl.u32 %v8804_v36, 16 }
  0x7e   : > { %7162 = vmatmul.mubr.bf16.gmra.mrb[40].mxu1 %v832_v47  ;;  %v1151_v47 = vsel %vm1134_vm2, %v1142_v50, %v1150_v17  ;;  %v835_v6 = vrot.slane %v8899_v58, 4  ;;  %v1180_v50 = vshrl.u32 %v8168_v23, 16  ;;  %10140 = vst [vmem:[#allocation6_spill] sm:$0xff] %v8918_v18 }
  0x7f   : > { %7165 = vmatprep.mubr.bf16.mxu1 %v834_v9  ;;  %v1173_v9 = vrot.slane %v1171_v31, 3  ;;  %7504 = vmatpush3.bf16.msra.mxu0 %v8134_v20  ;;  %v1183_v31 = vshll.u32 %v8168_v23, 16  ;;  %10141 = vst [vmem:[#allocation7_spill] sm:$0xff] %v8924_v33  ;;  %v10116_v20 = vshll.u32 %v8804_v36, 16  ;;  %v1160_v23 = vsel %vm1134_vm2, %v1150_v17, %v8833_v44 }
  0x80   : > { %v836_v5 = vsel %vm787_vm0, %v833_v41, %v835_v6  ;;  %7553 = vmatprep.subr.bf16.mxu0 %v8897_v45  ;;  %v8935_v41 = vrot.slane %v10114_v7, 1  ;;  %v10120_v6 = vshrl.u32 %v8782_v57, 16  ;;  %v1182_v19 = vrot.slane %v1180_v50, 3 }
  0x81   : > { %v1177_v42 = vor.u32 %v1176_v29, %v1173_v9  ;;  %v1185_v17 = vrot.slane %v1183_v31, 4  ;;  %v1191_v62 = vrot.slane %v1189_v37, 3  ;;  %v1194_v9 = vrot.slane %v1192_v54, 4  ;;  %v8129_v54 = vld [vmem:[%s10100_s1 + $0xc8] sm:$0xff]  }
  0x82   : > { %7458 = vmatmul.mubr.bf16.gmra.mrb[16].mxu0 %v8572_v25  ;;  %10142 = vst [vmem:[#allocation8_spill] sm:$0xff] %v8935_v41  ;;  %v8949_v7 = vor.u32 %v10120_v6, %v8935_v41  ;;  %v1230_v50 = vrot.slane %v2988_v8, 4  ;;  %v10125_v31 = vshll.u32 %v8841_v12, 16  ;;  %v1236_v6 = vrot.slane %v3000_v39, 3 }
  0x83   : > { %7461 = vmatprep.mubr.bf16.mxu0 %v8601_v52  ;;  %v10126_v8 = vshrl.u32 %v8841_v12, 16  ;;  %v1200_v52 = vrot.slane %v1198_v26, 3  ;;  %v450_v26 = vmul.f32 %v8717_v14, %v6649_v28 }
  0x84   : > { %10144 = vst [vmem:[#allocation10_spill] sm:$0xff] %v8949_v7  ;;  %v8975_v59 = vrot.slane %v10125_v31, 1  ;;  %v1239_v31 = vrot.slane %v2996_v38, 4 }
  0x86   : > { %7166 = vmatmul.mubr.bf16.gmra.mrb[44].mxu1 %v836_v5  ;;  %v8940_v5 = vrot.slane %v10116_v20, 1  ;;  %v10123_v20 = vshll.u32 %v8824_v10, 16  ;;  %10147 = vst [vmem:[#allocation13_spill] sm:$0xff] %v8975_v59  ;;  %v8997_v0 = vor.u32 %v10126_v8, %v8975_v59  ;;  %v1240_v38 = vor.u32 %v1239_v31, %v1236_v6 }
  0x87   : > { %7185 = vmatprep.mubr.bf16.mxu1 %v1151_v47  ;;  %v1169_v47 = vsel %vm1134_vm2, %v8833_v44, %v8913_v1  ;;  %v1227_v44 = vrot.slane %v2992_v13, 3  ;;  %v1245_v13 = vrot.slane %v3008_v4, 3  ;;  %v1178_v6 = vsel %vm1134_vm2, %v8913_v1, %v1177_v42  ;;  %v8133_v1 = vld [vmem:[%s10100_s1 + $0xd8] sm:$0xff]  }
  0x88   : > { %10143 = vst [vmem:[#allocation9_spill] sm:$0xff] %v8940_v5  ;;  %v8954_v29 = vor.u32 %v10119_v30, %v8940_v5  ;;  %v8967_v37 = vrot.slane %v10123_v20, 1  ;;  %v10127_v30 = vshrl.u32 %v8824_v10, 16  ;;  %v8983_v20 = vor.u32 %v1185_v17, %v1182_v19  ;;  %10149 = vst [vmem:[#allocation15_spill] sm:$0xff] %v8997_v0  ;;  %v8131_v19 = vld [vmem:[%s10100_s1 + $0xd0] sm:$0xff]  }
  0x89   : > { %v1249_v4 = vor.u32 %v1248_v63, %v1245_v13  ;;  %v9002_v25 = vor.u32 %v1230_v50, %v1227_v44  ;;  %v10150_v17 = vshll.u32 %v8624_v22, 16  ;;  %v1261_v63 = vshrl.u32 %v8653_v51, 16 }
  0x8a   : > { %10145 = vst [vmem:[#allocation11_spill] sm:$0xff] %v8954_v29  ;;  %10146 = vst [vmem:[#allocation12_spill] sm:$0xff] %v8967_v37  ;;  %7462 = vmatmul.mubr.bf16.gmra.mrb[20].mxu0 %v8624_v22  ;;  %v8988_v39 = vor.u32 %v10127_v30, %v8967_v37  ;;  %v1203_v30 = vrot.slane %v1201_v34, 4  ;;  %v505_v22 = vadd.f32 %v8708_v15, %v450_v26  ;;  %v8171_v26 = vld [vmem:[#allocation2 + $0x40] sm:$0xff]  ;;  %v3834_v37 = vld [vmem:[#allocation2 + $0x18] sm:$0xf8] }
  0x8b   : > { %7465 = vmatprep.mubr.bf16.mxu0 %v8653_v51  ;;  %v1257_v8 = vrot.slane %v10150_v17, 4  ;;  %v9014_v44 = vsel %vm1134_vm2, %v9002_v25, %v1240_v38  ;;  %v1263_v31 = vrot.slane %v1261_v63, 3  ;;  %v1187_v34 = vsel %vm1134_vm2, %v1177_v42, %v8983_v20  ;;  %v602_v42 = vld [vmem:[%s10103_s4 + $0x178] sm:$0xff] }
  0x8c   : > { %10148 = vst [vmem:[#allocation14_spill] sm:$0xff] %v8988_v39  ;;  %v1210_v17 = vshll.u32 %v8171_v26, 16 }
  0x8e   : > { %7186 = vmatmul.mubr.bf16.vlgmr.msra.gmra.mrb[0].mxu1 %v1160_v23  ;;  %v6650_v23 = vunpack.c.h.bf16 %v6793_v21  ;;  %v9017_v21 = vsel %vm1134_vm2, %v1240_v38, %v1249_v4  ;;  %v601_v38 = vld [vmem:[%s10103_s4 + $0x170] sm:$0xff]  ;;  %v1212_v26 = vrot.slane %v1210_v17, 4  ;;  %v10161_v17 = vshrl.u32 %v8768_v55, 16 }
  0x8f   : > { %7234 = vmatpush3.bf16.msra.mxu1 %v8564_v16  ;;  %7189 = vmatprep.mubr.bf16.mxu1 %v1169_v47  ;;  %v1254_v16 = vrot.slane %v3016_v35, 3  ;;  %v10151_v47 = vshll.u32 %v8653_v51, 16  ;;  %v1195_v51 = vor.u32 %v1194_v9, %v1191_v62  ;;  %v10153_v9 = vshll.u32 %v8678_v27, 16 }
  0x90   : > { %7235 = vmatprep.subr.bf16.mxu1 %v8129_v54  ;;  %v451_v35 = vmul.f32 %v8717_v14, %v6650_v23  ;;  %v10152_v14 = vshrl.u32 %v8678_v27, 16 }
  0x91   : > { %v1266_v13 = vrot.slane %v10151_v47, 4  ;;  %v1258_v50 = vor.u32 %v1257_v8, %v1254_v16  ;;  %v1275_v8 = vrot.slane %v10153_v9, 4  ;;  %v1204_v16 = vor.u32 %v1203_v30, %v1200_v52 }
  0x92   : > { %v506_v28 = vadd.f32 %v8708_v15, %v451_v35  ;;  %v1272_v23 = vrot.slane %v10152_v14, 3  ;;  %7466 = vmatmul.mubr.bf16.gmra.mrb[24].mxu0 %v8678_v27  ;;  %v10154_v47 = vshrl.u32 %v8703_v2, 16  ;;  %v8172_v27 = vld [vmem:[#allocation2 + $0x48] sm:$0xff] }
  0x93   : > { %7236 = vmatpush3.bf16.msra.mxu1 %v8129_v54  ;;  %v553_v54 = vmax.f32 %v505_v22, 0.0  ;;  %v9038_v62 = vsel %vm1134_vm2, %v1249_v4, %v1258_v50  ;;  %v1267_v15 = vor.u32 %v1266_v13, %v1263_v31  ;;  %7469 = vmatprep.mubr.bf16.mxu0 %v8703_v2  ;;  %v10155_v31 = vshll.u32 %v8703_v2, 16 }
  0x94   : > { %7237 = vmatprep.subr.bf16.mxu1 %v8131_v19  ;;  %v554_v63 = vmax.f32 %v506_v28, 0.0  ;;  %v1281_v35 = vrot.slane %v10154_v47, 3  ;;  %v1276_v13 = vor.u32 %v1275_v8, %v1272_v23  ;;  %v1216_v30 = vshrl.u32 %v8172_v27, 16 }
  0x95   : > { %v649_v22 = vmul.f32 %v601_v38, %v553_v54  ;;  %v9047_v4 = vsel %vm1134_vm2, %v1258_v50, %v1267_v15  ;;  %v1284_v14 = vrot.slane %v10155_v31, 4  ;;  %v1219_v52 = vshll.u32 %v8172_v27, 16 }
  0x96   : > { %7190 = vmatmul.mubr.bf16.gmra.mrb[4].mxu1 %v1178_v6  ;;  %v650_v6 = vmul.f32 %v602_v42, %v554_v63  ;;  %v10156_v28 = vshrl.u32 %v8737_v46, 16  ;;  %v9057_v50 = vsel %vm1134_vm2, %v1267_v15, %v1276_v13  ;;  %v10157_v2 = vshll.u32 %v8737_v46, 16 }
  0x97   : > { %7193 = vmatprep.mubr.bf16.mxu1 %v1187_v34  ;;  %7238 = vmatpush3.bf16.msra.mxu1 %v8131_v19  ;;  %v8135_v34 = vld [vmem:[%s10100_s1 + $0xe0] sm:$0xff]   ;;  %v1285_v38 = vor.u32 %v1284_v14, %v1281_v35  ;;  %v10158_v19 = vshrl.u32 %v8747_v61, 16  ;;  %v10159_v42 = vshrl.u32 %v8493_v3, 16  ;;  %v10160_v47 = vshll.u32 %v8747_v61, 16 }
  0x98   : > { %v1290_v9 = vrot.slane %v10156_v28, 3  ;;  %7239 = vmatprep.subr.bf16.mxu1 %v8133_v1  ;;  %v1293_v23 = vrot.slane %v10157_v2, 4  ;;  %v9065_v63 = vpack.c.bf16 %v650_v6, %v649_v22  ;;  %v1196_v15 = vsel %vm1134_vm2, %v8983_v20, %v1195_v51  ;;  %v8137_v20 = vld [vmem:[%s10100_s1 + $0xe8] sm:$0xff]  }
  0x99   : > { %v1299_v54 = vrot.slane %v10158_v19, 3  ;;  %v1209_v8 = vrot.slane %v10159_v42, 3  ;;  %v1302_v31 = vrot.slane %v10160_v47, 4  ;;  %v1205_v35 = vsel %vm1134_vm2, %v1195_v51, %v1204_v16 }
  0x9a   : > { %v9073_v14 = vsel %vm1134_vm2, %v1276_v13, %v1285_v38  ;;  %v1294_v27 = vor.u32 %v1293_v23, %v1290_v9  ;;  %v1218_v28 = vrot.slane %v1216_v30, 3  ;;  %v1221_v2 = vrot.slane %v1219_v52, 4  ;;  %702 = vst [vmem:[#allocation2 + $0xc8] sm:$0xff] %v9065_v63  ;;  %7470 = vmatmul.mubr.bf16.gmra.mrb[28].mxu0 %v8737_v46 }
  0x9b   : > { %7240 = vmatpush3.bf16.msra.mxu1 %v8133_v1  ;;  %v1303_v3 = vor.u32 %v1302_v31, %v1299_v54  ;;  %v1308_v22 = vrot.slane %v10161_v17, 3  ;;  %v10162_v13 = vshll.u32 %v8768_v55, 16  ;;  %v1213_v1 = vor.u32 %v1212_v26, %v1209_v8  ;;  %7473 = vmatprep.mubr.bf16.mxu0 %v8747_v61  ;;  %v8139_v61 = vld [vmem:[%s10100_s1 + $0xf0] sm:$0xff]  }
  0x9c   : > { %7241 = vmatprep.subr.bf16.mxu1 %v8135_v34  ;;  %v9082_v51 = vsel %vm1134_vm2, %v1285_v38, %v1294_v27  ;;  %v10163_v52 = vshrl.u32 %v8782_v57, 16  ;;  %v10164_v23 = vshll.u32 %v8782_v57, 16  ;;  %v10165_v54 = vshrl.u32 %v8804_v36, 16 }
  0x9d   : > { %v1311_v6 = vrot.slane %v10162_v13, 4  ;;  %v9088_v30 = vsel %vm1134_vm2, %v1294_v27, %v1303_v3  ;;  %v1222_v47 = vor.u32 %v1221_v2, %v1218_v28  ;;  %v10166_v8 = vshll.u32 %v8804_v36, 16 }
  0x9e   : > { %7194 = vmatmul.mubr.bf16.gmra.mrb[8].mxu1 %v1196_v15  ;;  %v1317_v9 = vrot.slane %v10163_v52, 3  ;;  %v1320_v19 = vrot.slane %v10164_v23, 4  ;;  %v1326_v42 = vrot.slane %v10165_v54, 3  ;;  %v10167_v31 = vshrl.u32 %v8824_v10, 16  ;;  %v8141_v54 = vld [vmem:[%s10100_s1 + $0xf8] sm:$0xff]  }
  0x9f   : > { %7197 = vmatprep.mubr.bf16.mxu1 %v1205_v35  ;;  %v1312_v38 = vor.u32 %v1311_v6, %v1308_v22  ;;  %7242 = vmatpush3.bf16.msra.mxu1 %v8135_v34  ;;  %v1329_v26 = vrot.slane %v10166_v8, 4  ;;  %v10168_v35 = vshll.u32 %v8824_v10, 16  ;;  %v1214_v34 = vsel %vm1134_vm2, %v1204_v16, %v1213_v1 }
  0xa0   : > { %v1321_v46 = vor.u32 %v1320_v19, %v1317_v9  ;;  %v1335_v15 = vrot.slane %v10167_v31, 3  ;;  %7243 = vmatprep.subr.bf16.mxu1 %v8137_v20  ;;  %v10169_v13 = vshrl.u32 %v8841_v12, 16  ;;  %v1351_v9 = vshrl.u32 %v8899_v58, 16  ;;  %v3876_v31 = vld [vmem:[#allocation2 + $0x18] sm:$0xf0] }
  0xa1   : > { %v9102_v27 = vsel %vm1134_vm2, %v1303_v3, %v1312_v38  ;;  %v1338_v17 = vrot.slane %v10168_v35, 4  ;;  %v1330_v2 = vor.u32 %v1329_v26, %v1326_v42  ;;  %v10170_v3 = vshll.u32 %v8841_v12, 16  ;;  %v9172_v35 = vld [vmem:[#allocation2 + $0x40] sm:$0xff] }
  0xa2   : > { %v9111_v28 = vsel %vm1134_vm2, %v1312_v38, %v1321_v46  ;;  %v1344_v6 = vrot.slane %v10169_v13, 3  ;;  %v1223_v23 = vsel %vm1134_vm2, %v1213_v1, %v1222_v47  ;;  %v1354_v16 = vshll.u32 %v8899_v58, 16  ;;  %7474 = vmatmul.mubr.bf16.gmra.mrb[32].mxu0 %v8768_v55 }
  0xa3   : > { %v1339_v22 = vor.u32 %v1338_v17, %v1335_v15  ;;  %v1347_v52 = vrot.slane %v10170_v3, 4  ;;  %7244 = vmatpush3.bf16.msra.mxu1 %v8137_v20  ;;  %v9120_v19 = vsel %vm1134_vm2, %v1321_v46, %v1330_v2  ;;  %v1353_v8 = vrot.slane %v1351_v9, 3  ;;  %7477 = vmatprep.mubr.bf16.mxu0 %v8782_v57  ;;  %v9137_v46 = vld [vmem:[%s10100_s1 + $0x80] sm:$0xff]   ;;  %v9156_v15 = vld [vmem:[#allocation2 + $0x28] sm:$0xff]  ;;  %v8140_v17 = vld [vmem:[%s10100_s1 + $0x190] sm:$0xff]  }
  0xa4   : > { %7245 = vmatprep.subr.bf16.mxu1 %v8139_v61  ;;  %v1356_v1 = vrot.slane %v1354_v16, 4  ;;  %v1232_v55 = vsel %vm1134_vm2, %v1222_v47, %v9002_v25  ;;  %v9148_v57 = vld [vmem:[#allocation2 + $0x20] sm:$0xff]  ;;  %v3919_v25 = vrot.slane %v3876_v31, 4  ;;  %v9200_v9 = vld [vmem:[#allocation2 + $0x58] sm:$0xff] }
  0xa5   : > { %v9124_v38 = vsel %vm1134_vm2, %v1330_v2, %v1339_v22  ;;  %v1348_v42 = vor.u32 %v1347_v52, %v1344_v6  ;;  %v3920_v47 = vrot.slane %v9148_v57, 4  ;;  %v8144_v6 = vld [vmem:[%s10100_s1 + $0x1a0] sm:$0xff]   ;;  %v3934_v16 = vrot.slane %v9200_v9, 4  ;;  %v9213_v31 = vld [vmem:[#allocation2 + $0x18] sm:$0xff] }
  0xa6   : > { %7198 = vmatmul.mubr.bf16.gmra.mrb[12].mxu1 %v1214_v34  ;;  %v1357_v58 = vor.u32 %v1356_v1, %v1353_v8  ;;  %v1794_v1 = vld [vmem:[#allocation2 + $0x8] sm:$0x80] }
  0xa7   : > { %7201 = vmatprep.mubr.bf16.mxu1 %v1223_v23  ;;  %v9132_v20 = vsel %vm1134_vm2, %v1339_v22, %v1348_v42  ;;  %7246 = vmatpush3.bf16.msra.mxu1 %v8139_v61  ;;  %v8138_v61 = vld [vmem:[%s10100_s1 + $0x188] sm:$0xff]   ;;  %v1754_v23 = vld [vmem:[#allocation2 + $0x10] sm:$0xff] }
  0xa8   : > { %7247 = vmatprep.subr.bf16.mxu1 %v8141_v54  ;;  %v9140_v26 = vsel %vm1134_vm2, %v1348_v42, %v1357_v58  ;;  %v1823_v42 = vshll.u32 %v1754_v23, 16  ;;  %v1820_v58 = vshrl.u32 %v1754_v23, 16 }
  0xaa   : > { %7478 = vmatmul.mubr.bf16.gmra.mrb[36].mxu0 %v8804_v36  ;;  %v3921_v36 = vsel %vm787_vm0, %v3919_v25, %v3920_v47 }
  0xab   : > { %7248 = vmatpush3.bf16.msra.mxu1 %v8141_v54  ;;  %7481 = vmatprep.mubr.bf16.mxu0 %v8824_v10  ;;  %v9158_v10 = vld [vmem:[#allocation2 + $0x30] sm:$0xff]  ;;  %v9210_v54 = vld [vmem:[#allocation2 + $0x68] sm:$0xff] }
  0xac   : > { %7297 = vmatprep.subr.bf16.mxu1 %v9137_v46  ;;  %v3938_v25 = vrot.slane %v9210_v54, 4 }
  0xae   : > { %7202 = vmatmul.mubr.bf16.gmra.mrb[16].mxu1 %v1232_v55  ;;  %v2327_v55 = vrot.slane %v1823_v42, 5 }
  0xaf   : > { %7205 = vmatprep.mubr.bf16.mxu1 %v9014_v44 }
  0xb2   : > { %7482 = vmatmul.mubr.bf16.gmra.mrb[40].mxu0 %v8841_v12  ;;  %v3922_v12 = vrot.slane %v9156_v15, 4 }
  0xb3   : > { %7485 = vmatprep.mubr.bf16.mxu0 %v8852_v43  ;;  %v3924_v43 = vrot.slane %v9158_v10, 4 }
  0xb4   : > { %v3923_v44 = vsel %vm787_vm0, %v3920_v47, %v3922_v12  ;;  %v9220_v47 = vld [vmem:[#allocation2 + $0x70] sm:$0xff] }
  0xb6   : > { %7206 = vmatmul.mubr.bf16.gmra.mrb[20].mxu1 %v9017_v21  ;;  %v3925_v21 = vsel %vm787_vm0, %v3922_v12, %v3924_v43  ;;  %v2326_v12 = vrot.slane %v1820_v58, 4 }
  0xb7   : > { %7209 = vmatprep.mubr.bf16.mxu1 %v9038_v62  ;;  %v9167_v62 = vld [vmem:[#allocation2 + $0x38] sm:$0xff] }
  0xba   : > { %7486 = vmatmul.mubr.bf16.gmra.mrb[44].mxu0 %v9065_v63 }
  0xbb   : > { %7505 = vmatprep.mubr.bf16.mxu0 %v3921_v36  ;;  %v1816_v36 = vshrl.u32 %v1794_v1, 16  ;;  %v9262_v1 = vld [vmem:[%s10100_s1 + $0x200] sm:$0xff]  }
  0xbe   : > { %7210 = vmatmul.mubr.bf16.gmra.mrb[24].mxu1 %v9047_v4  ;;  %v3926_v4 = vrot.slane %v9167_v62, 4 }
  0xbf   : > { %7213 = vmatprep.mubr.bf16.mxu1 %v9057_v50  ;;  %v3928_v50 = vrot.slane %v9172_v35, 4 }
  0xc0   : > { %v3927_v34 = vsel %vm787_vm0, %v3924_v43, %v3926_v4 }
  0xc1   : > { %v3929_v2 = vsel %vm787_vm0, %v3926_v4, %v3928_v50  ;;  %v9228_v4 = vshrl.u32 %v9148_v57, 16 }
  0xc2   : > { %7506 = vmatmul.mubr.bf16.vlgmr.msra.gmra.mrb[0].mxu0 %v3923_v44  ;;  %v9223_v44 = vrot.slane %v1820_v58, 7 }
  0xc3   : > { %7554 = vmatpush3.bf16.msra.mxu0 %v8897_v45  ;;  %7509 = vmatprep.mubr.bf16.mxu0 %v3925_v21  ;;  %v9186_v45 = vld [vmem:[#allocation2 + $0x50] sm:$0xff]  ;;  %v1828_v21 = vshrl.u32 %v9213_v31, 16  ;;  %v4276_v5 = vrot.slane %v9228_v4, 3 }
  0xc4   : > { %7555 = vmatprep.subr.bf16.mxu0 %v8138_v61  ;;  %v3932_v13 = vrot.slane %v9186_v45, 4  ;;  %v1825_v23 = vor.u32 %v1823_v42, %v9223_v44 }
  0xc6   : > { %7214 = vmatmul.mubr.bf16.gmra.mrb[28].mxu1 %v9073_v14  ;;  %v9184_v14 = vld [vmem:[#allocation2 + $0x48] sm:$0xff] }
  0xc7   : > { %7217 = vmatprep.mubr.bf16.mxu1 %v9082_v51  ;;  %7556 = vmatpush3.bf16.msra.mxu0 %v8138_v61  ;;  %v8142_v51 = vld [vmem:[%s10100_s1 + $0x198] sm:$0xff]   ;;  %v3930_v22 = vrot.slane %v9184_v14, 4  ;;  %v1831_v61 = vshll.u32 %v9213_v31, 16 }
  0xc8   : > { %7557 = vmatprep.subr.bf16.mxu0 %v8140_v17 }
  0xc9   : > { %v3931_v3 = vsel %vm787_vm0, %v3928_v50, %v3930_v22  ;;  %v3933_v52 = vsel %vm787_vm0, %v3930_v22, %v3932_v13  ;;  %v9231_v50 = vshll.u32 %v9148_v57, 16  ;;  %v2330_v22 = vrot.slane %v1828_v21, 4  ;;  %v9242_v57 = vld [vmem:[#allocation2 + $0x78] sm:$0xff] }
  0xca   : > { %7510 = vmatmul.mubr.bf16.gmra.mrb[4].mxu0 %v3927_v34  ;;  %v9236_v34 = vor.u32 %v2327_v55, %v2326_v12  ;;  %v3942_v58 = vrot.slane %v9242_v57, 4  ;;  %v9487_v7 = vshll.u32 %v9242_v57, 16 }
  0xcb   : > { %7513 = vmatprep.mubr.bf16.mxu0 %v3929_v2  ;;  %7558 = vmatpush3.bf16.msra.mxu0 %v8140_v17  ;;  %v8150_v17 = vld [vmem:[%s10100_s1 + $0x1b8] sm:$0xff]   ;;  %v4279_v33 = vrot.slane %v9231_v50, 4 }
  0xcc   : > { %7559 = vmatprep.subr.bf16.mxu0 %v8142_v51  ;;  %10171 = vst [vmem:[#allocation16_spill] sm:$0xff] %v9236_v34 }
  0xce   : > { %7218 = vmatmul.mubr.bf16.gmra.mrb[32].mxu1 %v9088_v30  ;;  %v9202_v30 = vld [vmem:[#allocation2 + $0x60] sm:$0xff] }
  0xcf   : > { %7221 = vmatprep.mubr.bf16.mxu1 %v9102_v27  ;;  %7560 = vmatpush3.bf16.msra.mxu0 %v8142_v51  ;;  %v8146_v27 = vld [vmem:[%s10100_s1 + $0x1a8] sm:$0xff]   ;;  %v3936_v8 = vrot.slane %v9202_v30, 4  ;;  %v3940_v51 = vrot.slane %v9220_v47, 4 }
  0xd0   : > { %7561 = vmatprep.subr.bf16.mxu0 %v8144_v6 }
  0xd1   : > { %v3937_v43 = vsel %vm787_vm0, %v3934_v16, %v3936_v8  ;;  %v3939_v2 = vsel %vm787_vm0, %v3936_v8, %v3938_v25  ;;  %v9257_v8 = vshll.u32 %v9158_v10, 16 }
  0xd2   : > { %7514 = vmatmul.mubr.bf16.gmra.mrb[8].mxu0 %v3931_v3  ;;  %v2334_v3 = vrot.slane %v9228_v4, 4 }
  0xd3   : > { %7517 = vmatprep.mubr.bf16.mxu0 %v3933_v52  ;;  %7562 = vmatpush3.bf16.msra.mxu0 %v8144_v6  ;;  %v1818_v6 = vrot.slane %v1816_v36, 7  ;;  %v2335_v52 = vrot.slane %v9231_v50, 5  ;;  %v2343_v12 = vrot.slane %v9257_v8, 5 }
  0xd4   : > { %7563 = vmatprep.subr.bf16.mxu0 %v8146_v27 }
  0xd5   : > { %v2336_v42 = vor.u32 %v2335_v52, %v2334_v3  ;;  %v9285_v52 = vshll.u32 %v9167_v62, 16 }
  0xd6   : > { %7222 = vmatmul.mubr.bf16.gmra.mrb[36].mxu1 %v9111_v28  ;;  %v8148_v28 = vld [vmem:[%s10100_s1 + $0x1b0] sm:$0xff]  }
  0xd7   : > { %7225 = vmatprep.mubr.bf16.mxu1 %v9120_v19  ;;  %v3935_v19 = vsel %vm787_vm0, %v3932_v13, %v3934_v16  ;;  %7564 = vmatpush3.bf16.msra.mxu0 %v8146_v27  ;;  %v2331_v13 = vrot.slane %v1831_v61, 5  ;;  %v9251_v27 = vshll.u32 %v9156_v15, 16 }
  0xd8   : > { %7565 = vmatprep.subr.bf16.mxu0 %v8148_v28 }
  0xd9   : > { %v2332_v16 = vor.u32 %v2331_v13, %v2330_v22  ;;  %v2339_v31 = vrot.slane %v9251_v27, 5  ;;  %v1826_v22 = vsel %vm1814_vm3, %v1818_v6, %v1825_v23  ;;  %v9281_v13 = vshrl.u32 %v9167_v62, 16 }
  0xda   : > { %7518 = vmatmul.mubr.bf16.gmra.mrb[12].mxu0 %v3935_v19  ;;  %v9294_v6 = vshll.u32 %v9172_v35, 16 }
  0xdb   : > { %7521 = vmatprep.mubr.bf16.mxu0 %v3937_v43  ;;  %7566 = vmatpush3.bf16.msra.mxu0 %v8148_v28  ;;  %v9271_v28 = vld [vmem:[#allocation2 + $0x80] sm:$0xff]  ;;  %v9274_v19 = vsel %vm2308_vm4, %v2332_v16, %v2336_v42  ;;  %v3941_v43 = vsel %vm787_vm0, %v3938_v25, %v3940_v51  ;;  %v2346_v62 = vrot.slane %v9281_v13, 4  ;;  %v1862_v0 = vrot.slane %v9281_v13, 7 }
  0xdc   : > { %7567 = vmatprep.subr.bf16.mxu0 %v8150_v17  ;;  %10173 = vst [vmem:[#allocation18_spill] sm:$0xff] %v9274_v19  ;;  %v3944_v25 = vrot.slane %v9271_v28, 4 }
  0xde   : > { %7226 = vmatmul.mubr.bf16.gmra.mrb[40].mxu1 %v9124_v38  ;;  %v9248_v38 = vshrl.u32 %v9156_v15, 16  ;;  %v9267_v15 = vsel %vm2308_vm4, %v9236_v34, %v2332_v16  ;;  %v9288_v16 = vshrl.u32 %v9172_v35, 16  ;;  %v9440_v34 = vld [vmem:[#allocation2 + $0xb8] sm:$0xff] }
  0xdf   : > { %7229 = vmatprep.mubr.bf16.mxu1 %v9132_v20  ;;  %v9254_v20 = vshrl.u32 %v9158_v10, 16  ;;  %10172 = vst [vmem:[#allocation17_spill] sm:$0xff] %v9267_v15  ;;  %v1830_v10 = vrot.slane %v1828_v21, 7  ;;  %7568 = vmatpush3.bf16.msra.mxu0 %v8150_v17  ;;  %v1838_v21 = vrot.slane %v9228_v4, 7 }
  0xe0   : > { %v2338_v55 = vrot.slane %v9248_v38, 4  ;;  %7617 = vmatprep.subr.bf16.mxu0 %v9262_v1 }
  0xe1   : > { %v2342_v36 = vrot.slane %v9254_v20, 4  ;;  %v1833_v23 = vor.u32 %v1831_v61, %v1830_v10  ;;  %v1841_v35 = vor.u32 %v9231_v50, %v1838_v21  ;;  %v1846_v61 = vrot.slane %v9248_v38, 7 }
  0xe2   : > { %v2340_v3 = vor.u32 %v2339_v31, %v2338_v55  ;;  %7522 = vmatmul.mubr.bf16.gmra.mrb[16].mxu0 %v3939_v2  ;;  %v2347_v2 = vrot.slane %v9285_v52, 5  ;;  %v2351_v31 = vrot.slane %v9294_v6, 5  ;;  %v10184_v59 = vrot.slane %v9254_v20, 7 }
  0xe3   : > { %v2344_v40 = vor.u32 %v2343_v12, %v2342_v36  ;;  %7525 = vmatprep.mubr.bf16.mxu0 %v3941_v43  ;;  %v3945_v12 = vsel %vm787_vm0, %v3942_v58, %v3944_v25  ;;  %v9312_v43 = vld [vmem:[#allocation2 + $0x90] sm:$0xff]  ;;  %v9502_v50 = vshrl.u32 %v9309_v24, 16 }
  0xe4   : > { %v9297_v17 = vsel %vm2308_vm4, %v2336_v42, %v2340_v3  ;;  %v2348_v36 = vor.u32 %v2347_v2, %v2346_v62  ;;  %v3943_v42 = vsel %vm787_vm0, %v3940_v51, %v3942_v58  ;;  %v8145_v51 = vld [vmem:[%s10100_s1 + $0x88] sm:$0xff]   ;;  %v9327_v58 = vshll.u32 %v9184_v14, 16 }
  0xe5   : > { %10174 = vst [vmem:[#allocation19_spill] sm:$0xff] %v9297_v17  ;;  %v9301_v55 = vsel %vm2308_vm4, %v2340_v3, %v2344_v40  ;;  %v1834_v3 = vsel %vm1814_vm3, %v9223_v44, %v1833_v23  ;;  %v9318_v17 = vshrl.u32 %v9184_v14, 16  ;;  %v9330_v2 = vshrl.u32 %v9186_v45, 16 }
  0xe6   : > { %7230 = vmatmul.mubr.bf16.gmra.mrb[44].mxu1 %v9140_v26  ;;  %10175 = vst [vmem:[#allocation20_spill] sm:$0xff] %v9301_v55  ;;  %v2350_v26 = vrot.slane %v9288_v16, 4  ;;  %v9321_v62 = vsel %vm2308_vm4, %v2344_v40, %v2348_v36  ;;  %v9333_v44 = vshll.u32 %v9186_v45, 16  ;;  %v1842_v40 = vsel %vm1814_vm3, %v1830_v10, %v1841_v35  ;;  %v8147_v35 = vld [vmem:[%s10100_s1 + $0x90] sm:$0xff]  }
  0xe7   : > { %7249 = vmatprep.mubr.bf16.mxu1 %v1826_v22  ;;  %10176 = vst [vmem:[#allocation21_spill] sm:$0xff] %v9321_v62  ;;  %v2354_v14 = vrot.slane %v9318_v17, 4  ;;  %v2355_v55 = vrot.slane %v9327_v58, 5  ;;  %v2358_v62 = vrot.slane %v9330_v2, 4 }
  0xe8   : > { %v2352_v22 = vor.u32 %v2351_v31, %v2350_v26  ;;  %v3946_v26 = vrot.slane %v9309_v24, 4  ;;  %v3948_v31 = vrot.slane %v9312_v43, 4  ;;  %v2359_v45 = vrot.slane %v9333_v44, 5 }
  0xea   : > { %v9336_v23 = vsel %vm2308_vm4, %v2348_v36, %v2352_v22  ;;  %7526 = vmatmul.mubr.bf16.gmra.mrb[20].mxu0 %v3943_v42  ;;  %v1849_v36 = vor.u32 %v9251_v27, %v1846_v61  ;;  %v2356_v42 = vor.u32 %v2355_v55, %v2354_v14  ;;  %v3947_v19 = vsel %vm787_vm0, %v3944_v25, %v3946_v26  ;;  %v9367_v25 = vld [vmem:[#allocation2 + $0xa0] sm:$0xff] }
  0xeb   : > { %10177 = vst [vmem:[#allocation22_spill] sm:$0xff] %v9336_v23  ;;  %7529 = vmatprep.mubr.bf16.mxu0 %v3945_v12  ;;  %v10178_v23 = vrot.slane %v9254_v20, 7  ;;  %v3949_v12 = vsel %vm787_vm0, %v3946_v26, %v3948_v31  ;;  %v1870_v55 = vrot.slane %v9288_v16, 7  ;;  %v9373_v26 = vshll.u32 %v9200_v9, 16 }
  0xed   : > { %v1857_v10 = vor.u32 %v9257_v8, %v10178_v23  ;;  %v1850_v23 = vsel %vm1814_vm3, %v1838_v21, %v1849_v36  ;;  %v9376_v21 = vshrl.u32 %v9202_v30, 16 }
  0xee   : > { %7250 = vmatmul.mubr.bf16.vlgmr.msra.gmra.mrb[0].mxu1 %v1834_v3  ;;  %v2360_v3 = vor.u32 %v2359_v45, %v2358_v62  ;;  %v9365_v62 = vld [vmem:[#allocation2 + $0x98] sm:$0xff]  ;;  %v2363_v45 = vrot.slane %v9373_v26, 5 }
  0xef   : > { %7298 = vmatpush3.bf16.msra.mxu1 %v9137_v46  ;;  %7253 = vmatprep.mubr.bf16.mxu1 %v1842_v40  ;;  %v9356_v46 = vsel %vm2308_vm4, %v2352_v22, %v2356_v42  ;;  %v1858_v40 = vsel %vm1814_vm3, %v1846_v61, %v1857_v10  ;;  %v9370_v22 = vshrl.u32 %v9200_v9, 16  ;;  %v9379_v61 = vshll.u32 %v9202_v30, 16 }
  0xf0   : > { %7299 = vmatprep.subr.bf16.mxu1 %v8145_v51  ;;  %10179 = vst [vmem:[#allocation23_spill] sm:$0xff] %v9356_v46  ;;  %v9359_v15 = vsel %vm2308_vm4, %v2356_v42, %v2360_v3  ;;  %v2366_v36 = vrot.slane %v9376_v21, 4  ;;  %v3950_v10 = vrot.slane %v9365_v62, 4  ;;  %v1865_v30 = vor.u32 %v9285_v52, %v1862_v0  ;;  %v8151_v46 = vld [vmem:[%s10100_s1 + $0xa0] sm:$0xff]  }
  0xf1   : > { %10180 = vst [vmem:[#allocation24_spill] sm:$0xff] %v9359_v15  ;;  %v2362_v14 = vrot.slane %v9370_v22, 4  ;;  %v2367_v9 = vrot.slane %v9379_v61, 5  ;;  %v3952_v42 = vrot.slane %v9367_v25, 4  ;;  %v1873_v15 = vor.u32 %v9294_v6, %v1870_v55 }
  0xf2   : > { %7530 = vmatmul.mubr.bf16.gmra.mrb[24].mxu0 %v3947_v19  ;;  %v3951_v39 = vsel %vm787_vm0, %v3948_v31, %v3950_v10  ;;  %v9418_v31 = vshll.u32 %v9220_v47, 16 }
  0xf3   : > { %7300 = vmatpush3.bf16.msra.mxu1 %v8145_v51  ;;  %v8149_v51 = vld [vmem:[%s10100_s1 + $0x98] sm:$0xff]   ;;  %7533 = vmatprep.mubr.bf16.mxu0 %v3949_v12  ;;  %v2364_v19 = vor.u32 %v2363_v45, %v2362_v14  ;;  %v3953_v14 = vsel %vm787_vm0, %v3950_v10, %v3952_v42  ;;  %v1878_v45 = vrot.slane %v9318_v17, 7 }
  0xf4   : > { %7301 = vmatprep.subr.bf16.mxu1 %v8147_v35 }
  0xf5   : > { %v9398_v12 = vsel %vm2308_vm4, %v2360_v3, %v2364_v19  ;;  %v1886_v3 = vrot.slane %v9330_v2, 7 }
  0xf6   : > { %7254 = vmatmul.mubr.bf16.gmra.mrb[4].mxu1 %v1850_v23  ;;  %v9392_v23 = vor.u32 %v2367_v9, %v2366_v36  ;;  %10182 = vst [vmem:[#allocation26_spill] sm:$0xff] %v9398_v12  ;;  %v9410_v36 = vld [vmem:[#allocation2 + $0xa8] sm:$0xff]  ;;  %v1874_v9 = vsel %vm1814_vm3, %v1862_v0, %v1873_v15  ;;  %v2375_v15 = vrot.slane %v9418_v31, 5 }
  0xf7   : > { %7257 = vmatprep.mubr.bf16.mxu1 %v1858_v40  ;;  %7302 = vmatpush3.bf16.msra.mxu1 %v8147_v35  ;;  %v1866_v35 = vsel %vm1814_vm3, %v10184_v59, %v1865_v30  ;;  %v8153_v59 = vld [vmem:[%s10100_s1 + $0xa8] sm:$0xff]   ;;  %v1889_v30 = vor.u32 %v9333_v44, %v1886_v3 }
  0xf8   : > { %10181 = vst [vmem:[#allocation25_spill] sm:$0xff] %v9392_v23  ;;  %7303 = vmatprep.subr.bf16.mxu1 %v8149_v51  ;;  %v9402_v40 = vsel %vm2308_vm4, %v2364_v19, %v9392_v23  ;;  %v9415_v19 = vshrl.u32 %v9220_v47, 16  ;;  %v1881_v47 = vor.u32 %v9327_v58, %v1878_v45 }
  0xf9   : > { %10183 = vst [vmem:[#allocation27_spill] sm:$0xff] %v9402_v40  ;;  %v9420_v40 = vld [vmem:[#allocation2 + $0xb0] sm:$0xff]  ;;  %v1890_v29 = vsel %vm1814_vm3, %v1878_v45, %v1889_v30  ;;  %v9458_v30 = vshll.u32 %v9210_v54, 16 }
  0xfa   : > { %7534 = vmatmul.mubr.bf16.gmra.mrb[28].mxu0 %v3951_v39  ;;  %v2374_v0 = vrot.slane %v9415_v19, 4  ;;  %v3956_v10 = vrot.slane %v9420_v40, 4  ;;  %v8155_v39 = vld [vmem:[%s10100_s1 + $0xb0] sm:$0xff]  }
  0xfb   : > { %7304 = vmatpush3.bf16.msra.mxu1 %v8149_v51  ;;  %7537 = vmatprep.mubr.bf16.mxu0 %v3953_v14  ;;  %v3954_v51 = vrot.slane %v9410_v36, 4  ;;  %v1882_v14 = vsel %vm1814_vm3, %v1870_v55, %v1881_v47  ;;  %v9450_v55 = vshrl.u32 %v9210_v54, 16  ;;  %v3962_v54 = vrot.slane %v9065_v63, 4 }
  0xfc   : > { %7305 = vmatprep.subr.bf16.mxu1 %v8151_v46  ;;  %v9431_v23 = vor.u32 %v2375_v15, %v2374_v0  ;;  %v9444_v0 = vld [vmem:[#allocation2 + $0xc0] sm:$0xff]  ;;  %v3958_v15 = vrot.slane %v9440_v34, 4 }
  0xfd   : > { %v3957_v12 = vsel %vm787_vm0, %v3954_v51, %v3956_v10  ;;  %v1910_v47 = vrot.slane %v9450_v55, 7 }
  0xfe   : > { %7258 = vmatmul.mubr.bf16.gmra.mrb[8].mxu1 %v1866_v35  ;;  %10185 = vst [vmem:[#allocation28_spill] sm:$0xff] %v9431_v23  ;;  %v3955_v35 = vsel %vm787_vm0, %v3952_v42, %v3954_v51  ;;  %v8157_v42 = vld [vmem:[%s10100_s1 + $0xb8] sm:$0xff]   ;;  %v1918_v23 = vrot.slane %v9415_v19, 7 }
  0xff   : > { %7261 = vmatprep.mubr.bf16.mxu1 %v1874_v9  ;;  %7306 = vmatpush3.bf16.msra.mxu1 %v8151_v46  ;;  %v1894_v9 = vrot.slane %v9370_v22, 7  ;;  %v1902_v46 = vrot.slane %v9376_v21, 7 }
 0x100   : > { %7307 = vmatprep.subr.bf16.mxu1 %v8153_v59 }
 0x101   : > { %v1897_v45 = vor.u32 %v9373_v26, %v1894_v9  ;;  %v1905_v51 = vor.u32 %v9379_v61, %v1902_v46 }
 0x102   : > { %7538 = vmatmul.mubr.bf16.gmra.mrb[32].mxu0 %v3955_v35  ;;  %v3959_v35 = vsel %vm787_vm0, %v3956_v10, %v3958_v15  ;;  %v9473_v10 = vld [vmem:[#allocation2] sm:$0xff] }
 0x103   : > { %7308 = vmatpush3.bf16.msra.mxu1 %v8153_v59  ;;  %7541 = vmatprep.mubr.bf16.mxu0 %v3957_v12  ;;  %v3960_v59 = vrot.slane %v9444_v0, 4  ;;  %v1898_v12 = vsel %vm1814_vm3, %v1886_v3, %v1897_v45  ;;  %v1913_v3 = vor.u32 %v9458_v30, %v1910_v47  ;;  %v1921_v45 = vor.u32 %v9418_v31, %v1918_v23 }
 0x104   : > { %7309 = vmatprep.subr.bf16.mxu1 %v8155_v39 }
 0x105   : > { %v3963_v63 = vsel %vm787_vm0, %v3960_v59, %v3962_v54  ;;  %v1922_v41 = vsel %vm1814_vm3, %v1910_v47, %v1921_v45  ;;  %v4288_v45 = vrot.slane %v9251_v27, 4  ;;  %v9522_v27 = vshll.u32 %v9312_v43, 16 }
 0x106   : > { %7262 = vmatmul.mubr.bf16.gmra.mrb[12].mxu1 %v1882_v14  ;;  %v3961_v14 = vsel %vm787_vm0, %v3958_v15, %v3960_v59  ;;  %v4266_v15 = vshrl.u32 %v3834_v37, 16 }
 0x107   : > { %7265 = vmatprep.mubr.bf16.mxu1 %v1890_v29  ;;  %7310 = vmatpush3.bf16.msra.mxu1 %v8155_v39  ;;  %v1906_v29 = vsel %vm1814_vm3, %v1894_v9, %v1905_v51  ;;  %v9468_v39 = vld [vmem:[%s10100_s1 + $0x140] sm:$0xff]   ;;  %v3964_v9 = vrot.slane %v9473_v10, 4  ;;  %v4269_v51 = vshll.u32 %v3834_v37, 16  ;;  %v9492_v37 = vld [vmem:[#allocation2 + $0xd8] sm:$0xf] }
 0x108   : > { %7311 = vmatprep.subr.bf16.mxu1 %v8157_v42  ;;  %10186 = vst [vmem:[#allocation29_spill] sm:$0xff] %v9468_v39 }
 0x109   : > { %v4271_v18 = vrot.slane %v4269_v51, 4  ;;  %v1942_v51 = vrot.slane %v9502_v50, 7 }
 0x10a   : > { %7542 = vmatmul.mubr.bf16.gmra.mrb[36].mxu0 %v3959_v35  ;;  %v9481_v35 = vshrl.u32 %v9271_v28, 16 }
 0x10b   : > { %7312 = vmatpush3.bf16.msra.mxu1 %v8157_v42  ;;  %7545 = vmatprep.mubr.bf16.mxu0 %v3961_v14  ;;  %v9477_v42 = vshrl.u32 %v9242_v57, 16  ;;  %v3966_v57 = vrot.slane %v9492_v37, 4 }
 0x10c   : > { %7681 = vmatprep.subr.bf16.mxu1 %v9468_v39  ;;  %v3965_v39 = vsel %vm787_vm0, %v3962_v54, %v3964_v9  ;;  %v1934_v59 = vrot.slane %v9481_v35, 7 }
 0x10d   : > { %v1926_v14 = vrot.slane %v9477_v42, 7 }
 0x10e   : > { %7266 = vmatmul.mubr.bf16.gmra.mrb[16].mxu1 %v1898_v12  ;;  %v1914_v12 = vsel %vm1814_vm3, %v1902_v46, %v1913_v3  ;;  %v9497_v46 = vshll.u32 %v9271_v28, 16  ;;  %v4280_v3 = vor.u32 %v4279_v33, %v4276_v5  ;;  %v4285_v28 = vrot.slane %v9248_v38, 3 }
 0x10f   : > { %7269 = vmatprep.mubr.bf16.mxu1 %v1906_v29  ;;  %v4268_v29 = vrot.slane %v4266_v15, 3  ;;  %v1929_v4 = vor.u32 %v9487_v7, %v1926_v14  ;;  %v9506_v15 = vshrl.u32 %v9312_v43, 16  ;;  %v4294_v5 = vrot.slane %v9254_v20, 3 }
 0x110   : > { %v1937_v47 = vor.u32 %v9497_v46, %v1934_v59  ;;  %v9529_v20 = vshrl.u32 %v9367_v25, 16  ;;  %v4303_v43 = vrot.slane %v9281_v13, 3 }
 0x111   : > { %v4272_v54 = vor.u32 %v4271_v18, %v4268_v29  ;;  %v1950_v38 = vrot.slane %v9506_v15, 7 }
 0x112   : > { %7546 = vmatmul.mubr.bf16.gmra.mrb[40].mxu0 %v3963_v63  ;;  %v9514_v63 = vshll.u32 %v9309_v24, 16  ;;  %v1938_v33 = vsel %vm1814_vm3, %v1926_v14, %v1937_v47  ;;  %v1966_v13 = vrot.slane %v9529_v20, 7 }
 0x113   : > { %7549 = vmatprep.mubr.bf16.mxu0 %v3965_v39  ;;  %v3967_v39 = vsel %vm787_vm0, %v3964_v9, %v3966_v57  ;;  %v4281_v18 = vsel %vm1134_vm2, %v4272_v54, %v4280_v3  ;;  %v9526_v9 = vshrl.u32 %v9365_v62, 16  ;;  %v4306_v57 = vrot.slane %v9285_v52, 4 }
 0x114   : > { %v1945_v24 = vor.u32 %v9514_v63, %v1942_v51  ;;  %v9548_v52 = vshll.u32 %v9367_v25, 16  ;;  %v8156_v25 = vld [vmem:[%s10100_s1 + $0x210] sm:$0xff]  }
 0x115   : > { %v1958_v47 = vrot.slane %v9526_v9, 7 }
 0x116   : > { %7270 = vmatmul.mubr.bf16.gmra.mrb[20].mxu1 %v1914_v12  ;;  %v4297_v12 = vrot.slane %v9257_v8, 4  ;;  %v1953_v8 = vor.u32 %v9522_v27, %v1950_v38  ;;  %v1946_v54 = vsel %vm1814_vm3, %v1934_v59, %v1945_v24  ;;  %v4307_v59 = vor.u32 %v4306_v57, %v4303_v43 }
 0x117   : > { %7273 = vmatprep.mubr.bf16.mxu1 %v1922_v41  ;;  %v1930_v41 = vsel %vm1814_vm3, %v1918_v23, %v1929_v4  ;;  %v4289_v23 = vor.u32 %v4288_v45, %v4285_v28  ;;  %v9536_v4 = vshll.u32 %v9365_v62, 16  ;;  %v4312_v28 = vrot.slane %v9288_v16, 3 }
 0x118   : > { %v4298_v14 = vor.u32 %v4297_v12, %v4294_v5  ;;  %v4315_v45 = vrot.slane %v9294_v6, 4  ;;  %v1954_v62 = vsel %vm1814_vm3, %v1942_v51, %v1953_v8  ;;  %v9561_v51 = vshrl.u32 %v9420_v40, 16 }
 0x119   : > { %v4290_v29 = vsel %vm1134_vm2, %v4280_v3, %v4289_v23  ;;  %v8154_v3 = vld [vmem:[%s10100_s1 + $0x208] sm:$0xff]   ;;  %v1961_v16 = vor.u32 %v9536_v4, %v1958_v47  ;;  %v4324_v5 = vrot.slane %v9327_v58, 4  ;;  %v9567_v12 = vshll.u32 %v9410_v36, 16 }
 0x11a   : > { %7550 = vmatmul.mubr.bf16.gmra.mrb[44].mxu0 %v3967_v39  ;;  %v4299_v39 = vsel %vm1134_vm2, %v4289_v23, %v4298_v14  ;;  %v4316_v6 = vor.u32 %v4315_v45, %v4312_v28  ;;  %v9577_v58 = vshll.u32 %v9420_v40, 16  ;;  %v1996_v57 = vshrl.u32 %v9444_v0, 16 }
 0x11b   : > { %7569 = vmatprep.mubr.bf16.mxu0 %v4281_v18  ;;  %v1969_v18 = vor.u32 %v9548_v52, %v1966_v13  ;;  %v1962_v23 = vsel %vm1814_vm3, %v1950_v38, %v1961_v16  ;;  %v8158_v38 = vld [vmem:[%s10100_s1 + $0x218] sm:$0xff]   ;;  %v4339_v28 = vrot.slane %v9370_v22, 3  ;;  %v4342_v45 = vrot.slane %v9373_v26, 4 }
 0x11c   : > { %v4317_v24 = vsel %vm1134_vm2, %v4307_v59, %v4316_v6  ;;  %v1998_v26 = vrot.slane %v1996_v57, 7  ;;  %v1999_v16 = vshll.u32 %v9444_v0, 16 }
 0x11d   : > { %v1970_v43 = vsel %vm1814_vm3, %v1958_v47, %v1969_v18 }
 0x11e   : > { %7274 = vmatmul.mubr.bf16.gmra.mrb[24].mxu1 %v1930_v41  ;;  %v9554_v41 = vshrl.u32 %v9410_v36, 16  ;;  %v9580_v36 = vshrl.u32 %v9440_v34, 16 }
 0x11f   : > { %7277 = vmatprep.mubr.bf16.mxu1 %v1938_v33  ;;  %v4321_v33 = vrot.slane %v9318_v17, 3  ;;  %v1982_v17 = vrot.slane %v9561_v51, 7 }
 0x120   : > { %v1974_v8 = vrot.slane %v9554_v41, 7 }
 0x121   : > { %v1985_v47 = vor.u32 %v9577_v58, %v1982_v17 }
 0x122   : > { %7570 = vmatmul.mubr.bf16.vlgmr.msra.gmra.mrb[0].mxu0 %v4290_v29  ;;  %v4330_v29 = vrot.slane %v9330_v2, 3  ;;  %v9588_v2 = vsel %vm2923_vm1, %v8861_v56, %v8869_v53  ;;  %v1977_v40 = vor.u32 %v9567_v12, %v1974_v8  ;;  %v9597_v56 = vshll.u32 %v9440_v34, 16  ;;  %v8159_v53 = vld [vmem:[%s10100_s1 + $0x220] sm:$0xff]  }
 0x123   : > { %7618 = vmatpush3.bf16.msra.mxu0 %v9262_v1  ;;  %7573 = vmatprep.mubr.bf16.mxu0 %v4299_v39  ;;  %v4308_v1 = vsel %vm1134_vm2, %v4298_v14, %v4307_v59  ;;  %v4333_v14 = vrot.slane %v9333_v44, 4  ;;  %v4325_v44 = vor.u32 %v4324_v5, %v4321_v33  ;;  %v1990_v39 = vrot.slane %v9580_v36, 7 }
 0x124   : > { %7619 = vmatprep.subr.bf16.mxu0 %v8154_v3  ;;  %v1978_v22 = vsel %vm1814_vm3, %v1966_v13, %v1977_v40  ;;  %v1986_v18 = vsel %vm1814_vm3, %v1974_v8, %v1985_v47  ;;  %v8160_v13 = vld [vmem:[%s10100_s1 + $0x228] sm:$0xff]   ;;  %v9620_v33 = vsel %vm2923_vm1, %v8885_v11, %v8878_v49  ;;  %v9625_v5 = vsel %vm2923_vm1, %v8890_v32, %v8904_v48  ;;  %v8161_v32 = vld [vmem:[%s10100_s1 + $0x230] sm:$0xff]  }
 0x125   : > { %v4326_v59 = vsel %vm1134_vm2, %v4316_v6, %v4325_v44  ;;  %v4357_v11 = vrot.slane %v9450_v55, 3 }
 0x126   : > { %7278 = vmatmul.mubr.bf16.gmra.mrb[28].mxu1 %v1946_v54  ;;  %v4334_v54 = vor.u32 %v4333_v14, %v4330_v29  ;;  %v2321_v14 = vshll.u32 %v9473_v10, 16 }
 0x127   : > { %7281 = vmatprep.mubr.bf16.mxu1 %v1954_v62  ;;  %7620 = vmatpush3.bf16.msra.mxu0 %v8154_v3  ;;  %v4348_v3 = vrot.slane %v9376_v21, 3  ;;  %v4351_v62 = vrot.slane %v9379_v61, 4  ;;  %v1993_v21 = vor.u32 %v9597_v56, %v1990_v39  ;;  %v1752_v61 = vld [vmem:[#allocation2] sm:$0xf0] }
 0x128   : > { %7621 = vmatprep.subr.bf16.mxu0 %v8156_v25  ;;  %v4335_v34 = vsel %vm1134_vm2, %v4325_v44, %v4334_v54  ;;  %v2310_v8 = vshrl.u32 %v1752_v61, 16  ;;  %v2313_v29 = vshll.u32 %v1752_v61, 16  ;;  %v4360_v44 = vrot.slane %v9458_v30, 4 }
 0x129   : > { %v4352_v6 = vor.u32 %v4351_v62, %v4348_v3  ;;  %v1994_v48 = vsel %vm1814_vm3, %v1982_v17, %v1993_v21  ;;  %v2323_v62 = vrot.slane %v2321_v14, 5 }
 0x12a   : > { %7574 = vmatmul.mubr.bf16.gmra.mrb[4].mxu0 %v4308_v1  ;;  %v4343_v1 = vor.u32 %v4342_v45, %v4339_v28  ;;  %v4366_v28 = vrot.slane %v9415_v19, 3  ;;  %v4369_v45 = vrot.slane %v9418_v31, 4  ;;  %v2315_v3 = vrot.slane %v2313_v29, 5  ;;  %v10187_v19 = vld [vmem:[#allocation6_spill] sm:$0xff] }
 0x12b   : > { %7577 = vmatprep.mubr.bf16.mxu0 %v4317_v24  ;;  %7622 = vmatpush3.bf16.msra.mxu0 %v8156_v25  ;;  %v9611_v25 = vld [vmem:[#allocation2 + $0xc8] sm:$0xff]  ;;  %v9656_v31 = vsel %vm2923_vm1, %v10187_v19, %v8910_v60  ;;  %v4378_v29 = vrot.slane %v9487_v7, 4 }
 0x12c   : > { %7623 = vmatprep.subr.bf16.mxu0 %v8158_v38  ;;  %v2004_v24 = vshrl.u32 %v9611_v25, 16  ;;  %v4344_v49 = vsel %vm1134_vm2, %v4334_v54, %v4343_v1  ;;  %v2007_v40 = vshll.u32 %v9611_v25, 16  ;;  %v4370_v21 = vor.u32 %v4369_v45, %v4366_v28  ;;  %v10193_v28 = vld [vmem:[#allocation11_spill] sm:$0xff] }
 0x12e   : > { %7282 = vmatmul.mubr.bf16.gmra.mrb[32].mxu1 %v1962_v23  ;;  %v2001_v23 = vor.u32 %v1999_v16, %v1998_v26  ;;  %v2006_v54 = vrot.slane %v2004_v24, 7 }
 0x12f   : > { %7285 = vmatprep.mubr.bf16.mxu1 %v1970_v43  ;;  %7624 = vmatpush3.bf16.msra.mxu0 %v8158_v38  ;;  %v2318_v43 = vshrl.u32 %v9473_v10, 16  ;;  %v4353_v38 = vsel %vm1134_vm2, %v4343_v1, %v4352_v6 }
 0x130   : > { %7625 = vmatprep.subr.bf16.mxu0 %v8159_v53  ;;  %v2002_v47 = vsel %vm1814_vm3, %v1990_v39, %v2001_v23  ;;  %v8162_v39 = vld [vmem:[%s10100_s1 + $0x238] sm:$0xff]   ;;  %v2009_v1 = vor.u32 %v2007_v40, %v2006_v54  ;;  %v10192_v54 = vld [vmem:[#allocation12_spill] sm:$0xff] }
 0x131   : > { %v2320_v17 = vrot.slane %v2318_v43, 4  ;;  %v9687_v45 = vsel %vm2923_vm1, %v10193_v28, %v10192_v54  ;;  %v4414_v54 = vrot.slane %v9536_v4, 4 }
 0x132   : > { %7578 = vmatmul.mubr.bf16.gmra.mrb[8].mxu0 %v4326_v59  ;;  %v10188_v59 = vld [vmem:[#allocation8_spill] sm:$0xff]  ;;  %v2010_v23 = vsel %vm1814_vm3, %v1998_v26, %v2009_v1  ;;  %v10190_v26 = vld [vmem:[#allocation9_spill] sm:$0xff]  ;;  %v4402_v1 = vrot.slane %v9506_v15, 3 }
 0x133   : > { %7581 = vmatprep.mubr.bf16.mxu0 %v4335_v34  ;;  %7626 = vmatpush3.bf16.msra.mxu0 %v8159_v53  ;;  %v2312_v53 = vrot.slane %v2310_v8, 4  ;;  %v4375_v8 = vrot.slane %v9477_v42, 3 }
 0x134   : > { %7627 = vmatprep.subr.bf16.mxu0 %v8160_v13 }
 0x135   : > { %v2316_v61 = vor.u32 %v2315_v3, %v2312_v53  ;;  %v4379_v53 = vor.u32 %v4378_v29, %v4375_v8  ;;  %v10197_v8 = vld [vmem:[#allocation15_spill] sm:$0xff] }
 0x136   : > { %7286 = vmatmul.mubr.bf16.gmra.mrb[36].mxu1 %v1978_v22  ;;  %v10189_v22 = vld [vmem:[#allocation7_spill] sm:$0xff] }
 0x137   : > { %7289 = vmatprep.mubr.bf16.mxu1 %v1986_v18  ;;  %7628 = vmatpush3.bf16.msra.mxu0 %v8160_v13  ;;  %v9661_v34 = vsel %vm2923_vm1, %v10189_v22, %v10188_v59  ;;  %v4361_v18 = vor.u32 %v4360_v44, %v4357_v11  ;;  %v9665_v13 = vor.u32 %v2323_v62, %v2320_v17  ;;  %v10191_v44 = vld [vmem:[#allocation10_spill] sm:$0xff]  ;;  %v4393_v59 = vrot.slane %v9502_v50, 3 }
 0x138   : > { %7629 = vmatprep.subr.bf16.mxu0 %v8161_v32  ;;  %v4380_v62 = vsel %vm1134_vm2, %v4370_v21, %v4379_v53  ;;  %v4396_v22 = vrot.slane %v9514_v63, 4 }
 0x139   : > { %v4362_v60 = vsel %vm1134_vm2, %v4352_v6, %v4361_v18  ;;  %v2325_v11 = vsel %vm2308_vm4, %v2316_v61, %v9665_v13  ;;  %v4405_v61 = vrot.slane %v9522_v27, 4 }
 0x13a   : > { %7582 = vmatmul.mubr.bf16.gmra.mrb[12].mxu0 %v4344_v49  ;;  %v4371_v49 = vsel %vm1134_vm2, %v4361_v18, %v4370_v21 }
 0x13b   : > { %7585 = vmatprep.mubr.bf16.mxu0 %v4353_v38  ;;  %7630 = vmatpush3.bf16.msra.mxu0 %v8161_v32  ;;  %v4387_v38 = vrot.slane %v9497_v46, 4  ;;  %v9676_v32 = vld [vmem:[#allocation2 + $0xc0] sm:$0xff] }
 0x13c   : > { %7631 = vmatprep.subr.bf16.mxu0 %v8162_v39  ;;  %v3100_v6 = vshll.u32 %v9676_v32, 16 }
 0x13e   : > { %7290 = vmatmul.mubr.bf16.gmra.mrb[40].mxu1 %v1994_v48  ;;  %v4384_v48 = vrot.slane %v9481_v35, 3  ;;  %v9689_v17 = vrot.slane %v3100_v6, 1  ;;  %v8176_v6 = vld [vmem:[%s10100_s1 + $0x148] sm:$0xff]  }
 0x13f   : > { %7293 = vmatprep.mubr.bf16.mxu1 %v2002_v47  ;;  %7632 = vmatpush3.bf16.msra.mxu0 %v8162_v39  ;;  %v9682_v47 = vsel %vm2923_vm1, %v10191_v44, %v10190_v26  ;;  %v10194_v39 = vld [vmem:[#allocation16_spill] sm:$0xff]  ;;  %v4411_v44 = vrot.slane %v9526_v9, 3 }
 0x140   : > { %v4388_v3 = vor.u32 %v4387_v38, %v4384_v48  ;;  %v2329_v19 = vsel %vm2308_vm4, %v9665_v13, %v10194_v39  ;;  %v9708_v29 = vsel %vm2923_vm1, %v10197_v8, %v9689_v17  ;;  %v10199_v48 = vld [vmem:[#allocation17_spill] sm:$0xff]  ;;  %v4406_v38 = vor.u32 %v4405_v61, %v4402_v1  ;;  %v8177_v39 = vld [vmem:[%s10100_s1 + $0x150] sm:$0xff]  }
 0x141   : > { %v4429_v61 = vrot.slane %v9554_v41, 3  ;;  %v4438_v8 = vrot.slane %v9561_v51, 3 }
 0x142   : > { %7586 = vmatmul.mubr.bf16.gmra.mrb[16].mxu0 %v4362_v60  ;;  %v4389_v18 = vsel %vm1134_vm2, %v4379_v53, %v4388_v3  ;;  %v10195_v60 = vld [vmem:[#allocation13_spill] sm:$0xff]  ;;  %v4420_v53 = vrot.slane %v9529_v20, 3 }
 0x143   : > { %7589 = vmatprep.mubr.bf16.mxu0 %v4371_v49  ;;  %v10198_v49 = vld [vmem:[#allocation29_spill] sm:$0xff] }
 0x146   : > { %7294 = vmatmul.mubr.bf16.gmra.mrb[44].mxu1 %v2010_v23  ;;  %v10196_v23 = vld [vmem:[#allocation14_spill] sm:$0xff] }
 0x147   : > { %7313 = vmatprep.mubr.bf16.mxu1 %v2325_v11  ;;  %v9703_v21 = vsel %vm2923_vm1, %v10196_v23, %v10195_v60  ;;  %v4397_v11 = vor.u32 %v4396_v22, %v4393_v59  ;;  %v10201_v59 = vld [vmem:[#allocation19_spill] sm:$0xff]  ;;  %v4432_v60 = vrot.slane %v9567_v12, 4 }
 0x149   : > { %v4398_v26 = vsel %vm1134_vm2, %v4388_v3, %v4397_v11  ;;  %v4407_v28 = vsel %vm1134_vm2, %v4397_v11, %v4406_v38  ;;  %v4415_v3 = vor.u32 %v4414_v54, %v4411_v44  ;;  %v8179_v11 = vld [vmem:[%s10100_s1 + $0x160] sm:$0xff]   ;;  %v8180_v44 = vld [vmem:[%s10100_s1 + $0x168] sm:$0xff]  }
 0x14a   : > { %7590 = vmatmul.mubr.bf16.gmra.mrb[20].mxu0 %v4380_v62  ;;  %v4423_v62 = vrot.slane %v9548_v52, 4 }
 0x14b   : > { %7593 = vmatprep.mubr.bf16.mxu0 %v4389_v18  ;;  %v8178_v18 = vld [vmem:[%s10100_s1 + $0x158] sm:$0xff]   ;;  %v4416_v1 = vsel %vm1134_vm2, %v4406_v38, %v4415_v3  ;;  %v4433_v38 = vor.u32 %v4432_v60, %v4429_v61 }
 0x14c   : > { %v4424_v22 = vor.u32 %v4423_v62, %v4420_v53  ;;  %v4450_v53 = vrot.slane %v9597_v56, 4  ;;  %v10205_v61 = vld [vmem:[#allocation23_spill] sm:$0xff] }
 0x14e   : > { %7314 = vmatmul.mubr.bf16.vlgmr.msra.gmra.mrb[0].mxu1 %v2329_v19  ;;  %v10200_v19 = vld [vmem:[#allocation18_spill] sm:$0xff]  ;;  %v4425_v23 = vsel %vm1134_vm2, %v4415_v3, %v4424_v22  ;;  %v4434_v54 = vsel %vm1134_vm2, %v4424_v22, %v4433_v38  ;;  %v9755_v22 = vld [vmem:[#allocation2 + $0xc8] sm:$0xff] }
 0x14f   : > { %7689 = vmatpush3.bf16.msra.mxu1 %v10198_v49  ;;  %7317 = vmatprep.mubr.bf16.mxu1 %v10199_v48  ;;  %v4441_v49 = vrot.slane %v9577_v58, 4  ;;  %v10202_v48 = vld [vmem:[#allocation20_spill] sm:$0xff]  ;;  %v8181_v3 = vld [vmem:[%s10100_s1 + $0x170] sm:$0xff]  }
 0x150   : > { %7682 = vmatprep.subr.bf16.mxu1 %v8176_v6 }
 0x152   : > { %7594 = vmatmul.mubr.bf16.gmra.mrb[24].mxu0 %v4398_v26  ;;  %v4442_v26 = vor.u32 %v4441_v49, %v4438_v8  ;;  %v4474_v49 = vrot.slane %v2318_v43, 3  ;;  %v4484_v43 = vshll.u32 %v9492_v37, 16 }
 0x153   : > { %7690 = vmatpush3.bf16.msra.mxu1 %v8176_v6  ;;  %7597 = vmatprep.mubr.bf16.mxu0 %v4407_v28  ;;  %v10203_v6 = vld [vmem:[#allocation21_spill] sm:$0xff]  ;;  %v4447_v28 = vrot.slane %v9580_v36, 3 }
 0x154   : > { %7683 = vmatprep.subr.bf16.mxu1 %v8177_v39  ;;  %v4443_v62 = vsel %vm1134_vm2, %v4433_v38, %v4442_v26  ;;  %v2370_v38 = vrot.slane %v9450_v55, 4 }
 0x156   : > { %7318 = vmatmul.mubr.bf16.gmra.mrb[4].mxu1 %v10200_v19  ;;  %v4459_v19 = vrot.slane %v1999_v16, 4  ;;  %v8183_v16 = vld [vmem:[%s10100_s1 + $0x178] sm:$0xff]  }
 0x157   : > { %7321 = vmatprep.mubr.bf16.mxu1 %v10201_v59  ;;  %7691 = vmatpush3.bf16.msra.mxu1 %v8177_v39  ;;  %v4456_v39 = vrot.slane %v1996_v57, 3  ;;  %v10204_v59 = vld [vmem:[#allocation22_spill] sm:$0xff]  ;;  %v4451_v57 = vor.u32 %v4450_v53, %v4447_v28  ;;  %v10206_v28 = vld [vmem:[#allocation24_spill] sm:$0xff] }
 0x158   : > { %7684 = vmatprep.subr.bf16.mxu1 %v8178_v18 }
 0x159   : > { %v4460_v0 = vor.u32 %v4459_v19, %v4456_v39  ;;  %v4452_v8 = vsel %vm1134_vm2, %v4442_v26, %v4451_v57  ;;  %v4481_v26 = vshrl.u32 %v9492_v37, 16 }
 0x15a   : > { %7598 = vmatmul.mubr.bf16.gmra.mrb[28].mxu0 %v4416_v1  ;;  %v4466_v1 = vshll.u32 %v9755_v22, 16 }
 0x15b   : > { %7692 = vmatpush3.bf16.msra.mxu1 %v8178_v18  ;;  %7601 = vmatprep.mubr.bf16.mxu0 %v4425_v23  ;;  %v4463_v18 = vshrl.u32 %v9755_v22, 16 }
 0x15c   : > { %7685 = vmatprep.subr.bf16.mxu1 %v8179_v11  ;;  %v4468_v23 = vrot.slane %v4466_v1, 4 }
 0x15d   : > { %v4465_v60 = vrot.slane %v4463_v18, 3 }
 0x15e   : > { %7322 = vmatmul.mubr.bf16.gmra.mrb[8].mxu1 %v10202_v48  ;;  %v4477_v48 = vrot.slane %v2321_v14, 4 }
 0x15f   : > { %7325 = vmatprep.mubr.bf16.mxu1 %v10203_v6  ;;  %7693 = vmatpush3.bf16.msra.mxu1 %v8179_v11  ;;  %v4461_v11 = vsel %vm1134_vm2, %v4451_v57, %v4460_v0  ;;  %v2371_v6 = vrot.slane %v9458_v30, 5  ;;  %v4469_v53 = vor.u32 %v4468_v23, %v4465_v60  ;;  %v4486_v57 = vrot.slane %v4484_v43, 4 }
 0x160   : > { %7686 = vmatprep.subr.bf16.mxu1 %v8180_v44  ;;  %v4478_v19 = vor.u32 %v4477_v48, %v4474_v49  ;;  %v4933_v49 = vld [vmem:[#allocation2 + $0x30] sm:$0xff]  ;;  %v10209_v48 = vld [vmem:[#allocation27_spill] sm:$0xff] }
 0x161   : > { %v2372_v30 = vor.u32 %v2371_v6, %v2370_v38 }
 0x162   : > { %7602 = vmatmul.mubr.bf16.gmra.mrb[32].mxu0 %v4434_v54  ;;  %v4931_v54 = vld [vmem:[#allocation2 + $0x20] sm:$0xff]  ;;  %v4479_v37 = vsel %vm1134_vm2, %v4469_v53, %v4478_v19 }
 0x163   : > { %7694 = vmatpush3.bf16.msra.mxu1 %v8180_v44  ;;  %7605 = vmatprep.mubr.bf16.mxu0 %v4443_v62  ;;  %v4930_v44 = vld [vmem:[#allocation2 + $0x18] sm:$0xf0]  ;;  %v10207_v62 = vld [vmem:[#allocation26_spill] sm:$0xff]  ;;  %v4981_v39 = vshrl.u32 %v4931_v54, 16  ;;  %v4984_v55 = vshll.u32 %v4931_v54, 16  ;;  %v2379_v54 = vrot.slane %v9487_v7, 5 }
 0x164   : > { %7687 = vmatprep.subr.bf16.mxu1 %v8181_v3  ;;  %v4973_v10 = vshrl.u32 %v4930_v44, 16  ;;  %v4976_v14 = vshll.u32 %v4930_v44, 16  ;;  %v2378_v44 = vrot.slane %v9477_v42, 4  ;;  %v2382_v42 = vrot.slane %v9481_v35, 4  ;;  %v4935_v35 = vld [vmem:[#allocation2 + $0x40] sm:$0xff] }
 0x165   : > { %v4983_v60 = vrot.slane %v4981_v39, 4  ;;  %v4986_v23 = vrot.slane %v4984_v55, 5  ;;  %v2383_v7 = vrot.slane %v9497_v46, 5 }
 0x166   : > { %7326 = vmatmul.mubr.bf16.gmra.mrb[12].mxu1 %v10204_v59  ;;  %v4483_v59 = vrot.slane %v4481_v26, 3 }
 0x167   : > { %7329 = vmatprep.mubr.bf16.mxu1 %v10205_v61  ;;  %7695 = vmatpush3.bf16.msra.mxu1 %v8181_v3  ;;  %v4470_v3 = vsel %vm1134_vm2, %v4460_v0, %v4469_v53  ;;  %v4975_v61 = vrot.slane %v4973_v10, 4  ;;  %v4987_v43 = vor.u32 %v4986_v23, %v4983_v60  ;;  %v2380_v53 = vor.u32 %v2379_v54, %v2378_v44 }
 0x168   : > { %7688 = vmatprep.subr.bf16.mxu1 %v8183_v16  ;;  %v4487_v6 = vor.u32 %v4486_v57, %v4483_v59  ;;  %v5002_v10 = vshll.u32 %v4933_v49, 16  ;;  %v4934_v57 = vld [vmem:[#allocation2 + $0x38] sm:$0xff]  ;;  %v2386_v60 = vrot.slane %v9502_v50, 4  ;;  %v2387_v23 = vrot.slane %v9514_v63, 5 }
 0x169   : > { %v5020_v44 = vshll.u32 %v4935_v35, 16  ;;  %v2390_v63 = vrot.slane %v9506_v15, 4 }
 0x16a   : > { %7606 = vmatmul.mubr.bf16.gmra.mrb[36].mxu0 %v4452_v8  ;;  %v4932_v8 = vld [vmem:[#allocation2 + $0x28] sm:$0xff]  ;;  %v4488_v55 = vsel %vm1134_vm2, %v4478_v19, %v4487_v6  ;;  %v2384_v19 = vor.u32 %v2383_v7, %v2382_v42  ;;  %v2391_v6 = vrot.slane %v9522_v27, 5  ;;  %v2394_v42 = vrot.slane %v9526_v9, 4 }
 0x16b   : > { %7696 = vmatpush3.bf16.msra.mxu1 %v8183_v16  ;;  %7609 = vmatprep.mubr.bf16.mxu0 %v4461_v11  ;;  %v4978_v16 = vrot.slane %v4976_v14, 5  ;;  %v10208_v11 = vld [vmem:[#allocation25_spill] sm:$0xff]  ;;  %v4990_v0 = vshrl.u32 %v4932_v8, 16  ;;  %v4993_v38 = vshll.u32 %v4932_v8, 16  ;;  %v2395_v7 = vrot.slane %v9536_v4, 5 }
 0x16c   : > { %v2392_v27 = vor.u32 %v2391_v6, %v2390_v63  ;;  %v2399_v9 = vrot.slane %v9548_v52, 5 }
 0x16d   : > { %v4979_v26 = vor.u32 %v4978_v16, %v4975_v61  ;;  %v4992_v14 = vrot.slane %v4990_v0, 4  ;;  %v4995_v39 = vrot.slane %v4993_v38, 5  ;;  %v5004_v16 = vrot.slane %v5002_v10, 5  ;;  %v4936_v10 = vld [vmem:[#allocation2 + $0x48] sm:$0xff] }
 0x16e   : > { %7330 = vmatmul.mubr.bf16.gmra.mrb[16].mxu1 %v10206_v28  ;;  %v2373_v28 = vsel %vm2308_vm4, %v10208_v11, %v2372_v30  ;;  %v2385_v0 = vsel %vm2308_vm4, %v2380_v53, %v2384_v19 }
 0x16f   : > { %7333 = vmatprep.mubr.bf16.mxu1 %v10207_v62  ;;  %v4999_v62 = vshrl.u32 %v4933_v49, 16  ;;  %v4988_v8 = vsel %vm2308_vm4, %v4979_v26, %v4987_v43  ;;  %v4996_v46 = vor.u32 %v4995_v39, %v4992_v14  ;;  %v2388_v49 = vor.u32 %v2387_v23, %v2386_v60 }
 0x171   : > { %v5001_v59 = vrot.slane %v4999_v62, 4  ;;  %v5022_v62 = vrot.slane %v5020_v44, 5  ;;  %v2389_v39 = vsel %vm2308_vm4, %v2384_v19, %v2388_v49  ;;  %v2393_v60 = vsel %vm2308_vm4, %v2388_v49, %v2392_v27  ;;  %v4939_v44 = vld [vmem:[#allocation2 + $0x60] sm:$0xff] }
 0x172   : > { %7610 = vmatmul.mubr.bf16.gmra.mrb[40].mxu0 %v4470_v3  ;;  %v10210_v3 = vld [vmem:[#allocation28_spill] sm:$0xff]  ;;  %v5053_v49 = vshrl.u32 %v4939_v44, 16 }
 0x173   : > { %7613 = vmatprep.mubr.bf16.mxu0 %v4479_v37  ;;  %v2377_v11 = vsel %vm2308_vm4, %v2372_v30, %v10210_v3  ;;  %v2381_v61 = vsel %vm2308_vm4, %v10210_v3, %v2380_v53  ;;  %v5008_v37 = vshrl.u32 %v4934_v57, 16  ;;  %v5017_v30 = vshrl.u32 %v4935_v35, 16 }
 0x174   : > { %v5005_v54 = vor.u32 %v5004_v16, %v5001_v59  ;;  %v5026_v53 = vshrl.u32 %v4936_v10, 16  ;;  %v2398_v16 = vrot.slane %v9529_v20, 4 }
 0x175   : > { %v5010_v50 = vrot.slane %v5008_v37, 4  ;;  %v5019_v26 = vrot.slane %v5017_v30, 4  ;;  %v2403_v30 = vrot.slane %v9567_v12, 5  ;;  %v2406_v12 = vrot.slane %v9561_v51, 4 }
 0x176   : > { %7334 = vmatmul.mubr.bf16.gmra.mrb[20].mxu1 %v10209_v48  ;;  %v4997_v48 = vsel %vm2308_vm4, %v4987_v43, %v4996_v46  ;;  %v5006_v14 = vsel %vm2308_vm4, %v4996_v46, %v5005_v54  ;;  %v4937_v43 = vld [vmem:[#allocation2 + $0x50] sm:$0xff]  ;;  %v4938_v46 = vld [vmem:[#allocation2 + $0x58] sm:$0xff]  ;;  %v2400_v52 = vor.u32 %v2399_v9, %v2398_v16 }
 0x177   : > { %7337 = vmatprep.mubr.bf16.mxu1 %v2373_v28  ;;  %v5011_v28 = vshll.u32 %v4934_v57, 16  ;;  %v5023_v3 = vor.u32 %v5022_v62, %v5019_v26  ;;  %v5038_v59 = vshll.u32 %v4937_v43, 16  ;;  %v5028_v57 = vrot.slane %v5026_v53, 4 }
 0x178   : > { %v2407_v62 = vrot.slane %v9577_v58, 5  ;;  %v2411_v53 = vrot.slane %v9597_v56, 5 }
 0x179   : > { %v5013_v38 = vrot.slane %v5011_v28, 5  ;;  %v5040_v37 = vrot.slane %v5038_v59, 5  ;;  %v2402_v28 = vrot.slane %v9554_v41, 4 }
 0x17a   : > { %7614 = vmatmul.mubr.bf16.gmra.mrb[44].mxu0 %v4488_v55  ;;  %v5029_v55 = vshll.u32 %v4936_v10, 16  ;;  %v5055_v10 = vrot.slane %v5053_v49, 4  ;;  %v2408_v58 = vor.u32 %v2407_v62, %v2406_v12 }
 0x17b   : > { %7633 = vmatprep.mubr.bf16.mxu0 %v4988_v8  ;;  %v5014_v15 = vor.u32 %v5013_v38, %v5010_v50  ;;  %v2396_v8 = vor.u32 %v2395_v7, %v2394_v42  ;;  %v2404_v38 = vor.u32 %v2403_v30, %v2402_v28  ;;  %v4942_v28 = vld [vmem:[#allocation2 + $0x78] sm:$0xff]  ;;  %v8184_v30 = vld [vmem:[#allocation2 + $0x70] sm:$0xff] }
 0x17c   : > { %v5083_v49 = vshll.u32 %v4942_v28, 16 }
 0x17d   : > { %v5015_v4 = vsel %vm2308_vm4, %v5005_v54, %v5014_v15  ;;  %v5024_v23 = vsel %vm2308_vm4, %v5014_v15, %v5023_v3  ;;  %v2397_v19 = vsel %vm2308_vm4, %v2392_v27, %v2396_v8  ;;  %v5047_v54 = vshll.u32 %v4938_v46, 16  ;;  %v4941_v15 = vld [vmem:[#allocation2 + $0x70] sm:$0xff] }
 0x17e   : > { %7338 = vmatmul.mubr.bf16.gmra.mrb[24].mxu1 %v2377_v11  ;;  %v5035_v11 = vshrl.u32 %v4937_v43, 16  ;;  %v2401_v6 = vsel %vm2308_vm4, %v2396_v8, %v2400_v52  ;;  %v2405_v7 = vsel %vm2308_vm4, %v2400_v52, %v2404_v38  ;;  %v2410_v43 = vrot.slane %v9580_v36, 4 }
 0x17f   : > { %7341 = vmatprep.mubr.bf16.mxu1 %v2381_v61  ;;  %v5031_v61 = vrot.slane %v5029_v55, 5  ;;  %v5049_v26 = vrot.slane %v5047_v54, 5  ;;  %v1776_v55 = vld [vmem:[#allocation2 + $0xc0] sm:$0x1f]  ;;  %v5074_v16 = vshll.u32 %v4941_v15, 16  ;;  %v5080_v54 = vshrl.u32 %v4942_v28, 16 }
 0x180   : > { %v5037_v35 = vrot.slane %v5035_v11, 4  ;;  %v2415_v8 = vshrl.u32 %v1776_v55, 16  ;;  %v2418_v59 = vshll.u32 %v1776_v55, 16  ;;  %v5085_v62 = vrot.slane %v5083_v49, 5 }
 0x181   : > { %v5032_v20 = vor.u32 %v5031_v61, %v5028_v57  ;;  %v2412_v57 = vor.u32 %v2411_v53, %v2410_v43  ;;  %v5071_v61 = vshrl.u32 %v4941_v15, 16  ;;  %v5082_v12 = vrot.slane %v5080_v54, 4  ;;  %v4944_v43 = vld [vmem:[#allocation2 + $0x88] sm:$0xff]  ;;  %v4945_v53 = vld [vmem:[#allocation2 + $0x90] sm:$0xff] }
 0x182   : > { %7634 = vmatmul.mubr.bf16.vlgmr.msra.gmra.mrb[0].mxu0 %v4997_v48  ;;  %v5044_v48 = vshrl.u32 %v4938_v46, 16  ;;  %v5041_v50 = vor.u32 %v5040_v37, %v5037_v35  ;;  %v2420_v35 = vrot.slane %v2418_v59, 5  ;;  %v5076_v37 = vrot.slane %v5074_v16, 5 }
 0x183   : > { %7637 = vmatprep.mubr.bf16.mxu0 %v5006_v14  ;;  %v5033_v63 = vsel %vm2308_vm4, %v5023_v3, %v5032_v20  ;;  %v2413_v46 = vsel %vm2308_vm4, %v2408_v58, %v2412_v57  ;;  %v5086_v55 = vor.u32 %v5085_v62, %v5082_v12  ;;  %v5098_v15 = vshrl.u32 %v4944_v43, 16  ;;  %v4950_v62 = vld [vmem:[#allocation2 + $0xb8] sm:$0xff] }
 0x184   : > { %v5046_v41 = vrot.slane %v5044_v48, 4  ;;  %v5042_v42 = vsel %vm2308_vm4, %v5032_v20, %v5041_v50  ;;  %v4943_v20 = vld [vmem:[#allocation2 + $0x80] sm:$0xff] }
 0x186   : > { %7342 = vmatmul.mubr.bf16.gmra.mrb[28].mxu1 %v2385_v0  ;;  %v5056_v0 = vshll.u32 %v4939_v44, 16  ;;  %v5050_v27 = vor.u32 %v5049_v26, %v5046_v41  ;;  %v3024_v44 = vshrl.u32 %v8184_v30, 16 }
 0x187   : > { %7345 = vmatprep.mubr.bf16.mxu1 %v2389_v39  ;;  %v4940_v39 = vld [vmem:[#allocation2 + $0x68] sm:$0xff] }
 0x188   : > { %v5058_v14 = vrot.slane %v5056_v0, 5  ;;  %v5062_v3 = vshrl.u32 %v4940_v39, 16  ;;  %v5065_v51 = vshll.u32 %v4940_v39, 16  ;;  %v5051_v36 = vsel %vm2308_vm4, %v5041_v50, %v5050_v27  ;;  %v10211_v50 = vld [vmem:[#allocation4_spill] sm:$0xff] }
 0x18a   : > { %7638 = vmatmul.mubr.bf16.gmra.mrb[4].mxu0 %v5015_v4  ;;  %v5059_v11 = vor.u32 %v5058_v14, %v5055_v10  ;;  %v5064_v9 = vrot.slane %v5062_v3, 4  ;;  %v5067_v56 = vrot.slane %v5065_v51, 5  ;;  %v2409_v4 = vsel %vm2308_vm4, %v2404_v38, %v2408_v58  ;;  %v10212_v14 = vld [vmem:[#allocation5_spill] sm:$0xff] }
 0x18b   : > { %7641 = vmatprep.mubr.bf16.mxu0 %v5024_v23  ;;  %v2417_v23 = vrot.slane %v2415_v8, 4  ;;  %v3026_v38 = vor.u32 %v3024_v44, %v10211_v50  ;;  %v5107_v51 = vshrl.u32 %v4945_v53, 16  ;;  %v5110_v58 = vshll.u32 %v4945_v53, 16 }
 0x18c   : > { %v5068_v52 = vor.u32 %v5067_v56, %v5064_v9  ;;  %v5100_v8 = vrot.slane %v5098_v15, 4  ;;  %v4947_v9 = vld [vmem:[#allocation2 + $0xa0] sm:$0xff] }
 0x18d   : > { %v2421_v48 = vor.u32 %v2420_v35, %v2417_v23  ;;  %v3031_v39 = vsel %vm2923_vm1, %v3026_v38, %v10212_v14  ;;  %v5112_v16 = vrot.slane %v5110_v58, 5  ;;  %v5125_v35 = vshrl.u32 %v4947_v9, 16 }
 0x18e   : > { %7346 = vmatmul.mubr.bf16.gmra.mrb[32].mxu1 %v2393_v60  ;;  %v5060_v60 = vsel %vm2308_vm4, %v5050_v27, %v5059_v11  ;;  %v5069_v41 = vsel %vm2308_vm4, %v5059_v11, %v5068_v52  ;;  %v5101_v27 = vshll.u32 %v4944_v43, 16  ;;  %v5155_v14 = vshll.u32 %v4950_v62, 16 }
 0x18f   : > { %7349 = vmatprep.mubr.bf16.mxu1 %v2397_v19  ;;  %v5073_v19 = vrot.slane %v5071_v61, 4  ;;  %v2422_v26 = vsel %vm2308_vm4, %v2412_v57, %v2421_v48  ;;  %v5109_v61 = vrot.slane %v5107_v51, 4  ;;  %v5127_v44 = vrot.slane %v5125_v35, 4  ;;  %v4949_v48 = vld [vmem:[#allocation2 + $0xb0] sm:$0xff] }
 0x190   : > { %v5103_v59 = vrot.slane %v5101_v27, 5  ;;  %v5146_v50 = vshll.u32 %v4949_v48, 16  ;;  %v3104_v43 = vshrl.u32 %v9676_v32, 16  ;;  %v5157_v15 = vrot.slane %v5155_v14, 5 }
 0x191   : > { %v5077_v0 = vor.u32 %v5076_v37, %v5073_v19  ;;  %v5113_v23 = vor.u32 %v5112_v16, %v5109_v61  ;;  %v3110_v32 = vrot.slane %v4466_v1, 1  ;;  %v4954_v16 = vld [vmem:[#allocation2 + $0xd8] sm:$0x1f] }
 0x192   : > { %7642 = vmatmul.mubr.bf16.gmra.mrb[8].mxu0 %v5033_v63  ;;  %v5089_v63 = vshrl.u32 %v4943_v20, 16  ;;  %v5104_v56 = vor.u32 %v5103_v59, %v5100_v8  ;;  %v5148_v12 = vrot.slane %v5146_v50, 5  ;;  %v5172_v59 = vrot.slane %v2004_v24, 4 }
 0x193   : > { %7645 = vmatprep.mubr.bf16.mxu0 %v5042_v42  ;;  %v5078_v10 = vsel %vm2308_vm4, %v5068_v52, %v5077_v0  ;;  %v5087_v11 = vsel %vm2308_vm4, %v5077_v0, %v5086_v55  ;;  %v4948_v52 = vld [vmem:[#allocation2 + $0xa8] sm:$0xff]  ;;  %v5143_v0 = vshrl.u32 %v4949_v48, 16  ;;  %v5188_v24 = vshrl.u32 %v4954_v16, 16 }
 0x194   : > { %v5091_v42 = vrot.slane %v5089_v63, 4  ;;  %v5114_v30 = vsel %vm2308_vm4, %v5104_v56, %v5113_v23  ;;  %v5137_v54 = vshll.u32 %v4948_v52, 16 }
 0x196   : > { %7350 = vmatmul.mubr.bf16.gmra.mrb[36].mxu1 %v2401_v6  ;;  %v5092_v6 = vshll.u32 %v4943_v20, 16 }
 0x197   : > { %7353 = vmatprep.mubr.bf16.mxu1 %v2405_v7 }
 0x198   : > { %v5094_v7 = vrot.slane %v5092_v6, 5  ;;  %v5139_v6 = vrot.slane %v5137_v54, 5 }
 0x19a   : > { %7646 = vmatmul.mubr.bf16.gmra.mrb[12].mxu0 %v5051_v36  ;;  %v5095_v3 = vor.u32 %v5094_v7, %v5091_v42  ;;  %v4946_v36 = vld [vmem:[#allocation2 + $0x98] sm:$0xff] }
 0x19b   : > { %7649 = vmatprep.mubr.bf16.mxu0 %v5060_v60  ;;  %v5119_v60 = vshll.u32 %v4946_v36, 16 }
 0x19c   : > { %v5096_v57 = vsel %vm2308_vm4, %v5086_v55, %v5095_v3  ;;  %v5105_v19 = vsel %vm2308_vm4, %v5095_v3, %v5104_v56  ;;  %v5190_v56 = vrot.slane %v5188_v24, 4  ;;  %v5644_v24 = vld [vmem:[%s10103_s4 + $0x38] sm:$0xff] }
 0x19d   : > { %v5121_v28 = vrot.slane %v5119_v60, 5 }
 0x19e   : > { %7354 = vmatmul.mubr.bf16.gmra.mrb[40].mxu1 %v2409_v4  ;;  %v5116_v4 = vshrl.u32 %v4946_v36, 16 }
 0x19f   : > { %7357 = vmatprep.mubr.bf16.mxu1 %v2413_v46  ;;  %v5128_v46 = vshll.u32 %v4947_v9, 16  ;;  %v5191_v9 = vshll.u32 %v4954_v16, 16 }
 0x1a0   : > { %v5118_v37 = vrot.slane %v5116_v4, 4 }
 0x1a1   : > { %v5130_v20 = vrot.slane %v5128_v46, 5  ;;  %v5193_v4 = vrot.slane %v5191_v9, 5 }
 0x1a2   : > { %7650 = vmatmul.mubr.bf16.gmra.mrb[16].mxu0 %v5069_v41 }
 0x1a3   : > { %7653 = vmatprep.mubr.bf16.mxu0 %v5078_v10  ;;  %v5131_v49 = vor.u32 %v5130_v20, %v5127_v44  ;;  %v4951_v10 = vld [vmem:[#allocation2 + $0xc0] sm:$0xff]  ;;  %v5194_v22 = vor.u32 %v5193_v4, %v5190_v56  ;;  %v5642_v56 = vld [vmem:[%s10103_s4 + $0x28] sm:$0xff] }
 0x1a4   : > { %v5161_v42 = vshrl.u32 %v4951_v10, 16  ;;  %v5164_v7 = vshll.u32 %v4951_v10, 16 }
 0x1a6   : > { %7358 = vmatmul.mubr.bf16.gmra.mrb[44].mxu1 %v2422_v26  ;;  %v5145_v26 = vrot.slane %v5143_v0, 4  ;;  %v5163_v3 = vrot.slane %v5161_v42, 4  ;;  %v5166_v51 = vrot.slane %v5164_v7, 5  ;;  %v5640_v42 = vld [vmem:[%s10103_s4 + $0x18] sm:$0xff] }
 0x1a7   : > { %7401 = vmatprep.mubr.bf16.mxu1 %v3031_v39 }
 0x1a8   : > { %v5149_v39 = vor.u32 %v5148_v12, %v5145_v26  ;;  %v5167_v58 = vor.u32 %v5166_v51, %v5163_v3 }
 0x1aa   : > { %7654 = vmatmul.mubr.bf16.gmra.mrb[20].mxu0 %v5087_v11  ;;  %v2905_v11 = vld [vmem:[#allocation2 + $0xd0] sm:$0x1] }
 0x1ab   : > { %7657 = vmatprep.mubr.bf16.mxu0 %v5096_v57  ;;  %v5175_v57 = vrot.slane %v2007_v40, 5 }
 0x1ad   : > { %v5176_v1 = vor.u32 %v5175_v57, %v5172_v59 }
 0x1ae   : > { %7402 = vmatmul.mubr.bf16.vlgmr.msra.gmra.mrb[24].mxu1 %v9588_v2  ;;  %v5122_v2 = vor.u32 %v5121_v28, %v5118_v37 }
 0x1af   : > { %7405 = vmatprep.mubr.bf16.mxu1 %v9620_v33  ;;  %v5134_v33 = vshrl.u32 %v4948_v52, 16  ;;  %v5177_v25 = vsel %vm2308_vm4, %v5167_v58, %v5176_v1  ;;  %v5186_v60 = vsel %vm2308_vm4, %v5176_v1, %v9665_v13 }
 0x1b0   : > { %v5123_v38 = vsel %vm2308_vm4, %v5113_v23, %v5122_v2  ;;  %v5132_v41 = vsel %vm2308_vm4, %v5122_v2, %v5131_v49 }
 0x1b1   : > { %v5136_v63 = vrot.slane %v5134_v33, 4 }
 0x1b2   : > { %7658 = vmatmul.mubr.bf16.gmra.mrb[24].mxu0 %v5105_v19 }
 0x1b3   : > { %7661 = vmatprep.mubr.bf16.mxu0 %v5114_v30 }
 0x1b6   : > { %7406 = vmatmul.mubr.bf16.gmra.mrb[28].mxu1 %v9625_v5  ;;  %v5140_v5 = vor.u32 %v5139_v6, %v5136_v63 }
 0x1b7   : > { %7409 = vmatprep.mubr.bf16.mxu1 %v9656_v31  ;;  %v5152_v31 = vshrl.u32 %v4950_v62, 16 }
 0x1b8   : > { %v5141_v53 = vsel %vm2308_vm4, %v5131_v49, %v5140_v5  ;;  %v5150_v27 = vsel %vm2308_vm4, %v5140_v5, %v5149_v39  ;;  %v5637_v5 = vld [vmem:[%s10103_s4] sm:$0xff] }
 0x1b9   : > { %v5154_v55 = vrot.slane %v5152_v31, 4  ;;  %v5639_v31 = vld [vmem:[%s10103_s4 + $0x10] sm:$0xff] }
 0x1ba   : > { %7662 = vmatmul.mubr.bf16.gmra.mrb[28].mxu0 %v5123_v38 }
 0x1bb   : > { %7665 = vmatprep.mubr.bf16.mxu0 %v5132_v41 }
 0x1be   : > { %7410 = vmatmul.mubr.bf16.gmra.mrb[32].mxu1 %v9661_v34  ;;  %v5158_v34 = vor.u32 %v5157_v15, %v5154_v55 }
 0x1bf   : > { %7413 = vmatprep.mubr.bf16.mxu1 %v9682_v47  ;;  %v3106_v47 = vor.u32 %v3104_v43, %v9689_v17  ;;  %v3114_v17 = vor.u32 %v4463_v18, %v3110_v32 }
 0x1c0   : > { %v5159_v8 = vsel %vm2308_vm4, %v5149_v39, %v5158_v34  ;;  %v5168_v61 = vsel %vm2308_vm4, %v5158_v34, %v5167_v58 }
 0x1c2   : > { %7666 = vmatmul.mubr.bf16.gmra.mrb[32].mxu0 %v5141_v53  ;;  %v5638_v53 = vld [vmem:[%s10103_s4 + $0x8] sm:$0xff] }
 0x1c3   : > { %7669 = vmatprep.mubr.bf16.mxu0 %v5150_v27 }
 0x1c6   : > { %7414 = vmatmul.mubr.bf16.gmra.mrb[36].mxu1 %v9687_v45  ;;  %v3116_v45 = vshll.u32 %v2905_v11, 16 }
 0x1c7   : > { %7417 = vmatprep.mubr.bf16.mxu1 %v9703_v21  ;;  %v3111_v21 = vsel %vm2923_vm1, %v3106_v47, %v3110_v32 }
 0x1c8   : > { %v3118_v36 = vrot.slane %v3116_v45, 1  ;;  %v5641_v45 = vld [vmem:[%s10103_s4 + $0x20] sm:$0xff] }
 0x1ca   : > { %7670 = vmatmul.mubr.bf16.gmra.mrb[36].mxu0 %v5159_v8  ;;  %v3119_v40 = vsel %vm2923_vm1, %v3114_v17, %v3118_v36  ;;  %v5643_v17 = vld [vmem:[%s10103_s4 + $0x30] sm:$0xff] }
 0x1cb   : > { %7673 = vmatprep.mubr.bf16.mxu0 %v5168_v61 }
 0x1ce   : > { %7418 = vmatmul.mubr.bf16.gmra.mrb[40].mxu1 %v9708_v29  ;;  %v5195_v29 = vsel %vm2308_vm4, %v9665_v13, %v5194_v22 }
 0x1cf   : > { %7421 = vmatprep.mubr.bf16.mxu1 %v3111_v21 }
 0x1d2   : > { %7674 = vmatmul.mubr.bf16.gmra.mrb[40].mxu0 %v5177_v25 }
 0x1d3   : > { %7677 = vmatprep.mubr.bf16.mxu0 %v5186_v60 }
 0x1d6   : > { %7422 = vmatmul.mubr.bf16.gmra.mrb[44].mxu1 %v3119_v40 }
 0x1da   : > { %7678 = vmatmul.mubr.bf16.gmra.mrb[44].mxu0 %v5195_v29 }
 0x221   : > { %v7315_v18 = vpop.f32.mrb[0].mxu1 }
 0x222   : > { %v2529_v23 = vpop.f32.mrb[1].mxu1 }
 0x223   : > { %v7316_v35 = vpop.f32.mrb[2].mxu1 }
 0x224   : > { %v2532_v46 = vpop.f32.mrb[3].mxu1 }
 0x229   : > { %v7319_v19 = vpop.f32.mrb[4].mxu1 }
 0x22a   : > { %v2545_v37 = vpop.f32.mrb[5].mxu1 }
 0x22b   : > { %v7320_v28 = vpop.f32.mrb[6].mxu1 }
 0x22c   : > { %v2548_v30 = vpop.f32.mrb[7].mxu1 }
 0x231   : > { %v9866_v44 = vpop.f32.mrb[8].mxu1 }
 0x232   : > { %v9868_v20 = vpop.f32.mrb[9].mxu1 }
 0x233   : > { %v9870_v52 = vpop.f32.mrb[10].mxu1 }
 0x234   : > { %v9872_v48 = vpop.f32.mrb[11].mxu1 }
 0x239   : > { %v9874_v2 = vpop.f32.mrb[12].mxu1 }
 0x23a   : > { %v9876_v13 = vpop.f32.mrb[13].mxu1 }
 0x23b   : > { %v9878_v33 = vpop.f32.mrb[14].mxu1 }
 0x23c   : > { %v9880_v54 = vpop.f32.mrb[15].mxu1 }
 0x241   : > { %v9882_v49 = vpop.f32.mrb[16].mxu1 }
 0x242   : > { %v9884_v0 = vpop.f32.mrb[17].mxu1 }
 0x243   : > { %v9886_v50 = vpop.f32.mrb[18].mxu1 }
 0x244   : > { %v9888_v38 = vpop.f32.mrb[19].mxu1 }
 0x249   : > { %v9890_v63 = vpop.f32.mrb[20].mxu1 }
 0x24a   : > { %v9892_v6 = vpop.f32.mrb[21].mxu1 }
 0x24b   : > { %v9894_v41 = vpop.f32.mrb[22].mxu1 }
 0x24c   : > { %v9896_v26 = vpop.f32.mrb[23].mxu1 }
 0x255   : > { %v7635_v12 = vpop.f32.mrb[0].mxu0 }
 0x256   : > { %v7697_v62 = vadd.f32 %v7635_v12, %v7315_v18  ;;  %v5302_v10 = vpop.f32.mrb[1].mxu0 }
 0x257   : > { %v7698_v14 = vadd.f32 %v5302_v10, %v2529_v23  ;;  %v7636_v39 = vpop.f32.mrb[2].mxu0 }
 0x258   : > { %v7699_v7 = vadd.f32 %v7636_v39, %v7316_v35  ;;  %v5305_v43 = vpop.f32.mrb[3].mxu0  ;;  %v5687_v27 = vmul.f32 %v7697_v62, %v5639_v31 }
 0x259   : > { %v5685_v55 = vmul.f32 %v7698_v14, %v5637_v5  ;;  %v7700_v15 = vadd.f32 %v5305_v43, %v2532_v46 }
 0x25a   : > { %v5688_v3 = vmul.f32 %v7699_v7, %v5640_v42  ;;  %v5789_v61 = vmul.f32 %v5687_v27, %v5687_v27 }
 0x25b   : > { %v5686_v51 = vmul.f32 %v7700_v15, %v5638_v53  ;;  %v5787_v47 = vmul.f32 %v5685_v55, %v5685_v55  ;;  %v5647_v53 = vld [vmem:[%s10103_s4 + $0x50] sm:$0xff] }
 0x25c   : > { %v6659_v34 = vpack.c.bf16 %v5688_v3, %v5687_v27  ;;  %v5790_v9 = vmul.f32 %v5688_v3, %v5688_v3 }
 0x25d   : > { %v5733_v32 = vadd.f32 %v5686_v51, %v5685_v55  ;;  %v5788_v58 = vmul.f32 %v5686_v51, %v5686_v51  ;;  %v6654_v11 = vpack.c.bf16 %v5686_v51, %v5685_v55  ;;  %v7639_v8 = vpop.f32.mrb[4].mxu0 }
 0x25e   : > { %6794 = vst [vmem:[%s9915_s8 + $0x8] sm:$0xff] %v6659_v34   ;;  %v7701_v59 = vadd.f32 %v7639_v8, %v7319_v19  ;;  %v5318_v57 = vpop.f32.mrb[5].mxu0  ;;  %v5646_v34 = vld [vmem:[%s10103_s4 + $0x48] sm:$0xff] }
 0x25f   : > { %v5734_v21 = vadd.f32 %v5733_v32, %v5687_v27  ;;  %v5835_v16 = vadd.f32 %v5788_v58, %v5787_v47  ;;  %6655 = vst [vmem:[%s9915_s8] sm:$0xff] %v6654_v11   ;;  %v7702_v1 = vadd.f32 %v5318_v57, %v2545_v37  ;;  %v7640_v36 = vpop.f32.mrb[6].mxu0 }
 0x260   : > { %v7703_v25 = vadd.f32 %v7640_v36, %v7320_v28  ;;  %v5321_v40 = vpop.f32.mrb[7].mxu0  ;;  %v5691_v18 = vmul.f32 %v7701_v59, %v5643_v17 }
 0x261   : > { %v5836_v4 = vadd.f32 %v5835_v16, %v5789_v61  ;;  %v5689_v60 = vmul.f32 %v7702_v1, %v5641_v45  ;;  %v5735_v22 = vadd.f32 %v5734_v21, %v5688_v3  ;;  %v7704_v29 = vadd.f32 %v5321_v40, %v2548_v30  ;;  %v5645_v30 = vld [vmem:[%s10103_s4 + $0x40] sm:$0xff] }
 0x262   : > { %v5692_v23 = vmul.f32 %v7703_v25, %v5644_v24  ;;  %v5793_v42 = vmul.f32 %v5691_v18, %v5691_v18 }
 0x263   : > { %v5736_v35 = vadd.f32 %v5735_v22, %v5689_v60  ;;  %v5791_v46 = vmul.f32 %v5689_v60, %v5689_v60  ;;  %v5837_v19 = vadd.f32 %v5836_v4, %v5790_v9  ;;  %v5690_v37 = vmul.f32 %v7704_v29, %v5642_v56  ;;  %v5651_v4 = vld [vmem:[%s10103_s4 + $0x70] sm:$0xff] }
 0x264   : > { %v6669_v12 = vpack.c.bf16 %v5692_v23, %v5691_v18  ;;  %v5794_v27 = vmul.f32 %v5692_v23, %v5692_v23 }
 0x265   : > { %v5838_v62 = vadd.f32 %v5837_v19, %v5791_v46  ;;  %v5737_v28 = vadd.f32 %v5736_v35, %v5690_v37  ;;  %v5792_v10 = vmul.f32 %v5690_v37, %v5690_v37  ;;  %v6664_v5 = vpack.c.bf16 %v5690_v37, %v5689_v60  ;;  %v7643_v31 = vpop.f32.mrb[8].mxu0  ;;  %v5650_v35 = vld [vmem:[%s10103_s4 + $0x68] sm:$0xff] }
 0x266   : > { %6796 = vst [vmem:[%s9915_s8 + $0x18] sm:$0xff] %v6669_v12   ;;  %v7705_v14 = vadd.f32 %v7643_v31, %v9866_v44  ;;  %v5334_v39 = vpop.f32.mrb[9].mxu0  ;;  %v5648_v44 = vld [vmem:[%s10103_s4 + $0x58] sm:$0xff] }
 0x267   : > { %v5738_v7 = vadd.f32 %v5737_v28, %v5691_v18  ;;  %v5839_v43 = vadd.f32 %v5838_v62, %v5792_v10  ;;  %6795 = vst [vmem:[%s9915_s8 + $0x10] sm:$0xff] %v6664_v5   ;;  %v7706_v55 = vadd.f32 %v5334_v39, %v9868_v20  ;;  %v7644_v15 = vpop.f32.mrb[10].mxu0 }
 0x268   : > { %v7707_v3 = vadd.f32 %v7644_v15, %v9870_v52  ;;  %v5337_v51 = vpop.f32.mrb[11].mxu0  ;;  %v5695_v20 = vmul.f32 %v7705_v14, %v5647_v53 }
 0x269   : > { %v5840_v47 = vadd.f32 %v5839_v43, %v5793_v42  ;;  %v5693_v32 = vmul.f32 %v7706_v55, %v5645_v30  ;;  %v5739_v58 = vadd.f32 %v5738_v7, %v5692_v23  ;;  %v7708_v11 = vadd.f32 %v5337_v51, %v9872_v48  ;;  %v5649_v48 = vld [vmem:[%s10103_s4 + $0x60] sm:$0xff] }
 0x26a   : > { %v5696_v8 = vmul.f32 %v7707_v3, %v5648_v44  ;;  %v5797_v25 = vmul.f32 %v5695_v20, %v5695_v20 }
 0x26b   : > { %v5740_v59 = vadd.f32 %v5739_v58, %v5693_v32  ;;  %v5795_v57 = vmul.f32 %v5693_v32, %v5693_v32  ;;  %v5841_v45 = vadd.f32 %v5840_v47, %v5794_v27  ;;  %v5694_v61 = vmul.f32 %v7708_v11, %v5646_v34  ;;  %v5655_v27 = vld [vmem:[%s10103_s4 + $0x90] sm:$0xff]  ;;  %v5654_v58 = vld [vmem:[%s10103_s4 + $0x88] sm:$0xff] }
 0x26c   : > { %v6679_v21 = vpack.c.bf16 %v5696_v8, %v5695_v20  ;;  %v5798_v29 = vmul.f32 %v5696_v8, %v5696_v8 }
 0x26d   : > { %v5842_v52 = vadd.f32 %v5841_v45, %v5795_v57  ;;  %v5741_v16 = vadd.f32 %v5740_v59, %v5694_v61  ;;  %v5796_v17 = vmul.f32 %v5694_v61, %v5694_v61  ;;  %v6674_v1 = vpack.c.bf16 %v5694_v61, %v5693_v32  ;;  %v7647_v36 = vpop.f32.mrb[12].mxu0 }
 0x26e   : > { %6798 = vst [vmem:[%s9915_s8 + $0x28] sm:$0xff] %v6679_v21   ;;  %v7709_v24 = vadd.f32 %v7647_v36, %v9874_v2  ;;  %v5350_v9 = vpop.f32.mrb[13].mxu0  ;;  %v5652_v2 = vld [vmem:[%s10103_s4 + $0x78] sm:$0xff] }
 0x26f   : > { %v5742_v40 = vadd.f32 %v5741_v16, %v5695_v20  ;;  %v5843_v56 = vadd.f32 %v5842_v52, %v5796_v17  ;;  %6797 = vst [vmem:[%s9915_s8 + $0x20] sm:$0xff] %v6674_v1   ;;  %v7710_v60 = vadd.f32 %v5350_v9, %v9876_v13  ;;  %v7648_v22 = vpop.f32.mrb[14].mxu0 }
 0x270   : > { %v7711_v18 = vadd.f32 %v7648_v22, %v9878_v33  ;;  %v5353_v23 = vpop.f32.mrb[15].mxu0  ;;  %v5699_v13 = vmul.f32 %v7709_v24, %v5651_v4  ;;  %v5659_v22 = vld [vmem:[%s10103_s4 + $0xb0] sm:$0xff] }
 0x271   : > { %v5844_v46 = vadd.f32 %v5843_v56, %v5797_v25  ;;  %v5697_v19 = vmul.f32 %v7710_v60, %v5649_v48  ;;  %v5743_v37 = vadd.f32 %v5742_v40, %v5696_v8  ;;  %v7712_v12 = vadd.f32 %v5353_v23, %v9880_v54  ;;  %v5653_v54 = vld [vmem:[%s10103_s4 + $0x80] sm:$0xff] }
 0x272   : > { %v5700_v62 = vmul.f32 %v7711_v18, %v5652_v2  ;;  %v5801_v55 = vmul.f32 %v5699_v13, %v5699_v13 }
 0x273   : > { %v5744_v28 = vadd.f32 %v5743_v37, %v5697_v19  ;;  %v5799_v10 = vmul.f32 %v5697_v19, %v5697_v19  ;;  %v5845_v5 = vadd.f32 %v5844_v46, %v5798_v29  ;;  %v5698_v31 = vmul.f32 %v7712_v12, %v5650_v35 }
 0x274   : > { %v6689_v14 = vpack.c.bf16 %v5700_v62, %v5699_v13  ;;  %v5802_v34 = vmul.f32 %v5700_v62, %v5700_v62 }
 0x275   : > { %v5846_v33 = vadd.f32 %v5845_v5, %v5799_v10  ;;  %v5745_v39 = vadd.f32 %v5744_v28, %v5698_v31  ;;  %v5800_v30 = vmul.f32 %v5698_v31, %v5698_v31  ;;  %v6684_v42 = vpack.c.bf16 %v5698_v31, %v5697_v19  ;;  %v7651_v7 = vpop.f32.mrb[16].mxu0  ;;  %v5658_v19 = vld [vmem:[%s10103_s4 + $0xa8] sm:$0xff] }
 0x276   : > { %6800 = vst [vmem:[%s9915_s8 + $0x38] sm:$0xff] %v6689_v14   ;;  %v7713_v43 = vadd.f32 %v7651_v7, %v9882_v49  ;;  %v5366_v53 = vpop.f32.mrb[17].mxu0  ;;  %v5656_v49 = vld [vmem:[%s10103_s4 + $0x98] sm:$0xff] }
 0x277   : > { %v5746_v15 = vadd.f32 %v5745_v39, %v5699_v13  ;;  %v5847_v44 = vadd.f32 %v5846_v33, %v5800_v30  ;;  %6799 = vst [vmem:[%s9915_s8 + $0x30] sm:$0xff] %v6684_v42   ;;  %v7714_v3 = vadd.f32 %v5366_v53, %v9884_v0  ;;  %v7652_v51 = vpop.f32.mrb[18].mxu0 }
 0x278   : > { %v7715_v47 = vadd.f32 %v7652_v51, %v9886_v50  ;;  %v5369_v32 = vpop.f32.mrb[19].mxu0  ;;  %v5703_v0 = vmul.f32 %v7713_v43, %v5655_v27  ;;  %v5663_v51 = vld [vmem:[%s10103_s4 + $0xd0] sm:$0xff] }
 0x279   : > { %v5848_v11 = vadd.f32 %v5847_v44, %v5801_v55  ;;  %v5701_v20 = vmul.f32 %v7714_v3, %v5653_v54  ;;  %v5747_v8 = vadd.f32 %v5746_v15, %v5700_v62  ;;  %v7716_v59 = vadd.f32 %v5369_v32, %v9888_v38  ;;  %v5657_v38 = vld [vmem:[%s10103_s4 + $0xa0] sm:$0xff] }
 0x27a   : > { %v5704_v57 = vmul.f32 %v7715_v47, %v5656_v49  ;;  %v5805_v56 = vmul.f32 %v5703_v0, %v5703_v0  ;;  %v5664_v47 = vld [vmem:[%s10103_s4 + $0xd8] sm:$0xff] }
 0x27b   : > { %v5748_v45 = vadd.f32 %v5747_v8, %v5701_v20  ;;  %v5803_v61 = vmul.f32 %v5701_v20, %v5701_v20  ;;  %v5849_v21 = vadd.f32 %v5848_v11, %v5802_v34  ;;  %v5702_v52 = vmul.f32 %v7716_v59, %v5654_v58  ;;  %v5662_v8 = vld [vmem:[%s10103_s4 + $0xc8] sm:$0xff] }
 0x27c   : > { %v6699_v16 = vpack.c.bf16 %v5704_v57, %v5703_v0  ;;  %v5806_v23 = vmul.f32 %v5704_v57, %v5704_v57 }
 0x27d   : > { %v5850_v50 = vadd.f32 %v5849_v21, %v5803_v61  ;;  %v5749_v17 = vadd.f32 %v5748_v45, %v5702_v52  ;;  %v5804_v1 = vmul.f32 %v5702_v52, %v5702_v52  ;;  %v6694_v36 = vpack.c.bf16 %v5702_v52, %v5701_v20  ;;  %v7655_v24 = vpop.f32.mrb[20].mxu0 }
 0x27e   : > { %6802 = vst [vmem:[%s9915_s8 + $0x48] sm:$0xff] %v6699_v16   ;;  %v7717_v48 = vadd.f32 %v7655_v24, %v9890_v63  ;;  %v5382_v25 = vpop.f32.mrb[21].mxu0  ;;  %v5660_v63 = vld [vmem:[%s10103_s4 + $0xb8] sm:$0xff] }
 0x27f   : > { %v5750_v4 = vadd.f32 %v5749_v17, %v5703_v0  ;;  %v5851_v60 = vadd.f32 %v5850_v50, %v5804_v1  ;;  %6801 = vst [vmem:[%s9915_s8 + $0x40] sm:$0xff] %v6694_v36   ;;  %v7718_v2 = vadd.f32 %v5382_v25, %v9892_v6  ;;  %v7656_v29 = vpop.f32.mrb[22].mxu0 }
 0x280   : > { %v7719_v35 = vadd.f32 %v7656_v29, %v9894_v41  ;;  %v5385_v46 = vpop.f32.mrb[23].mxu0  ;;  %v5707_v28 = vmul.f32 %v7717_v48, %v5659_v22 }
 0x281   : > { %v7403_v9 = vpop.f32.mrb[24].mxu1  ;;  %v5852_v12 = vadd.f32 %v5851_v60, %v5805_v56  ;;  %v5705_v13 = vmul.f32 %v7718_v2, %v5657_v38  ;;  %v5751_v62 = vadd.f32 %v5750_v4, %v5704_v57  ;;  %v7720_v6 = vadd.f32 %v5385_v46, %v9896_v26  ;;  %v5661_v26 = vld [vmem:[%s10103_s4 + $0xc0] sm:$0xff]  ;;  %v5668_v46 = vld [vmem:[%s10103_s4 + $0xf8] sm:$0xff] }
 0x282   : > { %v3322_v40 = vpop.f32.mrb[25].mxu1  ;;  %v5708_v10 = vmul.f32 %v7719_v35, %v5660_v63  ;;  %v5809_v44 = vmul.f32 %v5707_v28, %v5707_v28  ;;  %v5665_v60 = vld [vmem:[%s10103_s4 + $0xe0] sm:$0xff] }
 0x283   : > { %v7404_v18 = vpop.f32.mrb[26].mxu1  ;;  %v5752_v5 = vadd.f32 %v5751_v62, %v5705_v13  ;;  %v5807_v31 = vmul.f32 %v5705_v13, %v5705_v13  ;;  %v5853_v14 = vadd.f32 %v5852_v12, %v5806_v23  ;;  %v5706_v33 = vmul.f32 %v7720_v6, %v5658_v19  ;;  %v5666_v62 = vld [vmem:[%s10103_s4 + $0xe8] sm:$0xff] }
 0x284   : > { %v3325_v37 = vpop.f32.mrb[27].mxu1  ;;  %v6709_v41 = vpack.c.bf16 %v5708_v10, %v5707_v28  ;;  %v5810_v58 = vmul.f32 %v5708_v10, %v5708_v10 }
 0x285   : > { %v5854_v39 = vadd.f32 %v5853_v14, %v5807_v31  ;;  %v5753_v30 = vadd.f32 %v5752_v5, %v5706_v33  ;;  %v5808_v42 = vmul.f32 %v5706_v33, %v5706_v33  ;;  %v6704_v7 = vpack.c.bf16 %v5706_v33, %v5705_v13  ;;  %v7659_v43 = vpop.f32.mrb[24].mxu0 }
 0x286   : > { %6804 = vst [vmem:[%s9915_s8 + $0x58] sm:$0xff] %v6709_v41   ;;  %v7721_v54 = vadd.f32 %v7659_v43, %v7403_v9  ;;  %v5398_v55 = vpop.f32.mrb[25].mxu0 }
 0x287   : > { %v5754_v27 = vadd.f32 %v5753_v30, %v5707_v28  ;;  %v5855_v3 = vadd.f32 %v5854_v39, %v5808_v42  ;;  %6803 = vst [vmem:[%s9915_s8 + $0x50] sm:$0xff] %v6704_v7   ;;  %v7722_v49 = vadd.f32 %v5398_v55, %v3322_v40  ;;  %v7660_v34 = vpop.f32.mrb[26].mxu0 }
 0x288   : > { %v7723_v11 = vadd.f32 %v7660_v34, %v7404_v18  ;;  %v5401_v20 = vpop.f32.mrb[27].mxu0  ;;  %v5711_v21 = vmul.f32 %v7721_v54, %v5663_v51  ;;  %v5667_v18 = vld [vmem:[%s10103_s4 + $0xf0] sm:$0xff] }
 0x289   : > { %v7407_v53 = vpop.f32.mrb[28].mxu1  ;;  %v5856_v0 = vadd.f32 %v5855_v3, %v5809_v44  ;;  %v5709_v57 = vmul.f32 %v7722_v49, %v5661_v26  ;;  %v5755_v45 = vadd.f32 %v5754_v27, %v5708_v10  ;;  %v7724_v61 = vadd.f32 %v5401_v20, %v3325_v37  ;;  %v5669_v3 = vld [vmem:[%s10103_s4 + $0x100] sm:$0xff]  ;;  %v5672_v20 = vld [vmem:[%s10103_s4 + $0x118] sm:$0xff] }
 0x28a   : > { %v3338_v15 = vpop.f32.mrb[29].mxu1  ;;  %v5712_v52 = vmul.f32 %v7723_v11, %v5664_v47  ;;  %v5813_v2 = vmul.f32 %v5711_v21, %v5711_v21 }
 0x28b   : > { %v7408_v32 = vpop.f32.mrb[30].mxu1  ;;  %v5756_v16 = vadd.f32 %v5755_v45, %v5709_v57  ;;  %v5811_v50 = vmul.f32 %v5709_v57, %v5709_v57  ;;  %v5857_v17 = vadd.f32 %v5856_v0, %v5810_v58  ;;  %v5710_v1 = vmul.f32 %v7724_v61, %v5662_v8  ;;  %v5670_v45 = vld [vmem:[%s10103_s4 + $0x108] sm:$0xff] }
 0x28c   : > { %v3341_v59 = vpop.f32.mrb[31].mxu1  ;;  %v6719_v36 = vpack.c.bf16 %v5712_v52, %v5711_v21  ;;  %v5814_v37 = vmul.f32 %v5712_v52, %v5712_v52 }
 0x28d   : > { %v5858_v24 = vadd.f32 %v5857_v17, %v5811_v50  ;;  %v5757_v9 = vadd.f32 %v5756_v16, %v5710_v1  ;;  %v5812_v48 = vmul.f32 %v5710_v1, %v5710_v1  ;;  %v6714_v25 = vpack.c.bf16 %v5710_v1, %v5709_v57  ;;  %v7663_v38 = vpop.f32.mrb[28].mxu0 }
 0x28e   : > { %6806 = vst [vmem:[%s9915_s8 + $0x68] sm:$0xff] %v6719_v36   ;;  %v7725_v56 = vadd.f32 %v7663_v38, %v7407_v53  ;;  %v5414_v4 = vpop.f32.mrb[29].mxu0 }
 0x28f   : > { %v5758_v29 = vadd.f32 %v5757_v9, %v5711_v21  ;;  %v5859_v63 = vadd.f32 %v5858_v24, %v5812_v48  ;;  %6805 = vst [vmem:[%s9915_s8 + $0x60] sm:$0xff] %v6714_v25   ;;  %v7726_v23 = vadd.f32 %v5414_v4, %v3338_v15  ;;  %v7664_v35 = vpop.f32.mrb[30].mxu0 }
 0x290   : > { %v7727_v12 = vadd.f32 %v7664_v35, %v7408_v32  ;;  %v5417_v13 = vpop.f32.mrb[31].mxu0  ;;  %v5715_v14 = vmul.f32 %v7725_v56, %v5667_v18  ;;  %v5671_v32 = vld [vmem:[%s10103_s4 + $0x110] sm:$0xff] }
 0x291   : > { %v7411_v40 = vpop.f32.mrb[32].mxu1  ;;  %v5860_v28 = vadd.f32 %v5859_v63, %v5813_v2  ;;  %v5713_v10 = vmul.f32 %v7726_v23, %v5665_v60  ;;  %v5759_v5 = vadd.f32 %v5758_v29, %v5712_v52  ;;  %v7728_v31 = vadd.f32 %v5417_v13, %v3341_v59  ;;  %v5673_v63 = vld [vmem:[%s10103_s4 + $0x120] sm:$0xff]  ;;  %v5676_v13 = vld [vmem:[%s10103_s4 + $0x138] sm:$0xff] }
 0x292   : > { %v3354_v22 = vpop.f32.mrb[33].mxu1  ;;  %v5716_v33 = vmul.f32 %v7727_v12, %v5668_v46  ;;  %v5817_v49 = vmul.f32 %v5715_v14, %v5715_v14 }
 0x293   : > { %v7412_v19 = vpop.f32.mrb[34].mxu1  ;;  %v5760_v41 = vadd.f32 %v5759_v5, %v5713_v10  ;;  %v5815_v39 = vmul.f32 %v5713_v10, %v5713_v10  ;;  %v5861_v30 = vadd.f32 %v5860_v28, %v5814_v37  ;;  %v5714_v42 = vmul.f32 %v7728_v31, %v5666_v62  ;;  %v5674_v5 = vld [vmem:[%s10103_s4 + $0x128] sm:$0xff] }
 0x294   : > { %v3357_v6 = vpop.f32.mrb[35].mxu1  ;;  %v6729_v7 = vpack.c.bf16 %v5716_v33, %v5715_v14  ;;  %v5818_v59 = vmul.f32 %v5716_v33, %v5716_v33 }
 0x295   : > { %v5862_v43 = vadd.f32 %v5861_v30, %v5815_v39  ;;  %v5761_v53 = vadd.f32 %v5760_v41, %v5714_v42  ;;  %v5816_v54 = vmul.f32 %v5714_v42, %v5714_v42  ;;  %v6724_v55 = vpack.c.bf16 %v5714_v42, %v5713_v10  ;;  %v7667_v26 = vpop.f32.mrb[32].mxu0 }
 0x296   : > { %6808 = vst [vmem:[%s9915_s8 + $0x78] sm:$0xff] %v6729_v7   ;;  %v7729_v44 = vadd.f32 %v7667_v26, %v7411_v40  ;;  %v5430_v27 = vpop.f32.mrb[33].mxu0 }
 0x297   : > { %v5762_v34 = vadd.f32 %v5761_v53, %v5715_v14  ;;  %v5863_v47 = vadd.f32 %v5862_v43, %v5816_v54  ;;  %6807 = vst [vmem:[%s9915_s8 + $0x70] sm:$0xff] %v6724_v55   ;;  %v7730_v58 = vadd.f32 %v5430_v27, %v3354_v22  ;;  %v7668_v11 = vpop.f32.mrb[34].mxu0 }
 0x298   : > { %v7731_v0 = vadd.f32 %v7668_v11, %v7412_v19  ;;  %v5433_v57 = vpop.f32.mrb[35].mxu0  ;;  %v5719_v17 = vmul.f32 %v7729_v44, %v5671_v32  ;;  %v5675_v19 = vld [vmem:[%s10103_s4 + $0x130] sm:$0xff] }
 0x299   : > { %v7415_v15 = vpop.f32.mrb[36].mxu1  ;;  %v5864_v21 = vadd.f32 %v5863_v47, %v5817_v49  ;;  %v5717_v52 = vmul.f32 %v7730_v58, %v5669_v3  ;;  %v5763_v16 = vadd.f32 %v5762_v34, %v5716_v33  ;;  %v7732_v50 = vadd.f32 %v5433_v57, %v3357_v6  ;;  %v5677_v47 = vld [vmem:[%s10103_s4 + $0x140] sm:$0xff]  ;;  %v5680_v57 = vld [vmem:[%s10103_s4 + $0x158] sm:$0xff] }
 0x29a   : > { %v3370_v51 = vpop.f32.mrb[37].mxu1  ;;  %v5720_v1 = vmul.f32 %v7731_v0, %v5672_v20  ;;  %v5821_v23 = vmul.f32 %v5719_v17, %v5719_v17 }
 0x29b   : > { %v7416_v8 = vpop.f32.mrb[38].mxu1  ;;  %v5764_v36 = vadd.f32 %v5763_v16, %v5717_v52  ;;  %v5819_v24 = vmul.f32 %v5717_v52, %v5717_v52  ;;  %v5865_v9 = vadd.f32 %v5864_v21, %v5818_v59  ;;  %v5718_v48 = vmul.f32 %v7732_v50, %v5670_v45  ;;  %v5678_v16 = vld [vmem:[%s10103_s4 + $0x148] sm:$0xff] }
 0x29c   : > { %v3373_v61 = vpop.f32.mrb[39].mxu1  ;;  %v6739_v25 = vpack.c.bf16 %v5720_v1, %v5719_v17  ;;  %v5822_v6 = vmul.f32 %v5720_v1, %v5720_v1 }
 0x29d   : > { %v5866_v38 = vadd.f32 %v5865_v9, %v5819_v24  ;;  %v5765_v40 = vadd.f32 %v5764_v36, %v5718_v48  ;;  %v5820_v56 = vmul.f32 %v5718_v48, %v5718_v48  ;;  %v6734_v4 = vpack.c.bf16 %v5718_v48, %v5717_v52  ;;  %v7671_v60 = vpop.f32.mrb[36].mxu0 }
 0x29e   : > { %6810 = vst [vmem:[%s9915_s8 + $0x88] sm:$0xff] %v6739_v25   ;;  %v7733_v2 = vadd.f32 %v7671_v60, %v7415_v15  ;;  %v5446_v29 = vpop.f32.mrb[37].mxu0 }
 0x29f   : > { %v5766_v35 = vadd.f32 %v5765_v40, %v5719_v17  ;;  %v5867_v46 = vadd.f32 %v5866_v38, %v5820_v56  ;;  %6809 = vst [vmem:[%s9915_s8 + $0x80] sm:$0xff] %v6734_v4   ;;  %v7734_v37 = vadd.f32 %v5446_v29, %v3370_v51  ;;  %v7672_v12 = vpop.f32.mrb[38].mxu0 }
 0x2a0   : > { %v7735_v28 = vadd.f32 %v7672_v12, %v7416_v8  ;;  %v5449_v10 = vpop.f32.mrb[39].mxu0  ;;  %v5723_v30 = vmul.f32 %v7733_v2, %v5675_v19  ;;  %v5679_v8 = vld [vmem:[%s10103_s4 + $0x150] sm:$0xff] }
 0x2a1   : > { %v7419_v22 = vpop.f32.mrb[40].mxu1  ;;  %v5868_v14 = vadd.f32 %v5867_v46, %v5821_v23  ;;  %v5721_v33 = vmul.f32 %v7734_v37, %v5673_v63  ;;  %v5767_v41 = vadd.f32 %v5766_v35, %v5720_v1  ;;  %v7736_v39 = vadd.f32 %v5449_v10, %v3373_v61  ;;  %v5681_v35 = vld [vmem:[%s10103_s4 + $0x160] sm:$0xff]  ;;  %v5683_v12 = vld [vmem:[%s10103_s4 + $0x170] sm:$0xff] }
 0x2a2   : > { %v3386_v18 = vpop.f32.mrb[41].mxu1  ;;  %v5724_v42 = vmul.f32 %v7735_v28, %v5676_v13  ;;  %v5825_v58 = vmul.f32 %v5723_v30, %v5723_v30 }
 0x2a3   : > { %v7420_v62 = vpop.f32.mrb[42].mxu1  ;;  %v5768_v7 = vadd.f32 %v5767_v41, %v5721_v33  ;;  %v5823_v43 = vmul.f32 %v5721_v33, %v5721_v33  ;;  %v5869_v53 = vadd.f32 %v5868_v14, %v5822_v6  ;;  %v5722_v54 = vmul.f32 %v7736_v39, %v5674_v5  ;;  %v5684_v6 = vld [vmem:[%s10103_s4 + $0x178] sm:$0xff] }
 0x2a4   : > { %v3389_v31 = vpop.f32.mrb[43].mxu1  ;;  %v6749_v55 = vpack.c.bf16 %v5724_v42, %v5723_v30  ;;  %v5826_v61 = vmul.f32 %v5724_v42, %v5724_v42 }
 0x2a5   : > { %v5870_v26 = vadd.f32 %v5869_v53, %v5823_v43  ;;  %v5769_v15 = vadd.f32 %v5768_v7, %v5722_v54  ;;  %v5824_v44 = vmul.f32 %v5722_v54, %v5722_v54  ;;  %v6744_v27 = vpack.c.bf16 %v5722_v54, %v5721_v33  ;;  %v7675_v3 = vpop.f32.mrb[40].mxu0 }
 0x2a6   : > { %6812 = vst [vmem:[%s9915_s8 + $0x98] sm:$0xff] %v6749_v55   ;;  %v7737_v49 = vadd.f32 %v7675_v3, %v7419_v22  ;;  %v5462_v34 = vpop.f32.mrb[41].mxu0 }
 0x2a7   : > { %v5770_v11 = vadd.f32 %v5769_v15, %v5723_v30  ;;  %v5871_v20 = vadd.f32 %v5870_v26, %v5824_v44  ;;  %6811 = vst [vmem:[%s9915_s8 + $0x90] sm:$0xff] %v6744_v27   ;;  %v7738_v59 = vadd.f32 %v5462_v34, %v3386_v18  ;;  %v7676_v0 = vpop.f32.mrb[42].mxu0 }
 0x2a8   : > { %v7739_v21 = vadd.f32 %v7676_v0, %v7420_v62  ;;  %v5465_v52 = vpop.f32.mrb[43].mxu0  ;;  %v5727_v9 = vmul.f32 %v7737_v49, %v5679_v8 }
 0x2a9   : > { %v7423_v51 = vpop.f32.mrb[44].mxu1  ;;  %v5872_v17 = vadd.f32 %v5871_v20, %v5825_v58  ;;  %v5725_v1 = vmul.f32 %v7738_v59, %v5677_v47  ;;  %v5771_v36 = vadd.f32 %v5770_v11, %v5724_v42  ;;  %v7740_v24 = vadd.f32 %v5465_v52, %v3389_v31  ;;  %v5682_v31 = vld [vmem:[%s10103_s4 + $0x168] sm:$0xff] }
 0x2aa   : > { %v3402_v32 = vpop.f32.mrb[45].mxu1  ;;  %v5728_v48 = vmul.f32 %v7739_v21, %v5680_v57  ;;  %v5829_v46 = vmul.f32 %v5727_v9, %v5727_v9 }
 0x2ab   : > { %v7424_v45 = vpop.f32.mrb[46].mxu1  ;;  %v5772_v25 = vadd.f32 %v5771_v36, %v5725_v1  ;;  %v5827_v38 = vmul.f32 %v5725_v1, %v5725_v1  ;;  %v5873_v40 = vadd.f32 %v5872_v17, %v5826_v61  ;;  %v5726_v56 = vmul.f32 %v7740_v24, %v5678_v16 }
 0x2ac   : > { %v3405_v50 = vpop.f32.mrb[47].mxu1  ;;  %v6759_v4 = vpack.c.bf16 %v5728_v48, %v5727_v9  ;;  %v5830_v28 = vmul.f32 %v5728_v48, %v5728_v48 }
 0x2ad   : > { %v5874_v60 = vadd.f32 %v5873_v40, %v5827_v38  ;;  %v5773_v22 = vadd.f32 %v5772_v25, %v5726_v56  ;;  %v5828_v2 = vmul.f32 %v5726_v56, %v5726_v56  ;;  %v6754_v29 = vpack.c.bf16 %v5726_v56, %v5725_v1  ;;  %v7679_v63 = vpop.f32.mrb[44].mxu0 }
 0x2ae   : > { %6814 = vst [vmem:[%s9915_s8 + $0xa8] sm:$0xff] %v6759_v4   ;;  %v7741_v18 = vadd.f32 %v7679_v63, %v7423_v51  ;;  %v5478_v23 = vpop.f32.mrb[45].mxu0 }
 0x2af   : > { %v5774_v19 = vadd.f32 %v5773_v22, %v5727_v9  ;;  %v5875_v37 = vadd.f32 %v5874_v60, %v5828_v2  ;;  %6813 = vst [vmem:[%s9915_s8 + $0xa0] sm:$0xff] %v6754_v29   ;;  %v7742_v13 = vadd.f32 %v5478_v23, %v3402_v32  ;;  %v7680_v62 = vpop.f32.mrb[46].mxu0 }
 0x2b0   : > { %v7743_v10 = vadd.f32 %v7680_v62, %v7424_v45  ;;  %v5481_v5 = vpop.f32.mrb[47].mxu0  ;;  %v5731_v30 = vmul.f32 %v7741_v18, %v5683_v12 }
 0x2b1   : > { %v5876_v14 = vadd.f32 %v5875_v37, %v5829_v46  ;;  %v5729_v33 = vmul.f32 %v7742_v13, %v5681_v35  ;;  %v5775_v41 = vadd.f32 %v5774_v19, %v5728_v48  ;;  %v7744_v39 = vadd.f32 %v5481_v5, %v3405_v50 }
 0x2b2   : > { %v5732_v42 = vmul.f32 %v7743_v10, %v5684_v6  ;;  %v5833_v3 = vmul.f32 %v5731_v30, %v5731_v30 }
 0x2b3   : > { %v5776_v7 = vadd.f32 %v5775_v41, %v5729_v33  ;;  %v5831_v43 = vmul.f32 %v5729_v33, %v5729_v33  ;;  %v5877_v53 = vadd.f32 %v5876_v14, %v5830_v28  ;;  %v5730_v54 = vmul.f32 %v7744_v39, %v5682_v31 }
 0x2b4   : > { %v6769_v55 = vpack.c.bf16 %v5732_v42, %v5731_v30  ;;  %v5834_v34 = vmul.f32 %v5732_v42, %v5732_v42 }
 0x2b5   : > { %v5878_v26 = vadd.f32 %v5877_v53, %v5831_v43  ;;  %v5777_v15 = vadd.f32 %v5776_v7, %v5730_v54  ;;  %v5832_v44 = vmul.f32 %v5730_v54, %v5730_v54  ;;  %v6764_v27 = vpack.c.bf16 %v5730_v54, %v5729_v33 }
 0x2b6   : > { %6816 = vst [vmem:[%s9915_s8 + $0xb8] sm:$0xff] %v6769_v55  }
 0x2b7   : > { %v5778_v51 = vadd.f32 %v5777_v15, %v5731_v30  ;;  %v5879_v49 = vadd.f32 %v5878_v26, %v5832_v44  ;;  %6815 = vst [vmem:[%s9915_s8 + $0xb0] sm:$0xff] %v6764_v27  }
 0x2b9   : > { %v5779_v47 = vadd.f32 %v5778_v51, %v5732_v42  ;;  %v5880_v32 = vadd.f32 %v5879_v49, %v5833_v3 }
 0x2bb   : > { %v5780_v58 = vrot.slane %v5779_v47, 4  ;;  %v5881_v11 = vadd.f32 %v5880_v32, %v5834_v34 }
 0x2bd   : > { %v5781_v20 = vadd.f32 %v5780_v58, %v5779_v47  ;;  %v5882_v8 = vrot.slane %v5881_v11, 4 }
 0x2bf   : > { %v5782_v59 = vrot.slane %v5781_v20, 2  ;;  %v5883_v0 = vadd.f32 %v5882_v8, %v5881_v11 }
 0x2c1   : > { %v5783_v57 = vadd.f32 %v5782_v59, %v5781_v20  ;;  %v5884_v45 = vrot.slane %v5883_v0, 2 }
 0x2c3   : > { %v5784_v61 = vrot.slane %v5783_v57, 1  ;;  %v5885_v21 = vadd.f32 %v5884_v45, %v5883_v0 }
 0x2c5   : > { %v5785_v52 = vadd.f32 %v5784_v61, %v5783_v57  ;;  %v5886_v16 = vrot.slane %v5885_v21, 1 }
 0x2c7   : > { %5786 = vst [vmem:[%s295_s20] sm:$0xff] %v5785_v52  ;;  %v5887_v50 = vadd.f32 %v5886_v16, %v5885_v21 }
 0x2c9   : > { %5888 = vst [vmem:[%s299_s21] sm:$0xff] %v5887_v50 }
 0x2ca PF: > { %s18_s24 = sadd.s32 1, %s8191_s24  }
 0x2cb   : > { %p15_p4 = scmp.ge.s32.totalorder %s18_s24, 4  }
 0x2cd   :  { %17 = sbr.rel (!%p15_p4) target bundleno = 1 (0x1), region = 102 }

// kernel: resnet_block_forward.3
= control target key start
LH: loop header
LB: loop body
LE: loop exit
PB: predicated region body
PF: predicated region fallthrough
CT: control target
= control target key end

     0   :  { %s8634_s18 = smov 0   ;;  %s10507_s0 = inlined_call_operand.vmem [shape: bf16[2,448,128], index: 0, kind: input, shape index: {}]   ;;  %s10508_s1 = inlined_call_operand.vmem [shape: bf16[9,128,128], index: 1, kind: input, shape index: {}]   ;;  %s10509_s2 = inlined_call_operand.vmem [shape: f32[384,128], index: 2, kind: input, shape index: {}]   ;;  %s10510_s3 = inlined_call_operand.vmem [shape: bf16[2,384,128], index: 3, kind: output, shape index: {0}]   ;;  %s10511_s4 = inlined_call_operand.vmem [shape: f32[2,8,128], index: 4, kind: output, shape index: {1}]   ;;  %s10512_s5 = inlined_call_operand.vmem [shape: f32[2,8,128], index: 5, kind: output, shape index: {2}]  }
   0x1 LB: > { %s6428_s19 = sadd.s32 4294967295, %s8602_s18   ;;  %p6432_p0 = scmp.ge.s32.totalorder %s8602_s18, 1  ;;  %s8602_s18 = sphi %s8634_s18, %s16_s18  }
   0x2   : > { %p192_p1 = scmp.lt.s32.totalorder %s8602_s18, 3 }
   0x4   : > { %p193_p2 = pnand %p6432_p0, %p192_p1 }
   0x6   : > { %196 = sbr.rel (%p193_p2) target bundleno = 711 (0x2c7), region = 32 }
   0xd   : > { %v8328_v0 = vld [vmem:[%s10508_s1 + $0x40] sm:$0xff]   ;;  %v8330_v2 = vld [vmem:[%s10508_s1 + $0x48] sm:$0xff]   ;;  %p228_p3 = scmp.lt.s32.totalorder %s6428_s19, 1  ;;  %v8332_v4 = vld [vmem:[%s10508_s1 + $0x50] sm:$0xff]   ;;  %vm2133_vm0 = vsmask.f32 7424 }
   0xe   : > { %v8329_v1 = vld [vmem:[%s10508_s1 + $0x140] sm:$0xff]   ;;  %7342 = vmatprep.subr.bf16.mxu1 %v8328_v0  ;;  %v8331_v3 = vld [vmem:[%s10508_s1 + $0x148] sm:$0xff]   ;;  %v8333_v5 = vld [vmem:[%s10508_s1 + $0x150] sm:$0xff]   ;;  %vm773_vm1 = vsmask.f32 4352 }
   0xf   : > { %7598 = vmatprep.subr.bf16.mxu0 %v8329_v1  ;;  %7343 = vmatpush3.bf16.msra.mxu1 %v8328_v0  ;;  %s10756_s19 = smov (!%p228_p3, %s6428_s19), 1  ;;  %v8334_v6 = vld [vmem:[%s10508_s1 + $0x58] sm:$0xff]   ;;  %v8336_v8 = vld [vmem:[%s10508_s1 + $0x60] sm:$0xff]   ;;  %v8338_v10 = vld [vmem:[%s10508_s1 + $0x68] sm:$0xff]  }
  0x10   : > { %7599 = vmatpush3.bf16.msra.mxu0 %v8329_v1  ;;  %7344 = vmatprep.subr.bf16.mxu1 %v8330_v2  ;;  %v8335_v7 = vld [vmem:[%s10508_s1 + $0x158] sm:$0xff]   ;;  %s8318_s11 = smul.u32 224, %s10756_s19  ;;  %v8337_v9 = vld [vmem:[%s10508_s1 + $0x160] sm:$0xff]   ;;  %v8339_v13 = vld [vmem:[%s10508_s1 + $0x168] sm:$0xff]   ;;  %s6435_s15 = sshll.u32 %s10756_s19, 3 }
  0x11   : > { %7600 = vmatprep.subr.bf16.mxu0 %v8331_v3  ;;  %v8340_v19 = vld [vmem:[%s10508_s1 + $0x70] sm:$0xff]   ;;  %v8342_v24 = vld [vmem:[%s10508_s1 + $0x78] sm:$0xff]   ;;  %v8350_v36 = vld [vmem:[%s10508_s1] sm:$0xff]   ;;  %s8319_s7 = smul.u32 192, %s10756_s19  ;;  %s241_s21 = scalar_lea.vmem %s10511_s4, %s6435_s15 }
  0x12   : > { %s8678_s20 = scalar_lea.vmem %s10507_s0, %s8318_s11  ;;  %v8341_v20 = vld [vmem:[%s10508_s1 + $0x170] sm:$0xff]   ;;  %v8343_v26 = vld [vmem:[%s10508_s1 + $0x178] sm:$0xff]   ;;  %v8352_v43 = vld [vmem:[%s10508_s1 + $0x100] sm:$0xff]   ;;  %s245_s23 = scalar_lea.vmem %s10512_s5, %s6435_s15 }
  0x13   : > { %7345 = vmatpush3.bf16.msra.mxu1 %v8330_v2  ;;  %v8684_v11 = vld [vmem:[%s8678_s20 + $0x4] sm:$0xf]  ;;  %v249_v12 = vld [vmem:[%s8678_s20 + $0x8] sm:$0xf]  ;;  %v8691_v14 = vld [vmem:[%s8678_s20 + $0xc] sm:$0xf]  ;;  %s10323_s14 = scalar_lea.vmem %s10510_s3, %s8319_s7 }
  0x14   : > { %7601 = vmatpush3.bf16.msra.mxu0 %v8331_v3  ;;  %7346 = vmatprep.subr.bf16.mxu1 %v8332_v4  ;;  %v6453_v15 = vcombine.low %v8684_v11, %v249_v12  ;;  %v8695_v16 = vcombine.low %v249_v12, %v8691_v14  ;;  %v8698_v17 = vld [vmem:[%s8678_s20 + $0x10] sm:$0xff]   ;;  %v8701_v18 = vld [vmem:[%s8678_s20 + $0x18] sm:$0xff]   ;;  %v8712_v23 = vld [vmem:[%s8678_s20 + $0x20] sm:$0xff]  }
  0x15   : > { %7602 = vmatprep.subr.bf16.mxu0 %v8333_v5  ;;  %v2868_v21 = vshrl.u32 %v8698_v17, 16  ;;  %v2870_v22 = vshll.u32 %v8698_v17, 16  ;;  %v2875_v25 = vshll.u32 %v8701_v18, 16  ;;  %v2883_v28 = vshll.u32 %v8712_v23, 16  ;;  %v251_v32 = vld [vmem:[%s8678_s20 + $0x10] sm:$0xf] }
  0x16   : > { %7358 = vmatprep.mubr.bf16.mxu1 %v6453_v15  ;;  %v2879_v30 = vshrl.u32 %v8701_v18, 16  ;;  %v252_v33 = vld [vmem:[%s8678_s20 + $0x14] sm:$0xf]  ;;  %v253_v38 = vld [vmem:[%s8678_s20 + $0x18] sm:$0xf]  ;;  %v8733_v39 = vld [vmem:[%s8678_s20 + $0x28] sm:$0xff]   ;;  %v6454_v47 = vcombine.low %v8691_v14, %v251_v32 }
  0x17   : > { %7347 = vmatpush3.bf16.msra.mxu1 %v8332_v4  ;;  %v2872_v27 = vrot.slane %v2870_v22, 1  ;;  %v2877_v29 = vrot.slane %v2875_v25, 1  ;;  %v8725_v34 = vcombine.low %v251_v32, %v252_v33  ;;  %v2885_v37 = vrot.slane %v2883_v28, 1  ;;  %v8737_v42 = vld [vmem:[%s8678_s20 + $0x1c] sm:$0xf]  ;;  %v8747_v46 = vld [vmem:[%s8678_s20 + $0x30] sm:$0xff]  }
  0x18   : > { %7603 = vmatpush3.bf16.msra.mxu0 %v8333_v5  ;;  %7348 = vmatprep.subr.bf16.mxu1 %v8334_v6  ;;  %v2887_v40 = vshrl.u32 %v8712_v23, 16  ;;  %v2891_v44 = vshll.u32 %v8733_v39, 16  ;;  %v8744_v45 = vcombine.low %v253_v38, %v8737_v42  ;;  %v2899_v50 = vshll.u32 %v8747_v46, 16  ;;  %v8353_v52 = vld [vmem:[%s10508_s1 + $0x108] sm:$0xff]   ;;  %v255_v54 = vld [vmem:[%s8678_s20 + $0x20] sm:$0xf] }
  0x19   : > { %7604 = vmatprep.subr.bf16.mxu0 %v8335_v7  ;;  %v2873_v31 = vor.u32 %v2872_v27, %v2868_v21  ;;  %v2881_v41 = vor.u32 %v2879_v30, %v2877_v29  ;;  %v6455_v53 = vcombine.low %v252_v33, %v253_v38  ;;  %v2895_v55 = vshrl.u32 %v8733_v39, 16  ;;  %v256_v56 = vld [vmem:[%s8678_s20 + $0x24] sm:$0xf]  ;;  %v257_v57 = vld [vmem:[%s8678_s20 + $0x28] sm:$0xf]  ;;  %v8760_v58 = vld [vmem:[%s8678_s20 + $0x38] sm:$0xff]  }
  0x1a   : > { %v2889_v48 = vor.u32 %v2887_v40, %v2885_v37  ;;  %v2893_v49 = vrot.slane %v2891_v44, 1  ;;  %v2903_v59 = vshrl.u32 %v8747_v46, 16  ;;  %v2901_v61 = vrot.slane %v2899_v50, 1  ;;  %v8360_v62 = vld [vmem:[%s10508_s1 + $0x8] sm:$0xff]   ;;  %v8774_v2 = vld [vmem:[%s8678_s20 + $0x40] sm:$0xff]   ;;  %v8361_v5 = vld [vmem:[%s10508_s1 + $0x110] sm:$0xff]  }
  0x1b   : > { %7349 = vmatpush3.bf16.msra.mxu1 %v8334_v6  ;;  %v2878_v35 = vsel %vm2133_vm0, %v2873_v31, %v2877_v29  ;;  %v2886_v51 = vsel %vm2133_vm0, %v2881_v41, %v2885_v37  ;;  %v8767_v63 = vcombine.low %v255_v54, %v256_v56  ;;  %v8770_v0 = vld [vmem:[%s8678_s20 + $0x2c] sm:$0xf]  ;;  %v2907_v1 = vshll.u32 %v8760_v58, 16  ;;  %v261_v12 = vld [vmem:[%s8678_s20 + $0x38] sm:$0xf]  ;;  %v8374_v21 = vld [vmem:[%s10508_s1 + $0x10] sm:$0xff]  }
  0x1c   : > { %7605 = vmatpush3.bf16.msra.mxu0 %v8335_v7  ;;  %7350 = vmatprep.subr.bf16.mxu1 %v8336_v8  ;;  %v2894_v60 = vsel %vm2133_vm0, %v2889_v48, %v2893_v49  ;;  %v2897_v3 = vor.u32 %v2895_v55, %v2893_v49  ;;  %v8777_v4 = vcombine.low %v257_v57, %v8770_v0  ;;  %v2915_v15 = vshll.u32 %v8774_v2, 16  ;;  %v8368_v25 = vld [vmem:[%s10508_s1 + $0x118] sm:$0xff]   ;;  %v8810_v31 = vld [vmem:[%s8678_s20 + $0x40] sm:$0xf]  ;;  %v8813_v32 = vld [vmem:[%s8678_s20 + $0x50] sm:$0xff]  }
  0x1d   : > { %7606 = vmatprep.subr.bf16.mxu0 %v8337_v9  ;;  %7614 = vmatprep.mubr.bf16.mxu0 %v2878_v35  ;;  %v2905_v6 = vor.u32 %v2903_v59, %v2901_v61  ;;  %v2909_v7 = vrot.slane %v2907_v1, 1  ;;  %v6457_v14 = vcombine.low %v256_v56, %v257_v57  ;;  %v2919_v28 = vshrl.u32 %v8774_v2, 16  ;;  %10605 = vst [vmem:[#allocation4_spill] sm:$0xff] %v8813_v32  ;;  %v247_v33 = vld [vmem:[%s8678_s20] sm:$0x8]  ;;  %v8377_v56 = vld [vmem:[%s10508_s1 + $0x128] sm:$0xff]  }
  0x1e   : > { %v2902_v22 = vsel %vm2133_vm0, %v2897_v3, %v2901_v61  ;;  %v2917_v30 = vrot.slane %v2915_v15, 1  ;;  %v8820_v40 = vld [vmem:[%s8678_s20 + $0x44] sm:$0xf]  ;;  %v265_v41 = vld [vmem:[%s8678_s20 + $0x48] sm:$0xf]  ;;  %v2931_v49 = vshll.u32 %v8813_v32, 16 }
  0x1f   : > { %7351 = vmatpush3.bf16.msra.mxu1 %v8336_v8  ;;  %v259_v8 = vld [vmem:[%s8678_s20 + $0x30] sm:$0xf]  ;;  %v2910_v27 = vsel %vm2133_vm0, %v2905_v6, %v2909_v7  ;;  %v8829_v44 = vcombine.low %v8810_v31, %v8820_v40  ;;  %v2935_v57 = vshrl.u32 %v8813_v32, 16  ;;  %v8856_v61 = vld [vmem:[%s8678_s20 + $0x60] sm:$0xff]   ;;  %v6461_v15 = vcombine.low %v8820_v40, %v265_v41  ;;  %v9035_v32 = vld [vmem:[%s8678_s20 + $0xac] sm:$0xf] }
  0x20   : > { %7607 = vmatpush3.bf16.msra.mxu0 %v8337_v9  ;;  %7352 = vmatprep.subr.bf16.mxu1 %v8338_v10  ;;  %v260_v9 = vld [vmem:[%s8678_s20 + $0x34] sm:$0xf]  ;;  %v2921_v37 = vor.u32 %v2919_v28, %v2917_v30  ;;  %10607 = vst [vmem:[#allocation6_spill] sm:$0xff] %v8856_v61  ;;  %v8894_v28 = vld [vmem:[%s8678_s20 + $0x64] sm:$0xf]  ;;  %v786_v40 = vshll.u32 %v8695_v16, 16 }
  0x21   : > { %7608 = vmatprep.subr.bf16.mxu0 %v8339_v13  ;;  %v6459_v48 = vcombine.low %v260_v9, %v261_v12  ;;  %10612 = vst [vmem:[#allocation11_spill] sm:$0xff] %v9035_v32 }
  0x23   : > { %7353 = vmatpush3.bf16.msra.mxu1 %v8338_v10  ;;  %v6456_v10 = vcombine.low %v8737_v42, %v255_v54  ;;  %v8824_v42 = vld [vmem:[%s8678_s20 + $0x58] sm:$0xff]   ;;  %v8844_v54 = vcombine.low %v247_v33, %v8684_v11  ;;  %v8853_v11 = vld [vmem:[%s8678_s20 + $0x50] sm:$0xf]  ;;  %v8902_v33 = vld [vmem:[%s8678_s20 + $0x68] sm:$0xf] }
  0x24   : > { %7609 = vmatpush3.bf16.msra.mxu0 %v8339_v13  ;;  %7354 = vmatprep.subr.bf16.mxu1 %v8340_v19  ;;  %v8786_v13 = vcombine.low %v259_v8, %v260_v9  ;;  %10606 = vst [vmem:[#allocation5_spill] sm:$0xff] %v8824_v42  ;;  %v2939_v59 = vshll.u32 %v8824_v42, 16 }
  0x25   : > { %7610 = vmatprep.subr.bf16.mxu0 %v8341_v20  ;;  %v775_v3 = vshrl.u32 %v8844_v54, 16 }
  0x26   : > { %v2941_v6 = vrot.slane %v2939_v59, 1  ;;  %v8944_v59 = vld [vmem:[%s8678_s20 + $0x7c] sm:$0xf] }
  0x27   : > { %7355 = vmatpush3.bf16.msra.mxu1 %v8340_v19  ;;  %v8790_v19 = vld [vmem:[%s8678_s20 + $0x48] sm:$0xff]  }
  0x28   : > { %7611 = vmatpush3.bf16.msra.mxu0 %v8341_v20  ;;  %7356 = vmatprep.subr.bf16.mxu1 %v8342_v24  ;;  %10604 = vst [vmem:[#allocation3_spill] sm:$0xff] %v8790_v19  ;;  %v8793_v20 = vld [vmem:[%s8678_s20 + $0x3c] sm:$0xf]  ;;  %v2923_v29 = vshll.u32 %v8790_v19, 16 }
  0x29   : > { %7612 = vmatprep.subr.bf16.mxu0 %v8343_v26  ;;  %v6460_v9 = vcombine.low %v8793_v20, %v8810_v31  ;;  %v8392_v31 = vld [vmem:[%s10508_s1 + $0x138] sm:$0xff]  }
  0x2a   : > { %v2925_v38 = vrot.slane %v2923_v29, 1 }
  0x2b   : > { %7357 = vmatpush3.bf16.msra.mxu1 %v8342_v24  ;;  %v2911_v24 = vshrl.u32 %v8760_v58, 16 }
  0x2c   : > { %7613 = vmatpush3.bf16.msra.mxu0 %v8343_v26  ;;  %7406 = vmatprep.subr.bf16.mxu1 %v8350_v36  ;;  %v8804_v26 = vcombine.low %v261_v12, %v8793_v20  ;;  %v2926_v55 = vsel %vm2133_vm0, %v2921_v37, %v2925_v38  ;;  %v8878_v12 = vld [vmem:[%s8678_s20 + $0x5c] sm:$0xf]  ;;  %v2943_v20 = vshrl.u32 %v8824_v42, 16  ;;  %v783_v37 = vshrl.u32 %v8695_v16, 16 }
  0x2d   : > { %7662 = vmatprep.subr.bf16.mxu0 %v8352_v43  ;;  %v2913_v35 = vor.u32 %v2911_v24, %v2909_v7  ;;  %v8385_v7 = vld [vmem:[%s10508_s1 + $0x130] sm:$0xff]  }
  0x2e   : > { %7359 = vmatmul.mubr.bf16.vlgmr.msra.gmra.mrb[0].mxu1 %v6454_v47  ;;  %v8832_v47 = vld [vmem:[%s8678_s20 + $0x4c] sm:$0xf] }
  0x2f   : > { %7615 = vmatmul.mubr.bf16.vlgmr.msra.gmra.mrb[0].mxu0 %v2886_v51  ;;  %7407 = vmatpush3.bf16.msra.mxu1 %v8350_v36  ;;  %v8376_v36 = vld [vmem:[%s10508_s1 + $0x120] sm:$0xff]   ;;  %v8836_v50 = vcombine.low %v265_v41, %v8832_v47  ;;  %v2918_v51 = vsel %vm2133_vm0, %v2913_v35, %v2917_v30 }
  0x30   : > { %7663 = vmatpush3.bf16.msra.mxu0 %v8352_v43  ;;  %7362 = vmatprep.mubr.bf16.mxu1 %v6455_v53  ;;  %v6458_v43 = vcombine.low %v8770_v0, %v259_v8  ;;  %v8384_v53 = vld [vmem:[%s10508_s1 + $0x18] sm:$0xff]   ;;  %v8870_v8 = vld [vmem:[%s8678_s20 + $0x68] sm:$0xff]  }
  0x31   : > { %7664 = vmatprep.subr.bf16.mxu0 %v8353_v52  ;;  %7618 = vmatprep.mubr.bf16.mxu0 %v2894_v60  ;;  %v2933_v60 = vrot.slane %v2931_v49, 1  ;;  %10608 = vst [vmem:[#allocation7_spill] sm:$0xff] %v8870_v8  ;;  %v2955_v30 = vshll.u32 %v8870_v8, 16  ;;  %v2945_v49 = vor.u32 %v2943_v20, %v2941_v6 }
  0x32   : > { %7408 = vmatprep.subr.bf16.mxu1 %v8360_v62 }
  0x33   : > { %7409 = vmatpush3.bf16.msra.mxu1 %v8360_v62  ;;  %v8859_v62 = vld [vmem:[%s8678_s20 + $0x54] sm:$0xf] }
  0x34   : > { %7665 = vmatpush3.bf16.msra.mxu0 %v8353_v52  ;;  %7410 = vmatprep.subr.bf16.mxu1 %v8374_v21  ;;  %v2927_v52 = vshrl.u32 %v8790_v19, 16  ;;  %v8863_v1 = vcombine.low %v8853_v11, %v8859_v62 }
  0x35   : > { %7666 = vmatprep.subr.bf16.mxu0 %v8361_v5 }
  0x36   : > { %7363 = vmatmul.mubr.bf16.gmra.mrb[4].mxu1 %v6456_v10  ;;  %v2929_v0 = vor.u32 %v2927_v52, %v2925_v38  ;;  %v8875_v10 = vld [vmem:[%s8678_s20 + $0x58] sm:$0xf]  ;;  %v8397_v38 = vld [vmem:[%s10508_s1 + $0x20] sm:$0xff]   ;;  %v8926_v52 = vld [vmem:[%s8678_s20 + $0x70] sm:$0xf] }
  0x37   : > { %7619 = vmatmul.mubr.bf16.gmra.mrb[4].mxu0 %v2902_v22  ;;  %7366 = vmatprep.mubr.bf16.mxu1 %v6457_v14  ;;  %v778_v14 = vshll.u32 %v8844_v54, 16  ;;  %v8885_v22 = vcombine.low %v8875_v10, %v8878_v12  ;;  %v2957_v54 = vrot.slane %v2955_v30, 1  ;;  %v801_v30 = vshrl.u32 %v8744_v45, 16 }
  0x38   : > { %7667 = vmatpush3.bf16.msra.mxu0 %v8361_v5  ;;  %7622 = vmatprep.mubr.bf16.mxu0 %v2910_v27  ;;  %v2937_v5 = vor.u32 %v2935_v57, %v2933_v60  ;;  %v2934_v24 = vsel %vm2133_vm0, %v2929_v0, %v2933_v60  ;;  %v8891_v27 = vld [vmem:[%s8678_s20 + $0x60] sm:$0xf]  ;;  %v6462_v0 = vcombine.low %v8832_v47, %v8853_v11  ;;  %v2959_v47 = vshrl.u32 %v8870_v8, 16 }
  0x39   : > { %7668 = vmatprep.subr.bf16.mxu0 %v8368_v25  ;;  %7411 = vmatpush3.bf16.msra.mxu1 %v8374_v21  ;;  %v2947_v21 = vshll.u32 %v8856_v61, 16  ;;  %v8906_v35 = vcombine.low %v8891_v27, %v8894_v28  ;;  %v8946_v60 = vrot.slane %v778_v14, 4 }
  0x3a   : > { %7412 = vmatprep.subr.bf16.mxu1 %v8384_v53  ;;  %v2942_v29 = vsel %vm2133_vm0, %v2937_v5, %v2941_v6  ;;  %v8403_v5 = vld [vmem:[%s10508_s1 + $0x28] sm:$0xff]   ;;  %v785_v6 = vrot.slane %v783_v37, 3 }
  0x3b   : > { %v2949_v41 = vrot.slane %v2947_v21, 1  ;;  %v8967_v21 = vld [vmem:[%s8678_s20 + $0x84] sm:$0xf] }
  0x3c   : > { %7669 = vmatpush3.bf16.msra.mxu0 %v8368_v25  ;;  %v2951_v25 = vshrl.u32 %v8856_v61, 16  ;;  %v810_v61 = vshrl.u32 %v8767_v63, 16 }
  0x3d   : > { %7670 = vmatprep.subr.bf16.mxu0 %v8376_v36  ;;  %7413 = vmatpush3.bf16.msra.mxu1 %v8384_v53  ;;  %v8929_v53 = vld [vmem:[%s8678_s20 + $0x74] sm:$0xf]  ;;  %v2950_v14 = vsel %vm2133_vm0, %v2945_v49, %v2949_v41 }
  0x3e   : > { %7367 = vmatmul.mubr.bf16.gmra.mrb[8].mxu1 %v6458_v43  ;;  %v2953_v16 = vor.u32 %v2951_v25, %v2949_v41  ;;  %7414 = vmatprep.subr.bf16.mxu1 %v8397_v38  ;;  %v8941_v57 = vcombine.low %v8926_v52, %v8929_v53  ;;  %v8980_v25 = vld [vmem:[%s8678_s20 + $0x8c] sm:$0xf]  ;;  %v8998_v41 = vld [vmem:[%s8678_s20 + $0x98] sm:$0xf] }
  0x3f   : > { %7623 = vmatmul.mubr.bf16.gmra.mrb[8].mxu0 %v2918_v51  ;;  %7370 = vmatprep.mubr.bf16.mxu1 %v6459_v48  ;;  %v8920_v48 = vrot.slane %v775_v3, 3  ;;  %v8923_v51 = vld [vmem:[%s8678_s20 + $0x70] sm:$0xff]  }
  0x40   : > { %7626 = vmatprep.mubr.bf16.mxu0 %v2926_v55  ;;  %7671 = vmatpush3.bf16.msra.mxu0 %v8376_v36  ;;  %v8909_v36 = vld [vmem:[%s8678_s20 + $0x6c] sm:$0xf]  ;;  %10609 = vst [vmem:[#allocation8_spill] sm:$0xff] %v8923_v51  ;;  %v8934_v55 = vld [vmem:[%s10508_s1 + $0x1c0] sm:$0xff]   ;;  %v2963_v11 = vshll.u32 %v8923_v51, 16  ;;  %v2958_v20 = vsel %vm2133_vm0, %v2953_v16, %v2957_v54  ;;  %v788_v16 = vrot.slane %v786_v40, 4 }
  0x41   : > { %7672 = vmatprep.subr.bf16.mxu0 %v8377_v56  ;;  %v8918_v43 = vcombine.low %v8902_v33, %v8909_v36  ;;  %7415 = vmatpush3.bf16.msra.mxu1 %v8397_v38  ;;  %v8995_v38 = vld [vmem:[%s8678_s20 + $0x94] sm:$0xf]  ;;  %v8419_v40 = vld [vmem:[%s10508_s1 + $0x38] sm:$0xff]  }
  0x42   : > { %7416 = vmatprep.subr.bf16.mxu1 %v8403_v5  ;;  %v9007_v51 = vrot.slane %v2963_v11, 1  ;;  %v803_v11 = vrot.slane %v801_v30, 3  ;;  %v9048_v30 = vld [vmem:[%s8678_s20 + $0xb4] sm:$0xf]  ;;  %v789_v19 = vor.u32 %v788_v16, %v785_v6  ;;  %v840_v16 = vshll.u32 %v8804_v26, 16 }
  0x44   : > { %7673 = vmatpush3.bf16.msra.mxu0 %v8377_v56  ;;  %v8937_v56 = vld [vmem:[%s8678_s20 + $0x78] sm:$0xf]  ;;  %10610 = vst [vmem:[#allocation9_spill] sm:$0xff] %v9007_v51 }
  0x45   : > { %7674 = vmatprep.subr.bf16.mxu0 %v8385_v7  ;;  %v8952_v3 = vcombine.low %v8937_v56, %v8944_v59  ;;  %7417 = vmatpush3.bf16.msra.mxu1 %v8403_v5  ;;  %v9023_v5 = vld [vmem:[%s8678_s20 + $0xa4] sm:$0xf] }
  0x46   : > { %7371 = vmatmul.mubr.bf16.gmra.mrb[12].mxu1 %v6460_v9  ;;  %v6463_v9 = vcombine.low %v8859_v62, %v8875_v10  ;;  %v8973_v62 = vld [vmem:[%s8678_s20 + $0x88] sm:$0xf] }
  0x47   : > { %7627 = vmatmul.mubr.bf16.gmra.mrb[12].mxu0 %v2934_v24  ;;  %7374 = vmatprep.mubr.bf16.mxu1 %v6461_v15  ;;  %v8964_v15 = vld [vmem:[%s8678_s20 + $0x80] sm:$0xf]  ;;  %v795_v24 = vshll.u32 %v8725_v34, 16  ;;  %v8992_v37 = vcombine.low %v8973_v62, %v8980_v25 }
  0x48   : > { %7630 = vmatprep.mubr.bf16.mxu0 %v2942_v29  ;;  %7675 = vmatpush3.bf16.msra.mxu0 %v8385_v7  ;;  %v792_v7 = vshrl.u32 %v8725_v34, 16  ;;  %v8977_v10 = vcombine.low %v8964_v15, %v8967_v21  ;;  %v8413_v29 = vld [vmem:[%s10508_s1 + $0x30] sm:$0xff]   ;;  %v804_v34 = vshll.u32 %v8744_v45, 16  ;;  %v9005_v45 = vld [vmem:[%s8678_s20 + $0x9c] sm:$0xf] }
  0x49   : > { %7676 = vmatprep.subr.bf16.mxu0 %v8392_v31  ;;  %v797_v8 = vrot.slane %v795_v24, 4  ;;  %7418 = vmatprep.subr.bf16.mxu1 %v8413_v29  ;;  %v9028_v24 = vld [vmem:[%s8678_s20 + $0xa8] sm:$0xf] }
  0x4a   : > { %7419 = vmatpush3.bf16.msra.mxu1 %v8413_v29  ;;  %v9055_v29 = vld [vmem:[%s10508_s1 + $0xc0] sm:$0xff]  }
  0x4b   : > { %7420 = vmatprep.subr.bf16.mxu1 %v8419_v40  ;;  %10614 = vst [vmem:[#allocation13_spill] sm:$0xff] %v9055_v29 }
  0x4c   : > { %7677 = vmatpush3.bf16.msra.mxu0 %v8392_v31  ;;  %v8988_v31 = vld [vmem:[%s8678_s20 + $0x90] sm:$0xf] }
  0x4d   : > { %7726 = vmatprep.subr.bf16.mxu0 %v8934_v55  ;;  %v9002_v49 = vcombine.low %v8988_v31, %v8995_v38 }
  0x4e   : > { %7375 = vmatmul.mubr.bf16.gmra.mrb[16].mxu1 %v6462_v0  ;;  %v2961_v0 = vor.u32 %v2959_v47, %v2957_v54  ;;  %v6464_v54 = vcombine.low %v8878_v12, %v8891_v27  ;;  %v9020_v47 = vld [vmem:[%s8678_s20 + $0xa0] sm:$0xf]  ;;  %v9041_v27 = vcombine.low %v9028_v24, %v9035_v32 }
  0x4f   : > { %7631 = vmatmul.mubr.bf16.gmra.mrb[16].mxu0 %v2950_v14  ;;  %7378 = vmatprep.mubr.bf16.mxu1 %v6463_v9  ;;  %v9011_v9 = vcombine.low %v8998_v41, %v9005_v45  ;;  %v794_v14 = vrot.slane %v792_v7, 3  ;;  %v6465_v7 = vcombine.low %v8894_v28, %v8902_v33  ;;  %v9032_v42 = vcombine.low %v9020_v47, %v9023_v5  ;;  %v9045_v33 = vld [vmem:[%s8678_s20 + $0xb0] sm:$0xf] }
  0x50   : > { %7634 = vmatprep.mubr.bf16.mxu0 %v2958_v20  ;;  %v806_v20 = vrot.slane %v804_v34, 4  ;;  %v2966_v12 = vsel %vm2133_vm0, %v2961_v0, %v9007_v51  ;;  %10613 = vst [vmem:[#allocation12_spill] sm:$0xff] %v9041_v27  ;;  %v813_v28 = vshll.u32 %v8767_v63, 16  ;;  %v781_v34 = vor.u32 %v8946_v60, %v8920_v48  ;;  %v9060_v63 = vld [vmem:[%s8678_s20 + $0xb8] sm:$0xf]  ;;  %7421 = vmatpush3.bf16.msra.mxu1 %v8419_v40 }
  0x51   : > { %10611 = vst [vmem:[#allocation10_spill] sm:$0xff] %v9032_v42  ;;  %v798_v42 = vor.u32 %v797_v8, %v794_v14  ;;  %v819_v0 = vshrl.u32 %v8777_v4, 16  ;;  %v822_v51 = vshll.u32 %v8777_v4, 16  ;;  %v9064_v32 = vcombine.low %v9045_v33, %v9048_v30  ;;  %v9067_v27 = vld [vmem:[%s8678_s20 + $0xbc] sm:$0xf]  ;;  %7470 = vmatprep.subr.bf16.mxu1 %v9055_v29 }
  0x52   : > { %v807_v48 = vor.u32 %v806_v20, %v803_v11  ;;  %v828_v8 = vshrl.u32 %v8786_v13, 16  ;;  %v831_v60 = vshll.u32 %v8786_v13, 16  ;;  %v9073_v6 = vcombine.low %v9060_v63, %v9067_v27 }
  0x53   : > { %v837_v4 = vshrl.u32 %v8804_v26, 16  ;;  %v846_v14 = vshrl.u32 %v8829_v44, 16  ;;  %v9081_v13 = vsel %vm773_vm1, %v781_v34, %v789_v19  ;;  %v9084_v11 = vsel %vm773_vm1, %v789_v19, %v798_v42 }
  0x54   : > { %10615 = vst [vmem:[#allocation14_spill] sm:$0xff] %v9084_v11  ;;  %v855_v20 = vshrl.u32 %v8836_v50, 16  ;;  %v9092_v26 = vsel %vm773_vm1, %v798_v42, %v807_v48  ;;  %v867_v40 = vshll.u32 %v8863_v1, 16  ;;  %v6467_v19 = vcombine.low %v8929_v53, %v8937_v56 }
  0x55   : > { %10616 = vst [vmem:[#allocation15_spill] sm:$0xff] %v9092_v26  ;;  %v815_v34 = vrot.slane %v813_v28, 4  ;;  %v873_v29 = vshrl.u32 %v8885_v22, 16  ;;  %v882_v26 = vshrl.u32 %v8906_v35, 16  ;;  %v891_v11 = vshrl.u32 %v8918_v43, 16 }
  0x56   : > { %7379 = vmatmul.mubr.bf16.gmra.mrb[20].mxu1 %v6464_v54  ;;  %v849_v54 = vshll.u32 %v8829_v44, 16  ;;  %v864_v44 = vshrl.u32 %v8863_v1, 16  ;;  %v885_v1 = vshll.u32 %v8906_v35, 16  ;;  %v833_v56 = vrot.slane %v831_v60, 4  ;;  %v8414_v35 = vld [vmem:[%s10508_s1 + $0x1d0] sm:$0xff]  }
  0x57   : > { %7635 = vmatmul.mubr.bf16.gmra.mrb[20].mxu0 %v2966_v12  ;;  %7382 = vmatprep.mubr.bf16.mxu1 %v6465_v7  ;;  %v858_v7 = vshll.u32 %v8836_v50, 16  ;;  %v812_v12 = vrot.slane %v810_v61, 3  ;;  %v8404_v50 = vld [vmem:[%s10508_s1 + $0x1c8] sm:$0xff]   ;;  %v824_v61 = vrot.slane %v822_v51, 4  ;;  %v894_v28 = vshll.u32 %v8918_v43, 16 }
  0x58   : > { %7678 = vmatprep.mubr.bf16.mxu0 %v8698_v17  ;;  %v6466_v17 = vcombine.low %v8909_v36, %v8926_v52  ;;  %v876_v36 = vshll.u32 %v8885_v22, 16  ;;  %v821_v52 = vrot.slane %v819_v0, 3  ;;  %v830_v22 = vrot.slane %v828_v8, 3 }
  0x59   : > { %v816_v42 = vor.u32 %v815_v34, %v812_v12  ;;  %v6468_v51 = vcombine.low %v8944_v59, %v8964_v15  ;;  %v857_v60 = vrot.slane %v855_v20, 3  ;;  %v900_v12 = vshrl.u32 %v8941_v57, 16  ;;  %v8420_v59 = vld [vmem:[%s10508_s1 + $0x1d8] sm:$0xff]  }
  0x5a   : > { %v825_v0 = vor.u32 %v824_v61, %v821_v52  ;;  %v860_v34 = vrot.slane %v858_v7, 4  ;;  %v869_v20 = vrot.slane %v867_v40, 4  ;;  %v875_v7 = vrot.slane %v873_v29, 3  ;;  %v8428_v40 = vld [vmem:[%s10508_s1 + $0x1e0] sm:$0xff]  }
  0x5b   : > { %v9110_v53 = vsel %vm773_vm1, %v807_v48, %v816_v42  ;;  %v6469_v48 = vcombine.low %v8967_v21, %v8973_v62  ;;  %v866_v21 = vrot.slane %v864_v44, 3  ;;  %v903_v62 = vshll.u32 %v8941_v57, 16 }
  0x5c   : > { %v9121_v8 = vsel %vm773_vm1, %v816_v42, %v825_v0  ;;  %v912_v42 = vshll.u32 %v8952_v3, 16  ;;  %v878_v52 = vrot.slane %v876_v36, 4  ;;  %v884_v61 = vrot.slane %v882_v26, 3 }
  0x5d   : > { %v870_v57 = vor.u32 %v869_v20, %v866_v21  ;;  %v887_v29 = vrot.slane %v885_v1, 4  ;;  %v6471_v36 = vcombine.low %v8995_v38, %v8998_v41  ;;  %v930_v1 = vshll.u32 %v8992_v37, 16  ;;  %v8432_v38 = vld [vmem:[%s10508_s1 + $0x1e8] sm:$0xff]   ;;  %v9165_v41 = vld [vmem:[%s8678_s20 + $0x20] sm:$0xf] }
  0x5e   : > { %7383 = vmatmul.mubr.bf16.gmra.mrb[24].mxu1 %v6466_v17  ;;  %v842_v17 = vrot.slane %v840_v16, 4  ;;  %v9210_v20 = vld [vmem:[%s8678_s20 + $0x34] sm:$0xf] }
  0x5f   : > { %7679 = vmatmul.mubr.bf16.vlgmr.msra.gmra.mrb[0].mxu0 %v8701_v18  ;;  %7386 = vmatprep.mubr.bf16.mxu1 %v6467_v19  ;;  %v839_v18 = vrot.slane %v837_v4, 3  ;;  %v851_v19 = vrot.slane %v849_v54, 4  ;;  %v861_v54 = vor.u32 %v860_v34, %v857_v60  ;;  %v939_v60 = vshll.u32 %v9002_v49, 16 }
  0x60   : > { %7727 = vmatpush3.bf16.msra.mxu0 %v8934_v55  ;;  %7682 = vmatprep.mubr.bf16.mxu0 %v8712_v23  ;;  %v834_v55 = vor.u32 %v833_v56, %v830_v22  ;;  %v848_v23 = vrot.slane %v846_v14, 3  ;;  %v918_v22 = vshrl.u32 %v8977_v10, 16  ;;  %v893_v56 = vrot.slane %v891_v11, 3 }
  0x61   : > { %7728 = vmatprep.subr.bf16.mxu0 %v8404_v50  ;;  %v843_v43 = vor.u32 %v842_v17, %v839_v18  ;;  %v902_v11 = vrot.slane %v900_v12, 3  ;;  %v9171_v17 = vld [vmem:[%s8678_s20 + $0x24] sm:$0xf]  ;;  %v945_v12 = vshrl.u32 %v9011_v9, 16 }
  0x62   : > { %v9125_v4 = vsel %vm773_vm1, %v825_v0, %v834_v55  ;;  %v852_v16 = vor.u32 %v851_v19, %v848_v23  ;;  %v927_v0 = vshrl.u32 %v8992_v37, 16  ;;  %v936_v37 = vshrl.u32 %v9002_v49, 16 }
  0x63   : > { %v9131_v15 = vsel %vm773_vm1, %v834_v55, %v843_v43  ;;  %v905_v55 = vrot.slane %v903_v62, 4  ;;  %v6472_v23 = vcombine.low %v9005_v45, %v9020_v47  ;;  %v6473_v49 = vcombine.low %v9023_v5, %v9028_v24 }
  0x64   : > { %7729 = vmatpush3.bf16.msra.mxu0 %v8404_v50  ;;  %v9135_v14 = vsel %vm773_vm1, %v843_v43, %v852_v16  ;;  %v909_v50 = vshrl.u32 %v8952_v3, 16  ;;  %v9142_v44 = vsel %vm773_vm1, %v852_v16, %v861_v54  ;;  %v9150_v3 = vsel %vm773_vm1, %v861_v54, %v870_v57  ;;  %v9189_v43 = vld [vmem:[%s8678_s20 + $0x2c] sm:$0xf]  ;;  %v9207_v54 = vld [vmem:[%s8678_s20 + $0x30] sm:$0xf] }
  0x65   : > { %7730 = vmatprep.subr.bf16.mxu0 %v8414_v35  ;;  %v906_v45 = vor.u32 %v905_v55, %v902_v11  ;;  %v948_v16 = vshll.u32 %v9011_v9, 16  ;;  %v8442_v9 = vld [vmem:[%s10508_s1 + $0x1f8] sm:$0xff]   ;;  %v9220_v5 = vcombine.low %v9207_v54, %v9210_v20  ;;  %v929_v24 = vrot.slane %v927_v0, 3  ;;  %v9246_v0 = vld [vmem:[%s8678_s20 + $0xc0] sm:$0xf] }
  0x66   : > { %7387 = vmatmul.mubr.bf16.gmra.mrb[28].mxu1 %v6468_v51  ;;  %v9180_v51 = vcombine.low %v9165_v41, %v9171_v17  ;;  %v972_v55 = vshrl.u32 %v9064_v32, 16 }
  0x67   : > { %7683 = vmatmul.mubr.bf16.gmra.mrb[4].mxu0 %v8733_v39  ;;  %7390 = vmatprep.mubr.bf16.mxu1 %v6469_v48  ;;  %v6470_v39 = vcombine.low %v8980_v25, %v8988_v31  ;;  %v888_v25 = vor.u32 %v887_v29, %v884_v61  ;;  %v896_v31 = vrot.slane %v894_v28, 4  ;;  %v9176_v28 = vld [vmem:[%s8678_s20 + $0x28] sm:$0xf]  ;;  %v914_v48 = vrot.slane %v912_v42, 4  ;;  %v9223_v42 = vld [vmem:[%s8678_s20 + $0x38] sm:$0xf] }
  0x68   : > { %7686 = vmatprep.mubr.bf16.mxu0 %v8747_v46  ;;  %7731 = vmatpush3.bf16.msra.mxu0 %v8414_v35  ;;  %v879_v46 = vor.u32 %v878_v52, %v875_v7  ;;  %v921_v35 = vshll.u32 %v8977_v10, 16  ;;  %v9198_v47 = vcombine.low %v9176_v28, %v9189_v43  ;;  %v9226_v52 = vld [vmem:[%s8678_s20 + $0x3c] sm:$0xf] }
  0x69   : > { %7732 = vmatprep.subr.bf16.mxu0 %v8420_v59  ;;  %v897_v18 = vor.u32 %v896_v31, %v893_v56  ;;  %v10617_v61 = vld [vmem:[#allocation10_spill] sm:$0xff]  ;;  %v9241_v56 = vld [vmem:[%s8678_s20 + $0x44] sm:$0xf] }
  0x6a   : > { %v9157_v26 = vsel %vm773_vm1, %v870_v57, %v879_v46  ;;  %v9168_v10 = vsel %vm773_vm1, %v879_v46, %v888_v25  ;;  %v923_v21 = vrot.slane %v921_v35, 4  ;;  %v932_v57 = vrot.slane %v930_v1, 4  ;;  %v10618_v35 = vld [vmem:[#allocation3_spill] sm:$0xff] }
  0x6b   : > { %v9186_v19 = vsel %vm773_vm1, %v888_v25, %v897_v18  ;;  %v9204_v62 = vsel %vm773_vm1, %v897_v18, %v906_v45  ;;  %v957_v46 = vshll.u32 %v10617_v61, 16  ;;  %v10619_v25 = vld [vmem:[#allocation12_spill] sm:$0xff] }
  0x6c   : > { %7733 = vmatpush3.bf16.msra.mxu0 %v8420_v59  ;;  %v920_v59 = vrot.slane %v918_v22, 3  ;;  %v9234_v22 = vld [vmem:[%s8678_s20 + $0x40] sm:$0xf]  ;;  %v963_v31 = vshrl.u32 %v10619_v25, 16  ;;  %v933_v1 = vor.u32 %v932_v57, %v929_v24  ;;  %v10620_v18 = vld [vmem:[#allocation4_spill] sm:$0xff]  ;;  %v950_v24 = vrot.slane %v948_v16, 4 }
  0x6d   : > { %7734 = vmatprep.subr.bf16.mxu0 %v8428_v40  ;;  %v9250_v11 = vcombine.low %v9234_v22, %v9241_v56  ;;  %v9276_v57 = vld [vmem:[%s8678_s20 + $0x50] sm:$0xf] }
  0x6e   : > { %7391 = vmatmul.mubr.bf16.gmra.mrb[32].mxu1 %v6470_v39  ;;  %v924_v7 = vor.u32 %v923_v21, %v920_v59  ;;  %v954_v39 = vshrl.u32 %v10617_v61, 16  ;;  %v981_v61 = vshrl.u32 %v9073_v6, 16 }
  0x6f   : > { %7687 = vmatmul.mubr.bf16.gmra.mrb[8].mxu0 %v8760_v58  ;;  %7394 = vmatprep.mubr.bf16.mxu1 %v6471_v36  ;;  %v911_v58 = vrot.slane %v909_v50, 3  ;;  %v9238_v36 = vcombine.low %v9223_v42, %v9226_v52 }
  0x70   : > { %7690 = vmatprep.mubr.bf16.mxu0 %v8774_v2  ;;  %7735 = vmatpush3.bf16.msra.mxu0 %v8428_v40  ;;  %v8438_v2 = vld [vmem:[%s10508_s1 + $0x1f0] sm:$0xff]   ;;  %v938_v40 = vrot.slane %v936_v37, 3  ;;  %v966_v37 = vshll.u32 %v10619_v25, 16  ;;  %v9268_v59 = vsel %vm773_vm1, %v924_v7, %v933_v1  ;;  %v965_v25 = vrot.slane %v963_v31, 3  ;;  %v9313_v31 = vld [vmem:[%s8678_s20 + $0x64] sm:$0xf] }
  0x71   : > { %7736 = vmatprep.subr.bf16.mxu0 %v8432_v38  ;;  %v915_v34 = vor.u32 %v914_v48, %v911_v58  ;;  %v9261_v58 = vld [vmem:[%s8678_s20 + $0x48] sm:$0xf]  ;;  %v947_v48 = vrot.slane %v945_v12, 3  ;;  %v975_v12 = vshll.u32 %v9064_v32, 16  ;;  %10625 = vst [vmem:[#allocation4_spill] sm:$0xff] %v9313_v31 }
  0x73   : > { %v9216_v50 = vsel %vm773_vm1, %v906_v45, %v915_v34  ;;  %v9231_v29 = vsel %vm773_vm1, %v915_v34, %v924_v7  ;;  %v6475_v34 = vcombine.low %v9048_v30, %v9060_v63  ;;  %v956_v30 = vrot.slane %v954_v39, 3  ;;  %v9283_v63 = vld [vmem:[%s8678_s20 + $0x54] sm:$0xf] }
  0x74   : > { %7737 = vmatpush3.bf16.msra.mxu0 %v8432_v38  ;;  %v941_v38 = vrot.slane %v939_v60, 4  ;;  %v10621_v60 = vld [vmem:[#allocation11_spill] sm:$0xff]  ;;  %10622 = vst [vmem:[#allocation10_spill] sm:$0xff] %v9283_v63  ;;  %v9291_v16 = vcombine.low %v9276_v57, %v9283_v63  ;;  %v984_v39 = vshll.u32 %v9073_v6, 16  ;;  %v974_v6 = vrot.slane %v972_v55, 3 }
  0x75   : > { %7738 = vmatprep.subr.bf16.mxu0 %v8438_v2  ;;  %v6474_v45 = vcombine.low %v10621_v60, %v9045_v33  ;;  %v9306_v63 = vld [vmem:[%s8678_s20 + $0x60] sm:$0xf] }
  0x76   : > { %7395 = vmatmul.mubr.bf16.gmra.mrb[36].mxu1 %v6472_v23  ;;  %v9258_v23 = vld [vmem:[%s10508_s1 + $0x180] sm:$0xff]   ;;  %v942_v21 = vor.u32 %v941_v38, %v938_v40  ;;  %v959_v40 = vrot.slane %v957_v46, 4  ;;  %v9297_v38 = vld [vmem:[%s8678_s20 + $0x58] sm:$0xf] }
  0x77   : > { %7691 = vmatmul.mubr.bf16.gmra.mrb[12].mxu0 %v10618_v35  ;;  %7398 = vmatprep.mubr.bf16.mxu1 %v6473_v49  ;;  %v6509_v49 = vcombine.low %v9246_v0, %v9246_v0  ;;  %v951_v35 = vor.u32 %v950_v24, %v947_v48  ;;  %10623 = vst [vmem:[#allocation3_spill] sm:$0xff] %v9297_v38  ;;  %v10626_v48 = vld [vmem:[#allocation5_spill] sm:$0xff]  ;;  %v977_v24 = vrot.slane %v975_v12, 4 }
  0x78   : > { %7694 = vmatprep.mubr.bf16.mxu0 %v10620_v18  ;;  %7739 = vmatpush3.bf16.msra.mxu0 %v8438_v2  ;;  %v9271_v2 = vld [vmem:[%s8678_s20 + $0x4c] sm:$0xf]  ;;  %v9287_v7 = vsel %vm773_vm1, %v933_v1, %v942_v21  ;;  %v960_v32 = vor.u32 %v959_v40, %v956_v30  ;;  %v968_v1 = vrot.slane %v966_v37, 4  ;;  %v9300_v18 = vld [vmem:[%s8678_s20 + $0x5c] sm:$0xf]  ;;  %v9322_v40 = vcombine.low %v9306_v63, %v9313_v31 }
  0x79   : > { %7740 = vmatprep.subr.bf16.mxu0 %v8442_v9  ;;  %v9280_v33 = vcombine.low %v9261_v58, %v9271_v2  ;;  %10624 = vst [vmem:[#allocation12_spill] sm:$0xff] %v9300_v18  ;;  %v990_v46 = vshrl.u32 %v6509_v49, 16  ;;  %v9303_v60 = vsel %vm773_vm1, %v942_v21, %v951_v35  ;;  %v993_v37 = vshll.u32 %v6509_v49, 16  ;;  %v10627_v30 = vld [vmem:[#allocation6_spill] sm:$0xff]  ;;  %v9505_v31 = vld [vmem:[%s8678_s20 + $0xc8] sm:$0xf] }
  0x7a   : > { %v969_v21 = vor.u32 %v968_v1, %v965_v25  ;;  %v986_v49 = vrot.slane %v984_v39, 4  ;;  %v6476_v12 = vcombine.low %v9067_v27, %v9246_v0  ;;  %10663 = vst [vmem:[#allocation38_spill] sm:$0xff] %v9505_v31 }
  0x7b   : > { %v995_v39 = vrot.slane %v993_v37, 4  ;;  %v9361_v37 = vld [vmem:[%s8678_s20 + $0x78] sm:$0xf] }
  0x7c   : > { %7741 = vmatpush3.bf16.msra.mxu0 %v8442_v9  ;;  %v9310_v9 = vcombine.low %v9297_v38, %v9300_v18  ;;  %v9325_v55 = vsel %vm773_vm1, %v960_v32, %v969_v21  ;;  %v978_v18 = vor.u32 %v977_v24, %v974_v6  ;;  %v9328_v38 = vld [vmem:[%s8678_s20 + $0x68] sm:$0xf]  ;;  %v9346_v6 = vld [vmem:[%s8678_s20 + $0x74] sm:$0xf]  ;;  %10637 = vst [vmem:[#allocation20_spill] sm:$0xff] %v9361_v37 }
  0x7d   : > { %7790 = vmatprep.subr.bf16.mxu0 %v9258_v23  ;;  %10628 = vst [vmem:[#allocation11_spill] sm:$0xff] %v9325_v55  ;;  %10629 = vst [vmem:[#allocation5_spill] sm:$0xff] %v9328_v38  ;;  %v4358_v55 = vshll.u32 %v9220_v5, 16 }
  0x7e   : > { %7399 = vmatmul.mubr.bf16.gmra.mrb[40].mxu1 %v6474_v45  ;;  %v9317_v45 = vsel %vm773_vm1, %v951_v35, %v960_v32  ;;  %v9336_v35 = vld [vmem:[%s8678_s20 + $0x70] sm:$0xf]  ;;  %v9343_v32 = vsel %vm773_vm1, %v969_v21, %v978_v18  ;;  %10633 = vst [vmem:[#allocation18_spill] sm:$0xff] %v9346_v6  ;;  %v10635_v21 = vld [vmem:[#allocation7_spill] sm:$0xff] }
  0x7f   : > { %7695 = vmatmul.mubr.bf16.gmra.mrb[16].mxu0 %v10626_v48  ;;  %7402 = vmatprep.mubr.bf16.mxu1 %v6475_v34  ;;  %v983_v34 = vrot.slane %v981_v61, 3  ;;  %v9331_v48 = vld [vmem:[%s8678_s20 + $0x6c] sm:$0xf]  ;;  %10631 = vst [vmem:[#allocation16_spill] sm:$0xff] %v9336_v35  ;;  %10632 = vst [vmem:[#allocation17_spill] sm:$0xff] %v9343_v32  ;;  %v992_v61 = vrot.slane %v990_v46, 3  ;;  %v9350_v27 = vcombine.low %v9336_v35, %v9346_v6 }
  0x80   : > { %7698 = vmatprep.mubr.bf16.mxu0 %v10627_v30  ;;  %10630 = vst [vmem:[#allocation6_spill] sm:$0xff] %v9331_v48  ;;  %v9340_v25 = vcombine.low %v9328_v38, %v9331_v48  ;;  %v9364_v30 = vld [vmem:[%s8678_s20 + $0x7c] sm:$0xf]  ;;  %v10647_v6 = vld [vmem:[#allocation15_spill] sm:$0xff]  ;;  %v8437_v32 = vld [vmem:[%s8678_s20 + $0xa8] sm:$0xff]   ;;  %v4349_v48 = vshll.u32 %v9198_v47, 16 }
  0x81   : > { %v987_v1 = vor.u32 %v986_v49, %v983_v34  ;;  %v996_v24 = vor.u32 %v995_v39, %v992_v61  ;;  %10638 = vst [vmem:[#allocation21_spill] sm:$0xff] %v9364_v30  ;;  %v10639_v34 = vld [vmem:[#allocation8_spill] sm:$0xff]  ;;  %v9372_v49 = vld [vmem:[%s8678_s20 + $0x80] sm:$0xf]  ;;  %v8471_v35 = vld [vmem:[%s10508_s1 + $0xf8] sm:$0xff]   ;;  %v4337_v38 = vshrl.u32 %v9180_v51, 16 }
  0x82   : > { %10640 = vst [vmem:[#allocation8_spill] sm:$0xff] %v9372_v49  ;;  %v8429_v61 = vld [vmem:[%s8678_s20 + $0x80] sm:$0xff]   ;;  %v8431_v39 = vld [vmem:[%s10508_s1 + $0xc8] sm:$0xff]  }
  0x83   : > { %v9353_v0 = vsel %vm773_vm1, %v978_v18, %v987_v1  ;;  %v9358_v46 = vsel %vm773_vm1, %v987_v1, %v996_v24  ;;  %v9369_v18 = vcombine.low %v9361_v37, %v9364_v30  ;;  %v9387_v24 = vld [vmem:[%s8678_s20 + $0x88] sm:$0xf]  ;;  %v8436_v30 = vld [vmem:[%s10508_s1 + $0xd0] sm:$0xff]  }
  0x84   : > { %10634 = vst [vmem:[#allocation19_spill] sm:$0xff] %v9353_v0  ;;  %10636 = vst [vmem:[#allocation7_spill] sm:$0xff] %v9358_v46  ;;  %v9406_v37 = vld [vmem:[%s8678_s20 + $0x94] sm:$0xf]  ;;  %v9474_v0 = vld [vmem:[%s8678_s20 + $0xbc] sm:$0xf] }
  0x85   : > { %10642 = vst [vmem:[#allocation23_spill] sm:$0xff] %v9387_v24  ;;  %10658 = vst [vmem:[#allocation33_spill] sm:$0xff] %v9474_v0 }
  0x86   : > { %7403 = vmatmul.mubr.bf16.gmra.mrb[44].mxu1 %v6476_v12  ;;  %v9375_v12 = vld [vmem:[%s8678_s20 + $0x84] sm:$0xf] }
  0x87   : > { %7699 = vmatmul.mubr.bf16.gmra.mrb[20].mxu0 %v10635_v21  ;;  %7422 = vmatprep.mubr.bf16.mxu1 %v9081_v13  ;;  %10641 = vst [vmem:[#allocation22_spill] sm:$0xff] %v9375_v12  ;;  %v8427_v13 = vld [vmem:[%s8678_s20 + $0x78] sm:$0xff]   ;;  %v9380_v1 = vcombine.low %v9372_v49, %v9375_v12  ;;  %v9390_v21 = vld [vmem:[%s8678_s20 + $0x8c] sm:$0xf]  ;;  %v10645_v12 = vld [vmem:[#allocation13_spill] sm:$0xff] }
  0x88   : > { %7702 = vmatprep.mubr.bf16.mxu0 %v10639_v34  ;;  %10643 = vst [vmem:[#allocation24_spill] sm:$0xff] %v9390_v21  ;;  %v10644_v34 = vld [vmem:[#allocation14_spill] sm:$0xff]  ;;  %v9395_v46 = vcombine.low %v9387_v24, %v9390_v21  ;;  %v9402_v49 = vld [vmem:[%s8678_s20 + $0x90] sm:$0xf]  ;;  %10648 = vst [vmem:[#allocation13_spill] sm:$0xff] %v9406_v37 }
  0x89   : > { %10646 = vst [vmem:[#allocation14_spill] sm:$0xff] %v9402_v49  ;;  %v9417_v21 = vld [vmem:[%s8678_s20 + $0x9c] sm:$0xf]  ;;  %v8433_v24 = vld [vmem:[%s8678_s20 + $0x90] sm:$0xff]  }
  0x8a   : > { %10650 = vst [vmem:[#allocation25_spill] sm:$0xff] %v9417_v21 }
  0x8e   : > { %7423 = vmatmul.mubr.bf16.vlgmr.msra.gmra.mrb[0].mxu1 %v10644_v34  ;;  %v9414_v34 = vld [vmem:[%s8678_s20 + $0x98] sm:$0xf] }
  0x8f   : > { %7703 = vmatmul.mubr.bf16.gmra.mrb[24].mxu0 %v8427_v13  ;;  %7471 = vmatpush3.bf16.msra.mxu1 %v10645_v12  ;;  %v9410_v13 = vcombine.low %v9402_v49, %v9406_v37  ;;  %v8430_v12 = vld [vmem:[%s8678_s20 + $0x88] sm:$0xff]   ;;  %10649 = vst [vmem:[#allocation15_spill] sm:$0xff] %v9414_v34  ;;  %v9428_v37 = vld [vmem:[%s8678_s20 + $0xa0] sm:$0xf] }
  0x90   : > { %7426 = vmatprep.mubr.bf16.mxu1 %v10647_v6  ;;  %7706 = vmatprep.mubr.bf16.mxu0 %v8429_v61  ;;  %v9422_v6 = vcombine.low %v9414_v34, %v9417_v21  ;;  %v8441_v61 = vld [vmem:[%s10508_s1 + $0xd8] sm:$0xff]   ;;  %10651 = vst [vmem:[#allocation26_spill] sm:$0xff] %v9428_v37  ;;  %v9436_v49 = vld [vmem:[%s8678_s20 + $0xa8] sm:$0xf]  ;;  %v9443_v34 = vld [vmem:[%s8678_s20 + $0xac] sm:$0xf] }
  0x91   : > { %7472 = vmatprep.subr.bf16.mxu1 %v8431_v39  ;;  %10653 = vst [vmem:[#allocation28_spill] sm:$0xff] %v9436_v49  ;;  %10654 = vst [vmem:[#allocation29_spill] sm:$0xff] %v9443_v34 }
  0x93   : > { %7473 = vmatpush3.bf16.msra.mxu1 %v8431_v39  ;;  %v9432_v39 = vld [vmem:[%s8678_s20 + $0xa4] sm:$0xf] }
  0x94   : > { %7474 = vmatprep.subr.bf16.mxu1 %v8436_v30  ;;  %10652 = vst [vmem:[#allocation27_spill] sm:$0xff] %v9432_v39  ;;  %v9440_v21 = vcombine.low %v9428_v37, %v9432_v39  ;;  %v9454_v39 = vld [vmem:[%s8678_s20 + $0xb0] sm:$0xf]  ;;  %v9457_v37 = vld [vmem:[%s8678_s20 + $0xb4] sm:$0xf] }
  0x95   : > { %10655 = vst [vmem:[#allocation30_spill] sm:$0xff] %v9454_v39  ;;  %10656 = vst [vmem:[#allocation31_spill] sm:$0xff] %v9457_v37 }
  0x96   : > { %7427 = vmatmul.mubr.bf16.gmra.mrb[4].mxu1 %v9110_v53  ;;  %v9447_v53 = vcombine.low %v9436_v49, %v9443_v34  ;;  %v8455_v34 = vld [vmem:[%s10508_s1 + $0xe8] sm:$0xff]   ;;  %v3801_v49 = vld [vmem:[%s8678_s20 + $0x18] sm:$0x8] }
  0x97   : > { %7707 = vmatmul.mubr.bf16.gmra.mrb[28].mxu0 %v8430_v12  ;;  %7430 = vmatprep.mubr.bf16.mxu1 %v9121_v8  ;;  %v8449_v8 = vld [vmem:[%s10508_s1 + $0xe0] sm:$0xff]   ;;  %v8434_v12 = vld [vmem:[%s8678_s20 + $0x98] sm:$0xff]  }
  0x98   : > { %7710 = vmatprep.mubr.bf16.mxu0 %v8433_v24  ;;  %7475 = vmatpush3.bf16.msra.mxu1 %v8436_v30  ;;  %v8435_v24 = vld [vmem:[%s8678_s20 + $0xa0] sm:$0xff]   ;;  %v9462_v30 = vcombine.low %v9454_v39, %v9457_v37  ;;  %v9477_v37 = vld [vmem:[%s8678_s20 + $0x1c] sm:$0xf] }
  0x99   : > { %7476 = vmatprep.subr.bf16.mxu1 %v8441_v61 }
  0x9c   : > { %7477 = vmatpush3.bf16.msra.mxu1 %v8441_v61  ;;  %v9471_v61 = vld [vmem:[%s8678_s20 + $0xb8] sm:$0xf] }
  0x9d   : > { %7478 = vmatprep.subr.bf16.mxu1 %v8449_v8  ;;  %10657 = vst [vmem:[#allocation32_spill] sm:$0xff] %v9471_v61  ;;  %v9481_v39 = vcombine.low %v9471_v61, %v9474_v0  ;;  %v8439_v0 = vld [vmem:[%s8678_s20 + $0xb0] sm:$0xff]   ;;  %v4346_v61 = vshrl.u32 %v9198_v47, 16 }
  0x9e   : > { %7431 = vmatmul.mubr.bf16.gmra.mrb[8].mxu1 %v9125_v4  ;;  %v8463_v4 = vld [vmem:[%s10508_s1 + $0xf0] sm:$0xff]  }
  0x9f   : > { %7711 = vmatmul.mubr.bf16.gmra.mrb[32].mxu0 %v8434_v12  ;;  %7434 = vmatprep.mubr.bf16.mxu1 %v9131_v15  ;;  %10659 = vst [vmem:[#allocation34_spill] sm:$0xff] %v9481_v39  ;;  %v9487_v15 = vld [vmem:[%s8678_s20 + $0xc0] sm:$0xf]  ;;  %v9490_v12 = vld [vmem:[%s8678_s20 + $0xc4] sm:$0xf]  ;;  %v8440_v39 = vld [vmem:[%s8678_s20 + $0xb8] sm:$0xff]  }
  0xa0   : > { %7714 = vmatprep.mubr.bf16.mxu0 %v8435_v24  ;;  %7479 = vmatpush3.bf16.msra.mxu1 %v8449_v8  ;;  %10660 = vst [vmem:[#allocation35_spill] sm:$0xff] %v9487_v15  ;;  %10661 = vst [vmem:[#allocation36_spill] sm:$0xff] %v9490_v12  ;;  %v6731_v24 = vcombine.low %v3801_v49, %v9477_v37  ;;  %v9496_v8 = vcombine.low %v9487_v15, %v9490_v12  ;;  %v9508_v49 = vld [vmem:[%s8678_s20 + $0xcc] sm:$0xf]  ;;  %v9517_v47 = vld [vmem:[%s8678_s20 + $0xd0] sm:$0xf] }
  0xa1   : > { %7480 = vmatprep.subr.bf16.mxu1 %v8455_v34  ;;  %10664 = vst [vmem:[#allocation39_spill] sm:$0xff] %v9508_v49  ;;  %10666 = vst [vmem:[#allocation41_spill] sm:$0xff] %v9517_v47 }
  0xa2   : > { %10662 = vst [vmem:[#allocation37_spill] sm:$0xff] %v9496_v8  ;;  %v4329_v12 = vshrl.u32 %v6731_v24, 16  ;;  %v4332_v15 = vshll.u32 %v6731_v24, 16  ;;  %v9513_v8 = vcombine.low %v9505_v31, %v9508_v49  ;;  %v4340_v24 = vshll.u32 %v9180_v51, 16 }
  0xa3   : > { %v4348_v49 = vrot.slane %v4346_v61, 3  ;;  %v4355_v31 = vshrl.u32 %v9220_v5, 16  ;;  %v4373_v5 = vshrl.u32 %v9250_v11, 16 }
  0xa4   : > { %7481 = vmatpush3.bf16.msra.mxu1 %v8455_v34  ;;  %10665 = vst [vmem:[#allocation40_spill] sm:$0xff] %v9513_v8  ;;  %v9520_v34 = vld [vmem:[%s8678_s20 + $0xd4] sm:$0xf]  ;;  %v4334_v8 = vrot.slane %v4332_v15, 4  ;;  %v4342_v61 = vrot.slane %v4340_v24, 4  ;;  %v4367_v15 = vshll.u32 %v9238_v36, 16 }
  0xa5   : > { %7482 = vmatprep.subr.bf16.mxu1 %v8463_v4  ;;  %10667 = vst [vmem:[#allocation42_spill] sm:$0xff] %v9520_v34  ;;  %v4385_v24 = vshll.u32 %v9280_v33, 16 }
  0xa6   : > { %7435 = vmatmul.mubr.bf16.gmra.mrb[12].mxu1 %v9135_v14  ;;  %v9525_v14 = vcombine.low %v9517_v47, %v9520_v34  ;;  %v4364_v34 = vshrl.u32 %v9238_v36, 16  ;;  %v6699_v36 = vcombine.low %v9477_v37, %v9165_v41 }
  0xa7   : > { %7715 = vmatmul.mubr.bf16.gmra.mrb[36].mxu0 %v8437_v32  ;;  %7438 = vmatprep.mubr.bf16.mxu1 %v9142_v44  ;;  %v4351_v32 = vrot.slane %v4349_v48, 4  ;;  %v9531_v44 = vld [vmem:[%s10508_s1 + $0x80] sm:$0xff]   ;;  %v4339_v48 = vrot.slane %v4337_v38, 3  ;;  %v4387_v37 = vrot.slane %v4385_v24, 4  ;;  %v6702_v24 = vcombine.low %v9210_v20, %v9223_v42 }
  0xa8   : > { %7718 = vmatprep.mubr.bf16.mxu0 %v8439_v0  ;;  %7483 = vmatpush3.bf16.msra.mxu1 %v8463_v4  ;;  %10668 = vst [vmem:[#allocation43_spill] sm:$0xff] %v9525_v14  ;;  %10669 = vst [vmem:[#allocation44_spill] sm:$0xff] %v9531_v44  ;;  %v4331_v0 = vrot.slane %v4329_v12, 3  ;;  %v8443_v4 = vld [vmem:[%s8678_s20 + $0xc0] sm:$0xff]   ;;  %v4357_v14 = vrot.slane %v4355_v31, 3  ;;  %v4382_v31 = vshrl.u32 %v9280_v33, 16 }
  0xa9   : > { %7484 = vmatprep.subr.bf16.mxu1 %v8471_v35  ;;  %v4352_v47 = vor.u32 %v4351_v32, %v4348_v49  ;;  %v4343_v12 = vor.u32 %v4342_v61, %v4339_v48  ;;  %v4369_v49 = vrot.slane %v4367_v15, 4  ;;  %v4409_v48 = vshrl.u32 %v9322_v40, 16 }
  0xaa   : > { %v4335_v51 = vor.u32 %v4334_v8, %v4331_v0  ;;  %v4412_v61 = vshll.u32 %v9322_v40, 16  ;;  %v4421_v40 = vshll.u32 %v9340_v25, 16  ;;  %v4436_v42 = vshrl.u32 %v9369_v18, 16 }
  0xab   : > { %v9548_v8 = vsel %vm773_vm1, %v4343_v12, %v4352_v47 }
  0xac   : > { %7485 = vmatpush3.bf16.msra.mxu1 %v8471_v35  ;;  %v4360_v35 = vrot.slane %v4358_v55, 4  ;;  %v9545_v38 = vsel %vm773_vm1, %v4335_v51, %v4343_v12 }
  0xad   : > { %7534 = vmatprep.subr.bf16.mxu1 %v9531_v44  ;;  %v4376_v44 = vshll.u32 %v9250_v11, 16  ;;  %v4375_v11 = vrot.slane %v4373_v5, 3  ;;  %v6701_v5 = vcombine.low %v9189_v43, %v9207_v54  ;;  %v4427_v43 = vshrl.u32 %v9350_v27, 16  ;;  %v9592_v54 = vld [vmem:[%s8678_s20 + $0x14] sm:$0xff]  }
  0xae   : > { %7439 = vmatmul.mubr.bf16.gmra.mrb[16].mxu1 %v9150_v3  ;;  %v4366_v3 = vrot.slane %v4364_v34, 3  ;;  %v4391_v34 = vshrl.u32 %v9291_v16, 16  ;;  %v1613_v20 = vshll.u32 %v9592_v54, 16 }
  0xaf   : > { %7719 = vmatmul.mubr.bf16.gmra.mrb[40].mxu0 %v8440_v39  ;;  %7442 = vmatprep.mubr.bf16.mxu1 %v9157_v26  ;;  %v4361_v39 = vor.u32 %v4360_v35, %v4357_v14  ;;  %v8444_v26 = vld [vmem:[%s8678_s20 + $0xc8] sm:$0xff]   ;;  %v4378_v0 = vrot.slane %v4376_v44, 4  ;;  %v4394_v14 = vshll.u32 %v9291_v16, 16  ;;  %v4403_v44 = vshll.u32 %v9310_v9, 16  ;;  %v9580_v35 = vld [vmem:[%s8678_s20 + $0x10] sm:$0xf] }
  0xb0   : > { %7722 = vmatprep.mubr.bf16.mxu0 %v8443_v4  ;;  %v4370_v32 = vor.u32 %v4369_v49, %v4366_v3  ;;  %v4384_v4 = vrot.slane %v4382_v31, 3  ;;  %v8456_v16 = vld [vmem:[%s10508_s1 + $0x188] sm:$0xff]   ;;  %v4393_v15 = vrot.slane %v4391_v34, 3  ;;  %v4411_v49 = vrot.slane %v4409_v48, 3 }
  0xb1   : > { %v9556_v55 = vsel %vm773_vm1, %v4352_v47, %v4361_v39  ;;  %v4379_v33 = vor.u32 %v4378_v0, %v4375_v11  ;;  %v4400_v47 = vshrl.u32 %v9310_v9, 16  ;;  %v4396_v12 = vrot.slane %v4394_v14, 4  ;;  %v1457_v9 = vld [vmem:[%s8678_s20 + $0xc] sm:$0x8]  ;;  %v8466_v11 = vld [vmem:[%s10508_s1 + $0x190] sm:$0xff]  }
  0xb2   : > { %v9563_v41 = vsel %vm773_vm1, %v4361_v39, %v4370_v32  ;;  %v4388_v51 = vor.u32 %v4387_v37, %v4384_v4  ;;  %v4405_v39 = vrot.slane %v4403_v44, 4  ;;  %v4423_v4 = vrot.slane %v4421_v40, 4 }
  0xb3   : > { %v4397_v3 = vor.u32 %v4396_v12, %v4393_v15  ;;  %v4402_v31 = vrot.slane %v4400_v47, 3  ;;  %v10603_v34 = vshrl.u32 %v9592_v54, 16  ;;  %v4429_v37 = vrot.slane %v4427_v43, 3 }
  0xb4   : > { %v4445_v44 = vshrl.u32 %v9380_v1, 16  ;;  %v4438_v12 = vrot.slane %v4436_v42, 3  ;;  %v6705_v40 = vcombine.low %v9271_v2, %v9276_v57  ;;  %v4475_v2 = vshll.u32 %v9422_v6, 16 }
  0xb5   : > { %v9632_v15 = vrot.slane %v10603_v34, 3  ;;  %v4499_v42 = vshrl.u32 %v9462_v30, 16 }
  0xb6   : > { %7443 = vmatmul.mubr.bf16.gmra.mrb[20].mxu1 %v9168_v10  ;;  %v9567_v10 = vsel %vm773_vm1, %v4370_v32, %v4379_v33  ;;  %v6550_v32 = vcombine.low %v1457_v9, %v9580_v35  ;;  %v6704_v9 = vcombine.low %v9241_v56, %v9261_v58  ;;  %v4447_v43 = vrot.slane %v4445_v44, 3  ;;  %v8493_v56 = vld [vmem:[%s10508_s1 + $0x1a8] sm:$0xff]  }
  0xb7   : > { %7723 = vmatmul.mubr.bf16.gmra.mrb[44].mxu0 %v8444_v26  ;;  %7446 = vmatprep.mubr.bf16.mxu1 %v9186_v19  ;;  %v6700_v19 = vcombine.low %v9171_v17, %v9176_v28  ;;  %v9583_v17 = vsel %vm773_vm1, %v4379_v33, %v4388_v51  ;;  %v4418_v28 = vshrl.u32 %v9340_v25, 16  ;;  %v9595_v26 = vsel %vm773_vm1, %v4388_v51, %v4397_v3 }
  0xb8   : > { %7742 = vmatprep.mubr.bf16.mxu0 %v6699_v36  ;;  %v4430_v36 = vshll.u32 %v9350_v27, 16  ;;  %v4414_v25 = vrot.slane %v4412_v61, 4  ;;  %v1602_v48 = vshrl.u32 %v6550_v32, 16  ;;  %v1605_v61 = vshll.u32 %v6550_v32, 16 }
  0xb9   : > { %v4420_v0 = vrot.slane %v4418_v28, 3  ;;  %v4472_v58 = vshrl.u32 %v9422_v6, 16  ;;  %v4490_v6 = vshrl.u32 %v9447_v53, 16 }
  0xba   : > { %v4415_v27 = vor.u32 %v4414_v25, %v4411_v49  ;;  %v4432_v47 = vrot.slane %v4430_v36, 4  ;;  %v9651_v36 = vrot.slane %v1602_v48, 3  ;;  %v4463_v25 = vshrl.u32 %v9410_v13, 16 }
  0xbb   : > { %v4424_v33 = vor.u32 %v4423_v4, %v4420_v0  ;;  %v4493_v0 = vshll.u32 %v9447_v53, 16  ;;  %v10671_v53 = vld [vmem:[#allocation10_spill] sm:$0xff] }
  0xbd   : > { %v9627_v51 = vsel %vm773_vm1, %v4415_v27, %v4424_v33 }
  0xbe   : > { %7447 = vmatmul.mubr.bf16.gmra.mrb[24].mxu1 %v9204_v62  ;;  %v4406_v62 = vor.u32 %v4405_v39, %v4402_v31  ;;  %v4457_v31 = vshll.u32 %v9395_v46, 16 }
  0xbf   : > { %7743 = vmatmul.mubr.bf16.vlgmr.msra.gmra.mrb[0].mxu0 %v6700_v19  ;;  %7450 = vmatprep.mubr.bf16.mxu1 %v9216_v50  ;;  %v6703_v50 = vcombine.low %v9226_v52, %v9234_v22  ;;  %v4439_v52 = vshll.u32 %v9369_v18, 16  ;;  %v9615_v22 = vld [vmem:[%s8678_s20 + $0x1c] sm:$0xff]   ;;  %v4448_v18 = vshll.u32 %v9380_v1, 16 }
  0xc0   : > { %7791 = vmatpush3.bf16.msra.mxu0 %v9258_v23  ;;  %7746 = vmatprep.mubr.bf16.mxu0 %v6701_v5  ;;  %v9608_v23 = vsel %vm773_vm1, %v4397_v3, %v4406_v62  ;;  %v9618_v14 = vsel %vm773_vm1, %v4406_v62, %v4415_v27  ;;  %v8472_v19 = vld [vmem:[%s10508_s1 + $0x198] sm:$0xff]   ;;  %v10578_v1 = vshrl.u32 %v9615_v22, 16  ;;  %v8485_v5 = vld [vmem:[%s10508_s1 + $0x1a0] sm:$0xff]   ;;  %v4454_v3 = vshrl.u32 %v9395_v46, 16 }
  0xc1   : > { %7792 = vmatprep.subr.bf16.mxu0 %v8456_v16  ;;  %v4441_v28 = vrot.slane %v4439_v52, 4  ;;  %v4450_v49 = vrot.slane %v4448_v18, 4  ;;  %v9653_v62 = vrot.slane %v1605_v61, 4  ;;  %v8515_v18 = vld [vmem:[%s10508_s1 + $0x1b8] sm:$0xff]  }
  0xc2   : > { %v4456_v32 = vrot.slane %v4454_v3, 3  ;;  %v10674_v3 = vld [vmem:[#allocation34_spill] sm:$0xff] }
  0xc3   : > { %v4442_v39 = vor.u32 %v4441_v28, %v4438_v12  ;;  %v4451_v46 = vor.u32 %v4450_v49, %v4447_v43  ;;  %v10673_v28 = vld [vmem:[#allocation11_spill] sm:$0xff]  ;;  %v4492_v49 = vrot.slane %v4490_v6, 3 }
  0xc4   : > { %7793 = vmatpush3.bf16.msra.mxu0 %v8456_v16  ;;  %v4433_v16 = vor.u32 %v4432_v47, %v4429_v37  ;;  %v4474_v37 = vrot.slane %v4472_v58, 3  ;;  %v4477_v47 = vrot.slane %v4475_v2, 4  ;;  %v9707_v58 = vld [vmem:[%s8678_s20 + $0x24] sm:$0xff]  }
  0xc5   : > { %7794 = vmatprep.subr.bf16.mxu0 %v8466_v11  ;;  %v9669_v27 = vsel %vm773_vm1, %v4442_v39, %v4451_v46 }
  0xc6   : > { %7451 = vmatmul.mubr.bf16.gmra.mrb[28].mxu1 %v9231_v29  ;;  %v9636_v29 = vrot.slane %v1613_v20, 4  ;;  %v9663_v57 = vsel %vm773_vm1, %v4433_v16, %v4442_v39  ;;  %v4478_v12 = vor.u32 %v4477_v47, %v4474_v37  ;;  %v4511_v39 = vshll.u32 %v10674_v3, 16  ;;  %v9726_v37 = vld [vmem:[%s8678_s20 + $0x2c] sm:$0xff]  }
  0xc7   : > { %7747 = vmatmul.mubr.bf16.gmra.mrb[4].mxu0 %v6702_v24  ;;  %7454 = vmatprep.mubr.bf16.mxu1 %v9268_v59  ;;  %v9643_v59 = vsel %vm773_vm1, %v4424_v33, %v4433_v16  ;;  %v4466_v24 = vshll.u32 %v9410_v13, 16  ;;  %v4459_v13 = vrot.slane %v4457_v31, 4  ;;  %v10672_v16 = vld [vmem:[#allocation12_spill] sm:$0xff]  ;;  %v4508_v31 = vshrl.u32 %v10674_v3, 16 }
  0xc8   : > { %7750 = vmatprep.mubr.bf16.mxu0 %v6703_v50  ;;  %7795 = vmatpush3.bf16.msra.mxu0 %v8466_v11  ;;  %v4481_v50 = vshrl.u32 %v9440_v21, 16  ;;  %v4484_v11 = vshll.u32 %v9440_v21, 16  ;;  %v8507_v21 = vld [vmem:[%s10508_s1 + $0x1b0] sm:$0xff]   ;;  %v6707_v48 = vcombine.low %v10672_v16, %v9306_v63  ;;  %v10565_v47 = vshrl.u32 %v9707_v58, 16  ;;  %v10684_v3 = vld [vmem:[#allocation8_spill] sm:$0xff] }
  0xc9   : > { %7796 = vmatprep.subr.bf16.mxu0 %v8472_v19  ;;  %v4460_v4 = vor.u32 %v4459_v13, %v4456_v32  ;;  %v4468_v52 = vrot.slane %v4466_v24, 4  ;;  %v10675_v24 = vld [vmem:[#allocation5_spill] sm:$0xff] }
  0xca   : > { %v4483_v63 = vrot.slane %v4481_v50, 3  ;;  %v10678_v50 = vld [vmem:[#allocation6_spill] sm:$0xff]  ;;  %v10679_v13 = vld [vmem:[#allocation17_spill] sm:$0xff] }
  0xcb   : > { %v9679_v33 = vsel %vm773_vm1, %v4451_v46, %v4460_v4  ;;  %v10677_v46 = vld [vmem:[#allocation16_spill] sm:$0xff] }
  0xcc   : > { %7797 = vmatpush3.bf16.msra.mxu0 %v8472_v19  ;;  %v10670_v19 = vld [vmem:[#allocation3_spill] sm:$0xff] }
  0xcd   : > { %7798 = vmatprep.subr.bf16.mxu0 %v8485_v5  ;;  %v6706_v44 = vcombine.low %v10671_v53, %v10670_v19  ;;  %v10583_v19 = vshll.u32 %v9707_v58, 16 }
  0xce   : > { %7455 = vmatmul.mubr.bf16.gmra.mrb[32].mxu1 %v9287_v7  ;;  %v4465_v7 = vrot.slane %v4463_v25, 3  ;;  %v4495_v25 = vrot.slane %v4493_v0, 4  ;;  %v10680_v0 = vld [vmem:[#allocation19_spill] sm:$0xff] }
  0xcf   : > { %7751 = vmatmul.mubr.bf16.gmra.mrb[8].mxu0 %v6704_v9  ;;  %7458 = vmatprep.mubr.bf16.mxu1 %v9303_v60  ;;  %v4502_v9 = vshll.u32 %v9462_v30, 16 }
  0xd0   : > { %7754 = vmatprep.mubr.bf16.mxu0 %v6705_v40  ;;  %7799 = vmatpush3.bf16.msra.mxu0 %v8485_v5  ;;  %v4469_v60 = vor.u32 %v4468_v52, %v4465_v7  ;;  %v4486_v40 = vrot.slane %v4484_v11, 4  ;;  %v6709_v11 = vcombine.low %v10678_v50, %v10677_v46  ;;  %v4496_v32 = vor.u32 %v4495_v25, %v4492_v49 }
  0xd1   : > { %7800 = vmatprep.subr.bf16.mxu0 %v8493_v56  ;;  %v4504_v7 = vrot.slane %v4502_v9, 4  ;;  %v1608_v52 = vor.u32 %v9653_v62, %v9651_v36  ;;  %v10683_v62 = vld [vmem:[#allocation37_spill] sm:$0xff]  ;;  %v10562_v25 = vshrl.u32 %v9726_v37, 16 }
  0xd2   : > { %v9689_v61 = vsel %vm773_vm1, %v4460_v4, %v4469_v60  ;;  %v9693_v5 = vsel %vm773_vm1, %v4469_v60, %v4478_v12  ;;  %v4487_v43 = vor.u32 %v4486_v40, %v4483_v63  ;;  %v10602_v4 = vshll.u32 %v9615_v22, 16  ;;  %v10685_v63 = vld [vmem:[#allocation21_spill] sm:$0xff] }
  0xd3   : > { %v1616_v60 = vor.u32 %v9636_v29, %v9632_v15  ;;  %v4517_v15 = vshrl.u32 %v10683_v62, 16  ;;  %v4520_v29 = vshll.u32 %v10683_v62, 16  ;;  %v6711_v40 = vcombine.low %v10685_v63, %v10684_v3  ;;  %v10690_v3 = vld [vmem:[#allocation43_spill] sm:$0xff] }
  0xd4   : > { %7801 = vmatpush3.bf16.msra.mxu0 %v8493_v56  ;;  %v10676_v56 = vld [vmem:[#allocation4_spill] sm:$0xff]  ;;  %v9710_v2 = vsel %vm773_vm1, %v4478_v12, %v4487_v43  ;;  %v9717_v6 = vsel %vm773_vm1, %v4487_v43, %v4496_v32  ;;  %v4513_v12 = vrot.slane %v4511_v39, 4  ;;  %v1624_v36 = vrot.slane %v10602_v4, 4  ;;  %v9745_v43 = vld [vmem:[%s8678_s20 + $0x34] sm:$0xff]  }
  0xd5   : > { %7802 = vmatprep.subr.bf16.mxu0 %v8507_v21  ;;  %v6708_v30 = vcombine.low %v10676_v56, %v10675_v24  ;;  %v1617_v9 = vsel %vm773_vm1, %v1608_v52, %v1616_v60  ;;  %v1633_v39 = vrot.slane %v10583_v19, 4  ;;  %v10686_v24 = vld [vmem:[#allocation7_spill] sm:$0xff]  ;;  %v10564_v56 = vshll.u32 %v9726_v37, 16 }
  0xd6   : > { %7459 = vmatmul.mubr.bf16.gmra.mrb[36].mxu1 %v9317_v45  ;;  %v9702_v45 = vld [vmem:[%s10508_s1 + $0x200] sm:$0xff]   ;;  %v4535_v63 = vshrl.u32 %v10690_v3, 16 }
  0xd7   : > { %7755 = vmatmul.mubr.bf16.gmra.mrb[12].mxu0 %v6706_v44  ;;  %7462 = vmatprep.mubr.bf16.mxu1 %v10673_v28  ;;  %v10681_v44 = vld [vmem:[#allocation20_spill] sm:$0xff]  ;;  %v10688_v52 = vld [vmem:[#allocation23_spill] sm:$0xff] }
  0xd8   : > { %7758 = vmatprep.mubr.bf16.mxu0 %v6707_v48  ;;  %7803 = vmatpush3.bf16.msra.mxu0 %v8507_v21  ;;  %v4501_v21 = vrot.slane %v4499_v42, 3  ;;  %v1621_v42 = vrot.slane %v10578_v1, 3  ;;  %v4510_v48 = vrot.slane %v4508_v31, 3  ;;  %v1630_v31 = vrot.slane %v10565_v47, 3  ;;  %v9815_v47 = vld [vmem:[%s8678_s20 + $0x4c] sm:$0xff]  }
  0xd9   : > { %7804 = vmatprep.subr.bf16.mxu0 %v8515_v18 }
  0xda   : > { %v4505_v53 = vor.u32 %v4504_v7, %v4501_v21  ;;  %v4514_v49 = vor.u32 %v4513_v12, %v4510_v48  ;;  %v10561_v21 = vshrl.u32 %v9745_v43, 16  ;;  %v10563_v7 = vshll.u32 %v9745_v43, 16  ;;  %v9766_v12 = vld [vmem:[%s8678_s20 + $0xd8] sm:$0xf] }
  0xdb   : > { %v1634_v48 = vor.u32 %v1633_v39, %v1630_v31  ;;  %v10691_v39 = vld [vmem:[#allocation14_spill] sm:$0xff] }
  0xdc   : > { %7805 = vmatpush3.bf16.msra.mxu0 %v8515_v18  ;;  %v10682_v18 = vld [vmem:[#allocation18_spill] sm:$0xff]  ;;  %v9739_v28 = vsel %vm773_vm1, %v4496_v32, %v4505_v53  ;;  %v1625_v32 = vor.u32 %v1624_v36, %v1621_v42  ;;  %v1642_v42 = vrot.slane %v10564_v56, 4  ;;  %v6755_v36 = vcombine.low %v9766_v12, %v9766_v12 }
  0xdd   : > { %7854 = vmatprep.subr.bf16.mxu0 %v9702_v45  ;;  %v6710_v16 = vcombine.low %v10682_v18, %v10681_v44  ;;  %v10689_v44 = vld [vmem:[#allocation22_spill] sm:$0xff] }
  0xde   : > { %7463 = vmatmul.mubr.bf16.gmra.mrb[40].mxu1 %v10679_v13  ;;  %v4519_v13 = vrot.slane %v4517_v15, 3  ;;  %v6712_v18 = vcombine.low %v10689_v44, %v10688_v52  ;;  %v8492_v52 = vld [vmem:[%s10508_s1 + $0x88] sm:$0xff]   ;;  %v4544_v44 = vshrl.u32 %v6755_v36, 16 }
  0xdf   : > { %7759 = vmatmul.mubr.bf16.gmra.mrb[16].mxu0 %v6708_v30  ;;  %7466 = vmatprep.mubr.bf16.mxu1 %v10680_v0  ;;  %v10687_v30 = vld [vmem:[#allocation40_spill] sm:$0xff]  ;;  %v4522_v0 = vrot.slane %v4520_v29, 4  ;;  %v1626_v29 = vsel %vm773_vm1, %v1616_v60, %v1625_v32 }
  0xe0   : > { %7762 = vmatprep.mubr.bf16.mxu0 %v6709_v11  ;;  %v4526_v46 = vshrl.u32 %v10687_v30, 16  ;;  %v4529_v50 = vshll.u32 %v10687_v30, 16  ;;  %v9757_v11 = vsel %vm773_vm1, %v4505_v53, %v4514_v49  ;;  %v1639_v53 = vrot.slane %v10562_v25, 3 }
  0xe2   : > { %v4528_v62 = vrot.slane %v4526_v46, 3  ;;  %v4531_v15 = vrot.slane %v4529_v50, 4  ;;  %v1651_v46 = vrot.slane %v10563_v7, 4  ;;  %v9788_v50 = vld [vmem:[%s8678_s20 + $0x44] sm:$0xff]   ;;  %v4546_v7 = vrot.slane %v4544_v44, 3 }
  0xe4   : > { %v4532_v60 = vor.u32 %v4531_v15, %v4528_v62  ;;  %v4537_v15 = vrot.slane %v4535_v63, 3  ;;  %v10696_v63 = vld [vmem:[#allocation26_spill] sm:$0xff] }
  0xe6   : > { %7467 = vmatmul.mubr.bf16.gmra.mrb[44].mxu1 %v10686_v24  ;;  %v10692_v24 = vld [vmem:[#allocation24_spill] sm:$0xff] }
  0xe7   : > { %7763 = vmatmul.mubr.bf16.gmra.mrb[20].mxu0 %v6710_v16  ;;  %7486 = vmatprep.mubr.bf16.mxu1 %v1617_v9  ;;  %v4523_v16 = vor.u32 %v4522_v0, %v4519_v13  ;;  %v9774_v9 = vld [vmem:[%s8678_s20 + $0x3c] sm:$0xff]   ;;  %v6713_v30 = vcombine.low %v10692_v24, %v10691_v39  ;;  %v1648_v13 = vrot.slane %v10561_v21, 3  ;;  %v1635_v0 = vsel %vm773_vm1, %v1625_v32, %v1634_v48  ;;  %v10693_v24 = vld [vmem:[#allocation44_spill] sm:$0xff] }
  0xe8   : > { %7766 = vmatprep.mubr.bf16.mxu0 %v6711_v40  ;;  %v4538_v40 = vshll.u32 %v10690_v3, 16  ;;  %v4547_v3 = vshll.u32 %v6755_v36, 16  ;;  %v10567_v21 = vshrl.u32 %v9774_v9, 16  ;;  %v10573_v62 = vshll.u32 %v9774_v9, 16  ;;  %v10694_v36 = vld [vmem:[#allocation15_spill] sm:$0xff] }
  0xe9   : > { %v9779_v31 = vsel %vm773_vm1, %v4514_v49, %v4523_v16  ;;  %v1643_v49 = vor.u32 %v1642_v42, %v1639_v53  ;;  %v9795_v39 = vsel %vm773_vm1, %v4523_v16, %v4532_v60  ;;  %v1652_v25 = vor.u32 %v1651_v46, %v1648_v13 }
  0xea   : > { %v4540_v32 = vrot.slane %v4538_v40, 4  ;;  %v10566_v53 = vshrl.u32 %v9788_v50, 16  ;;  %v10572_v42 = vshll.u32 %v9788_v50, 16  ;;  %v10697_v40 = vld [vmem:[#allocation25_spill] sm:$0xff]  ;;  %v1657_v46 = vrot.slane %v10567_v21, 3 }
  0xeb   : > { %v1644_v13 = vsel %vm773_vm1, %v1634_v48, %v1643_v49  ;;  %v1660_v56 = vrot.slane %v10573_v62, 4 }
  0xec   : > { %v4541_v16 = vor.u32 %v4540_v32, %v4537_v15  ;;  %v1653_v32 = vsel %vm773_vm1, %v1643_v49, %v1652_v25  ;;  %v1666_v44 = vrot.slane %v10566_v53, 3  ;;  %v1669_v48 = vrot.slane %v10572_v42, 4 }
  0xed   : > { %v1661_v49 = vor.u32 %v1660_v56, %v1657_v46  ;;  %v10698_v56 = vld [vmem:[#allocation28_spill] sm:$0xff] }
  0xee   : > { %7487 = vmatmul.mubr.bf16.vlgmr.msra.gmra.mrb[0].mxu1 %v1626_v29  ;;  %v10695_v29 = vld [vmem:[#allocation13_spill] sm:$0xff]  ;;  %v9818_v15 = vsel %vm773_vm1, %v4532_v60, %v4541_v16 }
  0xef   : > { %7767 = vmatmul.mubr.bf16.gmra.mrb[24].mxu0 %v6712_v18  ;;  %7535 = vmatpush3.bf16.msra.mxu1 %v10693_v24  ;;  %v8504_v18 = vld [vmem:[%s10508_s1 + $0x90] sm:$0xff]   ;;  %v6714_v24 = vcombine.low %v10695_v29, %v10694_v36  ;;  %v8514_v36 = vld [vmem:[%s10508_s1 + $0x98] sm:$0xff]   ;;  %v10569_v29 = vshrl.u32 %v9815_v47, 16 }
  0xf0   : > { %7490 = vmatprep.mubr.bf16.mxu1 %v1635_v0  ;;  %7770 = vmatprep.mubr.bf16.mxu0 %v6713_v30  ;;  %v6715_v0 = vcombine.low %v10697_v40, %v10696_v63  ;;  %v4549_v30 = vrot.slane %v4547_v3, 4  ;;  %v10571_v63 = vshll.u32 %v9815_v47, 16  ;;  %v1670_v40 = vor.u32 %v1669_v48, %v1666_v44  ;;  %v10700_v48 = vld [vmem:[#allocation30_spill] sm:$0xff] }
  0xf1   : > { %7536 = vmatprep.subr.bf16.mxu1 %v8492_v52 }
  0xf2   : > { %v4550_v3 = vor.u32 %v4549_v30, %v4546_v7  ;;  %v1671_v44 = vsel %vm773_vm1, %v1661_v49, %v1670_v40 }
  0xf3   : > { %7537 = vmatpush3.bf16.msra.mxu1 %v8492_v52  ;;  %v9826_v52 = vld [vmem:[%s8678_s20 + $0x54] sm:$0xff]  }
  0xf4   : > { %7538 = vmatprep.subr.bf16.mxu1 %v8504_v18  ;;  %v9832_v60 = vsel %vm773_vm1, %v4541_v16, %v4550_v3  ;;  %v10568_v7 = vshrl.u32 %v9826_v52, 16  ;;  %v10570_v30 = vshll.u32 %v9826_v52, 16  ;;  %v8525_v16 = vld [vmem:[%s10508_s1 + $0xa0] sm:$0xff]   ;;  %v10701_v3 = vld [vmem:[#allocation29_spill] sm:$0xff] }
  0xf5   : > { %v6717_v53 = vcombine.low %v10701_v3, %v10700_v48 }
  0xf6   : > { %7491 = vmatmul.mubr.bf16.gmra.mrb[4].mxu1 %v1644_v13  ;;  %v10699_v13 = vld [vmem:[#allocation27_spill] sm:$0xff]  ;;  %v1684_v21 = vrot.slane %v10568_v7, 3 }
  0xf7   : > { %7771 = vmatmul.mubr.bf16.gmra.mrb[28].mxu0 %v6714_v24  ;;  %7494 = vmatprep.mubr.bf16.mxu1 %v1653_v32  ;;  %v1662_v24 = vsel %vm773_vm1, %v1652_v25, %v1661_v49  ;;  %v6716_v46 = vcombine.low %v10699_v13, %v10698_v56  ;;  %v9849_v32 = vld [vmem:[%s8678_s20 + $0x5c] sm:$0xff]   ;;  %v1687_v25 = vrot.slane %v10570_v30, 4  ;;  %v9859_v56 = vld [vmem:[%s8678_s20 + $0x64] sm:$0xff]  }
  0xf8   : > { %7774 = vmatprep.mubr.bf16.mxu0 %v6715_v0  ;;  %7539 = vmatpush3.bf16.msra.mxu1 %v8504_v18  ;;  %v1675_v0 = vrot.slane %v10569_v29, 3  ;;  %v1678_v18 = vrot.slane %v10571_v63, 4  ;;  %v8529_v13 = vld [vmem:[%s10508_s1 + $0xa8] sm:$0xff]   ;;  %v10575_v48 = vshrl.u32 %v9849_v32, 16  ;;  %v10577_v3 = vshll.u32 %v9849_v32, 16  ;;  %v10704_v30 = vld [vmem:[#allocation35_spill] sm:$0xff] }
  0xf9   : > { %7540 = vmatprep.subr.bf16.mxu1 %v8514_v36  ;;  %v1688_v7 = vor.u32 %v1687_v25, %v1684_v21  ;;  %v10576_v29 = vshll.u32 %v9859_v56, 16  ;;  %v9879_v25 = vld [vmem:[%s8678_s20 + $0x6c] sm:$0xff]  }
  0xfa   : > { %v1679_v49 = vor.u32 %v1678_v18, %v1675_v0  ;;  %v10702_v0 = vld [vmem:[#allocation32_spill] sm:$0xff]  ;;  %v10703_v18 = vld [vmem:[#allocation31_spill] sm:$0xff]  ;;  %v1696_v21 = vrot.slane %v10577_v3, 4  ;;  %v10705_v63 = vld [vmem:[#allocation33_spill] sm:$0xff] }
  0xfb   : > { %v6719_v42 = vcombine.low %v10705_v63, %v10704_v30  ;;  %v10580_v63 = vshrl.u32 %v9879_v25, 16  ;;  %v10582_v30 = vshll.u32 %v9879_v25, 16  ;;  %v10707_v3 = vld [vmem:[#allocation36_spill] sm:$0xff] }
  0xfc   : > { %7541 = vmatpush3.bf16.msra.mxu1 %v8514_v36  ;;  %v10574_v36 = vshrl.u32 %v9859_v56, 16 }
  0xfd   : > { %7542 = vmatprep.subr.bf16.mxu1 %v8525_v16 }
  0xfe   : > { %7495 = vmatmul.mubr.bf16.gmra.mrb[8].mxu1 %v1662_v24  ;;  %v8535_v24 = vld [vmem:[%s10508_s1 + $0xb0] sm:$0xff]   ;;  %v1702_v62 = vrot.slane %v10574_v36, 3 }
  0xff   : > { %7775 = vmatmul.mubr.bf16.gmra.mrb[32].mxu0 %v6716_v46  ;;  %7498 = vmatprep.mubr.bf16.mxu1 %v1671_v44  ;;  %v1680_v46 = vsel %vm773_vm1, %v1670_v40, %v1679_v49  ;;  %v6718_v44 = vcombine.low %v10703_v18, %v10702_v0  ;;  %v1705_v40 = vrot.slane %v10576_v29, 4  ;;  %v9889_v0 = vld [vmem:[%s8678_s20 + $0x74] sm:$0xff]  }
 0x100   : > { %7778 = vmatprep.mubr.bf16.mxu0 %v6717_v53  ;;  %7543 = vmatpush3.bf16.msra.mxu1 %v8525_v16  ;;  %v1693_v53 = vrot.slane %v10575_v48, 3  ;;  %v1689_v16 = vsel %vm773_vm1, %v1679_v49, %v1688_v7  ;;  %v8539_v18 = vld [vmem:[%s10508_s1 + $0xb8] sm:$0xff]   ;;  %v10579_v48 = vshrl.u32 %v9889_v0, 16 }
 0x101   : > { %7544 = vmatprep.subr.bf16.mxu1 %v8529_v13  ;;  %v1706_v36 = vor.u32 %v1705_v40, %v1702_v62  ;;  %v10709_v40 = vld [vmem:[#allocation39_spill] sm:$0xff] }
 0x102   : > { %v1697_v49 = vor.u32 %v1696_v21, %v1693_v53  ;;  %v1711_v53 = vrot.slane %v10580_v63, 3  ;;  %v1714_v21 = vrot.slane %v10582_v30, 4  ;;  %v10710_v30 = vld [vmem:[#allocation42_spill] sm:$0xff] }
 0x103   : > { %v6722_v19 = vcombine.low %v10710_v30, %v9766_v12 }
 0x104   : > { %7545 = vmatpush3.bf16.msra.mxu1 %v8529_v13  ;;  %v10581_v13 = vshll.u32 %v9889_v0, 16  ;;  %v1698_v29 = vsel %vm773_vm1, %v1688_v7, %v1697_v49  ;;  %v1707_v62 = vsel %vm773_vm1, %v1697_v49, %v1706_v36  ;;  %v1715_v49 = vor.u32 %v1714_v21, %v1711_v53  ;;  %v9936_v53 = vld [vmem:[%s8678_s20 + $0x8c] sm:$0xff]  }
 0x105   : > { %7546 = vmatprep.subr.bf16.mxu1 %v8535_v24  ;;  %v10586_v30 = vshrl.u32 %v9936_v53, 16 }
 0x106   : > { %7499 = vmatmul.mubr.bf16.gmra.mrb[12].mxu1 %v1680_v46  ;;  %v10706_v46 = vld [vmem:[#allocation38_spill] sm:$0xff]  ;;  %v1723_v7 = vrot.slane %v10581_v13, 4  ;;  %v1716_v13 = vsel %vm773_vm1, %v1706_v36, %v1715_v49 }
 0x107   : > { %7779 = vmatmul.mubr.bf16.gmra.mrb[36].mxu0 %v6718_v44  ;;  %7502 = vmatprep.mubr.bf16.mxu1 %v1689_v16  ;;  %v6720_v44 = vcombine.low %v10707_v3, %v10706_v46  ;;  %v9906_v16 = vld [vmem:[%s8678_s20 + $0x7c] sm:$0xff]   ;;  %v9916_v3 = vld [vmem:[%s8678_s20 + $0x84] sm:$0xff]  }
 0x108   : > { %7782 = vmatprep.mubr.bf16.mxu0 %v6719_v42  ;;  %7547 = vmatpush3.bf16.msra.mxu1 %v8535_v24  ;;  %v10708_v42 = vld [vmem:[#allocation41_spill] sm:$0xff]  ;;  %v1720_v24 = vrot.slane %v10579_v48, 3  ;;  %v9921_v46 = vld [vmem:[%s10508_s1 + $0x140] sm:$0xff]   ;;  %v10598_v63 = vshll.u32 %v9916_v3, 16 }
 0x109   : > { %7548 = vmatprep.subr.bf16.mxu1 %v8539_v18  ;;  %v6721_v1 = vcombine.low %v10709_v40, %v10708_v42  ;;  %v10585_v42 = vshrl.u32 %v9906_v16, 16  ;;  %v10601_v40 = vshll.u32 %v9906_v16, 16 }
 0x10a   : > { %v1724_v48 = vor.u32 %v1723_v7, %v1720_v24  ;;  %v1741_v36 = vrot.slane %v10598_v63, 4  ;;  %v10589_v24 = vshll.u32 %v9936_v53, 16  ;;  %v8548_v63 = vld [vmem:[%s10508_s1 + $0x238] sm:$0xff]  }
 0x10c   : > { %7549 = vmatpush3.bf16.msra.mxu1 %v8539_v18  ;;  %v10584_v18 = vshrl.u32 %v9916_v3, 16 }
 0x10d   : > { %7918 = vmatprep.subr.bf16.mxu1 %v9921_v46 }
 0x10e   : > { %7503 = vmatmul.mubr.bf16.gmra.mrb[16].mxu1 %v1698_v29  ;;  %v1729_v29 = vrot.slane %v10585_v42, 3  ;;  %v1738_v21 = vrot.slane %v10584_v18, 3 }
 0x10f   : > { %7783 = vmatmul.mubr.bf16.gmra.mrb[40].mxu0 %v6720_v44  ;;  %7506 = vmatprep.mubr.bf16.mxu1 %v1707_v62  ;;  %v1732_v44 = vrot.slane %v10601_v40, 4  ;;  %v9944_v62 = vld [vmem:[%s8678_s20 + $0x94] sm:$0xff]  }
 0x110   : > { %7786 = vmatprep.mubr.bf16.mxu0 %v6721_v1  ;;  %v1725_v1 = vsel %vm773_vm1, %v1715_v49, %v1724_v48  ;;  %v1742_v7 = vor.u32 %v1741_v36, %v1738_v21  ;;  %v10587_v49 = vshrl.u32 %v9944_v62, 16  ;;  %v10588_v18 = vshll.u32 %v9944_v62, 16  ;;  %v9965_v21 = vld [vmem:[%s8678_s20 + $0xa4] sm:$0xff]  }
 0x111   : > { %v1733_v12 = vor.u32 %v1732_v44, %v1729_v29  ;;  %v9957_v29 = vld [vmem:[%s8678_s20 + $0x9c] sm:$0xff]  }
 0x113   : > { %v1734_v42 = vsel %vm773_vm1, %v1724_v48, %v1733_v12  ;;  %v1743_v44 = vsel %vm773_vm1, %v1733_v12, %v1742_v7  ;;  %v8530_v48 = vld [vmem:[%s10508_s1 + $0x208] sm:$0xff]   ;;  %v10591_v12 = vshrl.u32 %v9957_v29, 16 }
 0x116   : > { %7507 = vmatmul.mubr.bf16.gmra.mrb[20].mxu1 %v1716_v13  ;;  %v1747_v13 = vrot.slane %v10586_v30, 3  ;;  %v10593_v30 = vshll.u32 %v9957_v29, 16 }
 0x117   : > { %7787 = vmatmul.mubr.bf16.gmra.mrb[44].mxu0 %v6722_v19  ;;  %7510 = vmatprep.mubr.bf16.mxu1 %v1725_v1  ;;  %v1750_v19 = vrot.slane %v10589_v24, 4  ;;  %v1759_v1 = vrot.slane %v10588_v18, 4  ;;  %v10590_v18 = vshrl.u32 %v9965_v21, 16  ;;  %v10592_v24 = vshll.u32 %v9965_v21, 16 }
 0x118   : > { %7806 = vmatprep.mubr.bf16.mxu0 %v9545_v38  ;;  %v1756_v38 = vrot.slane %v10587_v49, 3 }
 0x119   : > { %v1751_v36 = vor.u32 %v1750_v19, %v1747_v13  ;;  %v1765_v13 = vrot.slane %v10591_v12, 3  ;;  %v9986_v19 = vld [vmem:[%s8678_s20 + $0xac] sm:$0xff]  }
 0x11a   : > { %v1760_v49 = vor.u32 %v1759_v1, %v1756_v38  ;;  %v1777_v38 = vrot.slane %v10592_v24, 4  ;;  %v9994_v1 = vld [vmem:[%s8678_s20 + $0xb4] sm:$0xff]  }
 0x11b   : > { %v10595_v24 = vshrl.u32 %v9994_v1, 16 }
 0x11e   : > { %7511 = vmatmul.mubr.bf16.gmra.mrb[24].mxu1 %v1734_v42  ;;  %v1752_v42 = vsel %vm773_vm1, %v1742_v7, %v1751_v36  ;;  %v8540_v7 = vld [vmem:[%s10508_s1 + $0x218] sm:$0xff]  }
 0x11f   : > { %7807 = vmatmul.mubr.bf16.vlgmr.msra.gmra.mrb[0].mxu0 %v9548_v8  ;;  %7514 = vmatprep.mubr.bf16.mxu1 %v1743_v44  ;;  %v8536_v8 = vld [vmem:[%s10508_s1 + $0x210] sm:$0xff]   ;;  %v1774_v44 = vrot.slane %v10590_v18, 3  ;;  %v10597_v18 = vshll.u32 %v9986_v19, 16 }
 0x120   : > { %7855 = vmatpush3.bf16.msra.mxu0 %v9702_v45  ;;  %7810 = vmatprep.mubr.bf16.mxu0 %v9556_v55  ;;  %v1768_v45 = vrot.slane %v10593_v30, 4  ;;  %v1761_v55 = vsel %vm773_vm1, %v1751_v36, %v1760_v49  ;;  %v10594_v36 = vshrl.u32 %v9986_v19, 16  ;;  %v10596_v30 = vshll.u32 %v9994_v1, 16 }
 0x121   : > { %7856 = vmatprep.subr.bf16.mxu0 %v8530_v48  ;;  %v1778_v12 = vor.u32 %v1777_v38, %v1774_v44  ;;  %v8541_v38 = vld [vmem:[%s8678_s20 + $0xc4] sm:$0xff]  }
 0x122   : > { %v1795_v44 = vrot.slane %v10596_v30, 4  ;;  %v1808_v30 = vshrl.u32 %v8541_v38, 16 }
 0x124   : > { %7857 = vmatpush3.bf16.msra.mxu0 %v8530_v48  ;;  %v1769_v48 = vor.u32 %v1768_v45, %v1765_v13  ;;  %v1783_v13 = vrot.slane %v10594_v36, 3  ;;  %v1786_v45 = vrot.slane %v10597_v18, 4  ;;  %v1811_v18 = vshll.u32 %v8541_v38, 16  ;;  %v8543_v38 = vld [vmem:[%s8678_s20 + $0x4] sm:$0xff]  }
 0x125   : > { %7858 = vmatprep.subr.bf16.mxu0 %v8536_v8  ;;  %v2135_v34 = vshrl.u32 %v8543_v38, 16 }
 0x126   : > { %7515 = vmatmul.mubr.bf16.gmra.mrb[28].mxu1 %v1752_v42  ;;  %v1770_v42 = vsel %vm773_vm1, %v1760_v49, %v1769_v48  ;;  %v8546_v49 = vld [vmem:[%s10508_s1 + $0x228] sm:$0xff]   ;;  %v1787_v36 = vor.u32 %v1786_v45, %v1783_v13 }
 0x127   : > { %7811 = vmatmul.mubr.bf16.gmra.mrb[4].mxu0 %v9563_v41  ;;  %7518 = vmatprep.mubr.bf16.mxu1 %v1761_v55  ;;  %v8545_v41 = vld [vmem:[%s10508_s1 + $0x220] sm:$0xff]   ;;  %v1792_v55 = vrot.slane %v10595_v24, 3 }
 0x128   : > { %7814 = vmatprep.mubr.bf16.mxu0 %v9567_v10  ;;  %7859 = vmatpush3.bf16.msra.mxu0 %v8536_v8  ;;  %v10014_v10 = vld [vmem:[%s8678_s20 + $0xbc] sm:$0xff]   ;;  %v1779_v8 = vsel %vm773_vm1, %v1769_v48, %v1778_v12 }
 0x129   : > { %7860 = vmatprep.subr.bf16.mxu0 %v8540_v7  ;;  %v10599_v48 = vshrl.u32 %v10014_v10, 16  ;;  %v10600_v24 = vshll.u32 %v10014_v10, 16 }
 0x12b   : > { %v1801_v13 = vrot.slane %v10599_v48, 3  ;;  %v1804_v45 = vrot.slane %v10600_v24, 4 }
 0x12c   : > { %7861 = vmatpush3.bf16.msra.mxu0 %v8540_v7  ;;  %v1796_v7 = vor.u32 %v1795_v44, %v1792_v55  ;;  %v1810_v55 = vrot.slane %v1808_v30, 3  ;;  %v1813_v44 = vrot.slane %v1811_v18, 4  ;;  %v2137_v30 = vshll.u32 %v8543_v38, 16 }
 0x12d   : > { %7862 = vmatprep.subr.bf16.mxu0 %v8545_v41 }
 0x12e   : > { %7519 = vmatmul.mubr.bf16.gmra.mrb[32].mxu1 %v1770_v42  ;;  %v8547_v42 = vld [vmem:[%s10508_s1 + $0x230] sm:$0xff]  }
 0x12f   : > { %7815 = vmatmul.mubr.bf16.gmra.mrb[8].mxu0 %v9583_v17  ;;  %7522 = vmatprep.mubr.bf16.mxu1 %v1779_v8  ;;  %v1788_v17 = vsel %vm773_vm1, %v1778_v12, %v1787_v36  ;;  %v8542_v8 = vld [vmem:[%s8678_s20 + $0xcc] ss:$0 sps:$4 sm:$0xff]   ;;  %v1805_v12 = vor.u32 %v1804_v45, %v1801_v13 }
 0x130   : > { %7818 = vmatprep.mubr.bf16.mxu0 %v9595_v26  ;;  %7863 = vmatpush3.bf16.msra.mxu0 %v8545_v41  ;;  %v1797_v26 = vsel %vm773_vm1, %v1787_v36, %v1796_v7  ;;  %v1393_v41 = vld [vmem:[%s8678_s20 + $0xc] sm:$0xf]  ;;  %v1817_v48 = vshrl.u32 %v8542_v8, 16  ;;  %v1820_v24 = vshll.u32 %v8542_v8, 16  ;;  %v1814_v36 = vor.u32 %v1813_v44, %v1810_v55 }
 0x131   : > { %7864 = vmatprep.subr.bf16.mxu0 %v8546_v49  ;;  %v6584_v18 = vcombine.low %v1393_v41, %v9580_v35  ;;  %v10716_v44 = vshll.u32 %v9726_v37, 16  ;;  %v8577_v41 = vld [vmem:[%s10508_s1 + $0x148] sm:$0xff]  }
 0x132   : > { %v1819_v40 = vrot.slane %v1817_v48, 3  ;;  %v1822_v4 = vrot.slane %v1820_v24, 4 }
 0x133   : > { %v2158_v38 = vrot.slane %v10716_v44, 1 }
 0x134   : > { %7865 = vmatpush3.bf16.msra.mxu0 %v8546_v49  ;;  %v1806_v49 = vsel %vm773_vm1, %v1796_v7, %v1805_v12  ;;  %v2146_v7 = vshrl.u32 %v6584_v18, 16 }
 0x135   : > { %7866 = vmatprep.subr.bf16.mxu0 %v8547_v42 }
 0x136   : > { %7523 = vmatmul.mubr.bf16.gmra.mrb[36].mxu1 %v1788_v17  ;;  %v1815_v17 = vsel %vm773_vm1, %v1805_v12, %v1814_v36  ;;  %v10718_v12 = vshrl.u32 %v9726_v37, 16  ;;  %v10721_v37 = vshll.u32 %v9788_v50, 16 }
 0x137   : > { %7819 = vmatmul.mubr.bf16.gmra.mrb[12].mxu0 %v9608_v23  ;;  %7526 = vmatprep.mubr.bf16.mxu1 %v1797_v26  ;;  %v2139_v23 = vrot.slane %v2137_v30, 1  ;;  %v2142_v26 = vshll.u32 %v6584_v18, 16  ;;  %v10719_v18 = vshrl.u32 %v9745_v43, 16 }
 0x138   : > { %7822 = vmatprep.mubr.bf16.mxu0 %v9618_v14  ;;  %7867 = vmatpush3.bf16.msra.mxu0 %v8547_v42  ;;  %v1823_v14 = vor.u32 %v1822_v4, %v1819_v40 }
 0x139   : > { %7868 = vmatprep.subr.bf16.mxu0 %v8548_v63  ;;  %v2140_v35 = vor.u32 %v2139_v23, %v2135_v34  ;;  %v2144_v42 = vrot.slane %v2142_v26, 1  ;;  %v10712_v34 = vshll.u32 %v9615_v22, 16  ;;  %v8579_v23 = vld [vmem:[%s10508_s1 + $0x158] sm:$0xff]  }
 0x13a   : > { %v1824_v13 = vsel %vm773_vm1, %v1814_v36, %v1823_v14  ;;  %v2160_v36 = vor.u32 %v2158_v38, %v10718_v12  ;;  %v10722_v14 = vshrl.u32 %v9774_v9, 16 }
 0x13b   : > { %v2145_v24 = vsel %vm2133_vm0, %v2140_v35, %v2144_v42  ;;  %v2148_v48 = vor.u32 %v2146_v7, %v2144_v42  ;;  %v2152_v4 = vrot.slane %v10712_v34, 1  ;;  %v10723_v42 = vshrl.u32 %v9788_v50, 16 }
 0x13c   : > { %7869 = vmatpush3.bf16.msra.mxu0 %v8548_v63  ;;  %v2149_v63 = vrot.slane %v1613_v20, 1  ;;  %v10714_v20 = vshrl.u32 %v9615_v22, 16  ;;  %v10724_v7 = vshll.u32 %v9815_v47, 16  ;;  %v10725_v50 = vshll.u32 %v9826_v52, 16 }
 0x13e   : > { %7527 = vmatmul.mubr.bf16.gmra.mrb[40].mxu1 %v1806_v49  ;;  %v2150_v40 = vsel %vm2133_vm0, %v2148_v48, %v2149_v63  ;;  %v10720_v49 = vshll.u32 %v9774_v9, 16  ;;  %v8581_v48 = vld [vmem:[%s10508_s1 + $0x168] sm:$0xff]  }
 0x13f   : > { %7823 = vmatmul.mubr.bf16.gmra.mrb[16].mxu0 %v9627_v51  ;;  %7530 = vmatprep.mubr.bf16.mxu1 %v1815_v17  ;;  %v10711_v51 = vshrl.u32 %v9592_v54, 16  ;;  %v10715_v54 = vshrl.u32 %v9707_v58, 16 }
 0x140   : > { %7826 = vmatprep.mubr.bf16.mxu0 %v9643_v59  ;;  %v2164_v17 = vrot.slane %v10720_v49, 1 }
 0x141   : > { %v2151_v59 = vor.u32 %v2149_v63, %v10711_v51  ;;  %v8549_v63 = vld [vmem:[%s8678_s20 + $0x1c] sm:$0xff]   ;;  %v2173_v51 = vrot.slane %v10725_v50, 1 }
 0x142   : > { %v2166_v35 = vor.u32 %v2164_v17, %v10722_v14 }
 0x143   : > { %v2153_v45 = vsel %vm2133_vm0, %v2151_v59, %v2152_v4  ;;  %v10726_v59 = vshrl.u32 %v9815_v47, 16 }
 0x146   : > { %7531 = vmatmul.mubr.bf16.gmra.mrb[44].mxu1 %v1824_v13 }
 0x147   : > { %7827 = vmatmul.mubr.bf16.gmra.mrb[20].mxu0 %v9663_v57  ;;  %7550 = vmatprep.mubr.bf16.mxu1 %v2145_v24  ;;  %v10713_v57 = vshll.u32 %v9707_v58, 16  ;;  %v10717_v58 = vshll.u32 %v9745_v43, 16  ;;  %v2167_v43 = vrot.slane %v10721_v37, 1  ;;  %v2170_v24 = vrot.slane %v10724_v7, 1 }
 0x148   : > { %7830 = vmatprep.mubr.bf16.mxu0 %v9669_v27  ;;  %v2154_v27 = vor.u32 %v2152_v4, %v10714_v20  ;;  %v10727_v4 = vshrl.u32 %v9826_v52, 16  ;;  %v5185_v20 = vshll.u32 %v8549_v63, 16 }
 0x149   : > { %v2155_v8 = vrot.slane %v10713_v57, 1  ;;  %v2169_v13 = vor.u32 %v2167_v43, %v10723_v42  ;;  %v2172_v34 = vor.u32 %v2170_v24, %v10726_v59  ;;  %v10737_v59 = vshll.u32 %v9916_v3, 16 }
 0x14a   : > { %v5187_v52 = vrot.slane %v5185_v20, 1  ;;  %v10739_v20 = vshrl.u32 %v9916_v3, 16 }
 0x14b   : > { %v2157_v55 = vor.u32 %v2155_v8, %v10715_v54  ;;  %v2171_v9 = vsel %vm2133_vm0, %v2169_v13, %v2170_v24  ;;  %v2174_v47 = vsel %vm2133_vm0, %v2172_v34, %v2173_v51  ;;  %v10736_v13 = vshll.u32 %v9906_v16, 16 }
 0x14c   : > { %v2191_v34 = vrot.slane %v10737_v59, 1 }
 0x14d   : > { %v2159_v22 = vsel %vm2133_vm0, %v2157_v55, %v2158_v38  ;;  %v10729_v55 = vshll.u32 %v9859_v56, 16  ;;  %v10730_v38 = vshrl.u32 %v9849_v32, 16  ;;  %v2188_v7 = vrot.slane %v10736_v13, 1 }
 0x14e   : > { %7551 = vmatmul.mubr.bf16.vlgmr.msra.gmra.mrb[0].mxu1 %v2150_v40  ;;  %v2175_v40 = vor.u32 %v2173_v51, %v10727_v4  ;;  %v10738_v4 = vshrl.u32 %v9906_v16, 16  ;;  %v10746_v13 = vshrl.u32 %v9957_v29, 16 }
 0x14f   : > { %7831 = vmatmul.mubr.bf16.gmra.mrb[24].mxu0 %v9679_v33  ;;  %7926 = vmatpush3.bf16.msra.mxu1 %v9921_v46  ;;  %v2156_v33 = vsel %vm2133_vm0, %v2154_v27, %v2155_v8  ;;  %v2161_v46 = vrot.slane %v10717_v58, 1  ;;  %v8550_v8 = vld [vmem:[%s8678_s20 + $0x24] sm:$0xff]   ;;  %v2179_v44 = vrot.slane %v10729_v55, 1  ;;  %v10732_v58 = vshll.u32 %v9879_v25, 16 }
 0x150   : > { %7554 = vmatprep.mubr.bf16.mxu1 %v2153_v45  ;;  %7834 = vmatprep.mubr.bf16.mxu0 %v9689_v61  ;;  %v8578_v61 = vld [vmem:[%s10508_s1 + $0x150] sm:$0xff]   ;;  %v10728_v45 = vshll.u32 %v9849_v32, 16  ;;  %v5190_v54 = vshll.u32 %v8550_v8, 16  ;;  %v5194_v32 = vshrl.u32 %v8550_v8, 16 }
 0x151   : > { %7919 = vmatprep.subr.bf16.mxu1 %v8577_v41  ;;  %v2163_v30 = vor.u32 %v2161_v46, %v10719_v18  ;;  %v8552_v18 = vld [vmem:[%s8678_s20 + $0x34] sm:$0xff]  }
 0x152   : > { %v2176_v57 = vrot.slane %v10728_v45, 1 }
 0x153   : > { %7927 = vmatpush3.bf16.msra.mxu1 %v8577_v41  ;;  %v2165_v26 = vsel %vm2133_vm0, %v2163_v30, %v2164_v17 }
 0x154   : > { %7920 = vmatprep.subr.bf16.mxu1 %v8578_v61  ;;  %v2177_v27 = vsel %vm2133_vm0, %v2175_v40, %v2176_v57  ;;  %v2178_v41 = vor.u32 %v2176_v57, %v10730_v38  ;;  %v2190_v40 = vor.u32 %v2188_v7, %v10738_v4  ;;  %v8555_v57 = vld [vmem:[%s8678_s20 + $0x4c] sm:$0xff]  }
 0x155   : > { %v5234_v3 = vshrl.u32 %v8555_v57, 16 }
 0x156   : > { %7555 = vmatmul.mubr.bf16.gmra.mrb[4].mxu1 %v2156_v33  ;;  %v8551_v33 = vld [vmem:[%s8678_s20 + $0x2c] sm:$0xff]   ;;  %v2180_v30 = vsel %vm2133_vm0, %v2178_v41, %v2179_v44  ;;  %v2192_v55 = vsel %vm2133_vm0, %v2190_v40, %v2191_v34 }
 0x157   : > { %7835 = vmatmul.mubr.bf16.gmra.mrb[28].mxu0 %v9693_v5  ;;  %7558 = vmatprep.mubr.bf16.mxu1 %v2159_v22  ;;  %v2162_v5 = vsel %vm2133_vm0, %v2160_v36, %v2161_v46  ;;  %v10731_v22 = vshrl.u32 %v9859_v56, 16  ;;  %v2182_v46 = vrot.slane %v10732_v58, 1  ;;  %v5192_v36 = vrot.slane %v5190_v54, 1  ;;  %v8556_v54 = vld [vmem:[%s8678_s20 + $0x54] sm:$0xff]  }
 0x158   : > { %7838 = vmatprep.mubr.bf16.mxu0 %v9710_v2  ;;  %7928 = vmatpush3.bf16.msra.mxu1 %v8578_v61  ;;  %v8580_v2 = vld [vmem:[%s10508_s1 + $0x160] sm:$0xff]   ;;  %v10733_v56 = vshll.u32 %v9889_v0, 16 }
 0x159   : > { %7921 = vmatprep.subr.bf16.mxu1 %v8579_v23  ;;  %v2181_v61 = vor.u32 %v2179_v44, %v10731_v22  ;;  %v5196_v14 = vor.u32 %v5194_v32, %v5192_v36  ;;  %v5230_v44 = vshll.u32 %v8555_v57, 16  ;;  %v5238_v22 = vshll.u32 %v8556_v54, 16 }
 0x15a   : > { %v10744_v32 = vshll.u32 %v9957_v29, 16  ;;  %v10749_v57 = vshll.u32 %v9994_v1, 16 }
 0x15b   : > { %v2183_v49 = vsel %vm2133_vm0, %v2181_v61, %v2182_v46  ;;  %v10741_v61 = vshll.u32 %v9944_v62, 16 }
 0x15c   : > { %7929 = vmatpush3.bf16.msra.mxu1 %v8579_v23  ;;  %v5206_v23 = vshll.u32 %v8552_v18, 16 }
 0x15d   : > { %7922 = vmatprep.subr.bf16.mxu1 %v8580_v2  ;;  %v2197_v58 = vrot.slane %v10741_v61, 1 }
 0x15e   : > { %7559 = vmatmul.mubr.bf16.gmra.mrb[8].mxu1 %v2162_v5  ;;  %v2185_v5 = vrot.slane %v10733_v56, 1  ;;  %v8558_v56 = vld [vmem:[%s8678_s20 + $0x64] sm:$0xff]  }
 0x15f   : > { %7839 = vmatmul.mubr.bf16.gmra.mrb[32].mxu0 %v9717_v6  ;;  %7562 = vmatprep.mubr.bf16.mxu1 %v2165_v26  ;;  %v2168_v6 = vsel %vm2133_vm0, %v2166_v35, %v2167_v43  ;;  %v10734_v26 = vshrl.u32 %v9879_v25, 16  ;;  %v8553_v43 = vld [vmem:[%s8678_s20 + $0x3c] sm:$0xff]   ;;  %v10735_v35 = vshrl.u32 %v9889_v0, 16  ;;  %v5258_v4 = vshrl.u32 %v8558_v56, 16 }
 0x160   : > { %7842 = vmatprep.mubr.bf16.mxu0 %v9739_v28  ;;  %7930 = vmatpush3.bf16.msra.mxu1 %v8580_v2  ;;  %v8582_v28 = vld [vmem:[%s10508_s1 + $0x170] sm:$0xff]   ;;  %v5218_v0 = vshrl.u32 %v8553_v43, 16 }
 0x161   : > { %7923 = vmatprep.subr.bf16.mxu1 %v8581_v48  ;;  %v2184_v2 = vor.u32 %v2182_v46, %v10734_v26  ;;  %v2187_v42 = vor.u32 %v2185_v5, %v10735_v35  ;;  %v10742_v46 = vshrl.u32 %v9936_v53, 16  ;;  %v10745_v35 = vshll.u32 %v9965_v21, 16 }
 0x164   : > { %7931 = vmatpush3.bf16.msra.mxu1 %v8581_v48  ;;  %v5208_v48 = vrot.slane %v5206_v23, 1  ;;  %v5240_v23 = vrot.slane %v5238_v22, 1 }
 0x165   : > { %7924 = vmatprep.subr.bf16.mxu1 %v8582_v28 }
 0x166   : > { %7563 = vmatmul.mubr.bf16.gmra.mrb[12].mxu1 %v2168_v6  ;;  %v8554_v6 = vld [vmem:[%s8678_s20 + $0x44] sm:$0xff]  }
 0x167   : > { %7843 = vmatmul.mubr.bf16.gmra.mrb[36].mxu0 %v9757_v11  ;;  %7566 = vmatprep.mubr.bf16.mxu1 %v2171_v9  ;;  %v8583_v11 = vld [vmem:[%s10508_s1 + $0x178] sm:$0xff]   ;;  %v5214_v9 = vshll.u32 %v8553_v43, 16  ;;  %v5222_v51 = vshll.u32 %v8554_v6, 16  ;;  %v5226_v41 = vshrl.u32 %v8554_v6, 16 }
 0x168   : > { %7846 = vmatprep.mubr.bf16.mxu0 %v9779_v31  ;;  %7932 = vmatpush3.bf16.msra.mxu1 %v8582_v28  ;;  %v5183_v31 = vshrl.u32 %v8549_v63, 16  ;;  %v2189_v63 = vsel %vm2133_vm0, %v2187_v42, %v2188_v7  ;;  %v5210_v28 = vshrl.u32 %v8552_v18, 16  ;;  %v8557_v18 = vld [vmem:[%s8678_s20 + $0x5c] sm:$0xff]   ;;  %v2203_v42 = vrot.slane %v10745_v35, 1 }
 0x169   : > { %7925 = vmatprep.subr.bf16.mxu1 %v8583_v11  ;;  %v5216_v45 = vrot.slane %v5214_v9, 1  ;;  %v5246_v26 = vshll.u32 %v8557_v18, 16 }
 0x16a   : > { %v5188_v12 = vor.u32 %v5187_v52, %v5183_v31  ;;  %v5212_v8 = vor.u32 %v5210_v28, %v5208_v48  ;;  %v5224_v52 = vrot.slane %v5222_v51, 1 }
 0x16b   : > { %v5220_v31 = vor.u32 %v5218_v0, %v5216_v45  ;;  %v8560_v0 = vld [vmem:[%s8678_s20 + $0x74] sm:$0xff]  }
 0x16c   : > { %7933 = vmatpush3.bf16.msra.mxu1 %v8583_v11  ;;  %v5193_v17 = vsel %vm2133_vm0, %v5188_v12, %v5192_v36  ;;  %v2193_v11 = vor.u32 %v2191_v34, %v10739_v20  ;;  %v5217_v16 = vsel %vm2133_vm0, %v5212_v8, %v5216_v45  ;;  %v5232_v36 = vrot.slane %v5230_v44, 1 }
 0x16d   : > { %v5270_v45 = vshll.u32 %v8560_v0, 16  ;;  %v2209_v8 = vrot.slane %v10749_v57, 1  ;;  %v10750_v20 = vshrl.u32 %v9986_v19, 16  ;;  %v10752_v44 = vshll.u32 %v10014_v10, 16  ;;  %v8588_v57 = vld [vmem:[%s8678_s20 + $0x90] sm:$0xff]  }
 0x16e   : > { %7567 = vmatmul.mubr.bf16.gmra.mrb[16].mxu1 %v2174_v47  ;;  %v10740_v47 = vshll.u32 %v9936_v53, 16  ;;  %v5274_v22 = vshrl.u32 %v8560_v0, 16 }
 0x16f   : > { %7847 = vmatmul.mubr.bf16.gmra.mrb[40].mxu0 %v9795_v39  ;;  %7570 = vmatprep.mubr.bf16.mxu1 %v2177_v27  ;;  %v5198_v39 = vshll.u32 %v8551_v33, 16 }
 0x170   : > { %7850 = vmatprep.mubr.bf16.mxu0 %v9818_v15  ;;  %v5202_v15 = vshrl.u32 %v8551_v33, 16  ;;  %v2194_v27 = vrot.slane %v10740_v47, 1  ;;  %v5225_v33 = vsel %vm2133_vm0, %v5220_v31, %v5224_v52  ;;  %v8562_v31 = vld [vmem:[%s8678_s20 + $0x7c] sm:$0xff]  }
 0x171   : > { %v5200_v37 = vrot.slane %v5198_v39, 1  ;;  %v10743_v39 = vshrl.u32 %v9944_v62, 16  ;;  %v5250_v62 = vshrl.u32 %v8557_v18, 16  ;;  %v5278_v61 = vshll.u32 %v8562_v31, 16 }
 0x172   : > { %v2195_v38 = vsel %vm2133_vm0, %v2193_v11, %v2194_v27  ;;  %v2196_v12 = vor.u32 %v2194_v27, %v10742_v46  ;;  %v8561_v27 = vld [vmem:[%s8678_s20 + $0xc4] ss:$0 sps:$4 sm:$0x11]  }
 0x173   : > { %v5204_v24 = vor.u32 %v5202_v15, %v5200_v37  ;;  %v5201_v25 = vsel %vm2133_vm0, %v5196_v14, %v5200_v37  ;;  %v5236_v15 = vor.u32 %v5234_v3, %v5232_v36  ;;  %v5242_v37 = vshrl.u32 %v8556_v54, 16 }
 0x174   : > { %v5254_v14 = vshll.u32 %v8558_v56, 16  ;;  %v10751_v54 = vshrl.u32 %v9994_v1, 16  ;;  %v8585_v1 = vld [vmem:[%s8678_s20 + $0x78] sm:$0xff]   ;;  %v5280_v56 = vrot.slane %v5278_v61, 1  ;;  %v8568_v61 = vld [vmem:[%s8678_s20 + $0xac] sm:$0xff]  }
 0x175   : > { %v5209_v50 = vsel %vm2133_vm0, %v5204_v24, %v5208_v48  ;;  %v5241_v43 = vsel %vm2133_vm0, %v5236_v15, %v5240_v23  ;;  %v5248_v24 = vrot.slane %v5246_v26, 1  ;;  %v8559_v48 = vld [vmem:[%s8678_s20 + $0x6c] sm:$0xff]   ;;  %v5244_v6 = vor.u32 %v5242_v37, %v5240_v23 }
 0x176   : > { %7571 = vmatmul.mubr.bf16.gmra.mrb[20].mxu1 %v2180_v30  ;;  %v5228_v30 = vor.u32 %v5226_v41, %v5224_v52  ;;  %v5262_v59 = vshll.u32 %v8559_v48, 16  ;;  %v5272_v41 = vrot.slane %v5270_v45, 1  ;;  %v2971_v18 = vshll.u32 %v8585_v1, 16  ;;  %v10754_v26 = vld [vmem:[#allocation9_spill] sm:$0xff]  ;;  %v8567_v45 = vld [vmem:[%s8678_s20 + $0xa4] sm:$0xff]  }
 0x177   : > { %7851 = vmatmul.mubr.bf16.gmra.mrb[44].mxu0 %v9832_v60  ;;  %7574 = vmatprep.mubr.bf16.mxu1 %v2183_v49  ;;  %v2186_v60 = vsel %vm2133_vm0, %v2184_v2, %v2185_v5  ;;  %v2199_v49 = vor.u32 %v2197_v58, %v10743_v39  ;;  %v2198_v5 = vsel %vm2133_vm0, %v2196_v12, %v2197_v58  ;;  %v8584_v12 = vld [vmem:[%s8678_s20 + $0x70] sm:$0xff]   ;;  %v5282_v39 = vshrl.u32 %v8562_v31, 16 }
 0x178   : > { %7870 = vmatprep.mubr.bf16.mxu0 %v5193_v17  ;;  %v2200_v17 = vrot.slane %v10744_v32, 1  ;;  %v5233_v53 = vsel %vm2133_vm0, %v5228_v30, %v5232_v36  ;;  %v5252_v28 = vor.u32 %v5250_v62, %v5248_v24  ;;  %v5249_v29 = vsel %vm2133_vm0, %v5244_v6, %v5248_v24  ;;  %v8565_v62 = vld [vmem:[%s8678_s20 + $0x94] sm:$0xff]  }
 0x179   : > { %v5264_v47 = vrot.slane %v5262_v59, 1  ;;  %v2967_v36 = vshrl.u32 %v8584_v12, 16  ;;  %v10753_v32 = vshrl.u32 %v10014_v10, 16  ;;  %v5276_v23 = vor.u32 %v5274_v22, %v5272_v41  ;;  %v8566_v59 = vld [vmem:[%s8678_s20 + $0x9c] sm:$0xff]  }
 0x17a   : > { %v2201_v2 = vsel %vm2133_vm0, %v2199_v49, %v2200_v17  ;;  %v2202_v7 = vor.u32 %v2200_v17, %v10746_v13  ;;  %v5284_v37 = vor.u32 %v5282_v39, %v5280_v56 }
 0x17b   : > { %v5281_v10 = vsel %vm2133_vm0, %v5276_v23, %v5280_v56  ;;  %v5322_v23 = vshrl.u32 %v8567_v45, 16 }
 0x17c   : > { %v2204_v51 = vsel %vm2133_vm0, %v2202_v7, %v2203_v42 }
 0x17e   : > { %7575 = vmatmul.mubr.bf16.gmra.mrb[24].mxu1 %v2186_v60  ;;  %v10747_v60 = vshrl.u32 %v9965_v21, 16  ;;  %v5266_v21 = vshrl.u32 %v8559_v48, 16 }
 0x17f   : > { %7871 = vmatmul.mubr.bf16.vlgmr.msra.gmra.mrb[0].mxu0 %v5201_v25  ;;  %7578 = vmatprep.mubr.bf16.mxu1 %v2189_v63  ;;  %v10748_v25 = vshll.u32 %v9986_v19, 16  ;;  %v2216_v19 = vshll.u32 %v8561_v27, 16  ;;  %v5310_v27 = vshll.u32 %v8566_v59, 16 }
 0x180   : > { %7874 = vmatprep.mubr.bf16.mxu0 %v5209_v50  ;;  %v2205_v9 = vor.u32 %v2203_v42, %v10747_v60  ;;  %v5256_v50 = vrot.slane %v5254_v14, 1  ;;  %v8586_v14 = vld [vmem:[%s8678_s20 + $0x80] sm:$0xff]   ;;  %v2975_v42 = vshrl.u32 %v8585_v1, 16  ;;  %v8587_v60 = vld [vmem:[%s8678_s20 + $0x88] sm:$0xff]   ;;  %v8569_v1 = vld [vmem:[%s8678_s20 + $0xb4] sm:$0xff]  }
 0x181   : > { %v2206_v63 = vrot.slane %v10748_v25, 1  ;;  %v2218_v15 = vrot.slane %v2216_v19, 1  ;;  %v2979_v35 = vshll.u32 %v8586_v14, 16  ;;  %v2983_v6 = vshrl.u32 %v8586_v14, 16 }
 0x182   : > { %v5257_v40 = vsel %vm2133_vm0, %v5252_v28, %v5256_v50  ;;  %v5260_v52 = vor.u32 %v5258_v4, %v5256_v50  ;;  %v5302_v28 = vshll.u32 %v8565_v62, 16  ;;  %v5312_v22 = vrot.slane %v5310_v27, 1 }
 0x183   : > { %v2207_v34 = vsel %vm2133_vm0, %v2205_v9, %v2206_v63  ;;  %v2208_v11 = vor.u32 %v2206_v63, %v10750_v20  ;;  %v2987_v9 = vshll.u32 %v8587_v60, 16  ;;  %v2981_v50 = vrot.slane %v2979_v35, 1  ;;  %v8570_v35 = vld [vmem:[%s8678_s20 + $0xbc] sm:$0xff]  }
 0x184   : > { %v5265_v58 = vsel %vm2133_vm0, %v5260_v52, %v5264_v47 }
 0x185   : > { %v2210_v3 = vsel %vm2133_vm0, %v2208_v11, %v2209_v8  ;;  %v2989_v4 = vrot.slane %v2987_v9, 1  ;;  %v2991_v11 = vshrl.u32 %v8587_v60, 16 }
 0x186   : > { %7579 = vmatmul.mubr.bf16.gmra.mrb[28].mxu1 %v2192_v55  ;;  %v2211_v55 = vor.u32 %v2209_v8, %v10751_v54  ;;  %v2995_v8 = vshll.u32 %v8588_v57, 16  ;;  %v2999_v54 = vshrl.u32 %v8588_v57, 16 }
 0x187   : > { %7875 = vmatmul.mubr.bf16.gmra.mrb[4].mxu0 %v5217_v16  ;;  %7582 = vmatprep.mubr.bf16.mxu1 %v2195_v38  ;;  %v2212_v16 = vrot.slane %v10752_v44, 1  ;;  %v5268_v38 = vor.u32 %v5266_v21, %v5264_v47  ;;  %v5304_v21 = vrot.slane %v5302_v28, 1  ;;  %v5306_v47 = vshrl.u32 %v8565_v62, 16 }
 0x188   : > { %7878 = vmatprep.mubr.bf16.mxu0 %v5225_v33  ;;  %v8563_v33 = vld [vmem:[%s8678_s20 + $0x84] sm:$0xff]   ;;  %v5342_v28 = vshll.u32 %v8570_v35, 16 }
 0x189   : > { %v2213_v46 = vsel %vm2133_vm0, %v2211_v55, %v2212_v16  ;;  %v5273_v30 = vsel %vm2133_vm0, %v5268_v38, %v5272_v41  ;;  %v5286_v49 = vshll.u32 %v8563_v33, 16  ;;  %v2214_v17 = vor.u32 %v2212_v16, %v10753_v32  ;;  %v8589_v55 = vld [vmem:[%s8678_s20 + $0x98] sm:$0xff]  }
 0x18a   : > { %v5290_v48 = vshrl.u32 %v8563_v33, 16  ;;  %v3003_v44 = vshll.u32 %v8589_v55, 16  ;;  %v5314_v38 = vshrl.u32 %v8566_v59, 16  ;;  %v5318_v41 = vshll.u32 %v8567_v45, 16  ;;  %v8593_v59 = vld [vmem:[%s8678_s20 + $0xb8] sm:$0xff]  }
 0x18b   : > { %v2219_v13 = vsel %vm2133_vm0, %v2214_v17, %v2218_v15  ;;  %v2997_v33 = vrot.slane %v2995_v8, 1  ;;  %v5308_v19 = vor.u32 %v5306_v47, %v5304_v21  ;;  %v3007_v32 = vshrl.u32 %v8589_v55, 16 }
 0x18c   : > { %v5316_v12 = vor.u32 %v5314_v38, %v5312_v22  ;;  %v5326_v17 = vshll.u32 %v8568_v61, 16  ;;  %v5344_v8 = vrot.slane %v5342_v28, 1  ;;  %v3039_v38 = vshrl.u32 %v8593_v59, 16 }
 0x18e   : > { %7583 = vmatmul.mubr.bf16.gmra.mrb[32].mxu1 %v2198_v5  ;;  %v8564_v5 = vld [vmem:[%s8678_s20 + $0x8c] sm:$0xff]   ;;  %v5328_v14 = vrot.slane %v5326_v17, 1  ;;  %v8575_v17 = vld [vmem:[%s8678_s20 + $0xdc] ss:$0 sps:$4 sm:$0x11]  }
 0x18f   : > { %7879 = vmatmul.mubr.bf16.gmra.mrb[8].mxu0 %v5233_v53  ;;  %7586 = vmatprep.mubr.bf16.mxu1 %v2201_v2  ;;  %v2969_v53 = vor.u32 %v2967_v36, %v10754_v26  ;;  %v2973_v2 = vrot.slane %v2971_v18, 1  ;;  %v5294_v7 = vshll.u32 %v8564_v5, 16  ;;  %v5298_v63 = vshrl.u32 %v8564_v5, 16  ;;  %v8590_v18 = vld [vmem:[%s8678_s20 + $0xa0] sm:$0xff]   ;;  %v8591_v5 = vld [vmem:[%s8678_s20 + $0xa8] sm:$0xff]  }
 0x190   : > { %7882 = vmatprep.mubr.bf16.mxu0 %v5241_v43  ;;  %v5288_v43 = vrot.slane %v5286_v49, 1  ;;  %v5320_v36 = vrot.slane %v5318_v41, 1  ;;  %v5313_v49 = vsel %vm2133_vm0, %v5308_v19, %v5312_v22  ;;  %v3015_v56 = vshrl.u32 %v8590_v18, 16  ;;  %v8595_v22 = vld [vmem:[%s8678_s20 + $0xc8] sm:$0xff]  }
 0x191   : > { %v2974_v24 = vsel %vm2133_vm0, %v2969_v53, %v2973_v2  ;;  %v2977_v0 = vor.u32 %v2975_v42, %v2973_v2  ;;  %v3019_v26 = vshll.u32 %v8591_v5, 16  ;;  %v5330_v2 = vshrl.u32 %v8568_v61, 16 }
 0x192   : > { %v5289_v25 = vsel %vm2133_vm0, %v5284_v37, %v5288_v43  ;;  %v5321_v53 = vsel %vm2133_vm0, %v5316_v12, %v5320_v36  ;;  %v5334_v37 = vshll.u32 %v8569_v1, 16  ;;  %v5324_v42 = vor.u32 %v5322_v23, %v5320_v36 }
 0x193   : > { %v2982_v20 = vsel %vm2133_vm0, %v2977_v0, %v2981_v50  ;;  %v3051_v61 = vshll.u32 %v8595_v22, 16 }
 0x196   : > { %7587 = vmatmul.mubr.bf16.gmra.mrb[36].mxu1 %v2204_v51  ;;  %v5296_v51 = vrot.slane %v5294_v7, 1  ;;  %v5332_v7 = vor.u32 %v5330_v2, %v5328_v14 }
 0x197   : > { %7883 = vmatmul.mubr.bf16.gmra.mrb[12].mxu0 %v5249_v29  ;;  %7590 = vmatprep.mubr.bf16.mxu1 %v2207_v34  ;;  %v5292_v29 = vor.u32 %v5290_v48, %v5288_v43  ;;  %v2985_v34 = vor.u32 %v2983_v6, %v2981_v50  ;;  %v8571_v48 = vld [vmem:[%s8678_s20 + $0xc4] sm:$0xff]   ;;  %v8592_v6 = vld [vmem:[%s8678_s20 + $0xb0] sm:$0xff]   ;;  %v5329_v50 = vsel %vm2133_vm0, %v5324_v42, %v5328_v14 }
 0x198   : > { %7886 = vmatprep.mubr.bf16.mxu0 %v5257_v40  ;;  %v5300_v40 = vor.u32 %v5298_v63, %v5296_v51  ;;  %v3027_v60 = vshll.u32 %v8592_v6, 16  ;;  %v5338_v63 = vshrl.u32 %v8569_v1, 16 }
 0x199   : > { %v5297_v31 = vsel %vm2133_vm0, %v5292_v29, %v5296_v51  ;;  %v2990_v52 = vsel %vm2133_vm0, %v2985_v34, %v2989_v4  ;;  %v3031_v51 = vshrl.u32 %v8592_v6, 16  ;;  %v3035_v29 = vshll.u32 %v8593_v59, 16 }
 0x19a   : > { %v5305_v16 = vsel %vm2133_vm0, %v5300_v40, %v5304_v21  ;;  %v5350_v40 = vshll.u32 %v8571_v48, 16  ;;  %v3029_v21 = vrot.slane %v3027_v60, 1 }
 0x19b   : > { %v3037_v47 = vrot.slane %v3035_v29, 1 }
 0x19d   : > { %v3041_v1 = vor.u32 %v3039_v38, %v3037_v47 }
 0x19e   : > { %7591 = vmatmul.mubr.bf16.gmra.mrb[40].mxu1 %v2210_v3  ;;  %v2993_v3 = vor.u32 %v2991_v11, %v2989_v4  ;;  %v5346_v4 = vshrl.u32 %v8570_v35, 16  ;;  %v3033_v11 = vor.u32 %v3031_v51, %v3029_v21 }
 0x19f   : > { %7887 = vmatmul.mubr.bf16.gmra.mrb[16].mxu0 %v5265_v58  ;;  %7594 = vmatprep.mubr.bf16.mxu1 %v2213_v46  ;;  %v3001_v58 = vor.u32 %v2999_v54, %v2997_v33  ;;  %v3005_v46 = vrot.slane %v3003_v44, 1  ;;  %v8594_v54 = vld [vmem:[%s8678_s20 + $0xc0] sm:$0xff]  }
 0x1a0   : > { %7890 = vmatprep.mubr.bf16.mxu0 %v5273_v30  ;;  %v3011_v30 = vshll.u32 %v8590_v18, 16  ;;  %v2998_v39 = vsel %vm2133_vm0, %v2993_v3, %v2997_v33  ;;  %v5348_v27 = vor.u32 %v5346_v4, %v5344_v8  ;;  %v3043_v55 = vshll.u32 %v8594_v54, 16 }
 0x1a1   : > { %v3006_v15 = vsel %vm2133_vm0, %v3001_v58, %v3005_v46  ;;  %v3009_v62 = vor.u32 %v3007_v32, %v3005_v46  ;;  %v3038_v33 = vsel %vm2133_vm0, %v3033_v11, %v3037_v47  ;;  %v5354_v3 = vshrl.u32 %v8571_v48, 16 }
 0x1a2   : > { %v3013_v43 = vrot.slane %v3011_v30, 1  ;;  %v3047_v19 = vshrl.u32 %v8594_v54, 16  ;;  %v3045_v36 = vrot.slane %v3043_v55, 1  ;;  %v8574_v30 = vld [vmem:[%s8678_s20 + $0xd0] ss:$0 sps:$4 sm:$0x11]  }
 0x1a3   : > { %v3053_v32 = vrot.slane %v3051_v61, 1  ;;  %v5819_v55 = vld [vmem:[%s10509_s2] sm:$0xff] }
 0x1a4   : > { %v3014_v9 = vsel %vm2133_vm0, %v3009_v62, %v3013_v43 }
 0x1a6   : > { %7595 = vmatmul.mubr.bf16.gmra.mrb[44].mxu1 %v2219_v13  ;;  %v3017_v13 = vor.u32 %v3015_v56, %v3013_v43  ;;  %v3046_v56 = vsel %vm2133_vm0, %v3041_v1, %v3045_v36  ;;  %v5374_v43 = vshll.u32 %v8575_v17, 16 }
 0x1a7   : > { %7891 = vmatmul.mubr.bf16.gmra.mrb[20].mxu0 %v5281_v10  ;;  %7638 = vmatprep.mubr.bf16.mxu1 %v2974_v24  ;;  %v3021_v10 = vrot.slane %v3019_v26, 1  ;;  %v5336_v24 = vrot.slane %v5334_v37, 1  ;;  %v3059_v26 = vshll.u32 %v8574_v30, 16 }
 0x1a8   : > { %7894 = vmatprep.mubr.bf16.mxu0 %v5289_v25  ;;  %v3023_v25 = vshrl.u32 %v8591_v5, 16  ;;  %v3055_v5 = vshrl.u32 %v8595_v22, 16 }
 0x1a9   : > { %v3022_v0 = vsel %vm2133_vm0, %v3017_v13, %v3021_v10  ;;  %v5337_v34 = vsel %vm2133_vm0, %v5332_v7, %v5336_v24  ;;  %v5340_v57 = vor.u32 %v5338_v63, %v5336_v24  ;;  %v3061_v35 = vrot.slane %v3059_v26, 1  ;;  %v5825_v26 = vld [vmem:[%s10509_s2 + $0x30] sm:$0xff] }
 0x1aa   : > { %v3025_v45 = vor.u32 %v3023_v25, %v3021_v10  ;;  %v3057_v14 = vor.u32 %v3055_v5, %v3053_v32  ;;  %v5376_v13 = vrot.slane %v5374_v43, 1 }
 0x1ac   : > { %v3030_v44 = vsel %vm2133_vm0, %v3025_v45, %v3029_v21  ;;  %v3062_v10 = vsel %vm2133_vm0, %v3057_v14, %v3061_v35  ;;  %v5824_v35 = vld [vmem:[%s10509_s2 + $0x28] sm:$0xff] }
 0x1ae   : > { %7639 = vmatmul.mubr.bf16.vlgmr.msra.gmra.mrb[24].mxu1 %v2982_v20  ;;  %v8572_v20 = vld [vmem:[%s8678_s20 + $0xcc] sm:$0xff]  }
 0x1af   : > { %7895 = vmatmul.mubr.bf16.gmra.mrb[24].mxu0 %v5297_v31  ;;  %7642 = vmatprep.mubr.bf16.mxu1 %v2990_v52  ;;  %v5352_v31 = vrot.slane %v5350_v40, 1  ;;  %v8573_v52 = vld [vmem:[%s8678_s20 + $0xd4] sm:$0xff]   ;;  %v5358_v41 = vshll.u32 %v8572_v20, 16  ;;  %v5362_v46 = vshrl.u32 %v8572_v20, 16 }
 0x1b0   : > { %7898 = vmatprep.mubr.bf16.mxu0 %v5305_v16  ;;  %v5345_v16 = vsel %vm2133_vm0, %v5340_v57, %v5344_v8  ;;  %v5366_v12 = vshll.u32 %v8573_v52, 16  ;;  %v5370_v37 = vshrl.u32 %v8573_v52, 16 }
 0x1b1   : > { %v5353_v58 = vsel %vm2133_vm0, %v5348_v27, %v5352_v31  ;;  %v5360_v18 = vrot.slane %v5358_v41, 1  ;;  %v5822_v41 = vld [vmem:[%s10509_s2 + $0x18] sm:$0xff] }
 0x1b2   : > { %v5368_v23 = vrot.slane %v5366_v12, 1 }
 0x1b4   : > { %v5372_v42 = vor.u32 %v5370_v37, %v5368_v23  ;;  %v5826_v37 = vld [vmem:[%s10509_s2 + $0x38] sm:$0xff] }
 0x1b6   : > { %7643 = vmatmul.mubr.bf16.gmra.mrb[28].mxu1 %v2998_v39  ;;  %v5356_v39 = vor.u32 %v5354_v3, %v5352_v31  ;;  %v5377_v7 = vsel %vm2133_vm0, %v5372_v42, %v5376_v13 }
 0x1b7   : > { %7899 = vmatmul.mubr.bf16.gmra.mrb[28].mxu0 %v5313_v49  ;;  %7646 = vmatprep.mubr.bf16.mxu1 %v3006_v15  ;;  %v3049_v49 = vor.u32 %v3047_v19, %v3045_v36  ;;  %v5364_v15 = vor.u32 %v5362_v46, %v5360_v18  ;;  %v5820_v19 = vld [vmem:[%s10509_s2 + $0x8] sm:$0xff] }
 0x1b8   : > { %7902 = vmatprep.mubr.bf16.mxu0 %v5321_v53  ;;  %v5361_v53 = vsel %vm2133_vm0, %v5356_v39, %v5360_v18 }
 0x1b9   : > { %v3054_v2 = vsel %vm2133_vm0, %v3049_v49, %v3053_v32  ;;  %v5369_v62 = vsel %vm2133_vm0, %v5364_v15, %v5368_v23  ;;  %v5823_v15 = vld [vmem:[%s10509_s2 + $0x20] sm:$0xff] }
 0x1be   : > { %7647 = vmatmul.mubr.bf16.gmra.mrb[32].mxu1 %v3014_v9 }
 0x1bf   : > { %7903 = vmatmul.mubr.bf16.gmra.mrb[32].mxu0 %v5329_v50  ;;  %7650 = vmatprep.mubr.bf16.mxu1 %v3022_v0 }
 0x1c0   : > { %7906 = vmatprep.mubr.bf16.mxu0 %v5337_v34 }
 0x1c6   : > { %7651 = vmatmul.mubr.bf16.gmra.mrb[36].mxu1 %v3030_v44  ;;  %v5821_v44 = vld [vmem:[%s10509_s2 + $0x10] sm:$0xff] }
 0x1c7   : > { %7907 = vmatmul.mubr.bf16.gmra.mrb[36].mxu0 %v5345_v16  ;;  %7654 = vmatprep.mubr.bf16.mxu1 %v3038_v33 }
 0x1c8   : > { %7910 = vmatprep.mubr.bf16.mxu0 %v5353_v58 }
 0x1ce   : > { %7655 = vmatmul.mubr.bf16.gmra.mrb[40].mxu1 %v3046_v56 }
 0x1cf   : > { %7911 = vmatmul.mubr.bf16.gmra.mrb[40].mxu0 %v5361_v53  ;;  %7658 = vmatprep.mubr.bf16.mxu1 %v3054_v2 }
 0x1d0   : > { %7914 = vmatprep.mubr.bf16.mxu0 %v5369_v62 }
 0x1d6   : > { %7659 = vmatmul.mubr.bf16.gmra.mrb[44].mxu1 %v3062_v10 }
 0x1d7   : > { %7915 = vmatmul.mubr.bf16.gmra.mrb[44].mxu0 %v5377_v7 }
 0x221   : > { %v7552_v24 = vpop.f32.mrb[0].mxu1 }
 0x222   : > { %v2326_v48 = vpop.f32.mrb[1].mxu1 }
 0x223   : > { %v7553_v6 = vpop.f32.mrb[2].mxu1 }
 0x224   : > { %v2329_v60 = vpop.f32.mrb[3].mxu1 }
 0x229   : > { %v7556_v9 = vpop.f32.mrb[4].mxu1 }
 0x22a   : > { %v2342_v25 = vpop.f32.mrb[5].mxu1 }
 0x22b   : > { %v7557_v63 = vpop.f32.mrb[6].mxu1 }
 0x22c   : > { %v2345_v28 = vpop.f32.mrb[7].mxu1 }
 0x231   : > { %v10275_v50 = vpop.f32.mrb[8].mxu1 }
 0x232   : > { %v10277_v0 = vpop.f32.mrb[9].mxu1 }
 0x233   : > { %v10279_v51 = vpop.f32.mrb[10].mxu1 }
 0x234   : > { %v10281_v59 = vpop.f32.mrb[11].mxu1 }
 0x239   : > { %v10283_v29 = vpop.f32.mrb[12].mxu1 }
 0x23a   : > { %v10285_v34 = vpop.f32.mrb[13].mxu1 }
 0x23b   : > { %v10287_v4 = vpop.f32.mrb[14].mxu1 }
 0x23c   : > { %v10289_v40 = vpop.f32.mrb[15].mxu1 }
 0x241   : > { %v10291_v21 = vpop.f32.mrb[16].mxu1 }
 0x242   : > { %v10293_v45 = vpop.f32.mrb[17].mxu1 }
 0x243   : > { %v10295_v57 = vpop.f32.mrb[18].mxu1 }
 0x244   : > { %v10297_v8 = vpop.f32.mrb[19].mxu1 }
 0x249   : > { %v10299_v20 = vpop.f32.mrb[20].mxu1 }
 0x24a   : > { %v10301_v11 = vpop.f32.mrb[21].mxu1 }
 0x24b   : > { %v10303_v47 = vpop.f32.mrb[22].mxu1 }
 0x24c   : > { %v10305_v27 = vpop.f32.mrb[23].mxu1 }
 0x252   : > { %v7872_v31 = vpop.f32.mrb[0].mxu0 }
 0x253   : > { %v7934_v52 = vadd.f32 %v7872_v31, %v7552_v24  ;;  %v5484_v54 = vpop.f32.mrb[1].mxu0 }
 0x254   : > { %v7935_v16 = vadd.f32 %v5484_v54, %v2326_v48  ;;  %v7873_v38 = vpop.f32.mrb[2].mxu0 }
 0x255   : > { %v7936_v33 = vadd.f32 %v7873_v38, %v7553_v6  ;;  %v5487_v3 = vpop.f32.mrb[3].mxu0  ;;  %v5869_v58 = vmul.f32 %v7934_v52, %v5821_v44 }
 0x256   : > { %v5867_v22 = vmul.f32 %v7935_v16, %v5819_v55  ;;  %v7937_v61 = vadd.f32 %v5487_v3, %v2329_v60 }
 0x257   : > { %v5870_v46 = vmul.f32 %v7936_v33, %v5822_v41  ;;  %v5971_v23 = vmul.f32 %v5869_v58, %v5869_v58 }
 0x258   : > { %v5868_v12 = vmul.f32 %v7937_v61, %v5820_v19  ;;  %v5969_v1 = vmul.f32 %v5867_v22, %v5867_v22  ;;  %v5829_v19 = vld [vmem:[%s10509_s2 + $0x50] sm:$0xff] }
 0x259   : > { %v6919_v36 = vpack.c.bf16 %v5870_v46, %v5869_v58  ;;  %v5972_v43 = vmul.f32 %v5870_v46, %v5870_v46 }
 0x25a   : > { %v5915_v18 = vadd.f32 %v5868_v12, %v5867_v22  ;;  %v5970_v30 = vmul.f32 %v5868_v12, %v5868_v12  ;;  %v6914_v39 = vpack.c.bf16 %v5868_v12, %v5867_v22  ;;  %v7876_v49 = vpop.f32.mrb[4].mxu0 }
 0x25b   : > { %7031 = vst [vmem:[%s10323_s14 + $0x8] sm:$0xff] %v6919_v36   ;;  %v7938_v32 = vadd.f32 %v7876_v49, %v7556_v9  ;;  %v5500_v17 = vpop.f32.mrb[5].mxu0  ;;  %v5828_v36 = vld [vmem:[%s10509_s2 + $0x48] sm:$0xff] }
 0x25c   : > { %v5916_v56 = vadd.f32 %v5915_v18, %v5869_v58  ;;  %v6017_v5 = vadd.f32 %v5970_v30, %v5969_v1  ;;  %6915 = vst [vmem:[%s10323_s14] sm:$0xff] %v6914_v39   ;;  %v7939_v53 = vadd.f32 %v5500_v17, %v2342_v25  ;;  %v7877_v2 = vpop.f32.mrb[6].mxu0 }
 0x25d   : > { %v7940_v62 = vadd.f32 %v7877_v2, %v7557_v63  ;;  %v5503_v14 = vpop.f32.mrb[7].mxu0  ;;  %v5873_v24 = vmul.f32 %v7938_v32, %v5825_v26 }
 0x25e   : > { %v6018_v42 = vadd.f32 %v6017_v5, %v5971_v23  ;;  %v5871_v13 = vmul.f32 %v7939_v53, %v5823_v15  ;;  %v5917_v10 = vadd.f32 %v5916_v56, %v5870_v46  ;;  %v7941_v7 = vadd.f32 %v5503_v14, %v2345_v28  ;;  %v5827_v28 = vld [vmem:[%s10509_s2 + $0x40] sm:$0xff] }
 0x25f   : > { %v5874_v48 = vmul.f32 %v7940_v62, %v5826_v37  ;;  %v5975_v41 = vmul.f32 %v5873_v24, %v5873_v24 }
 0x260   : > { %v5918_v6 = vadd.f32 %v5917_v10, %v5871_v13  ;;  %v5973_v60 = vmul.f32 %v5871_v13, %v5871_v13  ;;  %v6019_v9 = vadd.f32 %v6018_v42, %v5972_v43  ;;  %v5872_v25 = vmul.f32 %v7941_v7, %v5824_v35  ;;  %v5833_v42 = vld [vmem:[%s10509_s2 + $0x70] sm:$0xff] }
 0x261   : > { %v6929_v31 = vpack.c.bf16 %v5874_v48, %v5873_v24  ;;  %v5976_v58 = vmul.f32 %v5874_v48, %v5874_v48 }
 0x262   : > { %v6020_v52 = vadd.f32 %v6019_v9, %v5973_v60  ;;  %v5919_v63 = vadd.f32 %v5918_v6, %v5872_v25  ;;  %v5974_v54 = vmul.f32 %v5872_v25, %v5872_v25  ;;  %v6924_v55 = vpack.c.bf16 %v5872_v25, %v5871_v13  ;;  %v7880_v44 = vpop.f32.mrb[8].mxu0  ;;  %v5832_v6 = vld [vmem:[%s10509_s2 + $0x68] sm:$0xff] }
 0x263   : > { %7033 = vst [vmem:[%s10323_s14 + $0x18] sm:$0xff] %v6929_v31   ;;  %v7942_v16 = vadd.f32 %v7880_v44, %v10275_v50  ;;  %v5516_v38 = vpop.f32.mrb[9].mxu0  ;;  %v5830_v50 = vld [vmem:[%s10509_s2 + $0x58] sm:$0xff] }
 0x264   : > { %v5920_v33 = vadd.f32 %v5919_v63, %v5873_v24  ;;  %v6021_v3 = vadd.f32 %v6020_v52, %v5974_v54  ;;  %7032 = vst [vmem:[%s10323_s14 + $0x10] sm:$0xff] %v6924_v55   ;;  %v7943_v22 = vadd.f32 %v5516_v38, %v10277_v0  ;;  %v7881_v61 = vpop.f32.mrb[10].mxu0 }
 0x265   : > { %v7944_v46 = vadd.f32 %v7881_v61, %v10279_v51  ;;  %v5519_v12 = vpop.f32.mrb[11].mxu0  ;;  %v5877_v0 = vmul.f32 %v7942_v16, %v5829_v19 }
 0x266   : > { %v6022_v1 = vadd.f32 %v6021_v3, %v5975_v41  ;;  %v5875_v18 = vmul.f32 %v7943_v22, %v5827_v28  ;;  %v5921_v30 = vadd.f32 %v5920_v33, %v5874_v48  ;;  %v7945_v39 = vadd.f32 %v5519_v12, %v10281_v59  ;;  %v5831_v59 = vld [vmem:[%s10509_s2 + $0x60] sm:$0xff] }
 0x267   : > { %v5878_v49 = vmul.f32 %v7944_v46, %v5830_v50  ;;  %v5979_v62 = vmul.f32 %v5877_v0, %v5877_v0 }
 0x268   : > { %v5922_v32 = vadd.f32 %v5921_v30, %v5875_v18  ;;  %v5977_v17 = vmul.f32 %v5875_v18, %v5875_v18  ;;  %v6023_v15 = vadd.f32 %v6022_v1, %v5976_v58  ;;  %v5876_v23 = vmul.f32 %v7945_v39, %v5828_v36  ;;  %v5837_v58 = vld [vmem:[%s10509_s2 + $0x90] sm:$0xff]  ;;  %v5836_v30 = vld [vmem:[%s10509_s2 + $0x88] sm:$0xff] }
 0x269   : > { %v6939_v56 = vpack.c.bf16 %v5878_v49, %v5877_v0  ;;  %v5980_v7 = vmul.f32 %v5878_v49, %v5878_v49 }
 0x26a   : > { %v6024_v51 = vadd.f32 %v6023_v15, %v5977_v17  ;;  %v5923_v5 = vadd.f32 %v5922_v32, %v5876_v23  ;;  %v5978_v26 = vmul.f32 %v5876_v23, %v5876_v23  ;;  %v6934_v53 = vpack.c.bf16 %v5876_v23, %v5875_v18  ;;  %v7884_v2 = vpop.f32.mrb[12].mxu0 }
 0x26b   : > { %7035 = vst [vmem:[%s10323_s14 + $0x28] sm:$0xff] %v6939_v56   ;;  %v7946_v37 = vadd.f32 %v7884_v2, %v10283_v29  ;;  %v5532_v43 = vpop.f32.mrb[13].mxu0  ;;  %v5834_v29 = vld [vmem:[%s10509_s2 + $0x78] sm:$0xff] }
 0x26c   : > { %v5924_v14 = vadd.f32 %v5923_v5, %v5877_v0  ;;  %v6025_v35 = vadd.f32 %v6024_v51, %v5978_v26  ;;  %7034 = vst [vmem:[%s10323_s14 + $0x20] sm:$0xff] %v6934_v53   ;;  %v7947_v13 = vadd.f32 %v5532_v43, %v10285_v34  ;;  %v7885_v10 = vpop.f32.mrb[14].mxu0 }
 0x26d   : > { %v7948_v24 = vadd.f32 %v7885_v10, %v10287_v4  ;;  %v5535_v48 = vpop.f32.mrb[15].mxu0  ;;  %v5881_v34 = vmul.f32 %v7946_v37, %v5833_v42  ;;  %v5841_v42 = vld [vmem:[%s10509_s2 + $0xb0] sm:$0xff] }
 0x26e   : > { %v6026_v60 = vadd.f32 %v6025_v35, %v5979_v62  ;;  %v5879_v9 = vmul.f32 %v7947_v13, %v5831_v59  ;;  %v5925_v25 = vadd.f32 %v5924_v14, %v5878_v49  ;;  %v7949_v31 = vadd.f32 %v5535_v48, %v10289_v40  ;;  %v5835_v40 = vld [vmem:[%s10509_s2 + $0x80] sm:$0xff]  ;;  %v5840_v48 = vld [vmem:[%s10509_s2 + $0xa8] sm:$0xff] }
 0x26f   : > { %v5882_v52 = vmul.f32 %v7948_v24, %v5834_v29  ;;  %v5983_v22 = vmul.f32 %v5881_v34, %v5881_v34 }
 0x270   : > { %v5926_v63 = vadd.f32 %v5925_v25, %v5879_v9  ;;  %v5981_v54 = vmul.f32 %v5879_v9, %v5879_v9  ;;  %v6027_v55 = vadd.f32 %v6026_v60, %v5980_v7  ;;  %v5880_v44 = vmul.f32 %v7949_v31, %v5832_v6 }
 0x271   : > { %v6949_v16 = vpack.c.bf16 %v5882_v52, %v5881_v34  ;;  %v5984_v36 = vmul.f32 %v5882_v52, %v5882_v52 }
 0x272   : > { %v6028_v4 = vadd.f32 %v6027_v55, %v5981_v54  ;;  %v5927_v38 = vadd.f32 %v5926_v63, %v5880_v44  ;;  %v5982_v28 = vmul.f32 %v5880_v44, %v5880_v44  ;;  %v6944_v41 = vpack.c.bf16 %v5880_v44, %v5879_v9  ;;  %v7888_v33 = vpop.f32.mrb[16].mxu0 }
 0x273   : > { %7037 = vst [vmem:[%s10323_s14 + $0x38] sm:$0xff] %v6949_v16   ;;  %v7950_v3 = vadd.f32 %v7888_v33, %v10291_v21  ;;  %v5548_v19 = vpop.f32.mrb[17].mxu0  ;;  %v5838_v21 = vld [vmem:[%s10509_s2 + $0x98] sm:$0xff] }
 0x274   : > { %v5928_v61 = vadd.f32 %v5927_v38, %v5881_v34  ;;  %v6029_v50 = vadd.f32 %v6028_v4, %v5982_v28  ;;  %7036 = vst [vmem:[%s10323_s14 + $0x30] sm:$0xff] %v6944_v41   ;;  %v7951_v46 = vadd.f32 %v5548_v19, %v10293_v45  ;;  %v7889_v12 = vpop.f32.mrb[18].mxu0 }
 0x275   : > { %v7952_v1 = vadd.f32 %v7889_v12, %v10295_v57  ;;  %v5551_v18 = vpop.f32.mrb[19].mxu0  ;;  %v5885_v45 = vmul.f32 %v7950_v3, %v5837_v58  ;;  %v5846_v12 = vld [vmem:[%s10509_s2 + $0xd8] sm:$0xff] }
 0x276   : > { %v6030_v39 = vadd.f32 %v6029_v50, %v5983_v22  ;;  %v5883_v0 = vmul.f32 %v7951_v46, %v5835_v40  ;;  %v5929_v49 = vadd.f32 %v5928_v61, %v5882_v52  ;;  %v7953_v32 = vadd.f32 %v5551_v18, %v10297_v8  ;;  %v5839_v8 = vld [vmem:[%s10509_s2 + $0xa0] sm:$0xff]  ;;  %v5845_v50 = vld [vmem:[%s10509_s2 + $0xd0] sm:$0xff] }
 0x277   : > { %v5886_v17 = vmul.f32 %v7952_v1, %v5838_v21  ;;  %v5987_v62 = vmul.f32 %v5885_v45, %v5885_v45 }
 0x278   : > { %v5930_v15 = vadd.f32 %v5929_v49, %v5883_v0  ;;  %v5985_v23 = vmul.f32 %v5883_v0, %v5883_v0  ;;  %v6031_v56 = vadd.f32 %v6030_v39, %v5984_v36  ;;  %v5884_v51 = vmul.f32 %v7953_v32, %v5836_v30  ;;  %v5844_v30 = vld [vmem:[%s10509_s2 + $0xc8] sm:$0xff] }
 0x279   : > { %v6959_v5 = vpack.c.bf16 %v5886_v17, %v5885_v45  ;;  %v5988_v29 = vmul.f32 %v5886_v17, %v5886_v17 }
 0x27a   : > { %v6032_v57 = vadd.f32 %v6031_v56, %v5985_v23  ;;  %v5931_v26 = vadd.f32 %v5930_v15, %v5884_v51  ;;  %v5986_v53 = vmul.f32 %v5884_v51, %v5884_v51  ;;  %v6954_v2 = vpack.c.bf16 %v5884_v51, %v5883_v0  ;;  %v7892_v37 = vpop.f32.mrb[20].mxu0 }
 0x27b   : > { %7039 = vst [vmem:[%s10323_s14 + $0x48] sm:$0xff] %v6959_v5   ;;  %v7954_v43 = vadd.f32 %v7892_v37, %v10299_v20  ;;  %v5564_v59 = vpop.f32.mrb[21].mxu0  ;;  %v5842_v20 = vld [vmem:[%s10509_s2 + $0xb8] sm:$0xff] }
 0x27c   : > { %v5932_v14 = vadd.f32 %v5931_v26, %v5885_v45  ;;  %v6033_v35 = vadd.f32 %v6032_v57, %v5986_v53  ;;  %7038 = vst [vmem:[%s10323_s14 + $0x40] sm:$0xff] %v6954_v2   ;;  %v7955_v13 = vadd.f32 %v5564_v59, %v10301_v11  ;;  %v7893_v10 = vpop.f32.mrb[22].mxu0 }
 0x27d   : > { %v7956_v7 = vadd.f32 %v7893_v10, %v10303_v47  ;;  %v5567_v24 = vpop.f32.mrb[23].mxu0  ;;  %v5889_v11 = vmul.f32 %v7954_v43, %v5841_v42 }
 0x27e   : > { %v6034_v6 = vadd.f32 %v6033_v35, %v5987_v62  ;;  %v5887_v60 = vmul.f32 %v7955_v13, %v5839_v8  ;;  %v5933_v9 = vadd.f32 %v5932_v14, %v5886_v17  ;;  %v7957_v25 = vadd.f32 %v5567_v24, %v10305_v27  ;;  %v5843_v27 = vld [vmem:[%s10509_s2 + $0xc0] sm:$0xff]  ;;  %v5850_v24 = vld [vmem:[%s10509_s2 + $0xf8] sm:$0xff] }
 0x27f   : > { %v5890_v31 = vmul.f32 %v7956_v7, %v5842_v20  ;;  %v5991_v40 = vmul.f32 %v5889_v11, %v5889_v11  ;;  %v5847_v14 = vld [vmem:[%s10509_s2 + $0xe0] sm:$0xff]  ;;  %v5849_v20 = vld [vmem:[%s10509_s2 + $0xf0] sm:$0xff] }
 0x280   : > { %v5934_v34 = vadd.f32 %v5933_v9, %v5887_v60  ;;  %v5989_v52 = vmul.f32 %v5887_v60, %v5887_v60  ;;  %v6035_v63 = vadd.f32 %v6034_v6, %v5988_v29  ;;  %v5888_v54 = vmul.f32 %v7957_v25, %v5840_v48  ;;  %v5848_v25 = vld [vmem:[%s10509_s2 + $0xe8] sm:$0xff] }
 0x281   : > { %v6969_v55 = vpack.c.bf16 %v5890_v31, %v5889_v11  ;;  %v7640_v47 = vpop.f32.mrb[24].mxu1  ;;  %v5992_v36 = vmul.f32 %v5890_v31, %v5890_v31 }
 0x282   : > { %v6036_v44 = vadd.f32 %v6035_v63, %v5989_v52  ;;  %v5935_v16 = vadd.f32 %v5934_v34, %v5888_v54  ;;  %v5990_v4 = vmul.f32 %v5888_v54, %v5888_v54  ;;  %v6964_v38 = vpack.c.bf16 %v5888_v54, %v5887_v60  ;;  %v7896_v28 = vpop.f32.mrb[24].mxu0  ;;  %v3265_v41 = vpop.f32.mrb[25].mxu1 }
 0x283   : > { %7041 = vst [vmem:[%s10323_s14 + $0x58] sm:$0xff] %v6969_v55   ;;  %v7958_v33 = vadd.f32 %v7896_v28, %v7640_v47  ;;  %v5580_v3 = vpop.f32.mrb[25].mxu0  ;;  %v7641_v19 = vpop.f32.mrb[26].mxu1 }
 0x284   : > { %v5936_v22 = vadd.f32 %v5935_v16, %v5889_v11  ;;  %v6037_v61 = vadd.f32 %v6036_v44, %v5990_v4  ;;  %7040 = vst [vmem:[%s10323_s14 + $0x50] sm:$0xff] %v6964_v38   ;;  %v7959_v58 = vadd.f32 %v5580_v3, %v3265_v41  ;;  %v7897_v46 = vpop.f32.mrb[26].mxu0  ;;  %v3268_v21 = vpop.f32.mrb[27].mxu1 }
 0x285   : > { %v7960_v1 = vadd.f32 %v7897_v46, %v7641_v19  ;;  %v5583_v18 = vpop.f32.mrb[27].mxu0  ;;  %v5893_v45 = vmul.f32 %v7958_v33, %v5845_v50 }
 0x286   : > { %v6038_v39 = vadd.f32 %v6037_v61, %v5991_v40  ;;  %v5891_v0 = vmul.f32 %v7959_v58, %v5843_v27  ;;  %v5937_v49 = vadd.f32 %v5936_v22, %v5890_v31  ;;  %v7961_v32 = vadd.f32 %v5583_v18, %v3268_v21  ;;  %v5851_v61 = vld [vmem:[%s10509_s2 + $0x100] sm:$0xff]  ;;  %v5853_v21 = vld [vmem:[%s10509_s2 + $0x110] sm:$0xff]  ;;  %v5854_v18 = vld [vmem:[%s10509_s2 + $0x118] sm:$0xff] }
 0x287   : > { %v5894_v17 = vmul.f32 %v7960_v1, %v5846_v12  ;;  %v5995_v42 = vmul.f32 %v5893_v45, %v5893_v45 }
 0x288   : > { %v5938_v15 = vadd.f32 %v5937_v49, %v5891_v0  ;;  %v5993_v23 = vmul.f32 %v5891_v0, %v5891_v0  ;;  %v6039_v56 = vadd.f32 %v6038_v39, %v5992_v36  ;;  %v5892_v51 = vmul.f32 %v7961_v32, %v5844_v30  ;;  %v5852_v32 = vld [vmem:[%s10509_s2 + $0x108] sm:$0xff] }
 0x289   : > { %v6979_v5 = vpack.c.bf16 %v5894_v17, %v5893_v45  ;;  %v7644_v57 = vpop.f32.mrb[28].mxu1  ;;  %v5996_v6 = vmul.f32 %v5894_v17, %v5894_v17 }
 0x28a   : > { %v6040_v26 = vadd.f32 %v6039_v56, %v5993_v23  ;;  %v5939_v53 = vadd.f32 %v5938_v15, %v5892_v51  ;;  %v5994_v2 = vmul.f32 %v5892_v51, %v5892_v51  ;;  %v6974_v37 = vpack.c.bf16 %v5892_v51, %v5891_v0  ;;  %v7900_v43 = vpop.f32.mrb[28].mxu0  ;;  %v3281_v59 = vpop.f32.mrb[29].mxu1 }
 0x28b   : > { %7043 = vst [vmem:[%s10323_s14 + $0x68] sm:$0xff] %v6979_v5   ;;  %v7962_v8 = vadd.f32 %v7900_v43, %v7644_v57  ;;  %v5596_v62 = vpop.f32.mrb[29].mxu0  ;;  %v7645_v35 = vpop.f32.mrb[30].mxu1 }
 0x28c   : > { %v5940_v13 = vadd.f32 %v5939_v53, %v5893_v45  ;;  %v6041_v10 = vadd.f32 %v6040_v26, %v5994_v2  ;;  %7042 = vst [vmem:[%s10323_s14 + $0x60] sm:$0xff] %v6974_v37   ;;  %v7963_v29 = vadd.f32 %v5596_v62, %v3281_v59  ;;  %v7901_v7 = vpop.f32.mrb[30].mxu0  ;;  %v3284_v48 = vpop.f32.mrb[31].mxu1 }
 0x28d   : > { %v7964_v60 = vadd.f32 %v7901_v7, %v7645_v35  ;;  %v5599_v9 = vpop.f32.mrb[31].mxu0  ;;  %v5897_v63 = vmul.f32 %v7962_v8, %v5849_v20 }
 0x28e   : > { %v6042_v11 = vadd.f32 %v6041_v10, %v5995_v42  ;;  %v5895_v31 = vmul.f32 %v7963_v29, %v5847_v14  ;;  %v5941_v34 = vadd.f32 %v5940_v13, %v5894_v17  ;;  %v7965_v52 = vadd.f32 %v5599_v9, %v3284_v48  ;;  %v5855_v10 = vld [vmem:[%s10509_s2 + $0x120] sm:$0xff]  ;;  %v5857_v48 = vld [vmem:[%s10509_s2 + $0x130] sm:$0xff]  ;;  %v5858_v9 = vld [vmem:[%s10509_s2 + $0x138] sm:$0xff] }
 0x28f   : > { %v5898_v54 = vmul.f32 %v7964_v60, %v5850_v24  ;;  %v5999_v58 = vmul.f32 %v5897_v63, %v5897_v63 }
 0x290   : > { %v5942_v55 = vadd.f32 %v5941_v34, %v5895_v31  ;;  %v5997_v47 = vmul.f32 %v5895_v31, %v5895_v31  ;;  %v6043_v44 = vadd.f32 %v6042_v11, %v5996_v6  ;;  %v5896_v16 = vmul.f32 %v7965_v52, %v5848_v25  ;;  %v5856_v52 = vld [vmem:[%s10509_s2 + $0x128] sm:$0xff] }
 0x291   : > { %v6989_v4 = vpack.c.bf16 %v5898_v54, %v5897_v63  ;;  %v7648_v38 = vpop.f32.mrb[32].mxu1  ;;  %v6000_v39 = vmul.f32 %v5898_v54, %v5898_v54 }
 0x292   : > { %v6044_v28 = vadd.f32 %v6043_v44, %v5997_v47  ;;  %v5943_v41 = vadd.f32 %v5942_v55, %v5896_v16  ;;  %v5998_v33 = vmul.f32 %v5896_v16, %v5896_v16  ;;  %v6984_v3 = vpack.c.bf16 %v5896_v16, %v5895_v31  ;;  %v7904_v27 = vpop.f32.mrb[32].mxu0  ;;  %v3297_v19 = vpop.f32.mrb[33].mxu1 }
 0x293   : > { %7045 = vst [vmem:[%s10323_s14 + $0x78] sm:$0xff] %v6989_v4   ;;  %v7966_v40 = vadd.f32 %v7904_v27, %v7648_v38  ;;  %v5612_v22 = vpop.f32.mrb[33].mxu0  ;;  %v7649_v50 = vpop.f32.mrb[34].mxu1 }
 0x294   : > { %v5944_v46 = vadd.f32 %v5943_v41, %v5897_v63  ;;  %v6045_v12 = vadd.f32 %v6044_v28, %v5998_v33  ;;  %7044 = vst [vmem:[%s10323_s14 + $0x70] sm:$0xff] %v6984_v3   ;;  %v7967_v36 = vadd.f32 %v5612_v22, %v3297_v19  ;;  %v7905_v1 = vpop.f32.mrb[34].mxu0  ;;  %v3300_v30 = vpop.f32.mrb[35].mxu1 }
 0x295   : > { %v7968_v0 = vadd.f32 %v7905_v1, %v7649_v50  ;;  %v5615_v49 = vpop.f32.mrb[35].mxu0  ;;  %v5901_v56 = vmul.f32 %v7966_v40, %v5853_v21 }
 0x296   : > { %v6046_v45 = vadd.f32 %v6045_v12, %v5999_v58  ;;  %v5899_v17 = vmul.f32 %v7967_v36, %v5851_v61  ;;  %v5945_v15 = vadd.f32 %v5944_v46, %v5898_v54  ;;  %v7969_v23 = vadd.f32 %v5615_v49, %v3300_v30  ;;  %v5859_v12 = vld [vmem:[%s10509_s2 + $0x140] sm:$0xff]  ;;  %v5861_v30 = vld [vmem:[%s10509_s2 + $0x150] sm:$0xff]  ;;  %v5862_v49 = vld [vmem:[%s10509_s2 + $0x158] sm:$0xff] }
 0x297   : > { %v5902_v51 = vmul.f32 %v7968_v0, %v5854_v18  ;;  %v6003_v29 = vmul.f32 %v5901_v56, %v5901_v56 }
 0x298   : > { %v5946_v5 = vadd.f32 %v5945_v15, %v5899_v17  ;;  %v6001_v57 = vmul.f32 %v5899_v17, %v5899_v17  ;;  %v6047_v26 = vadd.f32 %v6046_v45, %v6000_v39  ;;  %v5900_v53 = vmul.f32 %v7969_v23, %v5852_v32  ;;  %v5860_v23 = vld [vmem:[%s10509_s2 + $0x148] sm:$0xff] }
 0x299   : > { %v6999_v2 = vpack.c.bf16 %v5902_v51, %v5901_v56  ;;  %v7652_v37 = vpop.f32.mrb[36].mxu1  ;;  %v6004_v11 = vmul.f32 %v5902_v51, %v5902_v51 }
 0x29a   : > { %v6048_v43 = vadd.f32 %v6047_v26, %v6001_v57  ;;  %v5947_v59 = vadd.f32 %v5946_v5, %v5900_v53  ;;  %v6002_v8 = vmul.f32 %v5900_v53, %v5900_v53  ;;  %v6994_v62 = vpack.c.bf16 %v5900_v53, %v5899_v17  ;;  %v7908_v14 = vpop.f32.mrb[36].mxu0  ;;  %v3313_v35 = vpop.f32.mrb[37].mxu1 }
 0x29b   : > { %7047 = vst [vmem:[%s10323_s14 + $0x88] sm:$0xff] %v6999_v2   ;;  %v7970_v42 = vadd.f32 %v7908_v14, %v7652_v37  ;;  %v5628_v13 = vpop.f32.mrb[37].mxu0  ;;  %v7653_v20 = vpop.f32.mrb[38].mxu1 }
 0x29c   : > { %v5948_v7 = vadd.f32 %v5947_v59, %v5901_v56  ;;  %v6049_v24 = vadd.f32 %v6048_v43, %v6002_v8  ;;  %7046 = vst [vmem:[%s10323_s14 + $0x80] sm:$0xff] %v6994_v62   ;;  %v7971_v6 = vadd.f32 %v5628_v13, %v3313_v35  ;;  %v7909_v60 = vpop.f32.mrb[38].mxu0  ;;  %v3316_v25 = vpop.f32.mrb[39].mxu1 }
 0x29d   : > { %v7972_v31 = vadd.f32 %v7909_v60, %v7653_v20  ;;  %v5631_v34 = vpop.f32.mrb[39].mxu0  ;;  %v5905_v44 = vmul.f32 %v7970_v42, %v5857_v48 }
 0x29e   : > { %v6050_v63 = vadd.f32 %v6049_v24, %v6003_v29  ;;  %v5903_v54 = vmul.f32 %v7971_v6, %v5855_v10  ;;  %v5949_v55 = vadd.f32 %v5948_v7, %v5902_v51  ;;  %v7973_v47 = vadd.f32 %v5631_v34, %v3316_v25  ;;  %v5863_v24 = vld [vmem:[%s10509_s2 + $0x160] sm:$0xff]  ;;  %v5865_v25 = vld [vmem:[%s10509_s2 + $0x170] sm:$0xff]  ;;  %v5866_v34 = vld [vmem:[%s10509_s2 + $0x178] sm:$0xff] }
 0x29f   : > { %v5906_v16 = vmul.f32 %v7972_v31, %v5858_v9  ;;  %v6007_v36 = vmul.f32 %v5905_v44, %v5905_v44 }
 0x2a0   : > { %v5950_v4 = vadd.f32 %v5949_v55, %v5903_v54  ;;  %v6005_v38 = vmul.f32 %v5903_v54, %v5903_v54  ;;  %v6051_v28 = vadd.f32 %v6050_v63, %v6004_v11  ;;  %v5904_v41 = vmul.f32 %v7973_v47, %v5856_v52  ;;  %v5864_v47 = vld [vmem:[%s10509_s2 + $0x168] sm:$0xff] }
 0x2a1   : > { %v7009_v33 = vpack.c.bf16 %v5906_v16, %v5905_v44  ;;  %v7656_v3 = vpop.f32.mrb[40].mxu1  ;;  %v6008_v45 = vmul.f32 %v5906_v16, %v5906_v16 }
 0x2a2   : > { %v6052_v27 = vadd.f32 %v6051_v28, %v6005_v38  ;;  %v5951_v19 = vadd.f32 %v5950_v4, %v5904_v41  ;;  %v6006_v40 = vmul.f32 %v5904_v41, %v5904_v41  ;;  %v7004_v22 = vpack.c.bf16 %v5904_v41, %v5903_v54  ;;  %v7912_v61 = vpop.f32.mrb[40].mxu0  ;;  %v3329_v50 = vpop.f32.mrb[41].mxu1 }
 0x2a3   : > { %7049 = vst [vmem:[%s10323_s14 + $0x98] sm:$0xff] %v7009_v33   ;;  %v7974_v58 = vadd.f32 %v7912_v61, %v7656_v3  ;;  %v5644_v46 = vpop.f32.mrb[41].mxu0  ;;  %v7657_v21 = vpop.f32.mrb[42].mxu1 }
 0x2a4   : > { %v5952_v1 = vadd.f32 %v5951_v19, %v5905_v44  ;;  %v6053_v18 = vadd.f32 %v6052_v27, %v6006_v40  ;;  %7048 = vst [vmem:[%s10323_s14 + $0x90] sm:$0xff] %v7004_v22   ;;  %v7975_v39 = vadd.f32 %v5644_v46, %v3329_v50  ;;  %v7913_v0 = vpop.f32.mrb[42].mxu0  ;;  %v3332_v32 = vpop.f32.mrb[43].mxu1 }
 0x2a5   : > { %v7976_v17 = vadd.f32 %v7913_v0, %v7657_v21  ;;  %v5647_v15 = vpop.f32.mrb[43].mxu0  ;;  %v5909_v26 = vmul.f32 %v7974_v58, %v5861_v30 }
 0x2a6   : > { %v6054_v56 = vadd.f32 %v6053_v18, %v6007_v36  ;;  %v5907_v51 = vmul.f32 %v7975_v39, %v5859_v12  ;;  %v5953_v5 = vadd.f32 %v5952_v1, %v5906_v16  ;;  %v7977_v57 = vadd.f32 %v5647_v15, %v3332_v32 }
 0x2a7   : > { %v5910_v53 = vmul.f32 %v7976_v17, %v5862_v49  ;;  %v6011_v6 = vmul.f32 %v5909_v26, %v5909_v26 }
 0x2a8   : > { %v5954_v2 = vadd.f32 %v5953_v5, %v5907_v51  ;;  %v6009_v37 = vmul.f32 %v5907_v51, %v5907_v51  ;;  %v6055_v43 = vadd.f32 %v6054_v56, %v6008_v45  ;;  %v5908_v59 = vmul.f32 %v7977_v57, %v5860_v23 }
 0x2a9   : > { %v7019_v8 = vpack.c.bf16 %v5910_v53, %v5909_v26  ;;  %v7660_v62 = vpop.f32.mrb[44].mxu1  ;;  %v6012_v63 = vmul.f32 %v5910_v53, %v5910_v53 }
 0x2aa   : > { %v6056_v14 = vadd.f32 %v6055_v43, %v6009_v37  ;;  %v5955_v35 = vadd.f32 %v5954_v2, %v5908_v59  ;;  %v6010_v42 = vmul.f32 %v5908_v59, %v5908_v59  ;;  %v7014_v13 = vpack.c.bf16 %v5908_v59, %v5907_v51  ;;  %v7916_v10 = vpop.f32.mrb[44].mxu0  ;;  %v3345_v20 = vpop.f32.mrb[45].mxu1 }
 0x2ab   : > { %7051 = vst [vmem:[%s10323_s14 + $0xa8] sm:$0xff] %v7019_v8   ;;  %v7978_v29 = vadd.f32 %v7916_v10, %v7660_v62  ;;  %v5660_v7 = vpop.f32.mrb[45].mxu0  ;;  %v7661_v48 = vpop.f32.mrb[46].mxu1 }
 0x2ac   : > { %v5956_v60 = vadd.f32 %v5955_v35, %v5909_v26  ;;  %v6057_v9 = vadd.f32 %v6056_v14, %v6010_v42  ;;  %7050 = vst [vmem:[%s10323_s14 + $0xa0] sm:$0xff] %v7014_v13   ;;  %v7979_v11 = vadd.f32 %v5660_v7, %v3345_v20  ;;  %v7917_v31 = vpop.f32.mrb[46].mxu0  ;;  %v3348_v52 = vpop.f32.mrb[47].mxu1 }
 0x2ad   : > { %v7980_v54 = vadd.f32 %v7917_v31, %v7661_v48  ;;  %v5663_v55 = vpop.f32.mrb[47].mxu0  ;;  %v5913_v28 = vmul.f32 %v7978_v29, %v5865_v25 }
 0x2ae   : > { %v6058_v44 = vadd.f32 %v6057_v9, %v6011_v6  ;;  %v5911_v16 = vmul.f32 %v7979_v11, %v5863_v24  ;;  %v5957_v4 = vadd.f32 %v5956_v60, %v5910_v53  ;;  %v7981_v38 = vadd.f32 %v5663_v55, %v3348_v52 }
 0x2af   : > { %v5914_v41 = vmul.f32 %v7980_v54, %v5866_v34  ;;  %v6015_v46 = vmul.f32 %v5913_v28, %v5913_v28 }
 0x2b0   : > { %v5958_v33 = vadd.f32 %v5957_v4, %v5911_v16  ;;  %v6013_v3 = vmul.f32 %v5911_v16, %v5911_v16  ;;  %v6059_v27 = vadd.f32 %v6058_v44, %v6012_v63  ;;  %v5912_v19 = vmul.f32 %v7981_v38, %v5864_v47 }
 0x2b1   : > { %v7029_v40 = vpack.c.bf16 %v5914_v41, %v5913_v28  ;;  %v6016_v36 = vmul.f32 %v5914_v41, %v5914_v41 }
 0x2b2   : > { %v6060_v22 = vadd.f32 %v6059_v27, %v6013_v3  ;;  %v5959_v61 = vadd.f32 %v5958_v33, %v5912_v19  ;;  %v6014_v50 = vmul.f32 %v5912_v19, %v5912_v19  ;;  %v7024_v58 = vpack.c.bf16 %v5912_v19, %v5911_v16 }
 0x2b3   : > { %7053 = vst [vmem:[%s10323_s14 + $0xb8] sm:$0xff] %v7029_v40  }
 0x2b4   : > { %v5960_v12 = vadd.f32 %v5959_v61, %v5913_v28  ;;  %v6061_v21 = vadd.f32 %v6060_v22, %v6014_v50  ;;  %7052 = vst [vmem:[%s10323_s14 + $0xb0] sm:$0xff] %v7024_v58  }
 0x2b6   : > { %v5961_v1 = vadd.f32 %v5960_v12, %v5914_v41  ;;  %v6062_v18 = vadd.f32 %v6061_v21, %v6015_v46 }
 0x2b8   : > { %v5962_v30 = vrot.slane %v5961_v1, 4  ;;  %v6063_v39 = vadd.f32 %v6062_v18, %v6016_v36 }
 0x2ba   : > { %v5963_v0 = vadd.f32 %v5962_v30, %v5961_v1  ;;  %v6064_v49 = vrot.slane %v6063_v39, 4 }
 0x2bc   : > { %v5964_v32 = vrot.slane %v5963_v0, 2  ;;  %v6065_v45 = vadd.f32 %v6064_v49, %v6063_v39 }
 0x2be   : > { %v5965_v17 = vadd.f32 %v5964_v32, %v5963_v0  ;;  %v6066_v15 = vrot.slane %v6065_v45, 2 }
 0x2c0   : > { %v5966_v23 = vrot.slane %v5965_v17, 1  ;;  %v6067_v56 = vadd.f32 %v6066_v15, %v6065_v45 }
 0x2c2   : > { %v5967_v51 = vadd.f32 %v5966_v23, %v5965_v17  ;;  %v6068_v5 = vrot.slane %v6067_v56, 1 }
 0x2c4   : > { %5968 = vst [vmem:[%s241_s21] sm:$0xff] %v5967_v51  ;;  %v6069_v57 = vadd.f32 %v6068_v5, %v6067_v56 }
 0x2c6   : > { %6070 = vst [vmem:[%s245_s23] sm:$0xff] %v6069_v57 }
 0x2c7 PF: > { %s16_s18 = sadd.s32 1, %s8602_s18  }
 0x2c8   : > { %p13_p4 = scmp.ge.s32.totalorder %s16_s18, 4  }
 0x2ca   :  { %15 = sbr.rel (!%p13_p4) target bundleno = 1 (0x1), region = 94 }

</bundles_post_ra>
